<compile_context>
chip_gen: v5e
topology: v5e:2x2
jax: 0.10.0
libtpu: 0.0.40
codegen_flags: <defaults>
</compile_context>

<pallas_src>
import jax
import jax.numpy as jnp
from jax import lax
from jax.experimental import pallas as pl
from jax.experimental.pallas import tpu as pltpu


# ----------------------------------------------------------------------------
# Kernel 1: fused bidirectional LSTM layer
#   x_ref   : (L*B, Din)  time-major input rows
#   w_in    : (Din, 8H)   fused fwd+bwd input-projection weight (interleaved)
#   b_in    : (1, 8H)     fused bias (b_ih + b_hh, both directions)
#   w_rec   : (2H, 8H)    block-diagonal recurrent weight (interleaved cols)
#   out_ref : (L, B, 2H)  [..., :H] = forward hidden, [..., H:] = backward
# ----------------------------------------------------------------------------
def _bilstm_kernel(x_ref, w_in_ref, b_in_ref, w_rec_ref, out_ref):
    seq, bsz, hid2 = out_ref.shape
    hid = hid2 // 2
    g8 = 4 * hid2

    # (a) input projection for ALL timesteps in one MXU matmul.
    xp = jnp.dot(x_ref[...], w_in_ref[...],
                 preferred_element_type=jnp.float32) + b_in_ref[...]   # (L*B, 8H)

    w_rec = w_rec_ref[...]                                             # (2H, 8H)

    # interleaved layout: a column belongs to the forward direction iff
    # (col mod 2H) < H.  Hoisted out of the loop.
    col = lax.broadcasted_iota(jnp.int32, (bsz, g8), 1)
    fwd_cols = (col % hid2) < hid

    h = jnp.zeros((bsz, hid2), jnp.float32)   # [h_fwd | h_bwd]
    c = jnp.zeros((bsz, hid2), jnp.float32)   # [c_fwd | c_bwd]

    # (b) fully-unrolled time loop (seq is static & small): forward direction
    # processes position t, backward processes seq-1-t, both through ONE
    # block-diagonal recurrent matmul per step.
    for t in range(seq):
        tb = seq - 1 - t
        xin = jnp.where(fwd_cols,
                        xp[t * bsz:(t + 1) * bsz, :],
                        xp[tb * bsz:(tb + 1) * bsz, :])                # (B, 8H)
        gates = xin + jnp.dot(h, w_rec, preferred_element_type=jnp.float32)

        # whole-tile EUP nonlinearities, then 2H-wide (state-aligned) slices.
        sg = jax.nn.sigmoid(gates)
        tg = jnp.tanh(gates)
        i_g = sg[:, 0 * hid2:1 * hid2]
        f_g = sg[:, 1 * hid2:2 * hid2]
        g_g = tg[:, 2 * hid2:3 * hid2]
        o_g = sg[:, 3 * hid2:4 * hid2]

        c = f_g * c + i_g * g_g
        h = o_g * jnp.tanh(c)

        # (c) single combined output block, written in place (VMEM stores;
        # HBM writeback happens once, dense, at grid-step end).
        out_ref[t, :, 0:hid] = h[:, 0:hid]
        out_ref[tb, :, hid:hid2] = h[:, hid:hid2]


def _make_bilstm_weights(lp):
    """Build fused/interleaved weights from PyTorch-layout LSTM parameters."""
    hid = lp["w_hh_f"].shape[1]
    din = lp["w_ih_f"].shape[1]

    # input projection: columns [i_f, i_b, f_f, f_b, g_f, g_b, o_f, o_b]
    wif = lp["w_ih_f"].reshape(4, hid, din)
    wib = lp["w_ih_b"].reshape(4, hid, din)
    w_in = jnp.stack([wif, wib], axis=1).reshape(8 * hid, din).T        # (Din, 8H)

    bf = (lp["b_ih_f"] + lp["b_hh_f"]).reshape(4, hid)   # fold b_hh into bias
    bb = (lp["b_ih_b"] + lp["b_hh_b"]).reshape(4, hid)
    b_in = jnp.stack([bf, bb], axis=1).reshape(1, 8 * hid)              # (1, 8H)

    # block-diagonal recurrent weight: rows 0:H (h_fwd) feed fwd columns,
    # rows H:2H (h_bwd) feed bwd columns.
    whf = lp["w_hh_f"].reshape(4, hid, hid)
    whb = lp["w_hh_b"].reshape(4, hid, hid)
    z = jnp.zeros((hid, hid), jnp.float32)
    blocks = []
    for k in range(4):
        top = jnp.concatenate([whf[k].T, z], axis=1)                    # (H, 2H)
        bot = jnp.concatenate([z, whb[k].T], axis=1)                    # (H, 2H)
        blocks.append(jnp.concatenate([top, bot], axis=0))              # (2H, 2H)
    w_rec = jnp.concatenate(blocks, axis=1)                             # (2H, 8H)
    return w_in, b_in, w_rec


def bilstm(x, lp):
    """x: (B, L, Din) -> (B, L, 2H). Full-sequence bidirectional LSTM."""
    bsz, seq, din = x.shape
    hid = lp["w_hh_f"].shape[1]
    w_in, b_in, w_rec = _make_bilstm_weights(lp)

    x_tm = jnp.swapaxes(x, 0, 1).reshape(seq * bsz, din)   # time-major rows

    # TODO(synk): on v7x a leading "parallel" batch-tile grid axis would let
    # the second TensorCore run half the batch rows; kept grid=(1,) here to
    # preserve M=B in the recurrent matmul on single-core v5e/v6e.
    out = pl.pallas_call(
        _bilstm_kernel,
        out_shape=jax.ShapeDtypeStruct((seq, bsz, 2 * hid), jnp.float32),
        grid=(1,),
        in_specs=[
            pl.BlockSpec((seq * bsz, din), lambda i: (0, 0)),
            pl.BlockSpec((din, 8 * hid), lambda i: (0, 0)),
            pl.BlockSpec((1, 8 * hid), lambda i: (0, 0)),
            pl.BlockSpec((2 * hid, 8 * hid), lambda i: (0, 0)),
        ],
        out_specs=pl.BlockSpec((seq, bsz, 2 * hid), lambda i: (0, 0, 0)),
    )(x_tm, w_in, b_in, w_rec)
    return jnp.swapaxes(out, 0, 1)                           # (B, L, 2H)


# ----------------------------------------------------------------------------
# Kernel 2: BiDAF attention-flow layer, one batch row per grid step
# ----------------------------------------------------------------------------
def _attn_flow_kernel(c_ref, q_ref, wc_ref, wq_ref, wcq_ref, g_ref):
    c = c_ref[...]            # (C, D)
    q = q_ref[...]            # (Q, D)
    wc = wc_ref[...]          # (1, D)
    wq = wq_ref[...]
    wcq = wcq_ref[...]
    c_len = c.shape[0]
    q_len = q.shape[0]

    # s[i,j] = wc.c_i + wq.q_j + wcq.(c_i*q_j); fold the rank-1 terms into a
    # single MXU matmul with augmented K = D+2.  Scalar biases are dropped:
    # constant shift, cancels in both softmaxes (s is never exposed raw).
    c_aug = jnp.concatenate(
        [c * wcq,
         jnp.sum(c * wc, axis=-1, keepdims=True),
         jnp.ones((c_len, 1), jnp.float32)], axis=-1)                 # (C, D+2)
    q_aug = jnp.concatenate(
        [q,
         jnp.ones((q_len, 1), jnp.float32),
         jnp.sum(q * wq, axis=-1, keepdims=True)], axis=-1)           # (Q, D+2)
    s = lax.dot_general(c_aug, q_aug, (((1,), (1,)), ((), ())),
                        preferred_element_type=jnp.float32)           # (C, Q)

    # context-to-query attention: softmax over Q
    row_max = jnp.max(s, axis=1, keepdims=True)                       # (C, 1)
    e = jnp.exp(s - row_max)
    a = e / jnp.sum(e, axis=1, keepdims=True)                         # (C, Q)
    c2q = jnp.dot(a, q, preferred_element_type=jnp.float32)           # (C, D)

    # query-to-context attention: softmax over C of the per-row max
    col_max = jnp.max(row_max, axis=0, keepdims=True)                 # (1, 1)
    be = jnp.exp(row_max - col_max)                                   # (C, 1)
    b_att = be / jnp.sum(be, axis=0, keepdims=True)                   # (C, 1)
    q2c = jnp.sum(b_att * c, axis=0, keepdims=True)                   # (1, D)

    g_ref[...] = jnp.concatenate([c, c2q, c * c2q, c * q2c], axis=-1)  # (C, 4D)


def attention_flow(c, q, w_c, w_q, w_cq):
    """c: (B, c_len, d2), q: (B, q_len, d2) -> g: (B, c_len, 4*d2)."""
    bsz, c_len, d2 = c.shape
    q_len = q.shape[1]
    return pl.pallas_call(
        _attn_flow_kernel,
        out_shape=jax.ShapeDtypeStruct((bsz, c_len, 4 * d2), jnp.float32),
        grid=(bsz,),
        in_specs=[
            pl.BlockSpec((None, c_len, d2), lambda b: (b, 0, 0)),
            pl.BlockSpec((None, q_len, d2), lambda b: (b, 0, 0)),
            pl.BlockSpec((1, d2), lambda b: (0, 0)),
            pl.BlockSpec((1, d2), lambda b: (0, 0)),
            pl.BlockSpec((1, d2), lambda b: (0, 0)),
        ],
        out_specs=pl.BlockSpec((None, c_len, 4 * d2), lambda b: (b, 0, 0)),
        compiler_params=pltpu.CompilerParams(dimension_semantics=("parallel",)),
    )(c, q, w_c.reshape(1, d2), w_q.reshape(1, d2), w_cq.reshape(1, d2))


# ----------------------------------------------------------------------------
# Kernel 3: fused output heads (p1/p2 projections + mask + softmax),
#           one batch row per grid step, both heads in one pass.
# ----------------------------------------------------------------------------
def _output_kernel(g_ref, m_ref, m2_ref, tok_ref, wg_ref, wm_ref, out_ref):
    g = g_ref[...]            # (C, 8H)
    m = m_ref[...]            # (C, 2H)
    m2 = m2_ref[...]          # (C, 2H)
    tok = tok_ref[...]        # (1, C) int32
    wg = wg_ref[...]          # (2, 8H)  rows = [p1_wg, p2_wg]
    wm = wm_ref[...]          # (2, 4H)  rows = [p1_wm|0, 0|p2_wm]

    mm = jnp.concatenate([m, m2], axis=-1)                            # (C, 4H)
    # both head logits produced lane-dense as (2, C); scalar head biases are
    # dropped (softmax-invariant constants per row).
    logits = (lax.dot_general(wg, g, (((1,), (1,)), ((), ())),
                              preferred_element_type=jnp.float32)
              + lax.dot_general(wm, mm, (((1,), (1,)), ((), ())),
                                preferred_element_type=jnp.float32))  # (2, C)

    neg = jnp.float32(-1e30)   # finite fill: NaN-safe even for all-pad rows
    logits = jnp.where(tok == 0, neg, logits)

    lmax = jnp.max(logits, axis=1, keepdims=True)
    e = jnp.exp(logits - lmax)
    out_ref[...] = e / jnp.sum(e, axis=1, keepdims=True)              # (2, C)


def output_heads(g, m, m2, p_tokens, w1g, w1m, w2g, w2m):
    bsz, c_len, h8 = g.shape
    h2 = m.shape[2]
    wg = jnp.concatenate([w1g, w2g], axis=0)                          # (2, 8H)
    zer = jnp.zeros_like(w1m)
    wm = jnp.concatenate([jnp.concatenate([w1m, zer], axis=1),
                          jnp.concatenate([zer, w2m], axis=1)], axis=0)  # (2, 4H)
    tok = p_tokens.astype(jnp.int32).reshape(bsz, 1, c_len)

    out = pl.pallas_call(
        _output_kernel,
        out_shape=jax.ShapeDtypeStruct((bsz, 2, c_len), jnp.float32),
        grid=(bsz,),
        in_specs=[
            pl.BlockSpec((None, c_len, h8), lambda b: (b, 0, 0)),
            pl.BlockSpec((None, c_len, h2), lambda b: (b, 0, 0)),
            pl.BlockSpec((None, c_len, h2), lambda b: (b, 0, 0)),
            pl.BlockSpec((None, 1, c_len), lambda b: (b, 0, 0)),
            pl.BlockSpec((2, h8), lambda b: (0, 0)),
            pl.BlockSpec((2, 2 * h2), lambda b: (0, 0)),
        ],
        out_specs=pl.BlockSpec((None, 2, c_len), lambda b: (b, 0, 0)),
        compiler_params=pltpu.CompilerParams(dimension_semantics=("parallel",)),
    )(g, m, m2, tok, wg, wm)
    return out[:, 0, :], out[:, 1, :]


# ----------------------------------------------------------------------------
# Full BiDAF forward
# ----------------------------------------------------------------------------
def bidaf_forward(params, p_tokens, q_tokens):
    # TODO(synk): the reference drops batch rows whose q sums to 0 (dynamic
    # shapes); inputs here are constructed so every q row is non-empty.
    q_emb = params["emb"][q_tokens]
    p_emb = params["emb"][p_tokens]

    # TODO(synk): reference uses a length-aware packed-sequence LSTM wrapper
    # and dropout; here a full-sequence bidirectional LSTM is used and dropout
    # is disabled (deterministic eval).
    q_out = bilstm(q_emb, params["q_encode"])            # (B, q_len, 2H)
    p_out = bilstm(p_emb, params["p_encode"])            # (B, p_len, 2H)

    g = attention_flow(p_out, q_out,
                       params["att_w_c"], params["att_w_q"], params["att_w_cq"])

    m1 = bilstm(g, params["modeling1"])                  # (B, p_len, 2H)
    m = bilstm(m1, params["modeling2"])                  # (B, p_len, 2H)
    m2 = bilstm(m, params["output_lstm"])                # (B, p_len, 2H)

    p1, p2 = output_heads(g, m, m2, p_tokens,
                          params["p1_wg"], params["p1_wm"],
                          params["p2_wg"], params["p2_wm"])
    return p1, p2


# ----------------------------------------------------------------------------
# Deterministic parameter construction
# ----------------------------------------------------------------------------
def _init_bilstm(key, din, hid, scale=0.1):
    ks = jax.random.split(key, 8)
    return dict(
        w_ih_f=jax.random.normal(ks[0], (4 * hid, din), jnp.float32) * scale,
        w_hh_f=jax.random.normal(ks[1], (4 * hid, hid), jnp.float32) * scale,
        b_ih_f=jax.random.normal(ks[2], (4 * hid,), jnp.float32) * scale,
        b_hh_f=jax.random.normal(ks[3], (4 * hid,), jnp.float32) * scale,
        w_ih_b=jax.random.normal(ks[4], (4 * hid, din), jnp.float32) * scale,
        w_hh_b=jax.random.normal(ks[5], (4 * hid, hid), jnp.float32) * scale,
        b_ih_b=jax.random.normal(ks[6], (4 * hid,), jnp.float32) * scale,
        b_hh_b=jax.random.normal(ks[7], (4 * hid,), jnp.float32) * scale,
    )


def _init_linear(key, din, dout, scale=0.1):
    k1, k2 = jax.random.split(key)
    w = jax.random.normal(k1, (dout, din), jnp.float32) * scale
    b = jax.random.normal(k2, (dout,), jnp.float32) * scale
    return w, b


def make_params(key, vocab_size, embed_dim, hidden):
    ks = jax.random.split(key, 16)
    h2 = 2 * hidden
    h8 = 8 * hidden
    att_wc, att_bc = _init_linear(ks[1], h2, 1)
    att_wq, att_bq = _init_linear(ks[2], h2, 1)
    att_wcq, att_bcq = _init_linear(ks[3], h2, 1)
    p1_wg, p1_bg = _init_linear(ks[8], h8, 1)
    p1_wm, p1_bm = _init_linear(ks[9], h2, 1)
    p2_wg, p2_bg = _init_linear(ks[10], h8, 1)
    p2_wm, p2_bm = _init_linear(ks[11], h2, 1)
    # Scalar attention/head biases are kept in the dict for interface parity
    # but are not consumed by the kernels: every consumer of the corresponding
    # logits is a softmax, so the constant offsets cancel exactly.
    return dict(
        emb=jax.random.normal(ks[0], (vocab_size, embed_dim), jnp.float32) * 0.1,
        q_encode=_init_bilstm(ks[4], embed_dim, hidden),
        p_encode=_init_bilstm(ks[5], embed_dim, hidden),
        modeling1=_init_bilstm(ks[6], h8, hidden),
        modeling2=_init_bilstm(ks[7], h2, hidden),
        output_lstm=_init_bilstm(ks[12], h2, hidden),
        att_w_c=att_wc, att_b_c=att_bc[0],
        att_w_q=att_wq, att_b_q=att_bq[0],
        att_w_cq=att_wcq, att_b_cq=att_bcq[0],
        p1_wg=p1_wg, p1_bg=p1_bg, p1_wm=p1_wm, p1_bm=p1_bm,
        p2_wg=p2_wg, p2_bg=p2_bg, p2_wm=p2_wm, p2_bm=p2_bm,
    )


if __name__ == "__main__":
    B, P_LEN, Q_LEN = 2, 16, 8
    VOCAB, EMBED, HIDDEN = 50, 32, 16

    key = jax.random.PRNGKey(0)
    k_p, k_q, k_params = jax.random.split(key, 3)

    p_tokens = jax.random.randint(k_p, (B, P_LEN), 1, VOCAB, dtype=jnp.int32)
    q_tokens = jax.random.randint(k_q, (B, Q_LEN), 1, VOCAB, dtype=jnp.int32)
    # introduce some padding (token id 0) while keeping every q row non-empty
    p_tokens = p_tokens.at[1, 12:].set(0)
    q_tokens = q_tokens.at[1, 6:].set(0)

    params = make_params(k_params, VOCAB, EMBED, HIDDEN)

    fwd = jax.jit(bidaf_forward)
    p1, p2 = fwd(params, p_tokens, q_tokens)
    jax.block_until_ready((p1, p2))

    assert p1.shape == (B, P_LEN) and p2.shape == (B, P_LEN)
    assert bool(jnp.all(jnp.isfinite(p1))) and bool(jnp.all(jnp.isfinite(p2)))
    print("KERNEL_OK")
</pallas_src>

<mosaic_0001>
module attributes {stable_mosaic.version = 11 : i64} {
  func.func @_bilstm_kernel(%arg0: i32, %arg1: memref<16x32xf32, #tpu.memory_space<vmem>>, %arg2: memref<32x128xf32, #tpu.memory_space<vmem>>, %arg3: memref<1x128xf32, #tpu.memory_space<vmem>>, %arg4: memref<32x128xf32, #tpu.memory_space<vmem>>, %arg5: memref<8x2x32xf32, #tpu.memory_space<vmem>>) attributes {dimension_semantics = [#tpu.dimension_semantics<arbitrary>], iteration_bounds = array<i64: 1>, scalar_prefetch = 0 : i64, scratch_operands = 0 : i64, tpu.core_type = #tpu.core_type<tc>, window_params = [{pipeline_mode = #tpu.pipeline_mode<synchronous>, transform_indices = @transform_0, window_bounds = array<i64: 16, 32>}, {pipeline_mode = #tpu.pipeline_mode<synchronous>, transform_indices = @transform_1, window_bounds = array<i64: 32, 128>}, {pipeline_mode = #tpu.pipeline_mode<synchronous>, transform_indices = @transform_2, window_bounds = array<i64: 1, 128>}, {pipeline_mode = #tpu.pipeline_mode<synchronous>, transform_indices = @transform_3, window_bounds = array<i64: 32, 128>}, {pipeline_mode = #tpu.pipeline_mode<synchronous>, transform_indices = @transform_4, window_bounds = array<i64: 8, 2, 32>}]} {
    %c0 = arith.constant 0 : index
    %c0_0 = arith.constant 0 : index
    %0 = vector.load %arg1[%c0, %c0_0] : memref<16x32xf32, #tpu.memory_space<vmem>>, vector<16x32xf32>
    %c0_1 = arith.constant 0 : index
    %c0_2 = arith.constant 0 : index
    %1 = vector.load %arg2[%c0_1, %c0_2] : memref<32x128xf32, #tpu.memory_space<vmem>>, vector<32x128xf32>
    %cst = arith.constant dense<0.000000e+00> : vector<16x128xf32>
    %2 = tpu.matmul %0, %1, %cst {dimension_numbers = #tpu.dot_dimension_numbers<[1], [0], [0], [1], [0, 0, 1, 1], [], []>} : vector<16x32xf32>, vector<32x128xf32>, vector<16x128xf32> -> vector<16x128xf32>
    %c0_3 = arith.constant 0 : index
    %c0_4 = arith.constant 0 : index
    %3 = vector.load %arg3[%c0_3, %c0_4] : memref<1x128xf32, #tpu.memory_space<vmem>>, vector<1x128xf32>
    %4 = vector.broadcast %3 : vector<1x128xf32> to vector<16x128xf32>
    %5 = arith.addf %2, %4 : vector<16x128xf32>
    %c0_5 = arith.constant 0 : index
    %c0_6 = arith.constant 0 : index
    %6 = vector.load %arg4[%c0_5, %c0_6] : memref<32x128xf32, #tpu.memory_space<vmem>>, vector<32x128xf32>
    %7 = tpu.iota {dimensions = array<i32: 1>} : vector<2x128xi32>
    %c32_i32 = arith.constant 32 : i32
    %c0_i32 = arith.constant 0 : i32
    %8 = arith.cmpi eq, %c32_i32, %c0_i32 : i32
    %c1_i32 = arith.constant 1 : i32
    %9 = arith.select %8, %c1_i32, %c32_i32 : i32
    %10 = vector.broadcast %9 : i32 to vector<2x128xi32>
    %11 = arith.remsi %7, %10 : vector<2x128xi32>
    %c0_i32_7 = arith.constant 0 : i32
    %12 = vector.broadcast %c0_i32_7 : i32 to vector<2x128xi32>
    %13 = arith.cmpi ne, %11, %12 : vector<2x128xi32>
    %c0_i32_8 = arith.constant 0 : i32
    %14 = vector.broadcast %c0_i32_8 : i32 to vector<2x128xi32>
    %15 = arith.cmpi slt, %11, %14 : vector<2x128xi32>
    %c0_i32_9 = arith.constant 0 : i32
    %16 = arith.cmpi slt, %9, %c0_i32_9 : i32
    %17 = vector.broadcast %16 : i1 to vector<2x128xi1>
    %18 = vector.broadcast %17 : vector<2x128xi1> to vector<2x128xi1>
    %19 = arith.xori %15, %18 : vector<2x128xi1>
    %20 = arith.andi %19, %13 : vector<2x128xi1>
    %21 = vector.broadcast %9 : i32 to vector<2x128xi32>
    %22 = arith.addi %11, %21 : vector<2x128xi32>
    %23 = arith.select %20, %22, %11 : vector<2x128xi1>, vector<2x128xi32>
    %c16_i32 = arith.constant 16 : i32
    %24 = vector.broadcast %c16_i32 : i32 to vector<2x128xi32>
    %25 = arith.cmpi slt, %23, %24 : vector<2x128xi32>
    %cst_10 = arith.constant 0.000000e+00 : f32
    %26 = vector.broadcast %cst_10 : f32 to vector<2x32xf32>
    %cst_11 = arith.constant 0.000000e+00 : f32
    %27 = vector.broadcast %cst_11 : f32 to vector<2x32xf32>
    %28 = vector.extract_strided_slice %5 {offsets = [0, 0], sizes = [2, 128], strides = [1, 1]} : vector<16x128xf32> to vector<2x128xf32>
    %29 = vector.extract_strided_slice %5 {offsets = [14, 0], sizes = [2, 128], strides = [1, 1]} : vector<16x128xf32> to vector<2x128xf32>
    %30 = arith.select %25, %28, %29 : vector<2x128xi1>, vector<2x128xf32>
    %cst_12 = arith.constant dense<0.000000e+00> : vector<2x128xf32>
    %31 = tpu.matmul %26, %6, %cst_12 {dimension_numbers = #tpu.dot_dimension_numbers<[1], [0], [0], [1], [0, 0, 1, 1], [], []>} : vector<2x32xf32>, vector<32x128xf32>, vector<2x128xf32> -> vector<2x128xf32>
    %32 = arith.addf %30, %31 : vector<2x128xf32>
    %33 = arith.negf %32 : vector<2x128xf32>
    %34 = math.exp %33 : vector<2x128xf32>
    %cst_13 = arith.constant 1.000000e+00 : f32
    %35 = vector.broadcast %cst_13 : f32 to vector<2x128xf32>
    %36 = arith.addf %35, %34 : vector<2x128xf32>
    %37 = arith.divf %35, %36 : vector<2x128xf32>
    %38 = math.tanh %32 : vector<2x128xf32>
    %39 = vector.extract_strided_slice %37 {offsets = [0, 0], sizes = [2, 32], strides = [1, 1]} : vector<2x128xf32> to vector<2x32xf32>
    %40 = vector.extract_strided_slice %37 {offsets = [0, 32], sizes = [2, 32], strides = [1, 1]} : vector<2x128xf32> to vector<2x32xf32>
    %41 = vector.extract_strided_slice %38 {offsets = [0, 64], sizes = [2, 32], strides = [1, 1]} : vector<2x128xf32> to vector<2x32xf32>
    %42 = vector.extract_strided_slice %37 {offsets = [0, 96], sizes = [2, 32], strides = [1, 1]} : vector<2x128xf32> to vector<2x32xf32>
    %43 = arith.mulf %40, %27 : vector<2x32xf32>
    %44 = arith.mulf %39, %41 : vector<2x32xf32>
    %45 = arith.addf %43, %44 : vector<2x32xf32>
    %46 = math.tanh %45 : vector<2x32xf32>
    %47 = arith.mulf %42, %46 : vector<2x32xf32>
    %48 = vector.extract_strided_slice %47 {offsets = [0, 0], sizes = [2, 16], strides = [1, 1]} : vector<2x32xf32> to vector<2x16xf32>
    %c0_14 = arith.constant 0 : index
    %c0_15 = arith.constant 0 : index
    %c0_16 = arith.constant 0 : index
    %49 = vector.load %arg5[%c0_14, %c0_15, %c0_16] : memref<8x2x32xf32, #tpu.memory_space<vmem>>, vector<1x2x16xf32>
    %50 = vector.shape_cast %49 : vector<1x2x16xf32> to vector<2x16xf32>
    %51 = vector.shape_cast %48 : vector<2x16xf32> to vector<1x2x16xf32>
    tpu.vector_store %arg5[%c0_14, %c0_15, %c0_16], %51 {strides = array<i32>} : memref<8x2x32xf32, #tpu.memory_space<vmem>>, vector<1x2x16xf32>,
    %52 = vector.extract_strided_slice %47 {offsets = [0, 16], sizes = [2, 16], strides = [1, 1]} : vector<2x32xf32> to vector<2x16xf32>
    %c7 = arith.constant 7 : index
    %c0_17 = arith.constant 0 : index
    %c16 = arith.constant 16 : index
    %53 = vector.load %arg5[%c7, %c0_17, %c16] : memref<8x2x32xf32, #tpu.memory_space<vmem>>, vector<1x2x16xf32>
    %54 = vector.shape_cast %53 : vector<1x2x16xf32> to vector<2x16xf32>
    %55 = vector.shape_cast %52 : vector<2x16xf32> to vector<1x2x16xf32>
    tpu.vector_store %arg5[%c7, %c0_17, %c16], %55 {strides = array<i32>} : memref<8x2x32xf32, #tpu.memory_space<vmem>>, vector<1x2x16xf32>,
    %56 = vector.extract_strided_slice %5 {offsets = [2, 0], sizes = [2, 128], strides = [1, 1]} : vector<16x128xf32> to vector<2x128xf32>
    %57 = vector.extract_strided_slice %5 {offsets = [12, 0], sizes = [2, 128], strides = [1, 1]} : vector<16x128xf32> to vector<2x128xf32>
    %58 = arith.select %25, %56, %57 : vector<2x128xi1>, vector<2x128xf32>
    %cst_18 = arith.constant dense<0.000000e+00> : vector<2x128xf32>
    %59 = tpu.matmul %47, %6, %cst_18 {dimension_numbers = #tpu.dot_dimension_numbers<[1], [0], [0], [1], [0, 0, 1, 1], [], []>} : vector<2x32xf32>, vector<32x128xf32>, vector<2x128xf32> -> vector<2x128xf32>
    %60 = arith.addf %58, %59 : vector<2x128xf32>
    %61 = arith.negf %60 : vector<2x128xf32>
    %62 = math.exp %61 : vector<2x128xf32>
    %cst_19 = arith.constant 1.000000e+00 : f32
    %63 = vector.broadcast %cst_19 : f32 to vector<2x128xf32>
    %64 = arith.addf %63, %62 : vector<2x128xf32>
    %65 = arith.divf %63, %64 : vector<2x128xf32>
    %66 = math.tanh %60 : vector<2x128xf32>
    %67 = vector.extract_strided_slice %65 {offsets = [0, 0], sizes = [2, 32], strides = [1, 1]} : vector<2x128xf32> to vector<2x32xf32>
    %68 = vector.extract_strided_slice %65 {offsets = [0, 32], sizes = [2, 32], strides = [1, 1]} : vector<2x128xf32> to vector<2x32xf32>
    %69 = vector.extract_strided_slice %66 {offsets = [0, 64], sizes = [2, 32], strides = [1, 1]} : vector<2x128xf32> to vector<2x32xf32>
    %70 = vector.extract_strided_slice %65 {offsets = [0, 96], sizes = [2, 32], strides = [1, 1]} : vector<2x128xf32> to vector<2x32xf32>
    %71 = arith.mulf %68, %45 : vector<2x32xf32>
    %72 = arith.mulf %67, %69 : vector<2x32xf32>
    %73 = arith.addf %71, %72 : vector<2x32xf32>
    %74 = math.tanh %73 : vector<2x32xf32>
    %75 = arith.mulf %70, %74 : vector<2x32xf32>
    %76 = vector.extract_strided_slice %75 {offsets = [0, 0], sizes = [2, 16], strides = [1, 1]} : vector<2x32xf32> to vector<2x16xf32>
    %c1 = arith.constant 1 : index
    %c0_20 = arith.constant 0 : index
    %c0_21 = arith.constant 0 : index
    %77 = vector.load %arg5[%c1, %c0_20, %c0_21] : memref<8x2x32xf32, #tpu.memory_space<vmem>>, vector<1x2x16xf32>
    %78 = vector.shape_cast %77 : vector<1x2x16xf32> to vector<2x16xf32>
    %79 = vector.shape_cast %76 : vector<2x16xf32> to vector<1x2x16xf32>
    tpu.vector_store %arg5[%c1, %c0_20, %c0_21], %79 {strides = array<i32>} : memref<8x2x32xf32, #tpu.memory_space<vmem>>, vector<1x2x16xf32>,
    %80 = vector.extract_strided_slice %75 {offsets = [0, 16], sizes = [2, 16], strides = [1, 1]} : vector<2x32xf32> to vector<2x16xf32>
    %c6 = arith.constant 6 : index
    %c0_22 = arith.constant 0 : index
    %c16_23 = arith.constant 16 : index
    %81 = vector.load %arg5[%c6, %c0_22, %c16_23] : memref<8x2x32xf32, #tpu.memory_space<vmem>>, vector<1x2x16xf32>
    %82 = vector.shape_cast %81 : vector<1x2x16xf32> to vector<2x16xf32>
    %83 = vector.shape_cast %80 : vector<2x16xf32> to vector<1x2x16xf32>
    tpu.vector_store %arg5[%c6, %c0_22, %c16_23], %83 {strides = array<i32>} : memref<8x2x32xf32, #tpu.memory_space<vmem>>, vector<1x2x16xf32>,
    %84 = vector.extract_strided_slice %5 {offsets = [4, 0], sizes = [2, 128], strides = [1, 1]} : vector<16x128xf32> to vector<2x128xf32>
    %85 = vector.extract_strided_slice %5 {offsets = [10, 0], sizes = [2, 128], strides = [1, 1]} : vector<16x128xf32> to vector<2x128xf32>
    %86 = arith.select %25, %84, %85 : vector<2x128xi1>, vector<2x128xf32>
    %cst_24 = arith.constant dense<0.000000e+00> : vector<2x128xf32>
    %87 = tpu.matmul %75, %6, %cst_24 {dimension_numbers = #tpu.dot_dimension_numbers<[1], [0], [0], [1], [0, 0, 1, 1], [], []>} : vector<2x32xf32>, vector<32x128xf32>, vector<2x128xf32> -> vector<2x128xf32>
    %88 = arith.addf %86, %87 : vector<2x128xf32>
    %89 = arith.negf %88 : vector<2x128xf32>
    %90 = math.exp %89 : vector<2x128xf32>
    %cst_25 = arith.constant 1.000000e+00 : f32
    %91 = vector.broadcast %cst_25 : f32 to vector<2x128xf32>
    %92 = arith.addf %91, %90 : vector<2x128xf32>
    %93 = arith.divf %91, %92 : vector<2x128xf32>
    %94 = math.tanh %88 : vector<2x128xf32>
    %95 = vector.extract_strided_slice %93 {offsets = [0, 0], sizes = [2, 32], strides = [1, 1]} : vector<2x128xf32> to vector<2x32xf32>
    %96 = vector.extract_strided_slice %93 {offsets = [0, 32], sizes = [2, 32], strides = [1, 1]} : vector<2x128xf32> to vector<2x32xf32>
    %97 = vector.extract_strided_slice %94 {offsets = [0, 64], sizes = [2, 32], strides = [1, 1]} : vector<2x128xf32> to vector<2x32xf32>
    %98 = vector.extract_strided_slice %93 {offsets = [0, 96], sizes = [2, 32], strides = [1, 1]} : vector<2x128xf32> to vector<2x32xf32>
    %99 = arith.mulf %96, %73 : vector<2x32xf32>
    %100 = arith.mulf %95, %97 : vector<2x32xf32>
    %101 = arith.addf %99, %100 : vector<2x32xf32>
    %102 = math.tanh %101 : vector<2x32xf32>
    %103 = arith.mulf %98, %102 : vector<2x32xf32>
    %104 = vector.extract_strided_slice %103 {offsets = [0, 0], sizes = [2, 16], strides = [1, 1]} : vector<2x32xf32> to vector<2x16xf32>
    %c2 = arith.constant 2 : index
    %c0_26 = arith.constant 0 : index
    %c0_27 = arith.constant 0 : index
    %105 = vector.load %arg5[%c2, %c0_26, %c0_27] : memref<8x2x32xf32, #tpu.memory_space<vmem>>, vector<1x2x16xf32>
    %106 = vector.shape_cast %105 : vector<1x2x16xf32> to vector<2x16xf32>
    %107 = vector.shape_cast %104 : vector<2x16xf32> to vector<1x2x16xf32>
    tpu.vector_store %arg5[%c2, %c0_26, %c0_27], %107 {strides = array<i32>} : memref<8x2x32xf32, #tpu.memory_space<vmem>>, vector<1x2x16xf32>,
    %108 = vector.extract_strided_slice %103 {offsets = [0, 16], sizes = [2, 16], strides = [1, 1]} : vector<2x32xf32> to vector<2x16xf32>
    %c5 = arith.constant 5 : index
    %c0_28 = arith.constant 0 : index
    %c16_29 = arith.constant 16 : index
    %109 = vector.load %arg5[%c5, %c0_28, %c16_29] : memref<8x2x32xf32, #tpu.memory_space<vmem>>, vector<1x2x16xf32>
    %110 = vector.shape_cast %109 : vector<1x2x16xf32> to vector<2x16xf32>
    %111 = vector.shape_cast %108 : vector<2x16xf32> to vector<1x2x16xf32>
    tpu.vector_store %arg5[%c5, %c0_28, %c16_29], %111 {strides = array<i32>} : memref<8x2x32xf32, #tpu.memory_space<vmem>>, vector<1x2x16xf32>,
    %112 = vector.extract_strided_slice %5 {offsets = [6, 0], sizes = [2, 128], strides = [1, 1]} : vector<16x128xf32> to vector<2x128xf32>
    %113 = vector.extract_strided_slice %5 {offsets = [8, 0], sizes = [2, 128], strides = [1, 1]} : vector<16x128xf32> to vector<2x128xf32>
    %114 = arith.select %25, %112, %113 : vector<2x128xi1>, vector<2x128xf32>
    %cst_30 = arith.constant dense<0.000000e+00> : vector<2x128xf32>
    %115 = tpu.matmul %103, %6, %cst_30 {dimension_numbers = #tpu.dot_dimension_numbers<[1], [0], [0], [1], [0, 0, 1, 1], [], []>} : vector<2x32xf32>, vector<32x128xf32>, vector<2x128xf32> -> vector<2x128xf32>
    %116 = arith.addf %114, %115 : vector<2x128xf32>
    %117 = arith.negf %116 : vector<2x128xf32>
    %118 = math.exp %117 : vector<2x128xf32>
    %cst_31 = arith.constant 1.000000e+00 : f32
    %119 = vector.broadcast %cst_31 : f32 to vector<2x128xf32>
    %120 = arith.addf %119, %118 : vector<2x128xf32>
    %121 = arith.divf %119, %120 : vector<2x128xf32>
    %122 = math.tanh %116 : vector<2x128xf32>
    %123 = vector.extract_strided_slice %121 {offsets = [0, 0], sizes = [2, 32], strides = [1, 1]} : vector<2x128xf32> to vector<2x32xf32>
    %124 = vector.extract_strided_slice %121 {offsets = [0, 32], sizes = [2, 32], strides = [1, 1]} : vector<2x128xf32> to vector<2x32xf32>
    %125 = vector.extract_strided_slice %122 {offsets = [0, 64], sizes = [2, 32], strides = [1, 1]} : vector<2x128xf32> to vector<2x32xf32>
    %126 = vector.extract_strided_slice %121 {offsets = [0, 96], sizes = [2, 32], strides = [1, 1]} : vector<2x128xf32> to vector<2x32xf32>
    %127 = arith.mulf %124, %101 : vector<2x32xf32>
    %128 = arith.mulf %123, %125 : vector<2x32xf32>
    %129 = arith.addf %127, %128 : vector<2x32xf32>
    %130 = math.tanh %129 : vector<2x32xf32>
    %131 = arith.mulf %126, %130 : vector<2x32xf32>
    %132 = vector.extract_strided_slice %131 {offsets = [0, 0], sizes = [2, 16], strides = [1, 1]} : vector<2x32xf32> to vector<2x16xf32>
    %c3 = arith.constant 3 : index
    %c0_32 = arith.constant 0 : index
    %c0_33 = arith.constant 0 : index
    %133 = vector.load %arg5[%c3, %c0_32, %c0_33] : memref<8x2x32xf32, #tpu.memory_space<vmem>>, vector<1x2x16xf32>
    %134 = vector.shape_cast %133 : vector<1x2x16xf32> to vector<2x16xf32>
    %135 = vector.shape_cast %132 : vector<2x16xf32> to vector<1x2x16xf32>
    tpu.vector_store %arg5[%c3, %c0_32, %c0_33], %135 {strides = array<i32>} : memref<8x2x32xf32, #tpu.memory_space<vmem>>, vector<1x2x16xf32>,
    %136 = vector.extract_strided_slice %131 {offsets = [0, 16], sizes = [2, 16], strides = [1, 1]} : vector<2x32xf32> to vector<2x16xf32>
    %c4 = arith.constant 4 : index
    %c0_34 = arith.constant 0 : index
    %c16_35 = arith.constant 16 : index
    %137 = vector.load %arg5[%c4, %c0_34, %c16_35] : memref<8x2x32xf32, #tpu.memory_space<vmem>>, vector<1x2x16xf32>
    %138 = vector.shape_cast %137 : vector<1x2x16xf32> to vector<2x16xf32>
    %139 = vector.shape_cast %136 : vector<2x16xf32> to vector<1x2x16xf32>
    tpu.vector_store %arg5[%c4, %c0_34, %c16_35], %139 {strides = array<i32>} : memref<8x2x32xf32, #tpu.memory_space<vmem>>, vector<1x2x16xf32>,
    %140 = vector.extract_strided_slice %5 {offsets = [8, 0], sizes = [2, 128], strides = [1, 1]} : vector<16x128xf32> to vector<2x128xf32>
    %141 = vector.extract_strided_slice %5 {offsets = [6, 0], sizes = [2, 128], strides = [1, 1]} : vector<16x128xf32> to vector<2x128xf32>
    %142 = arith.select %25, %140, %141 : vector<2x128xi1>, vector<2x128xf32>
    %cst_36 = arith.constant dense<0.000000e+00> : vector<2x128xf32>
    %143 = tpu.matmul %131, %6, %cst_36 {dimension_numbers = #tpu.dot_dimension_numbers<[1], [0], [0], [1], [0, 0, 1, 1], [], []>} : vector<2x32xf32>, vector<32x128xf32>, vector<2x128xf32> -> vector<2x128xf32>
    %144 = arith.addf %142, %143 : vector<2x128xf32>
    %145 = arith.negf %144 : vector<2x128xf32>
    %146 = math.exp %145 : vector<2x128xf32>
    %cst_37 = arith.constant 1.000000e+00 : f32
    %147 = vector.broadcast %cst_37 : f32 to vector<2x128xf32>
    %148 = arith.addf %147, %146 : vector<2x128xf32>
    %149 = arith.divf %147, %148 : vector<2x128xf32>
    %150 = math.tanh %144 : vector<2x128xf32>
    %151 = vector.extract_strided_slice %149 {offsets = [0, 0], sizes = [2, 32], strides = [1, 1]} : vector<2x128xf32> to vector<2x32xf32>
    %152 = vector.extract_strided_slice %149 {offsets = [0, 32], sizes = [2, 32], strides = [1, 1]} : vector<2x128xf32> to vector<2x32xf32>
    %153 = vector.extract_strided_slice %150 {offsets = [0, 64], sizes = [2, 32], strides = [1, 1]} : vector<2x128xf32> to vector<2x32xf32>
    %154 = vector.extract_strided_slice %149 {offsets = [0, 96], sizes = [2, 32], strides = [1, 1]} : vector<2x128xf32> to vector<2x32xf32>
    %155 = arith.mulf %152, %129 : vector<2x32xf32>
    %156 = arith.mulf %151, %153 : vector<2x32xf32>
    %157 = arith.addf %155, %156 : vector<2x32xf32>
    %158 = math.tanh %157 : vector<2x32xf32>
    %159 = arith.mulf %154, %158 : vector<2x32xf32>
    %160 = vector.extract_strided_slice %159 {offsets = [0, 0], sizes = [2, 16], strides = [1, 1]} : vector<2x32xf32> to vector<2x16xf32>
    %c4_38 = arith.constant 4 : index
    %c0_39 = arith.constant 0 : index
    %c0_40 = arith.constant 0 : index
    %161 = vector.load %arg5[%c4_38, %c0_39, %c0_40] : memref<8x2x32xf32, #tpu.memory_space<vmem>>, vector<1x2x16xf32>
    %162 = vector.shape_cast %161 : vector<1x2x16xf32> to vector<2x16xf32>
    %163 = vector.shape_cast %160 : vector<2x16xf32> to vector<1x2x16xf32>
    tpu.vector_store %arg5[%c4_38, %c0_39, %c0_40], %163 {strides = array<i32>} : memref<8x2x32xf32, #tpu.memory_space<vmem>>, vector<1x2x16xf32>,
    %164 = vector.extract_strided_slice %159 {offsets = [0, 16], sizes = [2, 16], strides = [1, 1]} : vector<2x32xf32> to vector<2x16xf32>
    %c3_41 = arith.constant 3 : index
    %c0_42 = arith.constant 0 : index
    %c16_43 = arith.constant 16 : index
    %165 = vector.load %arg5[%c3_41, %c0_42, %c16_43] : memref<8x2x32xf32, #tpu.memory_space<vmem>>, vector<1x2x16xf32>
    %166 = vector.shape_cast %165 : vector<1x2x16xf32> to vector<2x16xf32>
    %167 = vector.shape_cast %164 : vector<2x16xf32> to vector<1x2x16xf32>
    tpu.vector_store %arg5[%c3_41, %c0_42, %c16_43], %167 {strides = array<i32>} : memref<8x2x32xf32, #tpu.memory_space<vmem>>, vector<1x2x16xf32>,
    %168 = vector.extract_strided_slice %5 {offsets = [10, 0], sizes = [2, 128], strides = [1, 1]} : vector<16x128xf32> to vector<2x128xf32>
    %169 = vector.extract_strided_slice %5 {offsets = [4, 0], sizes = [2, 128], strides = [1, 1]} : vector<16x128xf32> to vector<2x128xf32>
    %170 = arith.select %25, %168, %169 : vector<2x128xi1>, vector<2x128xf32>
    %cst_44 = arith.constant dense<0.000000e+00> : vector<2x128xf32>
    %171 = tpu.matmul %159, %6, %cst_44 {dimension_numbers = #tpu.dot_dimension_numbers<[1], [0], [0], [1], [0, 0, 1, 1], [], []>} : vector<2x32xf32>, vector<32x128xf32>, vector<2x128xf32> -> vector<2x128xf32>
    %172 = arith.addf %170, %171 : vector<2x128xf32>
    %173 = arith.negf %172 : vector<2x128xf32>
    %174 = math.exp %173 : vector<2x128xf32>
    %cst_45 = arith.constant 1.000000e+00 : f32
    %175 = vector.broadcast %cst_45 : f32 to vector<2x128xf32>
    %176 = arith.addf %175, %174 : vector<2x128xf32>
    %177 = arith.divf %175, %176 : vector<2x128xf32>
    %178 = math.tanh %172 : vector<2x128xf32>
    %179 = vector.extract_strided_slice %177 {offsets = [0, 0], sizes = [2, 32], strides = [1, 1]} : vector<2x128xf32> to vector<2x32xf32>
    %180 = vector.extract_strided_slice %177 {offsets = [0, 32], sizes = [2, 32], strides = [1, 1]} : vector<2x128xf32> to vector<2x32xf32>
    %181 = vector.extract_strided_slice %178 {offsets = [0, 64], sizes = [2, 32], strides = [1, 1]} : vector<2x128xf32> to vector<2x32xf32>
    %182 = vector.extract_strided_slice %177 {offsets = [0, 96], sizes = [2, 32], strides = [1, 1]} : vector<2x128xf32> to vector<2x32xf32>
    %183 = arith.mulf %180, %157 : vector<2x32xf32>
    %184 = arith.mulf %179, %181 : vector<2x32xf32>
    %185 = arith.addf %183, %184 : vector<2x32xf32>
    %186 = math.tanh %185 : vector<2x32xf32>
    %187 = arith.mulf %182, %186 : vector<2x32xf32>
    %188 = vector.extract_strided_slice %187 {offsets = [0, 0], sizes = [2, 16], strides = [1, 1]} : vector<2x32xf32> to vector<2x16xf32>
    %c5_46 = arith.constant 5 : index
    %c0_47 = arith.constant 0 : index
    %c0_48 = arith.constant 0 : index
    %189 = vector.load %arg5[%c5_46, %c0_47, %c0_48] : memref<8x2x32xf32, #tpu.memory_space<vmem>>, vector<1x2x16xf32>
    %190 = vector.shape_cast %189 : vector<1x2x16xf32> to vector<2x16xf32>
    %191 = vector.shape_cast %188 : vector<2x16xf32> to vector<1x2x16xf32>
    tpu.vector_store %arg5[%c5_46, %c0_47, %c0_48], %191 {strides = array<i32>} : memref<8x2x32xf32, #tpu.memory_space<vmem>>, vector<1x2x16xf32>,
    %192 = vector.extract_strided_slice %187 {offsets = [0, 16], sizes = [2, 16], strides = [1, 1]} : vector<2x32xf32> to vector<2x16xf32>
    %c2_49 = arith.constant 2 : index
    %c0_50 = arith.constant 0 : index
    %c16_51 = arith.constant 16 : index
    %193 = vector.load %arg5[%c2_49, %c0_50, %c16_51] : memref<8x2x32xf32, #tpu.memory_space<vmem>>, vector<1x2x16xf32>
    %194 = vector.shape_cast %193 : vector<1x2x16xf32> to vector<2x16xf32>
    %195 = vector.shape_cast %192 : vector<2x16xf32> to vector<1x2x16xf32>
    tpu.vector_store %arg5[%c2_49, %c0_50, %c16_51], %195 {strides = array<i32>} : memref<8x2x32xf32, #tpu.memory_space<vmem>>, vector<1x2x16xf32>,
    %196 = vector.extract_strided_slice %5 {offsets = [12, 0], sizes = [2, 128], strides = [1, 1]} : vector<16x128xf32> to vector<2x128xf32>
    %197 = vector.extract_strided_slice %5 {offsets = [2, 0], sizes = [2, 128], strides = [1, 1]} : vector<16x128xf32> to vector<2x128xf32>
    %198 = arith.select %25, %196, %197 : vector<2x128xi1>, vector<2x128xf32>
    %cst_52 = arith.constant dense<0.000000e+00> : vector<2x128xf32>
    %199 = tpu.matmul %187, %6, %cst_52 {dimension_numbers = #tpu.dot_dimension_numbers<[1], [0], [0], [1], [0, 0, 1, 1], [], []>} : vector<2x32xf32>, vector<32x128xf32>, vector<2x128xf32> -> vector<2x128xf32>
    %200 = arith.addf %198, %199 : vector<2x128xf32>
    %201 = arith.negf %200 : vector<2x128xf32>
    %202 = math.exp %201 : vector<2x128xf32>
    %cst_53 = arith.constant 1.000000e+00 : f32
    %203 = vector.broadcast %cst_53 : f32 to vector<2x128xf32>
    %204 = arith.addf %203, %202 : vector<2x128xf32>
    %205 = arith.divf %203, %204 : vector<2x128xf32>
    %206 = math.tanh %200 : vector<2x128xf32>
    %207 = vector.extract_strided_slice %205 {offsets = [0, 0], sizes = [2, 32], strides = [1, 1]} : vector<2x128xf32> to vector<2x32xf32>
    %208 = vector.extract_strided_slice %205 {offsets = [0, 32], sizes = [2, 32], strides = [1, 1]} : vector<2x128xf32> to vector<2x32xf32>
    %209 = vector.extract_strided_slice %206 {offsets = [0, 64], sizes = [2, 32], strides = [1, 1]} : vector<2x128xf32> to vector<2x32xf32>
    %210 = vector.extract_strided_slice %205 {offsets = [0, 96], sizes = [2, 32], strides = [1, 1]} : vector<2x128xf32> to vector<2x32xf32>
    %211 = arith.mulf %208, %185 : vector<2x32xf32>
    %212 = arith.mulf %207, %209 : vector<2x32xf32>
    %213 = arith.addf %211, %212 : vector<2x32xf32>
    %214 = math.tanh %213 : vector<2x32xf32>
    %215 = arith.mulf %210, %214 : vector<2x32xf32>
    %216 = vector.extract_strided_slice %215 {offsets = [0, 0], sizes = [2, 16], strides = [1, 1]} : vector<2x32xf32> to vector<2x16xf32>
    %c6_54 = arith.constant 6 : index
    %c0_55 = arith.constant 0 : index
    %c0_56 = arith.constant 0 : index
    %217 = vector.load %arg5[%c6_54, %c0_55, %c0_56] : memref<8x2x32xf32, #tpu.memory_space<vmem>>, vector<1x2x16xf32>
    %218 = vector.shape_cast %217 : vector<1x2x16xf32> to vector<2x16xf32>
    %219 = vector.shape_cast %216 : vector<2x16xf32> to vector<1x2x16xf32>
    tpu.vector_store %arg5[%c6_54, %c0_55, %c0_56], %219 {strides = array<i32>} : memref<8x2x32xf32, #tpu.memory_space<vmem>>, vector<1x2x16xf32>,
    %220 = vector.extract_strided_slice %215 {offsets = [0, 16], sizes = [2, 16], strides = [1, 1]} : vector<2x32xf32> to vector<2x16xf32>
    %c1_57 = arith.constant 1 : index
    %c0_58 = arith.constant 0 : index
    %c16_59 = arith.constant 16 : index
    %221 = vector.load %arg5[%c1_57, %c0_58, %c16_59] : memref<8x2x32xf32, #tpu.memory_space<vmem>>, vector<1x2x16xf32>
    %222 = vector.shape_cast %221 : vector<1x2x16xf32> to vector<2x16xf32>
    %223 = vector.shape_cast %220 : vector<2x16xf32> to vector<1x2x16xf32>
    tpu.vector_store %arg5[%c1_57, %c0_58, %c16_59], %223 {strides = array<i32>} : memref<8x2x32xf32, #tpu.memory_space<vmem>>, vector<1x2x16xf32>,
    %224 = vector.extract_strided_slice %5 {offsets = [14, 0], sizes = [2, 128], strides = [1, 1]} : vector<16x128xf32> to vector<2x128xf32>
    %225 = vector.extract_strided_slice %5 {offsets = [0, 0], sizes = [2, 128], strides = [1, 1]} : vector<16x128xf32> to vector<2x128xf32>
    %226 = arith.select %25, %224, %225 : vector<2x128xi1>, vector<2x128xf32>
    %cst_60 = arith.constant dense<0.000000e+00> : vector<2x128xf32>
    %227 = tpu.matmul %215, %6, %cst_60 {dimension_numbers = #tpu.dot_dimension_numbers<[1], [0], [0], [1], [0, 0, 1, 1], [], []>} : vector<2x32xf32>, vector<32x128xf32>, vector<2x128xf32> -> vector<2x128xf32>
    %228 = arith.addf %226, %227 : vector<2x128xf32>
    %229 = arith.negf %228 : vector<2x128xf32>
    %230 = math.exp %229 : vector<2x128xf32>
    %cst_61 = arith.constant 1.000000e+00 : f32
    %231 = vector.broadcast %cst_61 : f32 to vector<2x128xf32>
    %232 = arith.addf %231, %230 : vector<2x128xf32>
    %233 = arith.divf %231, %232 : vector<2x128xf32>
    %234 = math.tanh %228 : vector<2x128xf32>
    %235 = vector.extract_strided_slice %233 {offsets = [0, 0], sizes = [2, 32], strides = [1, 1]} : vector<2x128xf32> to vector<2x32xf32>
    %236 = vector.extract_strided_slice %233 {offsets = [0, 32], sizes = [2, 32], strides = [1, 1]} : vector<2x128xf32> to vector<2x32xf32>
    %237 = vector.extract_strided_slice %234 {offsets = [0, 64], sizes = [2, 32], strides = [1, 1]} : vector<2x128xf32> to vector<2x32xf32>
    %238 = vector.extract_strided_slice %233 {offsets = [0, 96], sizes = [2, 32], strides = [1, 1]} : vector<2x128xf32> to vector<2x32xf32>
    %239 = arith.mulf %236, %213 : vector<2x32xf32>
    %240 = arith.mulf %235, %237 : vector<2x32xf32>
    %241 = arith.addf %239, %240 : vector<2x32xf32>
    %242 = math.tanh %241 : vector<2x32xf32>
    %243 = arith.mulf %238, %242 : vector<2x32xf32>
    %244 = vector.extract_strided_slice %243 {offsets = [0, 0], sizes = [2, 16], strides = [1, 1]} : vector<2x32xf32> to vector<2x16xf32>
    %c7_62 = arith.constant 7 : index
    %c0_63 = arith.constant 0 : index
    %c0_64 = arith.constant 0 : index
    %245 = vector.load %arg5[%c7_62, %c0_63, %c0_64] : memref<8x2x32xf32, #tpu.memory_space<vmem>>, vector<1x2x16xf32>
    %246 = vector.shape_cast %245 : vector<1x2x16xf32> to vector<2x16xf32>
    %247 = vector.shape_cast %244 : vector<2x16xf32> to vector<1x2x16xf32>
    tpu.vector_store %arg5[%c7_62, %c0_63, %c0_64], %247 {strides = array<i32>} : memref<8x2x32xf32, #tpu.memory_space<vmem>>, vector<1x2x16xf32>,
    %248 = vector.extract_strided_slice %243 {offsets = [0, 16], sizes = [2, 16], strides = [1, 1]} : vector<2x32xf32> to vector<2x16xf32>
    %c0_65 = arith.constant 0 : index
    %c0_66 = arith.constant 0 : index
    %c16_67 = arith.constant 16 : index
    %249 = vector.load %arg5[%c0_65, %c0_66, %c16_67] : memref<8x2x32xf32, #tpu.memory_space<vmem>>, vector<1x2x16xf32>
    %250 = vector.shape_cast %249 : vector<1x2x16xf32> to vector<2x16xf32>
    %251 = vector.shape_cast %248 : vector<2x16xf32> to vector<1x2x16xf32>
    tpu.vector_store %arg5[%c0_65, %c0_66, %c16_67], %251 {strides = array<i32>} : memref<8x2x32xf32, #tpu.memory_space<vmem>>, vector<1x2x16xf32>,
    return
  }
  func.func @transform_0(%arg0: i32) -> (i32, i32) {
    %c0_i32 = arith.constant 0 : i32
    %c0_i32_0 = arith.constant 0 : i32
    %c0_i32_1 = arith.constant 0 : i32
    return %c0_i32, %c0_i32_0 : i32, i32
  }
  func.func @transform_1(%arg0: i32) -> (i32, i32) {
    %c0_i32 = arith.constant 0 : i32
    %c0_i32_0 = arith.constant 0 : i32
    %c0_i32_1 = arith.constant 0 : i32
    return %c0_i32, %c0_i32_0 : i32, i32
  }
  func.func @transform_2(%arg0: i32) -> (i32, i32) {
    %c0_i32 = arith.constant 0 : i32
    %c0_i32_0 = arith.constant 0 : i32
    %c0_i32_1 = arith.constant 0 : i32
    return %c0_i32, %c0_i32_0 : i32, i32
  }
  func.func @transform_3(%arg0: i32) -> (i32, i32) {
    %c0_i32 = arith.constant 0 : i32
    %c0_i32_0 = arith.constant 0 : i32
    %c0_i32_1 = arith.constant 0 : i32
    return %c0_i32, %c0_i32_0 : i32, i32
  }
  func.func @transform_4(%arg0: i32) -> (i32, i32, i32) {
    %c0_i32 = arith.constant 0 : i32
    %c0_i32_0 = arith.constant 0 : i32
    %c0_i32_1 = arith.constant 0 : i32
    %c0_i32_2 = arith.constant 0 : i32
    return %c0_i32, %c0_i32_0, %c0_i32_1 : i32, i32, i32
  }
}

module attributes {stable_mosaic.version = 11 : i64} {
  func.func @_attn_flow_kernel(%arg0: i32, %arg1: memref<1x16x32xf32, #tpu.memory_space<vmem>>, %arg2: memref<1x8x32xf32, #tpu.memory_space<vmem>>, %arg3: memref<1x32xf32, #tpu.memory_space<vmem>>, %arg4: memref<1x32xf32, #tpu.memory_space<vmem>>, %arg5: memref<1x32xf32, #tpu.memory_space<vmem>>, %arg6: memref<1x16x128xf32, #tpu.memory_space<vmem>>) attributes {dimension_semantics = [#tpu.dimension_semantics<parallel>], iteration_bounds = array<i64: 2>, scalar_prefetch = 0 : i64, scratch_operands = 0 : i64, tpu.core_type = #tpu.core_type<tc>, window_params = [{transform_indices = @transform_0, window_bounds = array<i64: 1, 16, 32>}, {transform_indices = @transform_1, window_bounds = array<i64: 1, 8, 32>}, {pipeline_mode = #tpu.pipeline_mode<synchronous>, transform_indices = @transform_2, window_bounds = array<i64: 1, 32>}, {pipeline_mode = #tpu.pipeline_mode<synchronous>, transform_indices = @transform_3, window_bounds = array<i64: 1, 32>}, {pipeline_mode = #tpu.pipeline_mode<synchronous>, transform_indices = @transform_4, window_bounds = array<i64: 1, 32>}, {transform_indices = @transform_5, window_bounds = array<i64: 1, 16, 128>}]} {
    %c0 = arith.constant 0 : index
    %c0_0 = arith.constant 0 : index
    %c0_1 = arith.constant 0 : index
    %0 = vector.load %arg1[%c0, %c0_0, %c0_1] : memref<1x16x32xf32, #tpu.memory_space<vmem>>, vector<1x16x32xf32>
    %1 = vector.shape_cast %0 : vector<1x16x32xf32> to vector<16x32xf32>
    %c0_2 = arith.constant 0 : index
    %c0_3 = arith.constant 0 : index
    %c0_4 = arith.constant 0 : index
    %2 = vector.load %arg2[%c0_2, %c0_3, %c0_4] : memref<1x8x32xf32, #tpu.memory_space<vmem>>, vector<1x8x32xf32>
    %3 = vector.shape_cast %2 : vector<1x8x32xf32> to vector<8x32xf32>
    %c0_5 = arith.constant 0 : index
    %c0_6 = arith.constant 0 : index
    %4 = vector.load %arg3[%c0_5, %c0_6] : memref<1x32xf32, #tpu.memory_space<vmem>>, vector<1x32xf32>
    %c0_7 = arith.constant 0 : index
    %c0_8 = arith.constant 0 : index
    %5 = vector.load %arg4[%c0_7, %c0_8] : memref<1x32xf32, #tpu.memory_space<vmem>>, vector<1x32xf32>
    %c0_9 = arith.constant 0 : index
    %c0_10 = arith.constant 0 : index
    %6 = vector.load %arg5[%c0_9, %c0_10] : memref<1x32xf32, #tpu.memory_space<vmem>>, vector<1x32xf32>
    %7 = vector.broadcast %6 : vector<1x32xf32> to vector<16x32xf32>
    %8 = arith.mulf %1, %7 : vector<16x32xf32>
    %9 = vector.broadcast %4 : vector<1x32xf32> to vector<16x32xf32>
    %10 = arith.mulf %1, %9 : vector<16x32xf32>
    %cst = arith.constant dense<0.000000e+00> : vector<16xf32>
    %11 = vector.multi_reduction <add>, %10, %cst [1] : vector<16x32xf32> to vector<16xf32>
    %12 = vector.shape_cast %11 : vector<16xf32> to vector<16x1xf32>
    %cst_11 = arith.constant 1.000000e+00 : f32
    %13 = vector.broadcast %cst_11 : f32 to vector<16x1xf32>
    %14 = tpu.concatenate %8, %12, %13 in 1 : vector<16x32xf32>, vector<16x1xf32>, vector<16x1xf32> -> vector<16x34xf32>
    %cst_12 = arith.constant 1.000000e+00 : f32
    %15 = vector.broadcast %cst_12 : f32 to vector<8x1xf32>
    %16 = vector.broadcast %5 : vector<1x32xf32> to vector<8x32xf32>
    %17 = arith.mulf %3, %16 : vector<8x32xf32>
    %cst_13 = arith.constant dense<0.000000e+00> : vector<8xf32>
    %18 = vector.multi_reduction <add>, %17, %cst_13 [1] : vector<8x32xf32> to vector<8xf32>
    %19 = vector.shape_cast %18 : vector<8xf32> to vector<8x1xf32>
    %20 = tpu.concatenate %3, %15, %19 in 1 : vector<8x32xf32>, vector<8x1xf32>, vector<8x1xf32> -> vector<8x34xf32>
    %cst_14 = arith.constant dense<0.000000e+00> : vector<16x8xf32>
    %21 = tpu.matmul %14, %20, %cst_14 {dimension_numbers = #tpu.dot_dimension_numbers<[1], [1], [0], [0], [0, 0, 1, 0], [], []>} : vector<16x34xf32>, vector<8x34xf32>, vector<16x8xf32> -> vector<16x8xf32>
    %cst_15 = arith.constant dense<0xFF800000> : vector<16xf32>
    %22 = vector.multi_reduction <maximumf>, %21, %cst_15 [1] : vector<16x8xf32> to vector<16xf32>
    %23 = vector.shape_cast %22 : vector<16xf32> to vector<16x1xf32>
    %24 = vector.broadcast %23 : vector<16x1xf32> to vector<16x8xf32>
    %25 = arith.subf %21, %24 : vector<16x8xf32>
    %26 = math.exp %25 : vector<16x8xf32>
    %cst_16 = arith.constant dense<0.000000e+00> : vector<16xf32>
    %27 = vector.multi_reduction <add>, %26, %cst_16 [1] : vector<16x8xf32> to vector<16xf32>
    %28 = vector.shape_cast %27 : vector<16xf32> to vector<16x1xf32>
    %29 = vector.broadcast %28 : vector<16x1xf32> to vector<16x8xf32>
    %30 = arith.divf %26, %29 : vector<16x8xf32>
    %cst_17 = arith.constant dense<0.000000e+00> : vector<16x32xf32>
    %31 = tpu.matmul %30, %3, %cst_17 {dimension_numbers = #tpu.dot_dimension_numbers<[1], [0], [0], [1], [0, 0, 1, 1], [], []>} : vector<16x8xf32>, vector<8x32xf32>, vector<16x32xf32> -> vector<16x32xf32>
    %cst_18 = arith.constant dense<0xFF800000> : vector<1xf32>
    %32 = vector.multi_reduction <maximumf>, %23, %cst_18 [0] : vector<16x1xf32> to vector<1xf32>
    %33 = vector.shape_cast %32 : vector<1xf32> to vector<1x1xf32>
    %34 = vector.broadcast %33 : vector<1x1xf32> to vector<16x1xf32>
    %35 = arith.subf %23, %34 : vector<16x1xf32>
    %36 = math.exp %35 : vector<16x1xf32>
    %cst_19 = arith.constant dense<0.000000e+00> : vector<1xf32>
    %37 = vector.multi_reduction <add>, %36, %cst_19 [0] : vector<16x1xf32> to vector<1xf32>
    %38 = vector.shape_cast %37 : vector<1xf32> to vector<1x1xf32>
    %39 = vector.broadcast %38 : vector<1x1xf32> to vector<16x1xf32>
    %40 = arith.divf %36, %39 : vector<16x1xf32>
    %41 = vector.broadcast %40 : vector<16x1xf32> to vector<16x32xf32>
    %42 = arith.mulf %41, %1 : vector<16x32xf32>
    %cst_20 = arith.constant dense<0.000000e+00> : vector<32xf32>
    %43 = vector.multi_reduction <add>, %42, %cst_20 [0] : vector<16x32xf32> to vector<32xf32>
    %44 = vector.shape_cast %43 : vector<32xf32> to vector<1x32xf32>
    %45 = arith.mulf %1, %31 : vector<16x32xf32>
    %46 = vector.broadcast %44 : vector<1x32xf32> to vector<16x32xf32>
    %47 = arith.mulf %1, %46 : vector<16x32xf32>
    %48 = tpu.concatenate %1, %31, %45, %47 in 1 : vector<16x32xf32>, vector<16x32xf32>, vector<16x32xf32>, vector<16x32xf32> -> vector<16x128xf32>
    %c0_21 = arith.constant 0 : index
    %c0_22 = arith.constant 0 : index
    %c0_23 = arith.constant 0 : index
    %49 = vector.load %arg6[%c0_21, %c0_22, %c0_23] : memref<1x16x128xf32, #tpu.memory_space<vmem>>, vector<1x16x128xf32>
    %50 = vector.shape_cast %49 : vector<1x16x128xf32> to vector<16x128xf32>
    %51 = vector.shape_cast %48 : vector<16x128xf32> to vector<1x16x128xf32>
    tpu.vector_store %arg6[%c0_21, %c0_22, %c0_23], %51 {strides = array<i32>} : memref<1x16x128xf32, #tpu.memory_space<vmem>>, vector<1x16x128xf32>,
    return
  }
  func.func @transform_0(%arg0: i32) -> (i32, i32, i32) {
    %c0_i32 = arith.constant 0 : i32
    %c0_i32_0 = arith.constant 0 : i32
    %c0_i32_1 = arith.constant 0 : i32
    return %arg0, %c0_i32, %c0_i32_0 : i32, i32, i32
  }
  func.func @transform_1(%arg0: i32) -> (i32, i32, i32) {
    %c0_i32 = arith.constant 0 : i32
    %c0_i32_0 = arith.constant 0 : i32
    %c0_i32_1 = arith.constant 0 : i32
    return %arg0, %c0_i32, %c0_i32_0 : i32, i32, i32
  }
  func.func @transform_2(%arg0: i32) -> (i32, i32) {
    %c0_i32 = arith.constant 0 : i32
    %c0_i32_0 = arith.constant 0 : i32
    %c0_i32_1 = arith.constant 0 : i32
    return %c0_i32, %c0_i32_0 : i32, i32
  }
  func.func @transform_3(%arg0: i32) -> (i32, i32) {
    %c0_i32 = arith.constant 0 : i32
    %c0_i32_0 = arith.constant 0 : i32
    %c0_i32_1 = arith.constant 0 : i32
    return %c0_i32, %c0_i32_0 : i32, i32
  }
  func.func @transform_4(%arg0: i32) -> (i32, i32) {
    %c0_i32 = arith.constant 0 : i32
    %c0_i32_0 = arith.constant 0 : i32
    %c0_i32_1 = arith.constant 0 : i32
    return %c0_i32, %c0_i32_0 : i32, i32
  }
  func.func @transform_5(%arg0: i32) -> (i32, i32, i32) {
    %c0_i32 = arith.constant 0 : i32
    %c0_i32_0 = arith.constant 0 : i32
    %c0_i32_1 = arith.constant 0 : i32
    return %arg0, %c0_i32, %c0_i32_0 : i32, i32, i32
  }
}

module attributes {stable_mosaic.version = 11 : i64} {
  func.func @_bilstm_kernel(%arg0: i32, %arg1: memref<32x32xf32, #tpu.memory_space<vmem>>, %arg2: memref<32x128xf32, #tpu.memory_space<vmem>>, %arg3: memref<1x128xf32, #tpu.memory_space<vmem>>, %arg4: memref<32x128xf32, #tpu.memory_space<vmem>>, %arg5: memref<16x2x32xf32, #tpu.memory_space<vmem>>) attributes {dimension_semantics = [#tpu.dimension_semantics<arbitrary>], iteration_bounds = array<i64: 1>, scalar_prefetch = 0 : i64, scratch_operands = 0 : i64, tpu.core_type = #tpu.core_type<tc>, window_params = [{pipeline_mode = #tpu.pipeline_mode<synchronous>, transform_indices = @transform_0, window_bounds = array<i64: 32, 32>}, {pipeline_mode = #tpu.pipeline_mode<synchronous>, transform_indices = @transform_1, window_bounds = array<i64: 32, 128>}, {pipeline_mode = #tpu.pipeline_mode<synchronous>, transform_indices = @transform_2, window_bounds = array<i64: 1, 128>}, {pipeline_mode = #tpu.pipeline_mode<synchronous>, transform_indices = @transform_3, window_bounds = array<i64: 32, 128>}, {pipeline_mode = #tpu.pipeline_mode<synchronous>, transform_indices = @transform_4, window_bounds = array<i64: 16, 2, 32>}]} {
    %c0 = arith.constant 0 : index
    %c0_0 = arith.constant 0 : index
    %0 = vector.load %arg1[%c0, %c0_0] : memref<32x32xf32, #tpu.memory_space<vmem>>, vector<32x32xf32>
    %c0_1 = arith.constant 0 : index
    %c0_2 = arith.constant 0 : index
    %1 = vector.load %arg2[%c0_1, %c0_2] : memref<32x128xf32, #tpu.memory_space<vmem>>, vector<32x128xf32>
    %cst = arith.constant dense<0.000000e+00> : vector<32x128xf32>
    %2 = tpu.matmul %0, %1, %cst {dimension_numbers = #tpu.dot_dimension_numbers<[1], [0], [0], [1], [0, 0, 1, 1], [], []>} : vector<32x32xf32>, vector<32x128xf32>, vector<32x128xf32> -> vector<32x128xf32>
    %c0_3 = arith.constant 0 : index
    %c0_4 = arith.constant 0 : index
    %3 = vector.load %arg3[%c0_3, %c0_4] : memref<1x128xf32, #tpu.memory_space<vmem>>, vector<1x128xf32>
    %4 = vector.broadcast %3 : vector<1x128xf32> to vector<32x128xf32>
    %5 = arith.addf %2, %4 : vector<32x128xf32>
    %c0_5 = arith.constant 0 : index
    %c0_6 = arith.constant 0 : index
    %6 = vector.load %arg4[%c0_5, %c0_6] : memref<32x128xf32, #tpu.memory_space<vmem>>, vector<32x128xf32>
    %7 = tpu.iota {dimensions = array<i32: 1>} : vector<2x128xi32>
    %c32_i32 = arith.constant 32 : i32
    %c0_i32 = arith.constant 0 : i32
    %8 = arith.cmpi eq, %c32_i32, %c0_i32 : i32
    %c1_i32 = arith.constant 1 : i32
    %9 = arith.select %8, %c1_i32, %c32_i32 : i32
    %10 = vector.broadcast %9 : i32 to vector<2x128xi32>
    %11 = arith.remsi %7, %10 : vector<2x128xi32>
    %c0_i32_7 = arith.constant 0 : i32
    %12 = vector.broadcast %c0_i32_7 : i32 to vector<2x128xi32>
    %13 = arith.cmpi ne, %11, %12 : vector<2x128xi32>
    %c0_i32_8 = arith.constant 0 : i32
    %14 = vector.broadcast %c0_i32_8 : i32 to vector<2x128xi32>
    %15 = arith.cmpi slt, %11, %14 : vector<2x128xi32>
    %c0_i32_9 = arith.constant 0 : i32
    %16 = arith.cmpi slt, %9, %c0_i32_9 : i32
    %17 = vector.broadcast %16 : i1 to vector<2x128xi1>
    %18 = vector.broadcast %17 : vector<2x128xi1> to vector<2x128xi1>
    %19 = arith.xori %15, %18 : vector<2x128xi1>
    %20 = arith.andi %19, %13 : vector<2x128xi1>
    %21 = vector.broadcast %9 : i32 to vector<2x128xi32>
    %22 = arith.addi %11, %21 : vector<2x128xi32>
    %23 = arith.select %20, %22, %11 : vector<2x128xi1>, vector<2x128xi32>
    %c16_i32 = arith.constant 16 : i32
    %24 = vector.broadcast %c16_i32 : i32 to vector<2x128xi32>
    %25 = arith.cmpi slt, %23, %24 : vector<2x128xi32>
    %cst_10 = arith.constant 0.000000e+00 : f32
    %26 = vector.broadcast %cst_10 : f32 to vector<2x32xf32>
    %cst_11 = arith.constant 0.000000e+00 : f32
    %27 = vector.broadcast %cst_11 : f32 to vector<2x32xf32>
    %28 = vector.extract_strided_slice %5 {offsets = [0, 0], sizes = [2, 128], strides = [1, 1]} : vector<32x128xf32> to vector<2x128xf32>
    %29 = vector.extract_strided_slice %5 {offsets = [30, 0], sizes = [2, 128], strides = [1, 1]} : vector<32x128xf32> to vector<2x128xf32>
    %30 = arith.select %25, %28, %29 : vector<2x128xi1>, vector<2x128xf32>
    %cst_12 = arith.constant dense<0.000000e+00> : vector<2x128xf32>
    %31 = tpu.matmul %26, %6, %cst_12 {dimension_numbers = #tpu.dot_dimension_numbers<[1], [0], [0], [1], [0, 0, 1, 1], [], []>} : vector<2x32xf32>, vector<32x128xf32>, vector<2x128xf32> -> vector<2x128xf32>
    %32 = arith.addf %30, %31 : vector<2x128xf32>
    %33 = arith.negf %32 : vector<2x128xf32>
    %34 = math.exp %33 : vector<2x128xf32>
    %cst_13 = arith.constant 1.000000e+00 : f32
    %35 = vector.broadcast %cst_13 : f32 to vector<2x128xf32>
    %36 = arith.addf %35, %34 : vector<2x128xf32>
    %37 = arith.divf %35, %36 : vector<2x128xf32>
    %38 = math.tanh %32 : vector<2x128xf32>
    %39 = vector.extract_strided_slice %37 {offsets = [0, 0], sizes = [2, 32], strides = [1, 1]} : vector<2x128xf32> to vector<2x32xf32>
    %40 = vector.extract_strided_slice %37 {offsets = [0, 32], sizes = [2, 32], strides = [1, 1]} : vector<2x128xf32> to vector<2x32xf32>
    %41 = vector.extract_strided_slice %38 {offsets = [0, 64], sizes = [2, 32], strides = [1, 1]} : vector<2x128xf32> to vector<2x32xf32>
    %42 = vector.extract_strided_slice %37 {offsets = [0, 96], sizes = [2, 32], strides = [1, 1]} : vector<2x128xf32> to vector<2x32xf32>
    %43 = arith.mulf %40, %27 : vector<2x32xf32>
    %44 = arith.mulf %39, %41 : vector<2x32xf32>
    %45 = arith.addf %43, %44 : vector<2x32xf32>
    %46 = math.tanh %45 : vector<2x32xf32>
    %47 = arith.mulf %42, %46 : vector<2x32xf32>
    %48 = vector.extract_strided_slice %47 {offsets = [0, 0], sizes = [2, 16], strides = [1, 1]} : vector<2x32xf32> to vector<2x16xf32>
    %c0_14 = arith.constant 0 : index
    %c0_15 = arith.constant 0 : index
    %c0_16 = arith.constant 0 : index
    %49 = vector.load %arg5[%c0_14, %c0_15, %c0_16] : memref<16x2x32xf32, #tpu.memory_space<vmem>>, vector<1x2x16xf32>
    %50 = vector.shape_cast %49 : vector<1x2x16xf32> to vector<2x16xf32>
    %51 = vector.shape_cast %48 : vector<2x16xf32> to vector<1x2x16xf32>
    tpu.vector_store %arg5[%c0_14, %c0_15, %c0_16], %51 {strides = array<i32>} : memref<16x2x32xf32, #tpu.memory_space<vmem>>, vector<1x2x16xf32>,
    %52 = vector.extract_strided_slice %47 {offsets = [0, 16], sizes = [2, 16], strides = [1, 1]} : vector<2x32xf32> to vector<2x16xf32>
    %c15 = arith.constant 15 : index
    %c0_17 = arith.constant 0 : index
    %c16 = arith.constant 16 : index
    %53 = vector.load %arg5[%c15, %c0_17, %c16] : memref<16x2x32xf32, #tpu.memory_space<vmem>>, vector<1x2x16xf32>
    %54 = vector.shape_cast %53 : vector<1x2x16xf32> to vector<2x16xf32>
    %55 = vector.shape_cast %52 : vector<2x16xf32> to vector<1x2x16xf32>
    tpu.vector_store %arg5[%c15, %c0_17, %c16], %55 {strides = array<i32>} : memref<16x2x32xf32, #tpu.memory_space<vmem>>, vector<1x2x16xf32>,
    %56 = vector.extract_strided_slice %5 {offsets = [2, 0], sizes = [2, 128], strides = [1, 1]} : vector<32x128xf32> to vector<2x128xf32>
    %57 = vector.extract_strided_slice %5 {offsets = [28, 0], sizes = [2, 128], strides = [1, 1]} : vector<32x128xf32> to vector<2x128xf32>
    %58 = arith.select %25, %56, %57 : vector<2x128xi1>, vector<2x128xf32>
    %cst_18 = arith.constant dense<0.000000e+00> : vector<2x128xf32>
    %59 = tpu.matmul %47, %6, %cst_18 {dimension_numbers = #tpu.dot_dimension_numbers<[1], [0], [0], [1], [0, 0, 1, 1], [], []>} : vector<2x32xf32>, vector<32x128xf32>, vector<2x128xf32> -> vector<2x128xf32>
    %60 = arith.addf %58, %59 : vector<2x128xf32>
    %61 = arith.negf %60 : vector<2x128xf32>
    %62 = math.exp %61 : vector<2x128xf32>
    %cst_19 = arith.constant 1.000000e+00 : f32
    %63 = vector.broadcast %cst_19 : f32 to vector<2x128xf32>
    %64 = arith.addf %63, %62 : vector<2x128xf32>
    %65 = arith.divf %63, %64 : vector<2x128xf32>
    %66 = math.tanh %60 : vector<2x128xf32>
    %67 = vector.extract_strided_slice %65 {offsets = [0, 0], sizes = [2, 32], strides = [1, 1]} : vector<2x128xf32> to vector<2x32xf32>
    %68 = vector.extract_strided_slice %65 {offsets = [0, 32], sizes = [2, 32], strides = [1, 1]} : vector<2x128xf32> to vector<2x32xf32>
    %69 = vector.extract_strided_slice %66 {offsets = [0, 64], sizes = [2, 32], strides = [1, 1]} : vector<2x128xf32> to vector<2x32xf32>
    %70 = vector.extract_strided_slice %65 {offsets = [0, 96], sizes = [2, 32], strides = [1, 1]} : vector<2x128xf32> to vector<2x32xf32>
    %71 = arith.mulf %68, %45 : vector<2x32xf32>
    %72 = arith.mulf %67, %69 : vector<2x32xf32>
    %73 = arith.addf %71, %72 : vector<2x32xf32>
    %74 = math.tanh %73 : vector<2x32xf32>
    %75 = arith.mulf %70, %74 : vector<2x32xf32>
    %76 = vector.extract_strided_slice %75 {offsets = [0, 0], sizes = [2, 16], strides = [1, 1]} : vector<2x32xf32> to vector<2x16xf32>
    %c1 = arith.constant 1 : index
    %c0_20 = arith.constant 0 : index
    %c0_21 = arith.constant 0 : index
    %77 = vector.load %arg5[%c1, %c0_20, %c0_21] : memref<16x2x32xf32, #tpu.memory_space<vmem>>, vector<1x2x16xf32>
    %78 = vector.shape_cast %77 : vector<1x2x16xf32> to vector<2x16xf32>
    %79 = vector.shape_cast %76 : vector<2x16xf32> to vector<1x2x16xf32>
    tpu.vector_store %arg5[%c1, %c0_20, %c0_21], %79 {strides = array<i32>} : memref<16x2x32xf32, #tpu.memory_space<vmem>>, vector<1x2x16xf32>,
    %80 = vector.extract_strided_slice %75 {offsets = [0, 16], sizes = [2, 16], strides = [1, 1]} : vector<2x32xf32> to vector<2x16xf32>
    %c14 = arith.constant 14 : index
    %c0_22 = arith.constant 0 : index
    %c16_23 = arith.constant 16 : index
    %81 = vector.load %arg5[%c14, %c0_22, %c16_23] : memref<16x2x32xf32, #tpu.memory_space<vmem>>, vector<1x2x16xf32>
    %82 = vector.shape_cast %81 : vector<1x2x16xf32> to vector<2x16xf32>
    %83 = vector.shape_cast %80 : vector<2x16xf32> to vector<1x2x16xf32>
    tpu.vector_store %arg5[%c14, %c0_22, %c16_23], %83 {strides = array<i32>} : memref<16x2x32xf32, #tpu.memory_space<vmem>>, vector<1x2x16xf32>,
    %84 = vector.extract_strided_slice %5 {offsets = [4, 0], sizes = [2, 128], strides = [1, 1]} : vector<32x128xf32> to vector<2x128xf32>
    %85 = vector.extract_strided_slice %5 {offsets = [26, 0], sizes = [2, 128], strides = [1, 1]} : vector<32x128xf32> to vector<2x128xf32>
    %86 = arith.select %25, %84, %85 : vector<2x128xi1>, vector<2x128xf32>
    %cst_24 = arith.constant dense<0.000000e+00> : vector<2x128xf32>
    %87 = tpu.matmul %75, %6, %cst_24 {dimension_numbers = #tpu.dot_dimension_numbers<[1], [0], [0], [1], [0, 0, 1, 1], [], []>} : vector<2x32xf32>, vector<32x128xf32>, vector<2x128xf32> -> vector<2x128xf32>
    %88 = arith.addf %86, %87 : vector<2x128xf32>
    %89 = arith.negf %88 : vector<2x128xf32>
    %90 = math.exp %89 : vector<2x128xf32>
    %cst_25 = arith.constant 1.000000e+00 : f32
    %91 = vector.broadcast %cst_25 : f32 to vector<2x128xf32>
    %92 = arith.addf %91, %90 : vector<2x128xf32>
    %93 = arith.divf %91, %92 : vector<2x128xf32>
    %94 = math.tanh %88 : vector<2x128xf32>
    %95 = vector.extract_strided_slice %93 {offsets = [0, 0], sizes = [2, 32], strides = [1, 1]} : vector<2x128xf32> to vector<2x32xf32>
    %96 = vector.extract_strided_slice %93 {offsets = [0, 32], sizes = [2, 32], strides = [1, 1]} : vector<2x128xf32> to vector<2x32xf32>
    %97 = vector.extract_strided_slice %94 {offsets = [0, 64], sizes = [2, 32], strides = [1, 1]} : vector<2x128xf32> to vector<2x32xf32>
    %98 = vector.extract_strided_slice %93 {offsets = [0, 96], sizes = [2, 32], strides = [1, 1]} : vector<2x128xf32> to vector<2x32xf32>
    %99 = arith.mulf %96, %73 : vector<2x32xf32>
    %100 = arith.mulf %95, %97 : vector<2x32xf32>
    %101 = arith.addf %99, %100 : vector<2x32xf32>
    %102 = math.tanh %101 : vector<2x32xf32>
    %103 = arith.mulf %98, %102 : vector<2x32xf32>
    %104 = vector.extract_strided_slice %103 {offsets = [0, 0], sizes = [2, 16], strides = [1, 1]} : vector<2x32xf32> to vector<2x16xf32>
    %c2 = arith.constant 2 : index
    %c0_26 = arith.constant 0 : index
    %c0_27 = arith.constant 0 : index
    %105 = vector.load %arg5[%c2, %c0_26, %c0_27] : memref<16x2x32xf32, #tpu.memory_space<vmem>>, vector<1x2x16xf32>
    %106 = vector.shape_cast %105 : vector<1x2x16xf32> to vector<2x16xf32>
    %107 = vector.shape_cast %104 : vector<2x16xf32> to vector<1x2x16xf32>
    tpu.vector_store %arg5[%c2, %c0_26, %c0_27], %107 {strides = array<i32>} : memref<16x2x32xf32, #tpu.memory_space<vmem>>, vector<1x2x16xf32>,
    %108 = vector.extract_strided_slice %103 {offsets = [0, 16], sizes = [2, 16], strides = [1, 1]} : vector<2x32xf32> to vector<2x16xf32>
    %c13 = arith.constant 13 : index
    %c0_28 = arith.constant 0 : index
    %c16_29 = arith.constant 16 : index
    %109 = vector.load %arg5[%c13, %c0_28, %c16_29] : memref<16x2x32xf32, #tpu.memory_space<vmem>>, vector<1x2x16xf32>
    %110 = vector.shape_cast %109 : vector<1x2x16xf32> to vector<2x16xf32>
    %111 = vector.shape_cast %108 : vector<2x16xf32> to vector<1x2x16xf32>
    tpu.vector_store %arg5[%c13, %c0_28, %c16_29], %111 {strides = array<i32>} : memref<16x2x32xf32, #tpu.memory_space<vmem>>, vector<1x2x16xf32>,
    %112 = vector.extract_strided_slice %5 {offsets = [6, 0], sizes = [2, 128], strides = [1, 1]} : vector<32x128xf32> to vector<2x128xf32>
    %113 = vector.extract_strided_slice %5 {offsets = [24, 0], sizes = [2, 128], strides = [1, 1]} : vector<32x128xf32> to vector<2x128xf32>
    %114 = arith.select %25, %112, %113 : vector<2x128xi1>, vector<2x128xf32>
    %cst_30 = arith.constant dense<0.000000e+00> : vector<2x128xf32>
    %115 = tpu.matmul %103, %6, %cst_30 {dimension_numbers = #tpu.dot_dimension_numbers<[1], [0], [0], [1], [0, 0, 1, 1], [], []>} : vector<2x32xf32>, vector<32x128xf32>, vector<2x128xf32> -> vector<2x128xf32>
    %116 = arith.addf %114, %115 : vector<2x128xf32>
    %117 = arith.negf %116 : vector<2x128xf32>
    %118 = math.exp %117 : vector<2x128xf32>
    %cst_31 = arith.constant 1.000000e+00 : f32
    %119 = vector.broadcast %cst_31 : f32 to vector<2x128xf32>
    %120 = arith.addf %119, %118 : vector<2x128xf32>
    %121 = arith.divf %119, %120 : vector<2x128xf32>
    %122 = math.tanh %116 : vector<2x128xf32>
    %123 = vector.extract_strided_slice %121 {offsets = [0, 0], sizes = [2, 32], strides = [1, 1]} : vector<2x128xf32> to vector<2x32xf32>
    %124 = vector.extract_strided_slice %121 {offsets = [0, 32], sizes = [2, 32], strides = [1, 1]} : vector<2x128xf32> to vector<2x32xf32>
    %125 = vector.extract_strided_slice %122 {offsets = [0, 64], sizes = [2, 32], strides = [1, 1]} : vector<2x128xf32> to vector<2x32xf32>
    %126 = vector.extract_strided_slice %121 {offsets = [0, 96], sizes = [2, 32], strides = [1, 1]} : vector<2x128xf32> to vector<2x32xf32>
    %127 = arith.mulf %124, %101 : vector<2x32xf32>
    %128 = arith.mulf %123, %125 : vector<2x32xf32>
    %129 = arith.addf %127, %128 : vector<2x32xf32>
    %130 = math.tanh %129 : vector<2x32xf32>
    %131 = arith.mulf %126, %130 : vector<2x32xf32>
    %132 = vector.extract_strided_slice %131 {offsets = [0, 0], sizes = [2, 16], strides = [1, 1]} : vector<2x32xf32> to vector<2x16xf32>
    %c3 = arith.constant 3 : index
    %c0_32 = arith.constant 0 : index
    %c0_33 = arith.constant 0 : index
    %133 = vector.load %arg5[%c3, %c0_32, %c0_33] : memref<16x2x32xf32, #tpu.memory_space<vmem>>, vector<1x2x16xf32>
    %134 = vector.shape_cast %133 : vector<1x2x16xf32> to vector<2x16xf32>
    %135 = vector.shape_cast %132 : vector<2x16xf32> to vector<1x2x16xf32>
    tpu.vector_store %arg5[%c3, %c0_32, %c0_33], %135 {strides = array<i32>} : memref<16x2x32xf32, #tpu.memory_space<vmem>>, vector<1x2x16xf32>,
    %136 = vector.extract_strided_slice %131 {offsets = [0, 16], sizes = [2, 16], strides = [1, 1]} : vector<2x32xf32> to vector<2x16xf32>
    %c12 = arith.constant 12 : index
    %c0_34 = arith.constant 0 : index
    %c16_35 = arith.constant 16 : index
    %137 = vector.load %arg5[%c12, %c0_34, %c16_35] : memref<16x2x32xf32, #tpu.memory_space<vmem>>, vector<1x2x16xf32>
    %138 = vector.shape_cast %137 : vector<1x2x16xf32> to vector<2x16xf32>
    %139 = vector.shape_cast %136 : vector<2x16xf32> to vector<1x2x16xf32>
    tpu.vector_store %arg5[%c12, %c0_34, %c16_35], %139 {strides = array<i32>} : memref<16x2x32xf32, #tpu.memory_space<vmem>>, vector<1x2x16xf32>,
    %140 = vector.extract_strided_slice %5 {offsets = [8, 0], sizes = [2, 128], strides = [1, 1]} : vector<32x128xf32> to vector<2x128xf32>
    %141 = vector.extract_strided_slice %5 {offsets = [22, 0], sizes = [2, 128], strides = [1, 1]} : vector<32x128xf32> to vector<2x128xf32>
    %142 = arith.select %25, %140, %141 : vector<2x128xi1>, vector<2x128xf32>
    %cst_36 = arith.constant dense<0.000000e+00> : vector<2x128xf32>
    %143 = tpu.matmul %131, %6, %cst_36 {dimension_numbers = #tpu.dot_dimension_numbers<[1], [0], [0], [1], [0, 0, 1, 1], [], []>} : vector<2x32xf32>, vector<32x128xf32>, vector<2x128xf32> -> vector<2x128xf32>
    %144 = arith.addf %142, %143 : vector<2x128xf32>
    %145 = arith.negf %144 : vector<2x128xf32>
    %146 = math.exp %145 : vector<2x128xf32>
    %cst_37 = arith.constant 1.000000e+00 : f32
    %147 = vector.broadcast %cst_37 : f32 to vector<2x128xf32>
    %148 = arith.addf %147, %146 : vector<2x128xf32>
    %149 = arith.divf %147, %148 : vector<2x128xf32>
    %150 = math.tanh %144 : vector<2x128xf32>
    %151 = vector.extract_strided_slice %149 {offsets = [0, 0], sizes = [2, 32], strides = [1, 1]} : vector<2x128xf32> to vector<2x32xf32>
    %152 = vector.extract_strided_slice %149 {offsets = [0, 32], sizes = [2, 32], strides = [1, 1]} : vector<2x128xf32> to vector<2x32xf32>
    %153 = vector.extract_strided_slice %150 {offsets = [0, 64], sizes = [2, 32], strides = [1, 1]} : vector<2x128xf32> to vector<2x32xf32>
    %154 = vector.extract_strided_slice %149 {offsets = [0, 96], sizes = [2, 32], strides = [1, 1]} : vector<2x128xf32> to vector<2x32xf32>
    %155 = arith.mulf %152, %129 : vector<2x32xf32>
    %156 = arith.mulf %151, %153 : vector<2x32xf32>
    %157 = arith.addf %155, %156 : vector<2x32xf32>
    %158 = math.tanh %157 : vector<2x32xf32>
    %159 = arith.mulf %154, %158 : vector<2x32xf32>
    %160 = vector.extract_strided_slice %159 {offsets = [0, 0], sizes = [2, 16], strides = [1, 1]} : vector<2x32xf32> to vector<2x16xf32>
    %c4 = arith.constant 4 : index
    %c0_38 = arith.constant 0 : index
    %c0_39 = arith.constant 0 : index
    %161 = vector.load %arg5[%c4, %c0_38, %c0_39] : memref<16x2x32xf32, #tpu.memory_space<vmem>>, vector<1x2x16xf32>
    %162 = vector.shape_cast %161 : vector<1x2x16xf32> to vector<2x16xf32>
    %163 = vector.shape_cast %160 : vector<2x16xf32> to vector<1x2x16xf32>
    tpu.vector_store %arg5[%c4, %c0_38, %c0_39], %163 {strides = array<i32>} : memref<16x2x32xf32, #tpu.memory_space<vmem>>, vector<1x2x16xf32>,
    %164 = vector.extract_strided_slice %159 {offsets = [0, 16], sizes = [2, 16], strides = [1, 1]} : vector<2x32xf32> to vector<2x16xf32>
    %c11 = arith.constant 11 : index
    %c0_40 = arith.constant 0 : index
    %c16_41 = arith.constant 16 : index
    %165 = vector.load %arg5[%c11, %c0_40, %c16_41] : memref<16x2x32xf32, #tpu.memory_space<vmem>>, vector<1x2x16xf32>
    %166 = vector.shape_cast %165 : vector<1x2x16xf32> to vector<2x16xf32>
    %167 = vector.shape_cast %164 : vector<2x16xf32> to vector<1x2x16xf32>
    tpu.vector_store %arg5[%c11, %c0_40, %c16_41], %167 {strides = array<i32>} : memref<16x2x32xf32, #tpu.memory_space<vmem>>, vector<1x2x16xf32>,
    %168 = vector.extract_strided_slice %5 {offsets = [10, 0], sizes = [2, 128], strides = [1, 1]} : vector<32x128xf32> to vector<2x128xf32>
    %169 = vector.extract_strided_slice %5 {offsets = [20, 0], sizes = [2, 128], strides = [1, 1]} : vector<32x128xf32> to vector<2x128xf32>
    %170 = arith.select %25, %168, %169 : vector<2x128xi1>, vector<2x128xf32>
    %cst_42 = arith.constant dense<0.000000e+00> : vector<2x128xf32>
    %171 = tpu.matmul %159, %6, %cst_42 {dimension_numbers = #tpu.dot_dimension_numbers<[1], [0], [0], [1], [0, 0, 1, 1], [], []>} : vector<2x32xf32>, vector<32x128xf32>, vector<2x128xf32> -> vector<2x128xf32>
    %172 = arith.addf %170, %171 : vector<2x128xf32>
    %173 = arith.negf %172 : vector<2x128xf32>
    %174 = math.exp %173 : vector<2x128xf32>
    %cst_43 = arith.constant 1.000000e+00 : f32
    %175 = vector.broadcast %cst_43 : f32 to vector<2x128xf32>
    %176 = arith.addf %175, %174 : vector<2x128xf32>
    %177 = arith.divf %175, %176 : vector<2x128xf32>
    %178 = math.tanh %172 : vector<2x128xf32>
    %179 = vector.extract_strided_slice %177 {offsets = [0, 0], sizes = [2, 32], strides = [1, 1]} : vector<2x128xf32> to vector<2x32xf32>
    %180 = vector.extract_strided_slice %177 {offsets = [0, 32], sizes = [2, 32], strides = [1, 1]} : vector<2x128xf32> to vector<2x32xf32>
    %181 = vector.extract_strided_slice %178 {offsets = [0, 64], sizes = [2, 32], strides = [1, 1]} : vector<2x128xf32> to vector<2x32xf32>
    %182 = vector.extract_strided_slice %177 {offsets = [0, 96], sizes = [2, 32], strides = [1, 1]} : vector<2x128xf32> to vector<2x32xf32>
    %183 = arith.mulf %180, %157 : vector<2x32xf32>
    %184 = arith.mulf %179, %181 : vector<2x32xf32>
    %185 = arith.addf %183, %184 : vector<2x32xf32>
    %186 = math.tanh %185 : vector<2x32xf32>
    %187 = arith.mulf %182, %186 : vector<2x32xf32>
    %188 = vector.extract_strided_slice %187 {offsets = [0, 0], sizes = [2, 16], strides = [1, 1]} : vector<2x32xf32> to vector<2x16xf32>
    %c5 = arith.constant 5 : index
    %c0_44 = arith.constant 0 : index
    %c0_45 = arith.constant 0 : index
    %189 = vector.load %arg5[%c5, %c0_44, %c0_45] : memref<16x2x32xf32, #tpu.memory_space<vmem>>, vector<1x2x16xf32>
    %190 = vector.shape_cast %189 : vector<1x2x16xf32> to vector<2x16xf32>
    %191 = vector.shape_cast %188 : vector<2x16xf32> to vector<1x2x16xf32>
    tpu.vector_store %arg5[%c5, %c0_44, %c0_45], %191 {strides = array<i32>} : memref<16x2x32xf32, #tpu.memory_space<vmem>>, vector<1x2x16xf32>,
    %192 = vector.extract_strided_slice %187 {offsets = [0, 16], sizes = [2, 16], strides = [1, 1]} : vector<2x32xf32> to vector<2x16xf32>
    %c10 = arith.constant 10 : index
    %c0_46 = arith.constant 0 : index
    %c16_47 = arith.constant 16 : index
    %193 = vector.load %arg5[%c10, %c0_46, %c16_47] : memref<16x2x32xf32, #tpu.memory_space<vmem>>, vector<1x2x16xf32>
    %194 = vector.shape_cast %193 : vector<1x2x16xf32> to vector<2x16xf32>
    %195 = vector.shape_cast %192 : vector<2x16xf32> to vector<1x2x16xf32>
    tpu.vector_store %arg5[%c10, %c0_46, %c16_47], %195 {strides = array<i32>} : memref<16x2x32xf32, #tpu.memory_space<vmem>>, vector<1x2x16xf32>,
    %196 = vector.extract_strided_slice %5 {offsets = [12, 0], sizes = [2, 128], strides = [1, 1]} : vector<32x128xf32> to vector<2x128xf32>
    %197 = vector.extract_strided_slice %5 {offsets = [18, 0], sizes = [2, 128], strides = [1, 1]} : vector<32x128xf32> to vector<2x128xf32>
    %198 = arith.select %25, %196, %197 : vector<2x128xi1>, vector<2x128xf32>
    %cst_48 = arith.constant dense<0.000000e+00> : vector<2x128xf32>
    %199 = tpu.matmul %187, %6, %cst_48 {dimension_numbers = #tpu.dot_dimension_numbers<[1], [0], [0], [1], [0, 0, 1, 1], [], []>} : vector<2x32xf32>, vector<32x128xf32>, vector<2x128xf32> -> vector<2x128xf32>
    %200 = arith.addf %198, %199 : vector<2x128xf32>
    %201 = arith.negf %200 : vector<2x128xf32>
    %202 = math.exp %201 : vector<2x128xf32>
    %cst_49 = arith.constant 1.000000e+00 : f32
    %203 = vector.broadcast %cst_49 : f32 to vector<2x128xf32>
    %204 = arith.addf %203, %202 : vector<2x128xf32>
    %205 = arith.divf %203, %204 : vector<2x128xf32>
    %206 = math.tanh %200 : vector<2x128xf32>
    %207 = vector.extract_strided_slice %205 {offsets = [0, 0], sizes = [2, 32], strides = [1, 1]} : vector<2x128xf32> to vector<2x32xf32>
    %208 = vector.extract_strided_slice %205 {offsets = [0, 32], sizes = [2, 32], strides = [1, 1]} : vector<2x128xf32> to vector<2x32xf32>
    %209 = vector.extract_strided_slice %206 {offsets = [0, 64], sizes = [2, 32], strides = [1, 1]} : vector<2x128xf32> to vector<2x32xf32>
    %210 = vector.extract_strided_slice %205 {offsets = [0, 96], sizes = [2, 32], strides = [1, 1]} : vector<2x128xf32> to vector<2x32xf32>
    %211 = arith.mulf %208, %185 : vector<2x32xf32>
    %212 = arith.mulf %207, %209 : vector<2x32xf32>
    %213 = arith.addf %211, %212 : vector<2x32xf32>
    %214 = math.tanh %213 : vector<2x32xf32>
    %215 = arith.mulf %210, %214 : vector<2x32xf32>
    %216 = vector.extract_strided_slice %215 {offsets = [0, 0], sizes = [2, 16], strides = [1, 1]} : vector<2x32xf32> to vector<2x16xf32>
    %c6 = arith.constant 6 : index
    %c0_50 = arith.constant 0 : index
    %c0_51 = arith.constant 0 : index
    %217 = vector.load %arg5[%c6, %c0_50, %c0_51] : memref<16x2x32xf32, #tpu.memory_space<vmem>>, vector<1x2x16xf32>
    %218 = vector.shape_cast %217 : vector<1x2x16xf32> to vector<2x16xf32>
    %219 = vector.shape_cast %216 : vector<2x16xf32> to vector<1x2x16xf32>
    tpu.vector_store %arg5[%c6, %c0_50, %c0_51], %219 {strides = array<i32>} : memref<16x2x32xf32, #tpu.memory_space<vmem>>, vector<1x2x16xf32>,
    %220 = vector.extract_strided_slice %215 {offsets = [0, 16], sizes = [2, 16], strides = [1, 1]} : vector<2x32xf32> to vector<2x16xf32>
    %c9 = arith.constant 9 : index
    %c0_52 = arith.constant 0 : index
    %c16_53 = arith.constant 16 : index
    %221 = vector.load %arg5[%c9, %c0_52, %c16_53] : memref<16x2x32xf32, #tpu.memory_space<vmem>>, vector<1x2x16xf32>
    %222 = vector.shape_cast %221 : vector<1x2x16xf32> to vector<2x16xf32>
    %223 = vector.shape_cast %220 : vector<2x16xf32> to vector<1x2x16xf32>
    tpu.vector_store %arg5[%c9, %c0_52, %c16_53], %223 {strides = array<i32>} : memref<16x2x32xf32, #tpu.memory_space<vmem>>, vector<1x2x16xf32>,
    %224 = vector.extract_strided_slice %5 {offsets = [14, 0], sizes = [2, 128], strides = [1, 1]} : vector<32x128xf32> to vector<2x128xf32>
    %225 = vector.extract_strided_slice %5 {offsets = [16, 0], sizes = [2, 128], strides = [1, 1]} : vector<32x128xf32> to vector<2x128xf32>
    %226 = arith.select %25, %224, %225 : vector<2x128xi1>, vector<2x128xf32>
    %cst_54 = arith.constant dense<0.000000e+00> : vector<2x128xf32>
    %227 = tpu.matmul %215, %6, %cst_54 {dimension_numbers = #tpu.dot_dimension_numbers<[1], [0], [0], [1], [0, 0, 1, 1], [], []>} : vector<2x32xf32>, vector<32x128xf32>, vector<2x128xf32> -> vector<2x128xf32>
    %228 = arith.addf %226, %227 : vector<2x128xf32>
    %229 = arith.negf %228 : vector<2x128xf32>
    %230 = math.exp %229 : vector<2x128xf32>
    %cst_55 = arith.constant 1.000000e+00 : f32
    %231 = vector.broadcast %cst_55 : f32 to vector<2x128xf32>
    %232 = arith.addf %231, %230 : vector<2x128xf32>
    %233 = arith.divf %231, %232 : vector<2x128xf32>
    %234 = math.tanh %228 : vector<2x128xf32>
    %235 = vector.extract_strided_slice %233 {offsets = [0, 0], sizes = [2, 32], strides = [1, 1]} : vector<2x128xf32> to vector<2x32xf32>
    %236 = vector.extract_strided_slice %233 {offsets = [0, 32], sizes = [2, 32], strides = [1, 1]} : vector<2x128xf32> to vector<2x32xf32>
    %237 = vector.extract_strided_slice %234 {offsets = [0, 64], sizes = [2, 32], strides = [1, 1]} : vector<2x128xf32> to vector<2x32xf32>
    %238 = vector.extract_strided_slice %233 {offsets = [0, 96], sizes = [2, 32], strides = [1, 1]} : vector<2x128xf32> to vector<2x32xf32>
    %239 = arith.mulf %236, %213 : vector<2x32xf32>
    %240 = arith.mulf %235, %237 : vector<2x32xf32>
    %241 = arith.addf %239, %240 : vector<2x32xf32>
    %242 = math.tanh %241 : vector<2x32xf32>
    %243 = arith.mulf %238, %242 : vector<2x32xf32>
    %244 = vector.extract_strided_slice %243 {offsets = [0, 0], sizes = [2, 16], strides = [1, 1]} : vector<2x32xf32> to vector<2x16xf32>
    %c7 = arith.constant 7 : index
    %c0_56 = arith.constant 0 : index
    %c0_57 = arith.constant 0 : index
    %245 = vector.load %arg5[%c7, %c0_56, %c0_57] : memref<16x2x32xf32, #tpu.memory_space<vmem>>, vector<1x2x16xf32>
    %246 = vector.shape_cast %245 : vector<1x2x16xf32> to vector<2x16xf32>
    %247 = vector.shape_cast %244 : vector<2x16xf32> to vector<1x2x16xf32>
    tpu.vector_store %arg5[%c7, %c0_56, %c0_57], %247 {strides = array<i32>} : memref<16x2x32xf32, #tpu.memory_space<vmem>>, vector<1x2x16xf32>,
    %248 = vector.extract_strided_slice %243 {offsets = [0, 16], sizes = [2, 16], strides = [1, 1]} : vector<2x32xf32> to vector<2x16xf32>
    %c8 = arith.constant 8 : index
    %c0_58 = arith.constant 0 : index
    %c16_59 = arith.constant 16 : index
    %249 = vector.load %arg5[%c8, %c0_58, %c16_59] : memref<16x2x32xf32, #tpu.memory_space<vmem>>, vector<1x2x16xf32>
    %250 = vector.shape_cast %249 : vector<1x2x16xf32> to vector<2x16xf32>
    %251 = vector.shape_cast %248 : vector<2x16xf32> to vector<1x2x16xf32>
    tpu.vector_store %arg5[%c8, %c0_58, %c16_59], %251 {strides = array<i32>} : memref<16x2x32xf32, #tpu.memory_space<vmem>>, vector<1x2x16xf32>,
    %252 = vector.extract_strided_slice %5 {offsets = [16, 0], sizes = [2, 128], strides = [1, 1]} : vector<32x128xf32> to vector<2x128xf32>
    %253 = vector.extract_strided_slice %5 {offsets = [14, 0], sizes = [2, 128], strides = [1, 1]} : vector<32x128xf32> to vector<2x128xf32>
    %254 = arith.select %25, %252, %253 : vector<2x128xi1>, vector<2x128xf32>
    %cst_60 = arith.constant dense<0.000000e+00> : vector<2x128xf32>
    %255 = tpu.matmul %243, %6, %cst_60 {dimension_numbers = #tpu.dot_dimension_numbers<[1], [0], [0], [1], [0, 0, 1, 1], [], []>} : vector<2x32xf32>, vector<32x128xf32>, vector<2x128xf32> -> vector<2x128xf32>
    %256 = arith.addf %254, %255 : vector<2x128xf32>
    %257 = arith.negf %256 : vector<2x128xf32>
    %258 = math.exp %257 : vector<2x128xf32>
    %cst_61 = arith.constant 1.000000e+00 : f32
    %259 = vector.broadcast %cst_61 : f32 to vector<2x128xf32>
    %260 = arith.addf %259, %258 : vector<2x128xf32>
    %261 = arith.divf %259, %260 : vector<2x128xf32>
    %262 = math.tanh %256 : vector<2x128xf32>
    %263 = vector.extract_strided_slice %261 {offsets = [0, 0], sizes = [2, 32], strides = [1, 1]} : vector<2x128xf32> to vector<2x32xf32>
    %264 = vector.extract_strided_slice %261 {offsets = [0, 32], sizes = [2, 32], strides = [1, 1]} : vector<2x128xf32> to vector<2x32xf32>
    %265 = vector.extract_strided_slice %262 {offsets = [0, 64], sizes = [2, 32], strides = [1, 1]} : vector<2x128xf32> to vector<2x32xf32>
    %266 = vector.extract_strided_slice %261 {offsets = [0, 96], sizes = [2, 32], strides = [1, 1]} : vector<2x128xf32> to vector<2x32xf32>
    %267 = arith.mulf %264, %241 : vector<2x32xf32>
    %268 = arith.mulf %263, %265 : vector<2x32xf32>
    %269 = arith.addf %267, %268 : vector<2x32xf32>
    %270 = math.tanh %269 : vector<2x32xf32>
    %271 = arith.mulf %266, %270 : vector<2x32xf32>
    %272 = vector.extract_strided_slice %271 {offsets = [0, 0], sizes = [2, 16], strides = [1, 1]} : vector<2x32xf32> to vector<2x16xf32>
    %c8_62 = arith.constant 8 : index
    %c0_63 = arith.constant 0 : index
    %c0_64 = arith.constant 0 : index
    %273 = vector.load %arg5[%c8_62, %c0_63, %c0_64] : memref<16x2x32xf32, #tpu.memory_space<vmem>>, vector<1x2x16xf32>
    %274 = vector.shape_cast %273 : vector<1x2x16xf32> to vector<2x16xf32>
    %275 = vector.shape_cast %272 : vector<2x16xf32> to vector<1x2x16xf32>
    tpu.vector_store %arg5[%c8_62, %c0_63, %c0_64], %275 {strides = array<i32>} : memref<16x2x32xf32, #tpu.memory_space<vmem>>, vector<1x2x16xf32>,
    %276 = vector.extract_strided_slice %271 {offsets = [0, 16], sizes = [2, 16], strides = [1, 1]} : vector<2x32xf32> to vector<2x16xf32>
    %c7_65 = arith.constant 7 : index
    %c0_66 = arith.constant 0 : index
    %c16_67 = arith.constant 16 : index
    %277 = vector.load %arg5[%c7_65, %c0_66, %c16_67] : memref<16x2x32xf32, #tpu.memory_space<vmem>>, vector<1x2x16xf32>
    %278 = vector.shape_cast %277 : vector<1x2x16xf32> to vector<2x16xf32>
    %279 = vector.shape_cast %276 : vector<2x16xf32> to vector<1x2x16xf32>
    tpu.vector_store %arg5[%c7_65, %c0_66, %c16_67], %279 {strides = array<i32>} : memref<16x2x32xf32, #tpu.memory_space<vmem>>, vector<1x2x16xf32>,
    %280 = vector.extract_strided_slice %5 {offsets = [18, 0], sizes = [2, 128], strides = [1, 1]} : vector<32x128xf32> to vector<2x128xf32>
    %281 = vector.extract_strided_slice %5 {offsets = [12, 0], sizes = [2, 128], strides = [1, 1]} : vector<32x128xf32> to vector<2x128xf32>
    %282 = arith.select %25, %280, %281 : vector<2x128xi1>, vector<2x128xf32>
    %cst_68 = arith.constant dense<0.000000e+00> : vector<2x128xf32>
    %283 = tpu.matmul %271, %6, %cst_68 {dimension_numbers = #tpu.dot_dimension_numbers<[1], [0], [0], [1], [0, 0, 1, 1], [], []>} : vector<2x32xf32>, vector<32x128xf32>, vector<2x128xf32> -> vector<2x128xf32>
    %284 = arith.addf %282, %283 : vector<2x128xf32>
    %285 = arith.negf %284 : vector<2x128xf32>
    %286 = math.exp %285 : vector<2x128xf32>
    %cst_69 = arith.constant 1.000000e+00 : f32
    %287 = vector.broadcast %cst_69 : f32 to vector<2x128xf32>
    %288 = arith.addf %287, %286 : vector<2x128xf32>
    %289 = arith.divf %287, %288 : vector<2x128xf32>
    %290 = math.tanh %284 : vector<2x128xf32>
    %291 = vector.extract_strided_slice %289 {offsets = [0, 0], sizes = [2, 32], strides = [1, 1]} : vector<2x128xf32> to vector<2x32xf32>
    %292 = vector.extract_strided_slice %289 {offsets = [0, 32], sizes = [2, 32], strides = [1, 1]} : vector<2x128xf32> to vector<2x32xf32>
    %293 = vector.extract_strided_slice %290 {offsets = [0, 64], sizes = [2, 32], strides = [1, 1]} : vector<2x128xf32> to vector<2x32xf32>
    %294 = vector.extract_strided_slice %289 {offsets = [0, 96], sizes = [2, 32], strides = [1, 1]} : vector<2x128xf32> to vector<2x32xf32>
    %295 = arith.mulf %292, %269 : vector<2x32xf32>
    %296 = arith.mulf %291, %293 : vector<2x32xf32>
    %297 = arith.addf %295, %296 : vector<2x32xf32>
    %298 = math.tanh %297 : vector<2x32xf32>
    %299 = arith.mulf %294, %298 : vector<2x32xf32>
    %300 = vector.extract_strided_slice %299 {offsets = [0, 0], sizes = [2, 16], strides = [1, 1]} : vector<2x32xf32> to vector<2x16xf32>
    %c9_70 = arith.constant 9 : index
    %c0_71 = arith.constant 0 : index
    %c0_72 = arith.constant 0 : index
    %301 = vector.load %arg5[%c9_70, %c0_71, %c0_72] : memref<16x2x32xf32, #tpu.memory_space<vmem>>, vector<1x2x16xf32>
    %302 = vector.shape_cast %301 : vector<1x2x16xf32> to vector<2x16xf32>
    %303 = vector.shape_cast %300 : vector<2x16xf32> to vector<1x2x16xf32>
    tpu.vector_store %arg5[%c9_70, %c0_71, %c0_72], %303 {strides = array<i32>} : memref<16x2x32xf32, #tpu.memory_space<vmem>>, vector<1x2x16xf32>,
    %304 = vector.extract_strided_slice %299 {offsets = [0, 16], sizes = [2, 16], strides = [1, 1]} : vector<2x32xf32> to vector<2x16xf32>
    %c6_73 = arith.constant 6 : index
    %c0_74 = arith.constant 0 : index
    %c16_75 = arith.constant 16 : index
    %305 = vector.load %arg5[%c6_73, %c0_74, %c16_75] : memref<16x2x32xf32, #tpu.memory_space<vmem>>, vector<1x2x16xf32>
    %306 = vector.shape_cast %305 : vector<1x2x16xf32> to vector<2x16xf32>
    %307 = vector.shape_cast %304 : vector<2x16xf32> to vector<1x2x16xf32>
    tpu.vector_store %arg5[%c6_73, %c0_74, %c16_75], %307 {strides = array<i32>} : memref<16x2x32xf32, #tpu.memory_space<vmem>>, vector<1x2x16xf32>,
    %308 = vector.extract_strided_slice %5 {offsets = [20, 0], sizes = [2, 128], strides = [1, 1]} : vector<32x128xf32> to vector<2x128xf32>
    %309 = vector.extract_strided_slice %5 {offsets = [10, 0], sizes = [2, 128], strides = [1, 1]} : vector<32x128xf32> to vector<2x128xf32>
    %310 = arith.select %25, %308, %309 : vector<2x128xi1>, vector<2x128xf32>
    %cst_76 = arith.constant dense<0.000000e+00> : vector<2x128xf32>
    %311 = tpu.matmul %299, %6, %cst_76 {dimension_numbers = #tpu.dot_dimension_numbers<[1], [0], [0], [1], [0, 0, 1, 1], [], []>} : vector<2x32xf32>, vector<32x128xf32>, vector<2x128xf32> -> vector<2x128xf32>
    %312 = arith.addf %310, %311 : vector<2x128xf32>
    %313 = arith.negf %312 : vector<2x128xf32>
    %314 = math.exp %313 : vector<2x128xf32>
    %cst_77 = arith.constant 1.000000e+00 : f32
    %315 = vector.broadcast %cst_77 : f32 to vector<2x128xf32>
    %316 = arith.addf %315, %314 : vector<2x128xf32>
    %317 = arith.divf %315, %316 : vector<2x128xf32>
    %318 = math.tanh %312 : vector<2x128xf32>
    %319 = vector.extract_strided_slice %317 {offsets = [0, 0], sizes = [2, 32], strides = [1, 1]} : vector<2x128xf32> to vector<2x32xf32>
    %320 = vector.extract_strided_slice %317 {offsets = [0, 32], sizes = [2, 32], strides = [1, 1]} : vector<2x128xf32> to vector<2x32xf32>
    %321 = vector.extract_strided_slice %318 {offsets = [0, 64], sizes = [2, 32], strides = [1, 1]} : vector<2x128xf32> to vector<2x32xf32>
    %322 = vector.extract_strided_slice %317 {offsets = [0, 96], sizes = [2, 32], strides = [1, 1]} : vector<2x128xf32> to vector<2x32xf32>
    %323 = arith.mulf %320, %297 : vector<2x32xf32>
    %324 = arith.mulf %319, %321 : vector<2x32xf32>
    %325 = arith.addf %323, %324 : vector<2x32xf32>
    %326 = math.tanh %325 : vector<2x32xf32>
    %327 = arith.mulf %322, %326 : vector<2x32xf32>
    %328 = vector.extract_strided_slice %327 {offsets = [0, 0], sizes = [2, 16], strides = [1, 1]} : vector<2x32xf32> to vector<2x16xf32>
    %c10_78 = arith.constant 10 : index
    %c0_79 = arith.constant 0 : index
    %c0_80 = arith.constant 0 : index
    %329 = vector.load %arg5[%c10_78, %c0_79, %c0_80] : memref<16x2x32xf32, #tpu.memory_space<vmem>>, vector<1x2x16xf32>
    %330 = vector.shape_cast %329 : vector<1x2x16xf32> to vector<2x16xf32>
    %331 = vector.shape_cast %328 : vector<2x16xf32> to vector<1x2x16xf32>
    tpu.vector_store %arg5[%c10_78, %c0_79, %c0_80], %331 {strides = array<i32>} : memref<16x2x32xf32, #tpu.memory_space<vmem>>, vector<1x2x16xf32>,
    %332 = vector.extract_strided_slice %327 {offsets = [0, 16], sizes = [2, 16], strides = [1, 1]} : vector<2x32xf32> to vector<2x16xf32>
    %c5_81 = arith.constant 5 : index
    %c0_82 = arith.constant 0 : index
    %c16_83 = arith.constant 16 : index
    %333 = vector.load %arg5[%c5_81, %c0_82, %c16_83] : memref<16x2x32xf32, #tpu.memory_space<vmem>>, vector<1x2x16xf32>
    %334 = vector.shape_cast %333 : vector<1x2x16xf32> to vector<2x16xf32>
    %335 = vector.shape_cast %332 : vector<2x16xf32> to vector<1x2x16xf32>
    tpu.vector_store %arg5[%c5_81, %c0_82, %c16_83], %335 {strides = array<i32>} : memref<16x2x32xf32, #tpu.memory_space<vmem>>, vector<1x2x16xf32>,
    %336 = vector.extract_strided_slice %5 {offsets = [22, 0], sizes = [2, 128], strides = [1, 1]} : vector<32x128xf32> to vector<2x128xf32>
    %337 = vector.extract_strided_slice %5 {offsets = [8, 0], sizes = [2, 128], strides = [1, 1]} : vector<32x128xf32> to vector<2x128xf32>
    %338 = arith.select %25, %336, %337 : vector<2x128xi1>, vector<2x128xf32>
    %cst_84 = arith.constant dense<0.000000e+00> : vector<2x128xf32>
    %339 = tpu.matmul %327, %6, %cst_84 {dimension_numbers = #tpu.dot_dimension_numbers<[1], [0], [0], [1], [0, 0, 1, 1], [], []>} : vector<2x32xf32>, vector<32x128xf32>, vector<2x128xf32> -> vector<2x128xf32>
    %340 = arith.addf %338, %339 : vector<2x128xf32>
    %341 = arith.negf %340 : vector<2x128xf32>
    %342 = math.exp %341 : vector<2x128xf32>
    %cst_85 = arith.constant 1.000000e+00 : f32
    %343 = vector.broadcast %cst_85 : f32 to vector<2x128xf32>
    %344 = arith.addf %343, %342 : vector<2x128xf32>
    %345 = arith.divf %343, %344 : vector<2x128xf32>
    %346 = math.tanh %340 : vector<2x128xf32>
    %347 = vector.extract_strided_slice %345 {offsets = [0, 0], sizes = [2, 32], strides = [1, 1]} : vector<2x128xf32> to vector<2x32xf32>
    %348 = vector.extract_strided_slice %345 {offsets = [0, 32], sizes = [2, 32], strides = [1, 1]} : vector<2x128xf32> to vector<2x32xf32>
    %349 = vector.extract_strided_slice %346 {offsets = [0, 64], sizes = [2, 32], strides = [1, 1]} : vector<2x128xf32> to vector<2x32xf32>
    %350 = vector.extract_strided_slice %345 {offsets = [0, 96], sizes = [2, 32], strides = [1, 1]} : vector<2x128xf32> to vector<2x32xf32>
    %351 = arith.mulf %348, %325 : vector<2x32xf32>
    %352 = arith.mulf %347, %349 : vector<2x32xf32>
    %353 = arith.addf %351, %352 : vector<2x32xf32>
    %354 = math.tanh %353 : vector<2x32xf32>
    %355 = arith.mulf %350, %354 : vector<2x32xf32>
    %356 = vector.extract_strided_slice %355 {offsets = [0, 0], sizes = [2, 16], strides = [1, 1]} : vector<2x32xf32> to vector<2x16xf32>
    %c11_86 = arith.constant 11 : index
    %c0_87 = arith.constant 0 : index
    %c0_88 = arith.constant 0 : index
    %357 = vector.load %arg5[%c11_86, %c0_87, %c0_88] : memref<16x2x32xf32, #tpu.memory_space<vmem>>, vector<1x2x16xf32>
    %358 = vector.shape_cast %357 : vector<1x2x16xf32> to vector<2x16xf32>
    %359 = vector.shape_cast %356 : vector<2x16xf32> to vector<1x2x16xf32>
    tpu.vector_store %arg5[%c11_86, %c0_87, %c0_88], %359 {strides = array<i32>} : memref<16x2x32xf32, #tpu.memory_space<vmem>>, vector<1x2x16xf32>,
    %360 = vector.extract_strided_slice %355 {offsets = [0, 16], sizes = [2, 16], strides = [1, 1]} : vector<2x32xf32> to vector<2x16xf32>
    %c4_89 = arith.constant 4 : index
    %c0_90 = arith.constant 0 : index
    %c16_91 = arith.constant 16 : index
    %361 = vector.load %arg5[%c4_89, %c0_90, %c16_91] : memref<16x2x32xf32, #tpu.memory_space<vmem>>, vector<1x2x16xf32>
    %362 = vector.shape_cast %361 : vector<1x2x16xf32> to vector<2x16xf32>
    %363 = vector.shape_cast %360 : vector<2x16xf32> to vector<1x2x16xf32>
    tpu.vector_store %arg5[%c4_89, %c0_90, %c16_91], %363 {strides = array<i32>} : memref<16x2x32xf32, #tpu.memory_space<vmem>>, vector<1x2x16xf32>,
    %364 = vector.extract_strided_slice %5 {offsets = [24, 0], sizes = [2, 128], strides = [1, 1]} : vector<32x128xf32> to vector<2x128xf32>
    %365 = vector.extract_strided_slice %5 {offsets = [6, 0], sizes = [2, 128], strides = [1, 1]} : vector<32x128xf32> to vector<2x128xf32>
    %366 = arith.select %25, %364, %365 : vector<2x128xi1>, vector<2x128xf32>
    %cst_92 = arith.constant dense<0.000000e+00> : vector<2x128xf32>
    %367 = tpu.matmul %355, %6, %cst_92 {dimension_numbers = #tpu.dot_dimension_numbers<[1], [0], [0], [1], [0, 0, 1, 1], [], []>} : vector<2x32xf32>, vector<32x128xf32>, vector<2x128xf32> -> vector<2x128xf32>
    %368 = arith.addf %366, %367 : vector<2x128xf32>
    %369 = arith.negf %368 : vector<2x128xf32>
    %370 = math.exp %369 : vector<2x128xf32>
    %cst_93 = arith.constant 1.000000e+00 : f32
    %371 = vector.broadcast %cst_93 : f32 to vector<2x128xf32>
    %372 = arith.addf %371, %370 : vector<2x128xf32>
    %373 = arith.divf %371, %372 : vector<2x128xf32>
    %374 = math.tanh %368 : vector<2x128xf32>
    %375 = vector.extract_strided_slice %373 {offsets = [0, 0], sizes = [2, 32], strides = [1, 1]} : vector<2x128xf32> to vector<2x32xf32>
    %376 = vector.extract_strided_slice %373 {offsets = [0, 32], sizes = [2, 32], strides = [1, 1]} : vector<2x128xf32> to vector<2x32xf32>
    %377 = vector.extract_strided_slice %374 {offsets = [0, 64], sizes = [2, 32], strides = [1, 1]} : vector<2x128xf32> to vector<2x32xf32>
    %378 = vector.extract_strided_slice %373 {offsets = [0, 96], sizes = [2, 32], strides = [1, 1]} : vector<2x128xf32> to vector<2x32xf32>
    %379 = arith.mulf %376, %353 : vector<2x32xf32>
    %380 = arith.mulf %375, %377 : vector<2x32xf32>
    %381 = arith.addf %379, %380 : vector<2x32xf32>
    %382 = math.tanh %381 : vector<2x32xf32>
    %383 = arith.mulf %378, %382 : vector<2x32xf32>
    %384 = vector.extract_strided_slice %383 {offsets = [0, 0], sizes = [2, 16], strides = [1, 1]} : vector<2x32xf32> to vector<2x16xf32>
    %c12_94 = arith.constant 12 : index
    %c0_95 = arith.constant 0 : index
    %c0_96 = arith.constant 0 : index
    %385 = vector.load %arg5[%c12_94, %c0_95, %c0_96] : memref<16x2x32xf32, #tpu.memory_space<vmem>>, vector<1x2x16xf32>
    %386 = vector.shape_cast %385 : vector<1x2x16xf32> to vector<2x16xf32>
    %387 = vector.shape_cast %384 : vector<2x16xf32> to vector<1x2x16xf32>
    tpu.vector_store %arg5[%c12_94, %c0_95, %c0_96], %387 {strides = array<i32>} : memref<16x2x32xf32, #tpu.memory_space<vmem>>, vector<1x2x16xf32>,
    %388 = vector.extract_strided_slice %383 {offsets = [0, 16], sizes = [2, 16], strides = [1, 1]} : vector<2x32xf32> to vector<2x16xf32>
    %c3_97 = arith.constant 3 : index
    %c0_98 = arith.constant 0 : index
    %c16_99 = arith.constant 16 : index
    %389 = vector.load %arg5[%c3_97, %c0_98, %c16_99] : memref<16x2x32xf32, #tpu.memory_space<vmem>>, vector<1x2x16xf32>
    %390 = vector.shape_cast %389 : vector<1x2x16xf32> to vector<2x16xf32>
    %391 = vector.shape_cast %388 : vector<2x16xf32> to vector<1x2x16xf32>
    tpu.vector_store %arg5[%c3_97, %c0_98, %c16_99], %391 {strides = array<i32>} : memref<16x2x32xf32, #tpu.memory_space<vmem>>, vector<1x2x16xf32>,
    %392 = vector.extract_strided_slice %5 {offsets = [26, 0], sizes = [2, 128], strides = [1, 1]} : vector<32x128xf32> to vector<2x128xf32>
    %393 = vector.extract_strided_slice %5 {offsets = [4, 0], sizes = [2, 128], strides = [1, 1]} : vector<32x128xf32> to vector<2x128xf32>
    %394 = arith.select %25, %392, %393 : vector<2x128xi1>, vector<2x128xf32>
    %cst_100 = arith.constant dense<0.000000e+00> : vector<2x128xf32>
    %395 = tpu.matmul %383, %6, %cst_100 {dimension_numbers = #tpu.dot_dimension_numbers<[1], [0], [0], [1], [0, 0, 1, 1], [], []>} : vector<2x32xf32>, vector<32x128xf32>, vector<2x128xf32> -> vector<2x128xf32>
    %396 = arith.addf %394, %395 : vector<2x128xf32>
    %397 = arith.negf %396 : vector<2x128xf32>
    %398 = math.exp %397 : vector<2x128xf32>
    %cst_101 = arith.constant 1.000000e+00 : f32
    %399 = vector.broadcast %cst_101 : f32 to vector<2x128xf32>
    %400 = arith.addf %399, %398 : vector<2x128xf32>
    %401 = arith.divf %399, %400 : vector<2x128xf32>
    %402 = math.tanh %396 : vector<2x128xf32>
    %403 = vector.extract_strided_slice %401 {offsets = [0, 0], sizes = [2, 32], strides = [1, 1]} : vector<2x128xf32> to vector<2x32xf32>
    %404 = vector.extract_strided_slice %401 {offsets = [0, 32], sizes = [2, 32], strides = [1, 1]} : vector<2x128xf32> to vector<2x32xf32>
    %405 = vector.extract_strided_slice %402 {offsets = [0, 64], sizes = [2, 32], strides = [1, 1]} : vector<2x128xf32> to vector<2x32xf32>
    %406 = vector.extract_strided_slice %401 {offsets = [0, 96], sizes = [2, 32], strides = [1, 1]} : vector<2x128xf32> to vector<2x32xf32>
    %407 = arith.mulf %404, %381 : vector<2x32xf32>
    %408 = arith.mulf %403, %405 : vector<2x32xf32>
    %409 = arith.addf %407, %408 : vector<2x32xf32>
    %410 = math.tanh %409 : vector<2x32xf32>
    %411 = arith.mulf %406, %410 : vector<2x32xf32>
    %412 = vector.extract_strided_slice %411 {offsets = [0, 0], sizes = [2, 16], strides = [1, 1]} : vector<2x32xf32> to vector<2x16xf32>
    %c13_102 = arith.constant 13 : index
    %c0_103 = arith.constant 0 : index
    %c0_104 = arith.constant 0 : index
    %413 = vector.load %arg5[%c13_102, %c0_103, %c0_104] : memref<16x2x32xf32, #tpu.memory_space<vmem>>, vector<1x2x16xf32>
    %414 = vector.shape_cast %413 : vector<1x2x16xf32> to vector<2x16xf32>
    %415 = vector.shape_cast %412 : vector<2x16xf32> to vector<1x2x16xf32>
    tpu.vector_store %arg5[%c13_102, %c0_103, %c0_104], %415 {strides = array<i32>} : memref<16x2x32xf32, #tpu.memory_space<vmem>>, vector<1x2x16xf32>,
    %416 = vector.extract_strided_slice %411 {offsets = [0, 16], sizes = [2, 16], strides = [1, 1]} : vector<2x32xf32> to vector<2x16xf32>
    %c2_105 = arith.constant 2 : index
    %c0_106 = arith.constant 0 : index
    %c16_107 = arith.constant 16 : index
    %417 = vector.load %arg5[%c2_105, %c0_106, %c16_107] : memref<16x2x32xf32, #tpu.memory_space<vmem>>, vector<1x2x16xf32>
    %418 = vector.shape_cast %417 : vector<1x2x16xf32> to vector<2x16xf32>
    %419 = vector.shape_cast %416 : vector<2x16xf32> to vector<1x2x16xf32>
    tpu.vector_store %arg5[%c2_105, %c0_106, %c16_107], %419 {strides = array<i32>} : memref<16x2x32xf32, #tpu.memory_space<vmem>>, vector<1x2x16xf32>,
    %420 = vector.extract_strided_slice %5 {offsets = [28, 0], sizes = [2, 128], strides = [1, 1]} : vector<32x128xf32> to vector<2x128xf32>
    %421 = vector.extract_strided_slice %5 {offsets = [2, 0], sizes = [2, 128], strides = [1, 1]} : vector<32x128xf32> to vector<2x128xf32>
    %422 = arith.select %25, %420, %421 : vector<2x128xi1>, vector<2x128xf32>
    %cst_108 = arith.constant dense<0.000000e+00> : vector<2x128xf32>
    %423 = tpu.matmul %411, %6, %cst_108 {dimension_numbers = #tpu.dot_dimension_numbers<[1], [0], [0], [1], [0, 0, 1, 1], [], []>} : vector<2x32xf32>, vector<32x128xf32>, vector<2x128xf32> -> vector<2x128xf32>
    %424 = arith.addf %422, %423 : vector<2x128xf32>
    %425 = arith.negf %424 : vector<2x128xf32>
    %426 = math.exp %425 : vector<2x128xf32>
    %cst_109 = arith.constant 1.000000e+00 : f32
    %427 = vector.broadcast %cst_109 : f32 to vector<2x128xf32>
    %428 = arith.addf %427, %426 : vector<2x128xf32>
    %429 = arith.divf %427, %428 : vector<2x128xf32>
    %430 = math.tanh %424 : vector<2x128xf32>
    %431 = vector.extract_strided_slice %429 {offsets = [0, 0], sizes = [2, 32], strides = [1, 1]} : vector<2x128xf32> to vector<2x32xf32>
    %432 = vector.extract_strided_slice %429 {offsets = [0, 32], sizes = [2, 32], strides = [1, 1]} : vector<2x128xf32> to vector<2x32xf32>
    %433 = vector.extract_strided_slice %430 {offsets = [0, 64], sizes = [2, 32], strides = [1, 1]} : vector<2x128xf32> to vector<2x32xf32>
    %434 = vector.extract_strided_slice %429 {offsets = [0, 96], sizes = [2, 32], strides = [1, 1]} : vector<2x128xf32> to vector<2x32xf32>
    %435 = arith.mulf %432, %409 : vector<2x32xf32>
    %436 = arith.mulf %431, %433 : vector<2x32xf32>
    %437 = arith.addf %435, %436 : vector<2x32xf32>
    %438 = math.tanh %437 : vector<2x32xf32>
    %439 = arith.mulf %434, %438 : vector<2x32xf32>
    %440 = vector.extract_strided_slice %439 {offsets = [0, 0], sizes = [2, 16], strides = [1, 1]} : vector<2x32xf32> to vector<2x16xf32>
    %c14_110 = arith.constant 14 : index
    %c0_111 = arith.constant 0 : index
    %c0_112 = arith.constant 0 : index
    %441 = vector.load %arg5[%c14_110, %c0_111, %c0_112] : memref<16x2x32xf32, #tpu.memory_space<vmem>>, vector<1x2x16xf32>
    %442 = vector.shape_cast %441 : vector<1x2x16xf32> to vector<2x16xf32>
    %443 = vector.shape_cast %440 : vector<2x16xf32> to vector<1x2x16xf32>
    tpu.vector_store %arg5[%c14_110, %c0_111, %c0_112], %443 {strides = array<i32>} : memref<16x2x32xf32, #tpu.memory_space<vmem>>, vector<1x2x16xf32>,
    %444 = vector.extract_strided_slice %439 {offsets = [0, 16], sizes = [2, 16], strides = [1, 1]} : vector<2x32xf32> to vector<2x16xf32>
    %c1_113 = arith.constant 1 : index
    %c0_114 = arith.constant 0 : index
    %c16_115 = arith.constant 16 : index
    %445 = vector.load %arg5[%c1_113, %c0_114, %c16_115] : memref<16x2x32xf32, #tpu.memory_space<vmem>>, vector<1x2x16xf32>
    %446 = vector.shape_cast %445 : vector<1x2x16xf32> to vector<2x16xf32>
    %447 = vector.shape_cast %444 : vector<2x16xf32> to vector<1x2x16xf32>
    tpu.vector_store %arg5[%c1_113, %c0_114, %c16_115], %447 {strides = array<i32>} : memref<16x2x32xf32, #tpu.memory_space<vmem>>, vector<1x2x16xf32>,
    %448 = vector.extract_strided_slice %5 {offsets = [30, 0], sizes = [2, 128], strides = [1, 1]} : vector<32x128xf32> to vector<2x128xf32>
    %449 = vector.extract_strided_slice %5 {offsets = [0, 0], sizes = [2, 128], strides = [1, 1]} : vector<32x128xf32> to vector<2x128xf32>
    %450 = arith.select %25, %448, %449 : vector<2x128xi1>, vector<2x128xf32>
    %cst_116 = arith.constant dense<0.000000e+00> : vector<2x128xf32>
    %451 = tpu.matmul %439, %6, %cst_116 {dimension_numbers = #tpu.dot_dimension_numbers<[1], [0], [0], [1], [0, 0, 1, 1], [], []>} : vector<2x32xf32>, vector<32x128xf32>, vector<2x128xf32> -> vector<2x128xf32>
    %452 = arith.addf %450, %451 : vector<2x128xf32>
    %453 = arith.negf %452 : vector<2x128xf32>
    %454 = math.exp %453 : vector<2x128xf32>
    %cst_117 = arith.constant 1.000000e+00 : f32
    %455 = vector.broadcast %cst_117 : f32 to vector<2x128xf32>
    %456 = arith.addf %455, %454 : vector<2x128xf32>
    %457 = arith.divf %455, %456 : vector<2x128xf32>
    %458 = math.tanh %452 : vector<2x128xf32>
    %459 = vector.extract_strided_slice %457 {offsets = [0, 0], sizes = [2, 32], strides = [1, 1]} : vector<2x128xf32> to vector<2x32xf32>
    %460 = vector.extract_strided_slice %457 {offsets = [0, 32], sizes = [2, 32], strides = [1, 1]} : vector<2x128xf32> to vector<2x32xf32>
    %461 = vector.extract_strided_slice %458 {offsets = [0, 64], sizes = [2, 32], strides = [1, 1]} : vector<2x128xf32> to vector<2x32xf32>
    %462 = vector.extract_strided_slice %457 {offsets = [0, 96], sizes = [2, 32], strides = [1, 1]} : vector<2x128xf32> to vector<2x32xf32>
    %463 = arith.mulf %460, %437 : vector<2x32xf32>
    %464 = arith.mulf %459, %461 : vector<2x32xf32>
    %465 = arith.addf %463, %464 : vector<2x32xf32>
    %466 = math.tanh %465 : vector<2x32xf32>
    %467 = arith.mulf %462, %466 : vector<2x32xf32>
    %468 = vector.extract_strided_slice %467 {offsets = [0, 0], sizes = [2, 16], strides = [1, 1]} : vector<2x32xf32> to vector<2x16xf32>
    %c15_118 = arith.constant 15 : index
    %c0_119 = arith.constant 0 : index
    %c0_120 = arith.constant 0 : index
    %469 = vector.load %arg5[%c15_118, %c0_119, %c0_120] : memref<16x2x32xf32, #tpu.memory_space<vmem>>, vector<1x2x16xf32>
    %470 = vector.shape_cast %469 : vector<1x2x16xf32> to vector<2x16xf32>
    %471 = vector.shape_cast %468 : vector<2x16xf32> to vector<1x2x16xf32>
    tpu.vector_store %arg5[%c15_118, %c0_119, %c0_120], %471 {strides = array<i32>} : memref<16x2x32xf32, #tpu.memory_space<vmem>>, vector<1x2x16xf32>,
    %472 = vector.extract_strided_slice %467 {offsets = [0, 16], sizes = [2, 16], strides = [1, 1]} : vector<2x32xf32> to vector<2x16xf32>
    %c0_121 = arith.constant 0 : index
    %c0_122 = arith.constant 0 : index
    %c16_123 = arith.constant 16 : index
    %473 = vector.load %arg5[%c0_121, %c0_122, %c16_123] : memref<16x2x32xf32, #tpu.memory_space<vmem>>, vector<1x2x16xf32>
    %474 = vector.shape_cast %473 : vector<1x2x16xf32> to vector<2x16xf32>
    %475 = vector.shape_cast %472 : vector<2x16xf32> to vector<1x2x16xf32>
    tpu.vector_store %arg5[%c0_121, %c0_122, %c16_123], %475 {strides = array<i32>} : memref<16x2x32xf32, #tpu.memory_space<vmem>>, vector<1x2x16xf32>,
    return
  }
  func.func @transform_0(%arg0: i32) -> (i32, i32) {
    %c0_i32 = arith.constant 0 : i32
    %c0_i32_0 = arith.constant 0 : i32
    %c0_i32_1 = arith.constant 0 : i32
    return %c0_i32, %c0_i32_0 : i32, i32
  }
  func.func @transform_1(%arg0: i32) -> (i32, i32) {
    %c0_i32 = arith.constant 0 : i32
    %c0_i32_0 = arith.constant 0 : i32
    %c0_i32_1 = arith.constant 0 : i32
    return %c0_i32, %c0_i32_0 : i32, i32
  }
  func.func @transform_2(%arg0: i32) -> (i32, i32) {
    %c0_i32 = arith.constant 0 : i32
    %c0_i32_0 = arith.constant 0 : i32
    %c0_i32_1 = arith.constant 0 : i32
    return %c0_i32, %c0_i32_0 : i32, i32
  }
  func.func @transform_3(%arg0: i32) -> (i32, i32) {
    %c0_i32 = arith.constant 0 : i32
    %c0_i32_0 = arith.constant 0 : i32
    %c0_i32_1 = arith.constant 0 : i32
    return %c0_i32, %c0_i32_0 : i32, i32
  }
  func.func @transform_4(%arg0: i32) -> (i32, i32, i32) {
    %c0_i32 = arith.constant 0 : i32
    %c0_i32_0 = arith.constant 0 : i32
    %c0_i32_1 = arith.constant 0 : i32
    %c0_i32_2 = arith.constant 0 : i32
    return %c0_i32, %c0_i32_0, %c0_i32_1 : i32, i32, i32
  }
}

module attributes {stable_mosaic.version = 11 : i64} {
  func.func @_bilstm_kernel(%arg0: i32, %arg1: memref<32x128xf32, #tpu.memory_space<vmem>>, %arg2: memref<128x128xf32, #tpu.memory_space<vmem>>, %arg3: memref<1x128xf32, #tpu.memory_space<vmem>>, %arg4: memref<32x128xf32, #tpu.memory_space<vmem>>, %arg5: memref<16x2x32xf32, #tpu.memory_space<vmem>>) attributes {dimension_semantics = [#tpu.dimension_semantics<arbitrary>], iteration_bounds = array<i64: 1>, scalar_prefetch = 0 : i64, scratch_operands = 0 : i64, tpu.core_type = #tpu.core_type<tc>, window_params = [{pipeline_mode = #tpu.pipeline_mode<synchronous>, transform_indices = @transform_0, window_bounds = array<i64: 32, 128>}, {pipeline_mode = #tpu.pipeline_mode<synchronous>, transform_indices = @transform_1, window_bounds = array<i64: 128, 128>}, {pipeline_mode = #tpu.pipeline_mode<synchronous>, transform_indices = @transform_2, window_bounds = array<i64: 1, 128>}, {pipeline_mode = #tpu.pipeline_mode<synchronous>, transform_indices = @transform_3, window_bounds = array<i64: 32, 128>}, {pipeline_mode = #tpu.pipeline_mode<synchronous>, transform_indices = @transform_4, window_bounds = array<i64: 16, 2, 32>}]} {
    %c0 = arith.constant 0 : index
    %c0_0 = arith.constant 0 : index
    %0 = vector.load %arg1[%c0, %c0_0] : memref<32x128xf32, #tpu.memory_space<vmem>>, vector<32x128xf32>
    %c0_1 = arith.constant 0 : index
    %c0_2 = arith.constant 0 : index
    %1 = vector.load %arg2[%c0_1, %c0_2] : memref<128x128xf32, #tpu.memory_space<vmem>>, vector<128x128xf32>
    %cst = arith.constant dense<0.000000e+00> : vector<32x128xf32>
    %2 = tpu.matmul %0, %1, %cst {dimension_numbers = #tpu.dot_dimension_numbers<[1], [0], [0], [1], [0, 0, 1, 1], [], []>} : vector<32x128xf32>, vector<128x128xf32>, vector<32x128xf32> -> vector<32x128xf32>
    %c0_3 = arith.constant 0 : index
    %c0_4 = arith.constant 0 : index
    %3 = vector.load %arg3[%c0_3, %c0_4] : memref<1x128xf32, #tpu.memory_space<vmem>>, vector<1x128xf32>
    %4 = vector.broadcast %3 : vector<1x128xf32> to vector<32x128xf32>
    %5 = arith.addf %2, %4 : vector<32x128xf32>
    %c0_5 = arith.constant 0 : index
    %c0_6 = arith.constant 0 : index
    %6 = vector.load %arg4[%c0_5, %c0_6] : memref<32x128xf32, #tpu.memory_space<vmem>>, vector<32x128xf32>
    %7 = tpu.iota {dimensions = array<i32: 1>} : vector<2x128xi32>
    %c32_i32 = arith.constant 32 : i32
    %c0_i32 = arith.constant 0 : i32
    %8 = arith.cmpi eq, %c32_i32, %c0_i32 : i32
    %c1_i32 = arith.constant 1 : i32
    %9 = arith.select %8, %c1_i32, %c32_i32 : i32
    %10 = vector.broadcast %9 : i32 to vector<2x128xi32>
    %11 = arith.remsi %7, %10 : vector<2x128xi32>
    %c0_i32_7 = arith.constant 0 : i32
    %12 = vector.broadcast %c0_i32_7 : i32 to vector<2x128xi32>
    %13 = arith.cmpi ne, %11, %12 : vector<2x128xi32>
    %c0_i32_8 = arith.constant 0 : i32
    %14 = vector.broadcast %c0_i32_8 : i32 to vector<2x128xi32>
    %15 = arith.cmpi slt, %11, %14 : vector<2x128xi32>
    %c0_i32_9 = arith.constant 0 : i32
    %16 = arith.cmpi slt, %9, %c0_i32_9 : i32
    %17 = vector.broadcast %16 : i1 to vector<2x128xi1>
    %18 = vector.broadcast %17 : vector<2x128xi1> to vector<2x128xi1>
    %19 = arith.xori %15, %18 : vector<2x128xi1>
    %20 = arith.andi %19, %13 : vector<2x128xi1>
    %21 = vector.broadcast %9 : i32 to vector<2x128xi32>
    %22 = arith.addi %11, %21 : vector<2x128xi32>
    %23 = arith.select %20, %22, %11 : vector<2x128xi1>, vector<2x128xi32>
    %c16_i32 = arith.constant 16 : i32
    %24 = vector.broadcast %c16_i32 : i32 to vector<2x128xi32>
    %25 = arith.cmpi slt, %23, %24 : vector<2x128xi32>
    %cst_10 = arith.constant 0.000000e+00 : f32
    %26 = vector.broadcast %cst_10 : f32 to vector<2x32xf32>
    %cst_11 = arith.constant 0.000000e+00 : f32
    %27 = vector.broadcast %cst_11 : f32 to vector<2x32xf32>
    %28 = vector.extract_strided_slice %5 {offsets = [0, 0], sizes = [2, 128], strides = [1, 1]} : vector<32x128xf32> to vector<2x128xf32>
    %29 = vector.extract_strided_slice %5 {offsets = [30, 0], sizes = [2, 128], strides = [1, 1]} : vector<32x128xf32> to vector<2x128xf32>
    %30 = arith.select %25, %28, %29 : vector<2x128xi1>, vector<2x128xf32>
    %cst_12 = arith.constant dense<0.000000e+00> : vector<2x128xf32>
    %31 = tpu.matmul %26, %6, %cst_12 {dimension_numbers = #tpu.dot_dimension_numbers<[1], [0], [0], [1], [0, 0, 1, 1], [], []>} : vector<2x32xf32>, vector<32x128xf32>, vector<2x128xf32> -> vector<2x128xf32>
    %32 = arith.addf %30, %31 : vector<2x128xf32>
    %33 = arith.negf %32 : vector<2x128xf32>
    %34 = math.exp %33 : vector<2x128xf32>
    %cst_13 = arith.constant 1.000000e+00 : f32
    %35 = vector.broadcast %cst_13 : f32 to vector<2x128xf32>
    %36 = arith.addf %35, %34 : vector<2x128xf32>
    %37 = arith.divf %35, %36 : vector<2x128xf32>
    %38 = math.tanh %32 : vector<2x128xf32>
    %39 = vector.extract_strided_slice %37 {offsets = [0, 0], sizes = [2, 32], strides = [1, 1]} : vector<2x128xf32> to vector<2x32xf32>
    %40 = vector.extract_strided_slice %37 {offsets = [0, 32], sizes = [2, 32], strides = [1, 1]} : vector<2x128xf32> to vector<2x32xf32>
    %41 = vector.extract_strided_slice %38 {offsets = [0, 64], sizes = [2, 32], strides = [1, 1]} : vector<2x128xf32> to vector<2x32xf32>
    %42 = vector.extract_strided_slice %37 {offsets = [0, 96], sizes = [2, 32], strides = [1, 1]} : vector<2x128xf32> to vector<2x32xf32>
    %43 = arith.mulf %40, %27 : vector<2x32xf32>
    %44 = arith.mulf %39, %41 : vector<2x32xf32>
    %45 = arith.addf %43, %44 : vector<2x32xf32>
    %46 = math.tanh %45 : vector<2x32xf32>
    %47 = arith.mulf %42, %46 : vector<2x32xf32>
    %48 = vector.extract_strided_slice %47 {offsets = [0, 0], sizes = [2, 16], strides = [1, 1]} : vector<2x32xf32> to vector<2x16xf32>
    %c0_14 = arith.constant 0 : index
    %c0_15 = arith.constant 0 : index
    %c0_16 = arith.constant 0 : index
    %49 = vector.load %arg5[%c0_14, %c0_15, %c0_16] : memref<16x2x32xf32, #tpu.memory_space<vmem>>, vector<1x2x16xf32>
    %50 = vector.shape_cast %49 : vector<1x2x16xf32> to vector<2x16xf32>
    %51 = vector.shape_cast %48 : vector<2x16xf32> to vector<1x2x16xf32>
    tpu.vector_store %arg5[%c0_14, %c0_15, %c0_16], %51 {strides = array<i32>} : memref<16x2x32xf32, #tpu.memory_space<vmem>>, vector<1x2x16xf32>,
    %52 = vector.extract_strided_slice %47 {offsets = [0, 16], sizes = [2, 16], strides = [1, 1]} : vector<2x32xf32> to vector<2x16xf32>
    %c15 = arith.constant 15 : index
    %c0_17 = arith.constant 0 : index
    %c16 = arith.constant 16 : index
    %53 = vector.load %arg5[%c15, %c0_17, %c16] : memref<16x2x32xf32, #tpu.memory_space<vmem>>, vector<1x2x16xf32>
    %54 = vector.shape_cast %53 : vector<1x2x16xf32> to vector<2x16xf32>
    %55 = vector.shape_cast %52 : vector<2x16xf32> to vector<1x2x16xf32>
    tpu.vector_store %arg5[%c15, %c0_17, %c16], %55 {strides = array<i32>} : memref<16x2x32xf32, #tpu.memory_space<vmem>>, vector<1x2x16xf32>,
    %56 = vector.extract_strided_slice %5 {offsets = [2, 0], sizes = [2, 128], strides = [1, 1]} : vector<32x128xf32> to vector<2x128xf32>
    %57 = vector.extract_strided_slice %5 {offsets = [28, 0], sizes = [2, 128], strides = [1, 1]} : vector<32x128xf32> to vector<2x128xf32>
    %58 = arith.select %25, %56, %57 : vector<2x128xi1>, vector<2x128xf32>
    %cst_18 = arith.constant dense<0.000000e+00> : vector<2x128xf32>
    %59 = tpu.matmul %47, %6, %cst_18 {dimension_numbers = #tpu.dot_dimension_numbers<[1], [0], [0], [1], [0, 0, 1, 1], [], []>} : vector<2x32xf32>, vector<32x128xf32>, vector<2x128xf32> -> vector<2x128xf32>
    %60 = arith.addf %58, %59 : vector<2x128xf32>
    %61 = arith.negf %60 : vector<2x128xf32>
    %62 = math.exp %61 : vector<2x128xf32>
    %cst_19 = arith.constant 1.000000e+00 : f32
    %63 = vector.broadcast %cst_19 : f32 to vector<2x128xf32>
    %64 = arith.addf %63, %62 : vector<2x128xf32>
    %65 = arith.divf %63, %64 : vector<2x128xf32>
    %66 = math.tanh %60 : vector<2x128xf32>
    %67 = vector.extract_strided_slice %65 {offsets = [0, 0], sizes = [2, 32], strides = [1, 1]} : vector<2x128xf32> to vector<2x32xf32>
    %68 = vector.extract_strided_slice %65 {offsets = [0, 32], sizes = [2, 32], strides = [1, 1]} : vector<2x128xf32> to vector<2x32xf32>
    %69 = vector.extract_strided_slice %66 {offsets = [0, 64], sizes = [2, 32], strides = [1, 1]} : vector<2x128xf32> to vector<2x32xf32>
    %70 = vector.extract_strided_slice %65 {offsets = [0, 96], sizes = [2, 32], strides = [1, 1]} : vector<2x128xf32> to vector<2x32xf32>
    %71 = arith.mulf %68, %45 : vector<2x32xf32>
    %72 = arith.mulf %67, %69 : vector<2x32xf32>
    %73 = arith.addf %71, %72 : vector<2x32xf32>
    %74 = math.tanh %73 : vector<2x32xf32>
    %75 = arith.mulf %70, %74 : vector<2x32xf32>
    %76 = vector.extract_strided_slice %75 {offsets = [0, 0], sizes = [2, 16], strides = [1, 1]} : vector<2x32xf32> to vector<2x16xf32>
    %c1 = arith.constant 1 : index
    %c0_20 = arith.constant 0 : index
    %c0_21 = arith.constant 0 : index
    %77 = vector.load %arg5[%c1, %c0_20, %c0_21] : memref<16x2x32xf32, #tpu.memory_space<vmem>>, vector<1x2x16xf32>
    %78 = vector.shape_cast %77 : vector<1x2x16xf32> to vector<2x16xf32>
    %79 = vector.shape_cast %76 : vector<2x16xf32> to vector<1x2x16xf32>
    tpu.vector_store %arg5[%c1, %c0_20, %c0_21], %79 {strides = array<i32>} : memref<16x2x32xf32, #tpu.memory_space<vmem>>, vector<1x2x16xf32>,
    %80 = vector.extract_strided_slice %75 {offsets = [0, 16], sizes = [2, 16], strides = [1, 1]} : vector<2x32xf32> to vector<2x16xf32>
    %c14 = arith.constant 14 : index
    %c0_22 = arith.constant 0 : index
    %c16_23 = arith.constant 16 : index
    %81 = vector.load %arg5[%c14, %c0_22, %c16_23] : memref<16x2x32xf32, #tpu.memory_space<vmem>>, vector<1x2x16xf32>
    %82 = vector.shape_cast %81 : vector<1x2x16xf32> to vector<2x16xf32>
    %83 = vector.shape_cast %80 : vector<2x16xf32> to vector<1x2x16xf32>
    tpu.vector_store %arg5[%c14, %c0_22, %c16_23], %83 {strides = array<i32>} : memref<16x2x32xf32, #tpu.memory_space<vmem>>, vector<1x2x16xf32>,
    %84 = vector.extract_strided_slice %5 {offsets = [4, 0], sizes = [2, 128], strides = [1, 1]} : vector<32x128xf32> to vector<2x128xf32>
    %85 = vector.extract_strided_slice %5 {offsets = [26, 0], sizes = [2, 128], strides = [1, 1]} : vector<32x128xf32> to vector<2x128xf32>
    %86 = arith.select %25, %84, %85 : vector<2x128xi1>, vector<2x128xf32>
    %cst_24 = arith.constant dense<0.000000e+00> : vector<2x128xf32>
    %87 = tpu.matmul %75, %6, %cst_24 {dimension_numbers = #tpu.dot_dimension_numbers<[1], [0], [0], [1], [0, 0, 1, 1], [], []>} : vector<2x32xf32>, vector<32x128xf32>, vector<2x128xf32> -> vector<2x128xf32>
    %88 = arith.addf %86, %87 : vector<2x128xf32>
    %89 = arith.negf %88 : vector<2x128xf32>
    %90 = math.exp %89 : vector<2x128xf32>
    %cst_25 = arith.constant 1.000000e+00 : f32
    %91 = vector.broadcast %cst_25 : f32 to vector<2x128xf32>
    %92 = arith.addf %91, %90 : vector<2x128xf32>
    %93 = arith.divf %91, %92 : vector<2x128xf32>
    %94 = math.tanh %88 : vector<2x128xf32>
    %95 = vector.extract_strided_slice %93 {offsets = [0, 0], sizes = [2, 32], strides = [1, 1]} : vector<2x128xf32> to vector<2x32xf32>
    %96 = vector.extract_strided_slice %93 {offsets = [0, 32], sizes = [2, 32], strides = [1, 1]} : vector<2x128xf32> to vector<2x32xf32>
    %97 = vector.extract_strided_slice %94 {offsets = [0, 64], sizes = [2, 32], strides = [1, 1]} : vector<2x128xf32> to vector<2x32xf32>
    %98 = vector.extract_strided_slice %93 {offsets = [0, 96], sizes = [2, 32], strides = [1, 1]} : vector<2x128xf32> to vector<2x32xf32>
    %99 = arith.mulf %96, %73 : vector<2x32xf32>
    %100 = arith.mulf %95, %97 : vector<2x32xf32>
    %101 = arith.addf %99, %100 : vector<2x32xf32>
    %102 = math.tanh %101 : vector<2x32xf32>
    %103 = arith.mulf %98, %102 : vector<2x32xf32>
    %104 = vector.extract_strided_slice %103 {offsets = [0, 0], sizes = [2, 16], strides = [1, 1]} : vector<2x32xf32> to vector<2x16xf32>
    %c2 = arith.constant 2 : index
    %c0_26 = arith.constant 0 : index
    %c0_27 = arith.constant 0 : index
    %105 = vector.load %arg5[%c2, %c0_26, %c0_27] : memref<16x2x32xf32, #tpu.memory_space<vmem>>, vector<1x2x16xf32>
    %106 = vector.shape_cast %105 : vector<1x2x16xf32> to vector<2x16xf32>
    %107 = vector.shape_cast %104 : vector<2x16xf32> to vector<1x2x16xf32>
    tpu.vector_store %arg5[%c2, %c0_26, %c0_27], %107 {strides = array<i32>} : memref<16x2x32xf32, #tpu.memory_space<vmem>>, vector<1x2x16xf32>,
    %108 = vector.extract_strided_slice %103 {offsets = [0, 16], sizes = [2, 16], strides = [1, 1]} : vector<2x32xf32> to vector<2x16xf32>
    %c13 = arith.constant 13 : index
    %c0_28 = arith.constant 0 : index
    %c16_29 = arith.constant 16 : index
    %109 = vector.load %arg5[%c13, %c0_28, %c16_29] : memref<16x2x32xf32, #tpu.memory_space<vmem>>, vector<1x2x16xf32>
    %110 = vector.shape_cast %109 : vector<1x2x16xf32> to vector<2x16xf32>
    %111 = vector.shape_cast %108 : vector<2x16xf32> to vector<1x2x16xf32>
    tpu.vector_store %arg5[%c13, %c0_28, %c16_29], %111 {strides = array<i32>} : memref<16x2x32xf32, #tpu.memory_space<vmem>>, vector<1x2x16xf32>,
    %112 = vector.extract_strided_slice %5 {offsets = [6, 0], sizes = [2, 128], strides = [1, 1]} : vector<32x128xf32> to vector<2x128xf32>
    %113 = vector.extract_strided_slice %5 {offsets = [24, 0], sizes = [2, 128], strides = [1, 1]} : vector<32x128xf32> to vector<2x128xf32>
    %114 = arith.select %25, %112, %113 : vector<2x128xi1>, vector<2x128xf32>
    %cst_30 = arith.constant dense<0.000000e+00> : vector<2x128xf32>
    %115 = tpu.matmul %103, %6, %cst_30 {dimension_numbers = #tpu.dot_dimension_numbers<[1], [0], [0], [1], [0, 0, 1, 1], [], []>} : vector<2x32xf32>, vector<32x128xf32>, vector<2x128xf32> -> vector<2x128xf32>
    %116 = arith.addf %114, %115 : vector<2x128xf32>
    %117 = arith.negf %116 : vector<2x128xf32>
    %118 = math.exp %117 : vector<2x128xf32>
    %cst_31 = arith.constant 1.000000e+00 : f32
    %119 = vector.broadcast %cst_31 : f32 to vector<2x128xf32>
    %120 = arith.addf %119, %118 : vector<2x128xf32>
    %121 = arith.divf %119, %120 : vector<2x128xf32>
    %122 = math.tanh %116 : vector<2x128xf32>
    %123 = vector.extract_strided_slice %121 {offsets = [0, 0], sizes = [2, 32], strides = [1, 1]} : vector<2x128xf32> to vector<2x32xf32>
    %124 = vector.extract_strided_slice %121 {offsets = [0, 32], sizes = [2, 32], strides = [1, 1]} : vector<2x128xf32> to vector<2x32xf32>
    %125 = vector.extract_strided_slice %122 {offsets = [0, 64], sizes = [2, 32], strides = [1, 1]} : vector<2x128xf32> to vector<2x32xf32>
    %126 = vector.extract_strided_slice %121 {offsets = [0, 96], sizes = [2, 32], strides = [1, 1]} : vector<2x128xf32> to vector<2x32xf32>
    %127 = arith.mulf %124, %101 : vector<2x32xf32>
    %128 = arith.mulf %123, %125 : vector<2x32xf32>
    %129 = arith.addf %127, %128 : vector<2x32xf32>
    %130 = math.tanh %129 : vector<2x32xf32>
    %131 = arith.mulf %126, %130 : vector<2x32xf32>
    %132 = vector.extract_strided_slice %131 {offsets = [0, 0], sizes = [2, 16], strides = [1, 1]} : vector<2x32xf32> to vector<2x16xf32>
    %c3 = arith.constant 3 : index
    %c0_32 = arith.constant 0 : index
    %c0_33 = arith.constant 0 : index
    %133 = vector.load %arg5[%c3, %c0_32, %c0_33] : memref<16x2x32xf32, #tpu.memory_space<vmem>>, vector<1x2x16xf32>
    %134 = vector.shape_cast %133 : vector<1x2x16xf32> to vector<2x16xf32>
    %135 = vector.shape_cast %132 : vector<2x16xf32> to vector<1x2x16xf32>
    tpu.vector_store %arg5[%c3, %c0_32, %c0_33], %135 {strides = array<i32>} : memref<16x2x32xf32, #tpu.memory_space<vmem>>, vector<1x2x16xf32>,
    %136 = vector.extract_strided_slice %131 {offsets = [0, 16], sizes = [2, 16], strides = [1, 1]} : vector<2x32xf32> to vector<2x16xf32>
    %c12 = arith.constant 12 : index
    %c0_34 = arith.constant 0 : index
    %c16_35 = arith.constant 16 : index
    %137 = vector.load %arg5[%c12, %c0_34, %c16_35] : memref<16x2x32xf32, #tpu.memory_space<vmem>>, vector<1x2x16xf32>
    %138 = vector.shape_cast %137 : vector<1x2x16xf32> to vector<2x16xf32>
    %139 = vector.shape_cast %136 : vector<2x16xf32> to vector<1x2x16xf32>
    tpu.vector_store %arg5[%c12, %c0_34, %c16_35], %139 {strides = array<i32>} : memref<16x2x32xf32, #tpu.memory_space<vmem>>, vector<1x2x16xf32>,
    %140 = vector.extract_strided_slice %5 {offsets = [8, 0], sizes = [2, 128], strides = [1, 1]} : vector<32x128xf32> to vector<2x128xf32>
    %141 = vector.extract_strided_slice %5 {offsets = [22, 0], sizes = [2, 128], strides = [1, 1]} : vector<32x128xf32> to vector<2x128xf32>
    %142 = arith.select %25, %140, %141 : vector<2x128xi1>, vector<2x128xf32>
    %cst_36 = arith.constant dense<0.000000e+00> : vector<2x128xf32>
    %143 = tpu.matmul %131, %6, %cst_36 {dimension_numbers = #tpu.dot_dimension_numbers<[1], [0], [0], [1], [0, 0, 1, 1], [], []>} : vector<2x32xf32>, vector<32x128xf32>, vector<2x128xf32> -> vector<2x128xf32>
    %144 = arith.addf %142, %143 : vector<2x128xf32>
    %145 = arith.negf %144 : vector<2x128xf32>
    %146 = math.exp %145 : vector<2x128xf32>
    %cst_37 = arith.constant 1.000000e+00 : f32
    %147 = vector.broadcast %cst_37 : f32 to vector<2x128xf32>
    %148 = arith.addf %147, %146 : vector<2x128xf32>
    %149 = arith.divf %147, %148 : vector<2x128xf32>
    %150 = math.tanh %144 : vector<2x128xf32>
    %151 = vector.extract_strided_slice %149 {offsets = [0, 0], sizes = [2, 32], strides = [1, 1]} : vector<2x128xf32> to vector<2x32xf32>
    %152 = vector.extract_strided_slice %149 {offsets = [0, 32], sizes = [2, 32], strides = [1, 1]} : vector<2x128xf32> to vector<2x32xf32>
    %153 = vector.extract_strided_slice %150 {offsets = [0, 64], sizes = [2, 32], strides = [1, 1]} : vector<2x128xf32> to vector<2x32xf32>
    %154 = vector.extract_strided_slice %149 {offsets = [0, 96], sizes = [2, 32], strides = [1, 1]} : vector<2x128xf32> to vector<2x32xf32>
    %155 = arith.mulf %152, %129 : vector<2x32xf32>
    %156 = arith.mulf %151, %153 : vector<2x32xf32>
    %157 = arith.addf %155, %156 : vector<2x32xf32>
    %158 = math.tanh %157 : vector<2x32xf32>
    %159 = arith.mulf %154, %158 : vector<2x32xf32>
    %160 = vector.extract_strided_slice %159 {offsets = [0, 0], sizes = [2, 16], strides = [1, 1]} : vector<2x32xf32> to vector<2x16xf32>
    %c4 = arith.constant 4 : index
    %c0_38 = arith.constant 0 : index
    %c0_39 = arith.constant 0 : index
    %161 = vector.load %arg5[%c4, %c0_38, %c0_39] : memref<16x2x32xf32, #tpu.memory_space<vmem>>, vector<1x2x16xf32>
    %162 = vector.shape_cast %161 : vector<1x2x16xf32> to vector<2x16xf32>
    %163 = vector.shape_cast %160 : vector<2x16xf32> to vector<1x2x16xf32>
    tpu.vector_store %arg5[%c4, %c0_38, %c0_39], %163 {strides = array<i32>} : memref<16x2x32xf32, #tpu.memory_space<vmem>>, vector<1x2x16xf32>,
    %164 = vector.extract_strided_slice %159 {offsets = [0, 16], sizes = [2, 16], strides = [1, 1]} : vector<2x32xf32> to vector<2x16xf32>
    %c11 = arith.constant 11 : index
    %c0_40 = arith.constant 0 : index
    %c16_41 = arith.constant 16 : index
    %165 = vector.load %arg5[%c11, %c0_40, %c16_41] : memref<16x2x32xf32, #tpu.memory_space<vmem>>, vector<1x2x16xf32>
    %166 = vector.shape_cast %165 : vector<1x2x16xf32> to vector<2x16xf32>
    %167 = vector.shape_cast %164 : vector<2x16xf32> to vector<1x2x16xf32>
    tpu.vector_store %arg5[%c11, %c0_40, %c16_41], %167 {strides = array<i32>} : memref<16x2x32xf32, #tpu.memory_space<vmem>>, vector<1x2x16xf32>,
    %168 = vector.extract_strided_slice %5 {offsets = [10, 0], sizes = [2, 128], strides = [1, 1]} : vector<32x128xf32> to vector<2x128xf32>
    %169 = vector.extract_strided_slice %5 {offsets = [20, 0], sizes = [2, 128], strides = [1, 1]} : vector<32x128xf32> to vector<2x128xf32>
    %170 = arith.select %25, %168, %169 : vector<2x128xi1>, vector<2x128xf32>
    %cst_42 = arith.constant dense<0.000000e+00> : vector<2x128xf32>
    %171 = tpu.matmul %159, %6, %cst_42 {dimension_numbers = #tpu.dot_dimension_numbers<[1], [0], [0], [1], [0, 0, 1, 1], [], []>} : vector<2x32xf32>, vector<32x128xf32>, vector<2x128xf32> -> vector<2x128xf32>
    %172 = arith.addf %170, %171 : vector<2x128xf32>
    %173 = arith.negf %172 : vector<2x128xf32>
    %174 = math.exp %173 : vector<2x128xf32>
    %cst_43 = arith.constant 1.000000e+00 : f32
    %175 = vector.broadcast %cst_43 : f32 to vector<2x128xf32>
    %176 = arith.addf %175, %174 : vector<2x128xf32>
    %177 = arith.divf %175, %176 : vector<2x128xf32>
    %178 = math.tanh %172 : vector<2x128xf32>
    %179 = vector.extract_strided_slice %177 {offsets = [0, 0], sizes = [2, 32], strides = [1, 1]} : vector<2x128xf32> to vector<2x32xf32>
    %180 = vector.extract_strided_slice %177 {offsets = [0, 32], sizes = [2, 32], strides = [1, 1]} : vector<2x128xf32> to vector<2x32xf32>
    %181 = vector.extract_strided_slice %178 {offsets = [0, 64], sizes = [2, 32], strides = [1, 1]} : vector<2x128xf32> to vector<2x32xf32>
    %182 = vector.extract_strided_slice %177 {offsets = [0, 96], sizes = [2, 32], strides = [1, 1]} : vector<2x128xf32> to vector<2x32xf32>
    %183 = arith.mulf %180, %157 : vector<2x32xf32>
    %184 = arith.mulf %179, %181 : vector<2x32xf32>
    %185 = arith.addf %183, %184 : vector<2x32xf32>
    %186 = math.tanh %185 : vector<2x32xf32>
    %187 = arith.mulf %182, %186 : vector<2x32xf32>
    %188 = vector.extract_strided_slice %187 {offsets = [0, 0], sizes = [2, 16], strides = [1, 1]} : vector<2x32xf32> to vector<2x16xf32>
    %c5 = arith.constant 5 : index
    %c0_44 = arith.constant 0 : index
    %c0_45 = arith.constant 0 : index
    %189 = vector.load %arg5[%c5, %c0_44, %c0_45] : memref<16x2x32xf32, #tpu.memory_space<vmem>>, vector<1x2x16xf32>
    %190 = vector.shape_cast %189 : vector<1x2x16xf32> to vector<2x16xf32>
    %191 = vector.shape_cast %188 : vector<2x16xf32> to vector<1x2x16xf32>
    tpu.vector_store %arg5[%c5, %c0_44, %c0_45], %191 {strides = array<i32>} : memref<16x2x32xf32, #tpu.memory_space<vmem>>, vector<1x2x16xf32>,
    %192 = vector.extract_strided_slice %187 {offsets = [0, 16], sizes = [2, 16], strides = [1, 1]} : vector<2x32xf32> to vector<2x16xf32>
    %c10 = arith.constant 10 : index
    %c0_46 = arith.constant 0 : index
    %c16_47 = arith.constant 16 : index
    %193 = vector.load %arg5[%c10, %c0_46, %c16_47] : memref<16x2x32xf32, #tpu.memory_space<vmem>>, vector<1x2x16xf32>
    %194 = vector.shape_cast %193 : vector<1x2x16xf32> to vector<2x16xf32>
    %195 = vector.shape_cast %192 : vector<2x16xf32> to vector<1x2x16xf32>
    tpu.vector_store %arg5[%c10, %c0_46, %c16_47], %195 {strides = array<i32>} : memref<16x2x32xf32, #tpu.memory_space<vmem>>, vector<1x2x16xf32>,
    %196 = vector.extract_strided_slice %5 {offsets = [12, 0], sizes = [2, 128], strides = [1, 1]} : vector<32x128xf32> to vector<2x128xf32>
    %197 = vector.extract_strided_slice %5 {offsets = [18, 0], sizes = [2, 128], strides = [1, 1]} : vector<32x128xf32> to vector<2x128xf32>
    %198 = arith.select %25, %196, %197 : vector<2x128xi1>, vector<2x128xf32>
    %cst_48 = arith.constant dense<0.000000e+00> : vector<2x128xf32>
    %199 = tpu.matmul %187, %6, %cst_48 {dimension_numbers = #tpu.dot_dimension_numbers<[1], [0], [0], [1], [0, 0, 1, 1], [], []>} : vector<2x32xf32>, vector<32x128xf32>, vector<2x128xf32> -> vector<2x128xf32>
    %200 = arith.addf %198, %199 : vector<2x128xf32>
    %201 = arith.negf %200 : vector<2x128xf32>
    %202 = math.exp %201 : vector<2x128xf32>
    %cst_49 = arith.constant 1.000000e+00 : f32
    %203 = vector.broadcast %cst_49 : f32 to vector<2x128xf32>
    %204 = arith.addf %203, %202 : vector<2x128xf32>
    %205 = arith.divf %203, %204 : vector<2x128xf32>
    %206 = math.tanh %200 : vector<2x128xf32>
    %207 = vector.extract_strided_slice %205 {offsets = [0, 0], sizes = [2, 32], strides = [1, 1]} : vector<2x128xf32> to vector<2x32xf32>
    %208 = vector.extract_strided_slice %205 {offsets = [0, 32], sizes = [2, 32], strides = [1, 1]} : vector<2x128xf32> to vector<2x32xf32>
    %209 = vector.extract_strided_slice %206 {offsets = [0, 64], sizes = [2, 32], strides = [1, 1]} : vector<2x128xf32> to vector<2x32xf32>
    %210 = vector.extract_strided_slice %205 {offsets = [0, 96], sizes = [2, 32], strides = [1, 1]} : vector<2x128xf32> to vector<2x32xf32>
    %211 = arith.mulf %208, %185 : vector<2x32xf32>
    %212 = arith.mulf %207, %209 : vector<2x32xf32>
    %213 = arith.addf %211, %212 : vector<2x32xf32>
    %214 = math.tanh %213 : vector<2x32xf32>
    %215 = arith.mulf %210, %214 : vector<2x32xf32>
    %216 = vector.extract_strided_slice %215 {offsets = [0, 0], sizes = [2, 16], strides = [1, 1]} : vector<2x32xf32> to vector<2x16xf32>
    %c6 = arith.constant 6 : index
    %c0_50 = arith.constant 0 : index
    %c0_51 = arith.constant 0 : index
    %217 = vector.load %arg5[%c6, %c0_50, %c0_51] : memref<16x2x32xf32, #tpu.memory_space<vmem>>, vector<1x2x16xf32>
    %218 = vector.shape_cast %217 : vector<1x2x16xf32> to vector<2x16xf32>
    %219 = vector.shape_cast %216 : vector<2x16xf32> to vector<1x2x16xf32>
    tpu.vector_store %arg5[%c6, %c0_50, %c0_51], %219 {strides = array<i32>} : memref<16x2x32xf32, #tpu.memory_space<vmem>>, vector<1x2x16xf32>,
    %220 = vector.extract_strided_slice %215 {offsets = [0, 16], sizes = [2, 16], strides = [1, 1]} : vector<2x32xf32> to vector<2x16xf32>
    %c9 = arith.constant 9 : index
    %c0_52 = arith.constant 0 : index
    %c16_53 = arith.constant 16 : index
    %221 = vector.load %arg5[%c9, %c0_52, %c16_53] : memref<16x2x32xf32, #tpu.memory_space<vmem>>, vector<1x2x16xf32>
    %222 = vector.shape_cast %221 : vector<1x2x16xf32> to vector<2x16xf32>
    %223 = vector.shape_cast %220 : vector<2x16xf32> to vector<1x2x16xf32>
    tpu.vector_store %arg5[%c9, %c0_52, %c16_53], %223 {strides = array<i32>} : memref<16x2x32xf32, #tpu.memory_space<vmem>>, vector<1x2x16xf32>,
    %224 = vector.extract_strided_slice %5 {offsets = [14, 0], sizes = [2, 128], strides = [1, 1]} : vector<32x128xf32> to vector<2x128xf32>
    %225 = vector.extract_strided_slice %5 {offsets = [16, 0], sizes = [2, 128], strides = [1, 1]} : vector<32x128xf32> to vector<2x128xf32>
    %226 = arith.select %25, %224, %225 : vector<2x128xi1>, vector<2x128xf32>
    %cst_54 = arith.constant dense<0.000000e+00> : vector<2x128xf32>
    %227 = tpu.matmul %215, %6, %cst_54 {dimension_numbers = #tpu.dot_dimension_numbers<[1], [0], [0], [1], [0, 0, 1, 1], [], []>} : vector<2x32xf32>, vector<32x128xf32>, vector<2x128xf32> -> vector<2x128xf32>
    %228 = arith.addf %226, %227 : vector<2x128xf32>
    %229 = arith.negf %228 : vector<2x128xf32>
    %230 = math.exp %229 : vector<2x128xf32>
    %cst_55 = arith.constant 1.000000e+00 : f32
    %231 = vector.broadcast %cst_55 : f32 to vector<2x128xf32>
    %232 = arith.addf %231, %230 : vector<2x128xf32>
    %233 = arith.divf %231, %232 : vector<2x128xf32>
    %234 = math.tanh %228 : vector<2x128xf32>
    %235 = vector.extract_strided_slice %233 {offsets = [0, 0], sizes = [2, 32], strides = [1, 1]} : vector<2x128xf32> to vector<2x32xf32>
    %236 = vector.extract_strided_slice %233 {offsets = [0, 32], sizes = [2, 32], strides = [1, 1]} : vector<2x128xf32> to vector<2x32xf32>
    %237 = vector.extract_strided_slice %234 {offsets = [0, 64], sizes = [2, 32], strides = [1, 1]} : vector<2x128xf32> to vector<2x32xf32>
    %238 = vector.extract_strided_slice %233 {offsets = [0, 96], sizes = [2, 32], strides = [1, 1]} : vector<2x128xf32> to vector<2x32xf32>
    %239 = arith.mulf %236, %213 : vector<2x32xf32>
    %240 = arith.mulf %235, %237 : vector<2x32xf32>
    %241 = arith.addf %239, %240 : vector<2x32xf32>
    %242 = math.tanh %241 : vector<2x32xf32>
    %243 = arith.mulf %238, %242 : vector<2x32xf32>
    %244 = vector.extract_strided_slice %243 {offsets = [0, 0], sizes = [2, 16], strides = [1, 1]} : vector<2x32xf32> to vector<2x16xf32>
    %c7 = arith.constant 7 : index
    %c0_56 = arith.constant 0 : index
    %c0_57 = arith.constant 0 : index
    %245 = vector.load %arg5[%c7, %c0_56, %c0_57] : memref<16x2x32xf32, #tpu.memory_space<vmem>>, vector<1x2x16xf32>
    %246 = vector.shape_cast %245 : vector<1x2x16xf32> to vector<2x16xf32>
    %247 = vector.shape_cast %244 : vector<2x16xf32> to vector<1x2x16xf32>
    tpu.vector_store %arg5[%c7, %c0_56, %c0_57], %247 {strides = array<i32>} : memref<16x2x32xf32, #tpu.memory_space<vmem>>, vector<1x2x16xf32>,
    %248 = vector.extract_strided_slice %243 {offsets = [0, 16], sizes = [2, 16], strides = [1, 1]} : vector<2x32xf32> to vector<2x16xf32>
    %c8 = arith.constant 8 : index
    %c0_58 = arith.constant 0 : index
    %c16_59 = arith.constant 16 : index
    %249 = vector.load %arg5[%c8, %c0_58, %c16_59] : memref<16x2x32xf32, #tpu.memory_space<vmem>>, vector<1x2x16xf32>
    %250 = vector.shape_cast %249 : vector<1x2x16xf32> to vector<2x16xf32>
    %251 = vector.shape_cast %248 : vector<2x16xf32> to vector<1x2x16xf32>
    tpu.vector_store %arg5[%c8, %c0_58, %c16_59], %251 {strides = array<i32>} : memref<16x2x32xf32, #tpu.memory_space<vmem>>, vector<1x2x16xf32>,
    %252 = vector.extract_strided_slice %5 {offsets = [16, 0], sizes = [2, 128], strides = [1, 1]} : vector<32x128xf32> to vector<2x128xf32>
    %253 = vector.extract_strided_slice %5 {offsets = [14, 0], sizes = [2, 128], strides = [1, 1]} : vector<32x128xf32> to vector<2x128xf32>
    %254 = arith.select %25, %252, %253 : vector<2x128xi1>, vector<2x128xf32>
    %cst_60 = arith.constant dense<0.000000e+00> : vector<2x128xf32>
    %255 = tpu.matmul %243, %6, %cst_60 {dimension_numbers = #tpu.dot_dimension_numbers<[1], [0], [0], [1], [0, 0, 1, 1], [], []>} : vector<2x32xf32>, vector<32x128xf32>, vector<2x128xf32> -> vector<2x128xf32>
    %256 = arith.addf %254, %255 : vector<2x128xf32>
    %257 = arith.negf %256 : vector<2x128xf32>
    %258 = math.exp %257 : vector<2x128xf32>
    %cst_61 = arith.constant 1.000000e+00 : f32
    %259 = vector.broadcast %cst_61 : f32 to vector<2x128xf32>
    %260 = arith.addf %259, %258 : vector<2x128xf32>
    %261 = arith.divf %259, %260 : vector<2x128xf32>
    %262 = math.tanh %256 : vector<2x128xf32>
    %263 = vector.extract_strided_slice %261 {offsets = [0, 0], sizes = [2, 32], strides = [1, 1]} : vector<2x128xf32> to vector<2x32xf32>
    %264 = vector.extract_strided_slice %261 {offsets = [0, 32], sizes = [2, 32], strides = [1, 1]} : vector<2x128xf32> to vector<2x32xf32>
    %265 = vector.extract_strided_slice %262 {offsets = [0, 64], sizes = [2, 32], strides = [1, 1]} : vector<2x128xf32> to vector<2x32xf32>
    %266 = vector.extract_strided_slice %261 {offsets = [0, 96], sizes = [2, 32], strides = [1, 1]} : vector<2x128xf32> to vector<2x32xf32>
    %267 = arith.mulf %264, %241 : vector<2x32xf32>
    %268 = arith.mulf %263, %265 : vector<2x32xf32>
    %269 = arith.addf %267, %268 : vector<2x32xf32>
    %270 = math.tanh %269 : vector<2x32xf32>
    %271 = arith.mulf %266, %270 : vector<2x32xf32>
    %272 = vector.extract_strided_slice %271 {offsets = [0, 0], sizes = [2, 16], strides = [1, 1]} : vector<2x32xf32> to vector<2x16xf32>
    %c8_62 = arith.constant 8 : index
    %c0_63 = arith.constant 0 : index
    %c0_64 = arith.constant 0 : index
    %273 = vector.load %arg5[%c8_62, %c0_63, %c0_64] : memref<16x2x32xf32, #tpu.memory_space<vmem>>, vector<1x2x16xf32>
    %274 = vector.shape_cast %273 : vector<1x2x16xf32> to vector<2x16xf32>
    %275 = vector.shape_cast %272 : vector<2x16xf32> to vector<1x2x16xf32>
    tpu.vector_store %arg5[%c8_62, %c0_63, %c0_64], %275 {strides = array<i32>} : memref<16x2x32xf32, #tpu.memory_space<vmem>>, vector<1x2x16xf32>,
    %276 = vector.extract_strided_slice %271 {offsets = [0, 16], sizes = [2, 16], strides = [1, 1]} : vector<2x32xf32> to vector<2x16xf32>
    %c7_65 = arith.constant 7 : index
    %c0_66 = arith.constant 0 : index
    %c16_67 = arith.constant 16 : index
    %277 = vector.load %arg5[%c7_65, %c0_66, %c16_67] : memref<16x2x32xf32, #tpu.memory_space<vmem>>, vector<1x2x16xf32>
    %278 = vector.shape_cast %277 : vector<1x2x16xf32> to vector<2x16xf32>
    %279 = vector.shape_cast %276 : vector<2x16xf32> to vector<1x2x16xf32>
    tpu.vector_store %arg5[%c7_65, %c0_66, %c16_67], %279 {strides = array<i32>} : memref<16x2x32xf32, #tpu.memory_space<vmem>>, vector<1x2x16xf32>,
    %280 = vector.extract_strided_slice %5 {offsets = [18, 0], sizes = [2, 128], strides = [1, 1]} : vector<32x128xf32> to vector<2x128xf32>
    %281 = vector.extract_strided_slice %5 {offsets = [12, 0], sizes = [2, 128], strides = [1, 1]} : vector<32x128xf32> to vector<2x128xf32>
    %282 = arith.select %25, %280, %281 : vector<2x128xi1>, vector<2x128xf32>
    %cst_68 = arith.constant dense<0.000000e+00> : vector<2x128xf32>
    %283 = tpu.matmul %271, %6, %cst_68 {dimension_numbers = #tpu.dot_dimension_numbers<[1], [0], [0], [1], [0, 0, 1, 1], [], []>} : vector<2x32xf32>, vector<32x128xf32>, vector<2x128xf32> -> vector<2x128xf32>
    %284 = arith.addf %282, %283 : vector<2x128xf32>
    %285 = arith.negf %284 : vector<2x128xf32>
    %286 = math.exp %285 : vector<2x128xf32>
    %cst_69 = arith.constant 1.000000e+00 : f32
    %287 = vector.broadcast %cst_69 : f32 to vector<2x128xf32>
    %288 = arith.addf %287, %286 : vector<2x128xf32>
    %289 = arith.divf %287, %288 : vector<2x128xf32>
    %290 = math.tanh %284 : vector<2x128xf32>
    %291 = vector.extract_strided_slice %289 {offsets = [0, 0], sizes = [2, 32], strides = [1, 1]} : vector<2x128xf32> to vector<2x32xf32>
    %292 = vector.extract_strided_slice %289 {offsets = [0, 32], sizes = [2, 32], strides = [1, 1]} : vector<2x128xf32> to vector<2x32xf32>
    %293 = vector.extract_strided_slice %290 {offsets = [0, 64], sizes = [2, 32], strides = [1, 1]} : vector<2x128xf32> to vector<2x32xf32>
    %294 = vector.extract_strided_slice %289 {offsets = [0, 96], sizes = [2, 32], strides = [1, 1]} : vector<2x128xf32> to vector<2x32xf32>
    %295 = arith.mulf %292, %269 : vector<2x32xf32>
    %296 = arith.mulf %291, %293 : vector<2x32xf32>
    %297 = arith.addf %295, %296 : vector<2x32xf32>
    %298 = math.tanh %297 : vector<2x32xf32>
    %299 = arith.mulf %294, %298 : vector<2x32xf32>
    %300 = vector.extract_strided_slice %299 {offsets = [0, 0], sizes = [2, 16], strides = [1, 1]} : vector<2x32xf32> to vector<2x16xf32>
    %c9_70 = arith.constant 9 : index
    %c0_71 = arith.constant 0 : index
    %c0_72 = arith.constant 0 : index
    %301 = vector.load %arg5[%c9_70, %c0_71, %c0_72] : memref<16x2x32xf32, #tpu.memory_space<vmem>>, vector<1x2x16xf32>
    %302 = vector.shape_cast %301 : vector<1x2x16xf32> to vector<2x16xf32>
    %303 = vector.shape_cast %300 : vector<2x16xf32> to vector<1x2x16xf32>
    tpu.vector_store %arg5[%c9_70, %c0_71, %c0_72], %303 {strides = array<i32>} : memref<16x2x32xf32, #tpu.memory_space<vmem>>, vector<1x2x16xf32>,
    %304 = vector.extract_strided_slice %299 {offsets = [0, 16], sizes = [2, 16], strides = [1, 1]} : vector<2x32xf32> to vector<2x16xf32>
    %c6_73 = arith.constant 6 : index
    %c0_74 = arith.constant 0 : index
    %c16_75 = arith.constant 16 : index
    %305 = vector.load %arg5[%c6_73, %c0_74, %c16_75] : memref<16x2x32xf32, #tpu.memory_space<vmem>>, vector<1x2x16xf32>
    %306 = vector.shape_cast %305 : vector<1x2x16xf32> to vector<2x16xf32>
    %307 = vector.shape_cast %304 : vector<2x16xf32> to vector<1x2x16xf32>
    tpu.vector_store %arg5[%c6_73, %c0_74, %c16_75], %307 {strides = array<i32>} : memref<16x2x32xf32, #tpu.memory_space<vmem>>, vector<1x2x16xf32>,
    %308 = vector.extract_strided_slice %5 {offsets = [20, 0], sizes = [2, 128], strides = [1, 1]} : vector<32x128xf32> to vector<2x128xf32>
    %309 = vector.extract_strided_slice %5 {offsets = [10, 0], sizes = [2, 128], strides = [1, 1]} : vector<32x128xf32> to vector<2x128xf32>
    %310 = arith.select %25, %308, %309 : vector<2x128xi1>, vector<2x128xf32>
    %cst_76 = arith.constant dense<0.000000e+00> : vector<2x128xf32>
    %311 = tpu.matmul %299, %6, %cst_76 {dimension_numbers = #tpu.dot_dimension_numbers<[1], [0], [0], [1], [0, 0, 1, 1], [], []>} : vector<2x32xf32>, vector<32x128xf32>, vector<2x128xf32> -> vector<2x128xf32>
    %312 = arith.addf %310, %311 : vector<2x128xf32>
    %313 = arith.negf %312 : vector<2x128xf32>
    %314 = math.exp %313 : vector<2x128xf32>
    %cst_77 = arith.constant 1.000000e+00 : f32
    %315 = vector.broadcast %cst_77 : f32 to vector<2x128xf32>
    %316 = arith.addf %315, %314 : vector<2x128xf32>
    %317 = arith.divf %315, %316 : vector<2x128xf32>
    %318 = math.tanh %312 : vector<2x128xf32>
    %319 = vector.extract_strided_slice %317 {offsets = [0, 0], sizes = [2, 32], strides = [1, 1]} : vector<2x128xf32> to vector<2x32xf32>
    %320 = vector.extract_strided_slice %317 {offsets = [0, 32], sizes = [2, 32], strides = [1, 1]} : vector<2x128xf32> to vector<2x32xf32>
    %321 = vector.extract_strided_slice %318 {offsets = [0, 64], sizes = [2, 32], strides = [1, 1]} : vector<2x128xf32> to vector<2x32xf32>
    %322 = vector.extract_strided_slice %317 {offsets = [0, 96], sizes = [2, 32], strides = [1, 1]} : vector<2x128xf32> to vector<2x32xf32>
    %323 = arith.mulf %320, %297 : vector<2x32xf32>
    %324 = arith.mulf %319, %321 : vector<2x32xf32>
    %325 = arith.addf %323, %324 : vector<2x32xf32>
    %326 = math.tanh %325 : vector<2x32xf32>
    %327 = arith.mulf %322, %326 : vector<2x32xf32>
    %328 = vector.extract_strided_slice %327 {offsets = [0, 0], sizes = [2, 16], strides = [1, 1]} : vector<2x32xf32> to vector<2x16xf32>
    %c10_78 = arith.constant 10 : index
    %c0_79 = arith.constant 0 : index
    %c0_80 = arith.constant 0 : index
    %329 = vector.load %arg5[%c10_78, %c0_79, %c0_80] : memref<16x2x32xf32, #tpu.memory_space<vmem>>, vector<1x2x16xf32>
    %330 = vector.shape_cast %329 : vector<1x2x16xf32> to vector<2x16xf32>
    %331 = vector.shape_cast %328 : vector<2x16xf32> to vector<1x2x16xf32>
    tpu.vector_store %arg5[%c10_78, %c0_79, %c0_80], %331 {strides = array<i32>} : memref<16x2x32xf32, #tpu.memory_space<vmem>>, vector<1x2x16xf32>,
    %332 = vector.extract_strided_slice %327 {offsets = [0, 16], sizes = [2, 16], strides = [1, 1]} : vector<2x32xf32> to vector<2x16xf32>
    %c5_81 = arith.constant 5 : index
    %c0_82 = arith.constant 0 : index
    %c16_83 = arith.constant 16 : index
    %333 = vector.load %arg5[%c5_81, %c0_82, %c16_83] : memref<16x2x32xf32, #tpu.memory_space<vmem>>, vector<1x2x16xf32>
    %334 = vector.shape_cast %333 : vector<1x2x16xf32> to vector<2x16xf32>
    %335 = vector.shape_cast %332 : vector<2x16xf32> to vector<1x2x16xf32>
    tpu.vector_store %arg5[%c5_81, %c0_82, %c16_83], %335 {strides = array<i32>} : memref<16x2x32xf32, #tpu.memory_space<vmem>>, vector<1x2x16xf32>,
    %336 = vector.extract_strided_slice %5 {offsets = [22, 0], sizes = [2, 128], strides = [1, 1]} : vector<32x128xf32> to vector<2x128xf32>
    %337 = vector.extract_strided_slice %5 {offsets = [8, 0], sizes = [2, 128], strides = [1, 1]} : vector<32x128xf32> to vector<2x128xf32>
    %338 = arith.select %25, %336, %337 : vector<2x128xi1>, vector<2x128xf32>
    %cst_84 = arith.constant dense<0.000000e+00> : vector<2x128xf32>
    %339 = tpu.matmul %327, %6, %cst_84 {dimension_numbers = #tpu.dot_dimension_numbers<[1], [0], [0], [1], [0, 0, 1, 1], [], []>} : vector<2x32xf32>, vector<32x128xf32>, vector<2x128xf32> -> vector<2x128xf32>
    %340 = arith.addf %338, %339 : vector<2x128xf32>
    %341 = arith.negf %340 : vector<2x128xf32>
    %342 = math.exp %341 : vector<2x128xf32>
    %cst_85 = arith.constant 1.000000e+00 : f32
    %343 = vector.broadcast %cst_85 : f32 to vector<2x128xf32>
    %344 = arith.addf %343, %342 : vector<2x128xf32>
    %345 = arith.divf %343, %344 : vector<2x128xf32>
    %346 = math.tanh %340 : vector<2x128xf32>
    %347 = vector.extract_strided_slice %345 {offsets = [0, 0], sizes = [2, 32], strides = [1, 1]} : vector<2x128xf32> to vector<2x32xf32>
    %348 = vector.extract_strided_slice %345 {offsets = [0, 32], sizes = [2, 32], strides = [1, 1]} : vector<2x128xf32> to vector<2x32xf32>
    %349 = vector.extract_strided_slice %346 {offsets = [0, 64], sizes = [2, 32], strides = [1, 1]} : vector<2x128xf32> to vector<2x32xf32>
    %350 = vector.extract_strided_slice %345 {offsets = [0, 96], sizes = [2, 32], strides = [1, 1]} : vector<2x128xf32> to vector<2x32xf32>
    %351 = arith.mulf %348, %325 : vector<2x32xf32>
    %352 = arith.mulf %347, %349 : vector<2x32xf32>
    %353 = arith.addf %351, %352 : vector<2x32xf32>
    %354 = math.tanh %353 : vector<2x32xf32>
    %355 = arith.mulf %350, %354 : vector<2x32xf32>
    %356 = vector.extract_strided_slice %355 {offsets = [0, 0], sizes = [2, 16], strides = [1, 1]} : vector<2x32xf32> to vector<2x16xf32>
    %c11_86 = arith.constant 11 : index
    %c0_87 = arith.constant 0 : index
    %c0_88 = arith.constant 0 : index
    %357 = vector.load %arg5[%c11_86, %c0_87, %c0_88] : memref<16x2x32xf32, #tpu.memory_space<vmem>>, vector<1x2x16xf32>
    %358 = vector.shape_cast %357 : vector<1x2x16xf32> to vector<2x16xf32>
    %359 = vector.shape_cast %356 : vector<2x16xf32> to vector<1x2x16xf32>
    tpu.vector_store %arg5[%c11_86, %c0_87, %c0_88], %359 {strides = array<i32>} : memref<16x2x32xf32, #tpu.memory_space<vmem>>, vector<1x2x16xf32>,
    %360 = vector.extract_strided_slice %355 {offsets = [0, 16], sizes = [2, 16], strides = [1, 1]} : vector<2x32xf32> to vector<2x16xf32>
    %c4_89 = arith.constant 4 : index
    %c0_90 = arith.constant 0 : index
    %c16_91 = arith.constant 16 : index
    %361 = vector.load %arg5[%c4_89, %c0_90, %c16_91] : memref<16x2x32xf32, #tpu.memory_space<vmem>>, vector<1x2x16xf32>
    %362 = vector.shape_cast %361 : vector<1x2x16xf32> to vector<2x16xf32>
    %363 = vector.shape_cast %360 : vector<2x16xf32> to vector<1x2x16xf32>
    tpu.vector_store %arg5[%c4_89, %c0_90, %c16_91], %363 {strides = array<i32>} : memref<16x2x32xf32, #tpu.memory_space<vmem>>, vector<1x2x16xf32>,
    %364 = vector.extract_strided_slice %5 {offsets = [24, 0], sizes = [2, 128], strides = [1, 1]} : vector<32x128xf32> to vector<2x128xf32>
    %365 = vector.extract_strided_slice %5 {offsets = [6, 0], sizes = [2, 128], strides = [1, 1]} : vector<32x128xf32> to vector<2x128xf32>
    %366 = arith.select %25, %364, %365 : vector<2x128xi1>, vector<2x128xf32>
    %cst_92 = arith.constant dense<0.000000e+00> : vector<2x128xf32>
    %367 = tpu.matmul %355, %6, %cst_92 {dimension_numbers = #tpu.dot_dimension_numbers<[1], [0], [0], [1], [0, 0, 1, 1], [], []>} : vector<2x32xf32>, vector<32x128xf32>, vector<2x128xf32> -> vector<2x128xf32>
    %368 = arith.addf %366, %367 : vector<2x128xf32>
    %369 = arith.negf %368 : vector<2x128xf32>
    %370 = math.exp %369 : vector<2x128xf32>
    %cst_93 = arith.constant 1.000000e+00 : f32
    %371 = vector.broadcast %cst_93 : f32 to vector<2x128xf32>
    %372 = arith.addf %371, %370 : vector<2x128xf32>
    %373 = arith.divf %371, %372 : vector<2x128xf32>
    %374 = math.tanh %368 : vector<2x128xf32>
    %375 = vector.extract_strided_slice %373 {offsets = [0, 0], sizes = [2, 32], strides = [1, 1]} : vector<2x128xf32> to vector<2x32xf32>
    %376 = vector.extract_strided_slice %373 {offsets = [0, 32], sizes = [2, 32], strides = [1, 1]} : vector<2x128xf32> to vector<2x32xf32>
    %377 = vector.extract_strided_slice %374 {offsets = [0, 64], sizes = [2, 32], strides = [1, 1]} : vector<2x128xf32> to vector<2x32xf32>
    %378 = vector.extract_strided_slice %373 {offsets = [0, 96], sizes = [2, 32], strides = [1, 1]} : vector<2x128xf32> to vector<2x32xf32>
    %379 = arith.mulf %376, %353 : vector<2x32xf32>
    %380 = arith.mulf %375, %377 : vector<2x32xf32>
    %381 = arith.addf %379, %380 : vector<2x32xf32>
    %382 = math.tanh %381 : vector<2x32xf32>
    %383 = arith.mulf %378, %382 : vector<2x32xf32>
    %384 = vector.extract_strided_slice %383 {offsets = [0, 0], sizes = [2, 16], strides = [1, 1]} : vector<2x32xf32> to vector<2x16xf32>
    %c12_94 = arith.constant 12 : index
    %c0_95 = arith.constant 0 : index
    %c0_96 = arith.constant 0 : index
    %385 = vector.load %arg5[%c12_94, %c0_95, %c0_96] : memref<16x2x32xf32, #tpu.memory_space<vmem>>, vector<1x2x16xf32>
    %386 = vector.shape_cast %385 : vector<1x2x16xf32> to vector<2x16xf32>
    %387 = vector.shape_cast %384 : vector<2x16xf32> to vector<1x2x16xf32>
    tpu.vector_store %arg5[%c12_94, %c0_95, %c0_96], %387 {strides = array<i32>} : memref<16x2x32xf32, #tpu.memory_space<vmem>>, vector<1x2x16xf32>,
    %388 = vector.extract_strided_slice %383 {offsets = [0, 16], sizes = [2, 16], strides = [1, 1]} : vector<2x32xf32> to vector<2x16xf32>
    %c3_97 = arith.constant 3 : index
    %c0_98 = arith.constant 0 : index
    %c16_99 = arith.constant 16 : index
    %389 = vector.load %arg5[%c3_97, %c0_98, %c16_99] : memref<16x2x32xf32, #tpu.memory_space<vmem>>, vector<1x2x16xf32>
    %390 = vector.shape_cast %389 : vector<1x2x16xf32> to vector<2x16xf32>
    %391 = vector.shape_cast %388 : vector<2x16xf32> to vector<1x2x16xf32>
    tpu.vector_store %arg5[%c3_97, %c0_98, %c16_99], %391 {strides = array<i32>} : memref<16x2x32xf32, #tpu.memory_space<vmem>>, vector<1x2x16xf32>,
    %392 = vector.extract_strided_slice %5 {offsets = [26, 0], sizes = [2, 128], strides = [1, 1]} : vector<32x128xf32> to vector<2x128xf32>
    %393 = vector.extract_strided_slice %5 {offsets = [4, 0], sizes = [2, 128], strides = [1, 1]} : vector<32x128xf32> to vector<2x128xf32>
    %394 = arith.select %25, %392, %393 : vector<2x128xi1>, vector<2x128xf32>
    %cst_100 = arith.constant dense<0.000000e+00> : vector<2x128xf32>
    %395 = tpu.matmul %383, %6, %cst_100 {dimension_numbers = #tpu.dot_dimension_numbers<[1], [0], [0], [1], [0, 0, 1, 1], [], []>} : vector<2x32xf32>, vector<32x128xf32>, vector<2x128xf32> -> vector<2x128xf32>
    %396 = arith.addf %394, %395 : vector<2x128xf32>
    %397 = arith.negf %396 : vector<2x128xf32>
    %398 = math.exp %397 : vector<2x128xf32>
    %cst_101 = arith.constant 1.000000e+00 : f32
    %399 = vector.broadcast %cst_101 : f32 to vector<2x128xf32>
    %400 = arith.addf %399, %398 : vector<2x128xf32>
    %401 = arith.divf %399, %400 : vector<2x128xf32>
    %402 = math.tanh %396 : vector<2x128xf32>
    %403 = vector.extract_strided_slice %401 {offsets = [0, 0], sizes = [2, 32], strides = [1, 1]} : vector<2x128xf32> to vector<2x32xf32>
    %404 = vector.extract_strided_slice %401 {offsets = [0, 32], sizes = [2, 32], strides = [1, 1]} : vector<2x128xf32> to vector<2x32xf32>
    %405 = vector.extract_strided_slice %402 {offsets = [0, 64], sizes = [2, 32], strides = [1, 1]} : vector<2x128xf32> to vector<2x32xf32>
    %406 = vector.extract_strided_slice %401 {offsets = [0, 96], sizes = [2, 32], strides = [1, 1]} : vector<2x128xf32> to vector<2x32xf32>
    %407 = arith.mulf %404, %381 : vector<2x32xf32>
    %408 = arith.mulf %403, %405 : vector<2x32xf32>
    %409 = arith.addf %407, %408 : vector<2x32xf32>
    %410 = math.tanh %409 : vector<2x32xf32>
    %411 = arith.mulf %406, %410 : vector<2x32xf32>
    %412 = vector.extract_strided_slice %411 {offsets = [0, 0], sizes = [2, 16], strides = [1, 1]} : vector<2x32xf32> to vector<2x16xf32>
    %c13_102 = arith.constant 13 : index
    %c0_103 = arith.constant 0 : index
    %c0_104 = arith.constant 0 : index
    %413 = vector.load %arg5[%c13_102, %c0_103, %c0_104] : memref<16x2x32xf32, #tpu.memory_space<vmem>>, vector<1x2x16xf32>
    %414 = vector.shape_cast %413 : vector<1x2x16xf32> to vector<2x16xf32>
    %415 = vector.shape_cast %412 : vector<2x16xf32> to vector<1x2x16xf32>
    tpu.vector_store %arg5[%c13_102, %c0_103, %c0_104], %415 {strides = array<i32>} : memref<16x2x32xf32, #tpu.memory_space<vmem>>, vector<1x2x16xf32>,
    %416 = vector.extract_strided_slice %411 {offsets = [0, 16], sizes = [2, 16], strides = [1, 1]} : vector<2x32xf32> to vector<2x16xf32>
    %c2_105 = arith.constant 2 : index
    %c0_106 = arith.constant 0 : index
    %c16_107 = arith.constant 16 : index
    %417 = vector.load %arg5[%c2_105, %c0_106, %c16_107] : memref<16x2x32xf32, #tpu.memory_space<vmem>>, vector<1x2x16xf32>
    %418 = vector.shape_cast %417 : vector<1x2x16xf32> to vector<2x16xf32>
    %419 = vector.shape_cast %416 : vector<2x16xf32> to vector<1x2x16xf32>
    tpu.vector_store %arg5[%c2_105, %c0_106, %c16_107], %419 {strides = array<i32>} : memref<16x2x32xf32, #tpu.memory_space<vmem>>, vector<1x2x16xf32>,
    %420 = vector.extract_strided_slice %5 {offsets = [28, 0], sizes = [2, 128], strides = [1, 1]} : vector<32x128xf32> to vector<2x128xf32>
    %421 = vector.extract_strided_slice %5 {offsets = [2, 0], sizes = [2, 128], strides = [1, 1]} : vector<32x128xf32> to vector<2x128xf32>
    %422 = arith.select %25, %420, %421 : vector<2x128xi1>, vector<2x128xf32>
    %cst_108 = arith.constant dense<0.000000e+00> : vector<2x128xf32>
    %423 = tpu.matmul %411, %6, %cst_108 {dimension_numbers = #tpu.dot_dimension_numbers<[1], [0], [0], [1], [0, 0, 1, 1], [], []>} : vector<2x32xf32>, vector<32x128xf32>, vector<2x128xf32> -> vector<2x128xf32>
    %424 = arith.addf %422, %423 : vector<2x128xf32>
    %425 = arith.negf %424 : vector<2x128xf32>
    %426 = math.exp %425 : vector<2x128xf32>
    %cst_109 = arith.constant 1.000000e+00 : f32
    %427 = vector.broadcast %cst_109 : f32 to vector<2x128xf32>
    %428 = arith.addf %427, %426 : vector<2x128xf32>
    %429 = arith.divf %427, %428 : vector<2x128xf32>
    %430 = math.tanh %424 : vector<2x128xf32>
    %431 = vector.extract_strided_slice %429 {offsets = [0, 0], sizes = [2, 32], strides = [1, 1]} : vector<2x128xf32> to vector<2x32xf32>
    %432 = vector.extract_strided_slice %429 {offsets = [0, 32], sizes = [2, 32], strides = [1, 1]} : vector<2x128xf32> to vector<2x32xf32>
    %433 = vector.extract_strided_slice %430 {offsets = [0, 64], sizes = [2, 32], strides = [1, 1]} : vector<2x128xf32> to vector<2x32xf32>
    %434 = vector.extract_strided_slice %429 {offsets = [0, 96], sizes = [2, 32], strides = [1, 1]} : vector<2x128xf32> to vector<2x32xf32>
    %435 = arith.mulf %432, %409 : vector<2x32xf32>
    %436 = arith.mulf %431, %433 : vector<2x32xf32>
    %437 = arith.addf %435, %436 : vector<2x32xf32>
    %438 = math.tanh %437 : vector<2x32xf32>
    %439 = arith.mulf %434, %438 : vector<2x32xf32>
    %440 = vector.extract_strided_slice %439 {offsets = [0, 0], sizes = [2, 16], strides = [1, 1]} : vector<2x32xf32> to vector<2x16xf32>
    %c14_110 = arith.constant 14 : index
    %c0_111 = arith.constant 0 : index
    %c0_112 = arith.constant 0 : index
    %441 = vector.load %arg5[%c14_110, %c0_111, %c0_112] : memref<16x2x32xf32, #tpu.memory_space<vmem>>, vector<1x2x16xf32>
    %442 = vector.shape_cast %441 : vector<1x2x16xf32> to vector<2x16xf32>
    %443 = vector.shape_cast %440 : vector<2x16xf32> to vector<1x2x16xf32>
    tpu.vector_store %arg5[%c14_110, %c0_111, %c0_112], %443 {strides = array<i32>} : memref<16x2x32xf32, #tpu.memory_space<vmem>>, vector<1x2x16xf32>,
    %444 = vector.extract_strided_slice %439 {offsets = [0, 16], sizes = [2, 16], strides = [1, 1]} : vector<2x32xf32> to vector<2x16xf32>
    %c1_113 = arith.constant 1 : index
    %c0_114 = arith.constant 0 : index
    %c16_115 = arith.constant 16 : index
    %445 = vector.load %arg5[%c1_113, %c0_114, %c16_115] : memref<16x2x32xf32, #tpu.memory_space<vmem>>, vector<1x2x16xf32>
    %446 = vector.shape_cast %445 : vector<1x2x16xf32> to vector<2x16xf32>
    %447 = vector.shape_cast %444 : vector<2x16xf32> to vector<1x2x16xf32>
    tpu.vector_store %arg5[%c1_113, %c0_114, %c16_115], %447 {strides = array<i32>} : memref<16x2x32xf32, #tpu.memory_space<vmem>>, vector<1x2x16xf32>,
    %448 = vector.extract_strided_slice %5 {offsets = [30, 0], sizes = [2, 128], strides = [1, 1]} : vector<32x128xf32> to vector<2x128xf32>
    %449 = vector.extract_strided_slice %5 {offsets = [0, 0], sizes = [2, 128], strides = [1, 1]} : vector<32x128xf32> to vector<2x128xf32>
    %450 = arith.select %25, %448, %449 : vector<2x128xi1>, vector<2x128xf32>
    %cst_116 = arith.constant dense<0.000000e+00> : vector<2x128xf32>
    %451 = tpu.matmul %439, %6, %cst_116 {dimension_numbers = #tpu.dot_dimension_numbers<[1], [0], [0], [1], [0, 0, 1, 1], [], []>} : vector<2x32xf32>, vector<32x128xf32>, vector<2x128xf32> -> vector<2x128xf32>
    %452 = arith.addf %450, %451 : vector<2x128xf32>
    %453 = arith.negf %452 : vector<2x128xf32>
    %454 = math.exp %453 : vector<2x128xf32>
    %cst_117 = arith.constant 1.000000e+00 : f32
    %455 = vector.broadcast %cst_117 : f32 to vector<2x128xf32>
    %456 = arith.addf %455, %454 : vector<2x128xf32>
    %457 = arith.divf %455, %456 : vector<2x128xf32>
    %458 = math.tanh %452 : vector<2x128xf32>
    %459 = vector.extract_strided_slice %457 {offsets = [0, 0], sizes = [2, 32], strides = [1, 1]} : vector<2x128xf32> to vector<2x32xf32>
    %460 = vector.extract_strided_slice %457 {offsets = [0, 32], sizes = [2, 32], strides = [1, 1]} : vector<2x128xf32> to vector<2x32xf32>
    %461 = vector.extract_strided_slice %458 {offsets = [0, 64], sizes = [2, 32], strides = [1, 1]} : vector<2x128xf32> to vector<2x32xf32>
    %462 = vector.extract_strided_slice %457 {offsets = [0, 96], sizes = [2, 32], strides = [1, 1]} : vector<2x128xf32> to vector<2x32xf32>
    %463 = arith.mulf %460, %437 : vector<2x32xf32>
    %464 = arith.mulf %459, %461 : vector<2x32xf32>
    %465 = arith.addf %463, %464 : vector<2x32xf32>
    %466 = math.tanh %465 : vector<2x32xf32>
    %467 = arith.mulf %462, %466 : vector<2x32xf32>
    %468 = vector.extract_strided_slice %467 {offsets = [0, 0], sizes = [2, 16], strides = [1, 1]} : vector<2x32xf32> to vector<2x16xf32>
    %c15_118 = arith.constant 15 : index
    %c0_119 = arith.constant 0 : index
    %c0_120 = arith.constant 0 : index
    %469 = vector.load %arg5[%c15_118, %c0_119, %c0_120] : memref<16x2x32xf32, #tpu.memory_space<vmem>>, vector<1x2x16xf32>
    %470 = vector.shape_cast %469 : vector<1x2x16xf32> to vector<2x16xf32>
    %471 = vector.shape_cast %468 : vector<2x16xf32> to vector<1x2x16xf32>
    tpu.vector_store %arg5[%c15_118, %c0_119, %c0_120], %471 {strides = array<i32>} : memref<16x2x32xf32, #tpu.memory_space<vmem>>, vector<1x2x16xf32>,
    %472 = vector.extract_strided_slice %467 {offsets = [0, 16], sizes = [2, 16], strides = [1, 1]} : vector<2x32xf32> to vector<2x16xf32>
    %c0_121 = arith.constant 0 : index
    %c0_122 = arith.constant 0 : index
    %c16_123 = arith.constant 16 : index
    %473 = vector.load %arg5[%c0_121, %c0_122, %c16_123] : memref<16x2x32xf32, #tpu.memory_space<vmem>>, vector<1x2x16xf32>
    %474 = vector.shape_cast %473 : vector<1x2x16xf32> to vector<2x16xf32>
    %475 = vector.shape_cast %472 : vector<2x16xf32> to vector<1x2x16xf32>
    tpu.vector_store %arg5[%c0_121, %c0_122, %c16_123], %475 {strides = array<i32>} : memref<16x2x32xf32, #tpu.memory_space<vmem>>, vector<1x2x16xf32>,
    return
  }
  func.func @transform_0(%arg0: i32) -> (i32, i32) {
    %c0_i32 = arith.constant 0 : i32
    %c0_i32_0 = arith.constant 0 : i32
    %c0_i32_1 = arith.constant 0 : i32
    return %c0_i32, %c0_i32_0 : i32, i32
  }
  func.func @transform_1(%arg0: i32) -> (i32, i32) {
    %c0_i32 = arith.constant 0 : i32
    %c0_i32_0 = arith.constant 0 : i32
    %c0_i32_1 = arith.constant 0 : i32
    return %c0_i32, %c0_i32_0 : i32, i32
  }
  func.func @transform_2(%arg0: i32) -> (i32, i32) {
    %c0_i32 = arith.constant 0 : i32
    %c0_i32_0 = arith.constant 0 : i32
    %c0_i32_1 = arith.constant 0 : i32
    return %c0_i32, %c0_i32_0 : i32, i32
  }
  func.func @transform_3(%arg0: i32) -> (i32, i32) {
    %c0_i32 = arith.constant 0 : i32
    %c0_i32_0 = arith.constant 0 : i32
    %c0_i32_1 = arith.constant 0 : i32
    return %c0_i32, %c0_i32_0 : i32, i32
  }
  func.func @transform_4(%arg0: i32) -> (i32, i32, i32) {
    %c0_i32 = arith.constant 0 : i32
    %c0_i32_0 = arith.constant 0 : i32
    %c0_i32_1 = arith.constant 0 : i32
    %c0_i32_2 = arith.constant 0 : i32
    return %c0_i32, %c0_i32_0, %c0_i32_1 : i32, i32, i32
  }
}

module attributes {stable_mosaic.version = 11 : i64} {
  func.func @_output_kernel(%arg0: i32, %arg1: memref<1x16x128xf32, #tpu.memory_space<vmem>>, %arg2: memref<1x16x32xf32, #tpu.memory_space<vmem>>, %arg3: memref<1x16x32xf32, #tpu.memory_space<vmem>>, %arg4: memref<1x1x16xi32, #tpu.memory_space<vmem>>, %arg5: memref<2x128xf32, #tpu.memory_space<vmem>>, %arg6: memref<2x64xf32, #tpu.memory_space<vmem>>, %arg7: memref<1x2x16xf32, #tpu.memory_space<vmem>>) attributes {dimension_semantics = [#tpu.dimension_semantics<parallel>], iteration_bounds = array<i64: 2>, scalar_prefetch = 0 : i64, scratch_operands = 0 : i64, tpu.core_type = #tpu.core_type<tc>, window_params = [{transform_indices = @transform_0, window_bounds = array<i64: 1, 16, 128>}, {transform_indices = @transform_1, window_bounds = array<i64: 1, 16, 32>}, {transform_indices = @transform_2, window_bounds = array<i64: 1, 16, 32>}, {transform_indices = @transform_3, window_bounds = array<i64: 1, 1, 16>}, {pipeline_mode = #tpu.pipeline_mode<synchronous>, transform_indices = @transform_4, window_bounds = array<i64: 2, 128>}, {pipeline_mode = #tpu.pipeline_mode<synchronous>, transform_indices = @transform_5, window_bounds = array<i64: 2, 64>}, {transform_indices = @transform_6, window_bounds = array<i64: 1, 2, 16>}]} {
    %c0 = arith.constant 0 : index
    %c0_0 = arith.constant 0 : index
    %c0_1 = arith.constant 0 : index
    %0 = vector.load %arg1[%c0, %c0_0, %c0_1] : memref<1x16x128xf32, #tpu.memory_space<vmem>>, vector<1x16x128xf32>
    %1 = vector.shape_cast %0 : vector<1x16x128xf32> to vector<16x128xf32>
    %c0_2 = arith.constant 0 : index
    %c0_3 = arith.constant 0 : index
    %c0_4 = arith.constant 0 : index
    %2 = vector.load %arg2[%c0_2, %c0_3, %c0_4] : memref<1x16x32xf32, #tpu.memory_space<vmem>>, vector<1x16x32xf32>
    %3 = vector.shape_cast %2 : vector<1x16x32xf32> to vector<16x32xf32>
    %c0_5 = arith.constant 0 : index
    %c0_6 = arith.constant 0 : index
    %c0_7 = arith.constant 0 : index
    %4 = vector.load %arg3[%c0_5, %c0_6, %c0_7] : memref<1x16x32xf32, #tpu.memory_space<vmem>>, vector<1x16x32xf32>
    %5 = vector.shape_cast %4 : vector<1x16x32xf32> to vector<16x32xf32>
    %c0_8 = arith.constant 0 : index
    %c0_9 = arith.constant 0 : index
    %c0_10 = arith.constant 0 : index
    %6 = vector.load %arg4[%c0_8, %c0_9, %c0_10] : memref<1x1x16xi32, #tpu.memory_space<vmem>>, vector<1x1x16xi32>
    %7 = vector.shape_cast %6 : vector<1x1x16xi32> to vector<1x16xi32>
    %c0_11 = arith.constant 0 : index
    %c0_12 = arith.constant 0 : index
    %8 = vector.load %arg5[%c0_11, %c0_12] : memref<2x128xf32, #tpu.memory_space<vmem>>, vector<2x128xf32>
    %c0_13 = arith.constant 0 : index
    %c0_14 = arith.constant 0 : index
    %9 = vector.load %arg6[%c0_13, %c0_14] : memref<2x64xf32, #tpu.memory_space<vmem>>, vector<2x64xf32>
    %10 = tpu.concatenate %3, %5 in 1 : vector<16x32xf32>, vector<16x32xf32> -> vector<16x64xf32>
    %cst = arith.constant dense<0.000000e+00> : vector<2x16xf32>
    %11 = tpu.matmul %8, %1, %cst {dimension_numbers = #tpu.dot_dimension_numbers<[1], [1], [0], [0], [0, 0, 1, 0], [], []>} : vector<2x128xf32>, vector<16x128xf32>, vector<2x16xf32> -> vector<2x16xf32>
    %cst_15 = arith.constant dense<0.000000e+00> : vector<2x16xf32>
    %12 = tpu.matmul %9, %10, %cst_15 {dimension_numbers = #tpu.dot_dimension_numbers<[1], [1], [0], [0], [0, 0, 1, 0], [], []>} : vector<2x64xf32>, vector<16x64xf32>, vector<2x16xf32> -> vector<2x16xf32>
    %13 = arith.addf %11, %12 : vector<2x16xf32>
    %c0_i32 = arith.constant 0 : i32
    %14 = vector.broadcast %c0_i32 : i32 to vector<1x16xi32>
    %15 = arith.cmpi eq, %7, %14 : vector<1x16xi32>
    %cst_16 = arith.constant -1.000000e+30 : f32
    %16 = vector.shape_cast %15 : vector<1x16xi1> to vector<1x16xi1>
    %17 = vector.broadcast %16 : vector<1x16xi1> to vector<2x16xi1>
    %18 = vector.broadcast %cst_16 : f32 to vector<2x16xf32>
    %19 = arith.select %17, %18, %13 : vector<2x16xi1>, vector<2x16xf32>
    %cst_17 = arith.constant dense<0xFF800000> : vector<2xf32>
    %20 = vector.multi_reduction <maximumf>, %19, %cst_17 [1] : vector<2x16xf32> to vector<2xf32>
    %21 = vector.shape_cast %20 : vector<2xf32> to vector<2x1xf32>
    %22 = vector.broadcast %21 : vector<2x1xf32> to vector<2x16xf32>
    %23 = arith.subf %19, %22 : vector<2x16xf32>
    %24 = math.exp %23 : vector<2x16xf32>
    %cst_18 = arith.constant dense<0.000000e+00> : vector<2xf32>
    %25 = vector.multi_reduction <add>, %24, %cst_18 [1] : vector<2x16xf32> to vector<2xf32>
    %26 = vector.shape_cast %25 : vector<2xf32> to vector<2x1xf32>
    %27 = vector.broadcast %26 : vector<2x1xf32> to vector<2x16xf32>
    %28 = arith.divf %24, %27 : vector<2x16xf32>
    %c0_19 = arith.constant 0 : index
    %c0_20 = arith.constant 0 : index
    %c0_21 = arith.constant 0 : index
    %29 = vector.load %arg7[%c0_19, %c0_20, %c0_21] : memref<1x2x16xf32, #tpu.memory_space<vmem>>, vector<1x2x16xf32>
    %30 = vector.shape_cast %29 : vector<1x2x16xf32> to vector<2x16xf32>
    %31 = vector.shape_cast %28 : vector<2x16xf32> to vector<1x2x16xf32>
    tpu.vector_store %arg7[%c0_19, %c0_20, %c0_21], %31 {strides = array<i32>} : memref<1x2x16xf32, #tpu.memory_space<vmem>>, vector<1x2x16xf32>,
    return
  }
  func.func @transform_0(%arg0: i32) -> (i32, i32, i32) {
    %c0_i32 = arith.constant 0 : i32
    %c0_i32_0 = arith.constant 0 : i32
    %c0_i32_1 = arith.constant 0 : i32
    return %arg0, %c0_i32, %c0_i32_0 : i32, i32, i32
  }
  func.func @transform_1(%arg0: i32) -> (i32, i32, i32) {
    %c0_i32 = arith.constant 0 : i32
    %c0_i32_0 = arith.constant 0 : i32
    %c0_i32_1 = arith.constant 0 : i32
    return %arg0, %c0_i32, %c0_i32_0 : i32, i32, i32
  }
  func.func @transform_2(%arg0: i32) -> (i32, i32, i32) {
    %c0_i32 = arith.constant 0 : i32
    %c0_i32_0 = arith.constant 0 : i32
    %c0_i32_1 = arith.constant 0 : i32
    return %arg0, %c0_i32, %c0_i32_0 : i32, i32, i32
  }
  func.func @transform_3(%arg0: i32) -> (i32, i32, i32) {
    %c0_i32 = arith.constant 0 : i32
    %c0_i32_0 = arith.constant 0 : i32
    %c0_i32_1 = arith.constant 0 : i32
    return %arg0, %c0_i32, %c0_i32_0 : i32, i32, i32
  }
  func.func @transform_4(%arg0: i32) -> (i32, i32) {
    %c0_i32 = arith.constant 0 : i32
    %c0_i32_0 = arith.constant 0 : i32
    %c0_i32_1 = arith.constant 0 : i32
    return %c0_i32, %c0_i32_0 : i32, i32
  }
  func.func @transform_5(%arg0: i32) -> (i32, i32) {
    %c0_i32 = arith.constant 0 : i32
    %c0_i32_0 = arith.constant 0 : i32
    %c0_i32_1 = arith.constant 0 : i32
    return %c0_i32, %c0_i32_0 : i32, i32
  }
  func.func @transform_6(%arg0: i32) -> (i32, i32, i32) {
    %c0_i32 = arith.constant 0 : i32
    %c0_i32_0 = arith.constant 0 : i32
    %c0_i32_1 = arith.constant 0 : i32
    return %arg0, %c0_i32, %c0_i32_0 : i32, i32, i32
  }
}

</mosaic_0001>

<bundles_post_ra>
// kernel: bidaf_forward.7
= control target key start
LH: loop header
LB: loop body
LE: loop exit
PB: predicated region body
PF: predicated region fallthrough
CT: control target
= control target key end

     0   :  { %vm27_vm0 = vcmask 261120   ;;  %v791_v9 = vmov 0.0   ;;  %v61_v11 = vlaneseq  ;;  %s793_s8 = smov 32   ;;  %vm145_vm6 = vcmask 123904   ;;  %s987_s1 = inlined_call_operand.vmem [shape: f32[32,128], index: 1, kind: input, shape index: {}]   ;;  %s988_s3 = inlined_call_operand.vmem [shape: f32[32,128], index: 3, kind: input, shape index: {}]   ;;  %s989_s0 = inlined_call_operand.vmem [shape: f32[16,32], index: 0, kind: input, shape index: {}]   ;;  %s990_s2 = inlined_call_operand.vmem [shape: f32[1,128], index: 2, kind: input, shape index: {}]   ;;  %s991_s4 = inlined_call_operand.vmem [shape: f32[8,2,32], index: 4, kind: output, shape index: {}]  }
   0x1   :  { %v22_v0 = vld [vmem:[%s987_s1 + $0x18] sm:$0xff]  ;;  %v21_v1 = vld [vmem:[%s987_s1 + $0x10] sm:$0xff]  ;;  %v20_v3 = vld [vmem:[%s987_s1 + $0x8] sm:$0xff]  ;;  %vm148_vm7 = vcmask 255104  }
   0x2   :  { %46 = vmatpush.msra.mxu0 %v22_v0  ;;  %v60_v2 = vld [vmem:[%s988_s3 + $0x18] sm:$0xff]  ;;  %v59_v4 = vld [vmem:[%s988_s3 + $0x10] sm:$0xff]  ;;  %v58_v5 = vld [vmem:[%s988_s3 + $0x8] sm:$0xff]  ;;  %v62_v13 = vand.u32 127, %v61_v11 }
   0x3   :  { %95 = vmatpush.msra.mxu1 %v60_v2  ;;  %167 = vmatpush.msra.mxu2 %v60_v2  ;;  %v19_v6 = vld [vmem:[%s987_s1] sm:$0xff]  ;;  %v18_v10 = vld [vmem:[%s989_s0 + $0x8] sm:$0xff] }
   0x4   :  { %47 = vmatpush.msra.mxu0 %v21_v1  ;;  %246 = vmatpush.msra.mxu3 %v60_v2  ;;  %v17_v7 = vld [vmem:[%s989_s0] sm:$0xff]  ;;  %v67_v15 = vand.u32 31, %v62_v13 }
   0x5   :  { %96 = vmatpush.msra.mxu1 %v59_v4  ;;  %168 = vmatpush.msra.mxu2 %v59_v4  ;;  %v57_v8 = vld [vmem:[%s988_s3] sm:$0xff] }
   0x6   :  { %48 = vmatpush.msra.mxu0 %v20_v3  ;;  %247 = vmatpush.msra.mxu3 %v59_v4  ;;  %v726_v14 = vld [vmem:[%s990_s2] ss:$0 sm:$0xff]  ;;  %vm75_vm1 = vcmp.lt.s32.totalorder %v67_v15, 16  ;;  %s792_s2 = smov 64  }
   0x7   :  { %97 = vmatpush.msra.mxu1 %v58_v5  ;;  %169 = vmatpush.msra.mxu2 %v58_v5 }
   0x8   :  { %49 = vmatpush.msra.mxu0 %v19_v6  ;;  %248 = vmatpush.msra.mxu3 %v58_v5 }
   0x9   :  { %692 = vmatmul.msk.f32.vlgmr.msra.gmra.mxu0 %vm27_vm0, %v17_v7  ;;  %98 = vmatpush.msra.mxu1 %v57_v8 }
   0xa   :  { %99 = vmatmul.f32.vlgmr.msra.gmra.mxu1 %v791_v9  ;;  %170 = vmatpush.msra.mxu2 %v57_v8 }
   0xb   :  { %249 = vmatpush.msra.mxu3 %v57_v8  ;;  %325 = vmatpush.msrb.mxu1 %v60_v2 }
   0xc   :  { %408 = vmatpush.msrb.mxu2 %v60_v2  ;;  %555 = vmatpush.msrb.mxu0 %v60_v2 }
   0xd   :  { %480 = vmatpush.msrb.mxu3 %v60_v2  ;;  %326 = vmatpush.msrb.mxu1 %v59_v4 }
   0xe   :  { %409 = vmatpush.msrb.mxu2 %v59_v4  ;;  %556 = vmatpush.msrb.mxu0 %v59_v4 }
   0xf   :  { %481 = vmatpush.msrb.mxu3 %v59_v4  ;;  %327 = vmatpush.msrb.mxu1 %v58_v5 }
  0x10   :  { %410 = vmatpush.msrb.mxu2 %v58_v5  ;;  %557 = vmatpush.msrb.mxu0 %v58_v5 }
  0x11   :  { %482 = vmatpush.msrb.mxu3 %v58_v5  ;;  %693 = vmatmul.msk.f32.gmra.mxu0 %vm27_vm0, %v18_v10 }
  0x12   :  { %328 = vmatpush.msrb.mxu1 %v57_v8  ;;  %411 = vmatpush.msrb.mxu2 %v57_v8 }
  0x13   :  { %483 = vmatpush.msrb.mxu3 %v57_v8  ;;  %558 = vmatpush.msrb.mxu0 %v57_v8 }
  0x14   :  { %630 = vmatpush.msra.mxu1 %v60_v2 }
  0x16   :  { %631 = vmatpush.msra.mxu1 %v59_v4 }
  0x18   :  { %632 = vmatpush.msra.mxu1 %v58_v5 }
  0x1a   :  { %633 = vmatpush.msra.mxu1 %v57_v8 }
  0x86   :  { %v51_v12 = vpop.f32.mrf.mxu0 }
  0x87   :  { %v52_v16 = vadd.f32 %v726_v14, %v51_v12  ;;  %v100_v22 = vpop.f32.mrf.mxu1 }
  0x89   :  { %v388_v19 = vrot.slane %v52_v16, 6  ;;  %v463_v20 = vrot.slane %v52_v16, 2 }
  0x8e   :  { %v54_v17 = vpop.f32.mrf.mxu0 }
  0x8f   :  { %v55_v18 = vadd.f32 %v726_v14, %v54_v17 }
  0x91   :  { %v77_v21 = vrot.slane %v55_v18, 6  ;;  %v150_v23 = vrot.slane %v55_v18, 2  ;;  %v854_v24 = vsel %vm75_vm1, %v55_v18, %v388_v19  ;;  %v856_v25 = vsel %vm75_vm1, %v55_v18, %v463_v20 }
  0x93   :  { %v858_v26 = vsel %vm75_vm1, %v52_v16, %v77_v21  ;;  %v860_v27 = vsel %vm75_vm1, %v52_v16, %v150_v23 }
  0x94   :  { %v103_v28 = vadd.f32 %v100_v22, %v858_v26 }
  0x96   :  { %727 = vtanh.f32 %v103_v28  ;;  %v694_v30 = vmul.f32 -1.442695, %v103_v28 }
  0x98   :  { %729 = vpow2.f32 %v694_v30 }
  0x9c   :  { %v728_v29 = vpop.eup %727 }
  0x9d   :  { %126 = vrot.lane.b32.xlu0 %v728_v29, %s792_s2 }
  0x9e   :  { %v730_v31 = vpop.eup %729 }
  0x9f   :  { %v107_v32 = vadd.f32 1.0, %v730_v31 }
  0xa1   :  { %731 = vrcp.f32 %v107_v32  ;;  %v119_v38 = vand.u32 2147483648, %v107_v32  ;;  %vm113_vm3 = vweird.f32 %v107_v32  ;;  %v117_v39 = vand.u32 2147483647, %v107_v32 }
  0xa3   :  { %v120_v41 = vor.u32 1.1754944e-38, %v119_v38  ;;  %vm118_vm5 = vcmp.eq.f32.partialorder %v117_v39, 8.507059e+37 }
  0xa7   :  { %v732_v33 = vpop.eup %731 }
  0xa8   :  { %v109_v34 = vmul.f32 %v732_v33, %v107_v32  ;;  %vm114_vm2 = vweird.f32 %v732_v33 }
  0xa9   :  { %vm115_vm4 = vmor %vm113_vm3, %vm114_vm2 }
  0xaa   :  { %v110_v35 = vsub.f32 1.0, %v109_v34 }
  0xac   :  { %v111_v36 = vmul.f32 %v732_v33, %v110_v35 }
  0xae   :  { %v112_v37 = vadd.f32 %v732_v33, %v111_v36 }
  0xb0   :  { %v116_v40 = vsel %vm115_vm4, %v732_v33, %v112_v37 }
  0xb1   :  { %v121_v43 = vsel %vm118_vm5, %v120_v41, %v116_v40 }
  0xb2   :  { %v124_v45 = vmul.f32 0.0, %v121_v43 }
 0x10f   :  { %v127_v42 = vpop.permute.xlu0 %126 }
 0x110   :  { %v129_v44 = vmul.f32 %v127_v42, %v121_v43 }
 0x112   :  { %131 = vrot.lane.b32.xlu0 %v129_v44, %s793_s8 }
 0x184   :  { %v132_v46 = vpop.permute.xlu0 %131 }
 0x185   :  { %v134_v47 = vadd.f32 %v132_v46, %v124_v45 }
 0x187   :  { %733 = vtanh.f32 %v134_v47  ;;  %v200_v7 = vrot.slane %v134_v47, 6 }
 0x18d   :  { %v734_v48 = vpop.eup %733 }
 0x18e   :  { %137 = vrot.lane.b32.xlu1 %v734_v48, %s792_s2 }
 0x200   :  { %v138_v49 = vpop.permute.xlu1 %137 }
 0x201   :  { %v140_v50 = vmul.f32 %v138_v49, %v121_v43 }
 0x203   :  { %142 = vrot.lane.b32.xlu1 %v140_v50, %s793_s8 }
 0x275   :  { %v143_v51 = vpop.permute.xlu1 %142 }
 0x276   :  { %146 = vst.msk [vmem:[%s991_s4] sm:$0x3] %vm145_vm6, %v143_v51  ;;  %696 = vmatmul.msk.f32.vlgmr.msra.gmra.mxu2 %vm27_vm0, %v143_v51 }
 0x277   :  { %695 = vst.msk [vmem:[%s991_s4 + $0xe] sm:$0x3] %vm148_vm7, %v143_v51 }
 0x2f9   :  { %v172_v52 = vpop.f32.mrf.mxu2 }
 0x2fa   :  { %v176_v53 = vrot.slane %v172_v52, 6 }
 0x2fc   :  { %v178_v54 = vadd.f32 %v176_v53, %v860_v27 }
 0x2fe   :  { %735 = vtanh.f32 %v178_v54  ;;  %v697_v56 = vmul.f32 -1.442695, %v178_v54 }
 0x300   :  { %737 = vpow2.f32 %v697_v56 }
 0x304   :  { %v736_v55 = vpop.eup %735 }
 0x305   :  { %204 = vrot.lane.b32.xlu2 %v736_v55, %s792_s2 }
 0x306   :  { %v738_v57 = vpop.eup %737 }
 0x307   :  { %v182_v58 = vadd.f32 1.0, %v738_v57 }
 0x309   :  { %739 = vrcp.f32 %v182_v58  ;;  %v194_v0 = vand.u32 2147483648, %v182_v58  ;;  %vm188_vm9 = vweird.f32 %v182_v58  ;;  %v192_v1 = vand.u32 2147483647, %v182_v58 }
 0x30b   :  { %v195_v3 = vor.u32 1.1754944e-38, %v194_v0  ;;  %vm193_vm11 = vcmp.eq.f32.partialorder %v192_v1, 8.507059e+37 }
 0x30f   :  { %v740_v59 = vpop.eup %739 }
 0x310   :  { %v184_v60 = vmul.f32 %v740_v59, %v182_v58  ;;  %vm189_vm8 = vweird.f32 %v740_v59 }
 0x311   :  { %vm190_vm10 = vmor %vm188_vm9, %vm189_vm8 }
 0x312   :  { %v185_v61 = vsub.f32 1.0, %v184_v60 }
 0x314   :  { %v186_v62 = vmul.f32 %v740_v59, %v185_v61 }
 0x316   :  { %v187_v63 = vadd.f32 %v740_v59, %v186_v62 }
 0x318   :  { %v191_v2 = vsel %vm190_vm10, %v740_v59, %v187_v63 }
 0x319   :  { %v196_v5 = vsel %vm193_vm11, %v195_v3, %v191_v2 }
 0x31a   :  { %v202_v8 = vmul.f32 %v200_v7, %v196_v5 }
 0x35f   :  { %v205_v4 = vpop.permute.xlu2 %204 }
 0x360   :  { %v207_v6 = vmul.f32 %v205_v4, %v196_v5 }
 0x362   :  { %209 = vrot.lane.b32.xlu2 %v207_v6, %s793_s8 }
 0x3bc   :  { %v210_v9 = vpop.permute.xlu2 %209 }
 0x3bd   :  { %v212_v10 = vadd.f32 %v210_v9, %v202_v8 }
 0x3bf   :  { %741 = vtanh.f32 %v212_v10  ;;  %v279_v38 = vrot.slane %v212_v10, 6 }
 0x3c5   :  { %v742_v11 = vpop.eup %741 }
 0x3c6   :  { %215 = vrot.lane.b32.xlu0 %v742_v11, %s792_s2 }
 0x438   :  { %v216_v12 = vpop.permute.xlu0 %215 }
 0x439   :  { %v880_v13 = vmul.f32 %v216_v12, %v196_v5 }
 0x43b   :  { %v229_v14 = vrot.slane %v880_v13, 2 }
 0x43d   :  { %230 = vrot.lane.b32.xlu1 %v229_v14, %s793_s8 }
 0x4af   :  { %v231_v15 = vpop.permute.xlu1 %230 }
 0x4b0   :  { %700 = vmatmul.msk.f32.vlgmr.msra.gmra.mxu3 %vm27_vm0, %v231_v15 }
 0x533   :  { %v251_v16 = vpop.f32.mrf.mxu3 }
 0x534   :  { %v255_v17 = vrot.slane %v251_v16, 4 }
 0x536   :  { %v257_v18 = vadd.f32 %v255_v17, %v858_v26 }
 0x538   :  { %743 = vtanh.f32 %v257_v18  ;;  %v701_v20 = vmul.f32 -1.442695, %v257_v18 }
 0x53a   :  { %745 = vpow2.f32 %v701_v20 }
 0x53e   :  { %v744_v19 = vpop.eup %743 }
 0x53f   :  { %283 = vrot.lane.b32.xlu2 %v744_v19, %s792_s2 }
 0x540   :  { %v746_v21 = vpop.eup %745 }
 0x541   :  { %v261_v22 = vadd.f32 1.0, %v746_v21 }
 0x543   :  { %747 = vrcp.f32 %v261_v22  ;;  %v273_v32 = vand.u32 2147483648, %v261_v22  ;;  %vm267_vm13 = vweird.f32 %v261_v22  ;;  %v271_v33 = vand.u32 2147483647, %v261_v22 }
 0x545   :  { %v274_v34 = vor.u32 1.1754944e-38, %v273_v32  ;;  %vm272_vm15 = vcmp.eq.f32.partialorder %v271_v33, 8.507059e+37 }
 0x549   :  { %v748_v23 = vpop.eup %747 }
 0x54a   :  { %v263_v28 = vmul.f32 %v748_v23, %v261_v22  ;;  %vm268_vm12 = vweird.f32 %v748_v23 }
 0x54b   :  { %vm269_vm14 = vmor %vm267_vm13, %vm268_vm12 }
 0x54c   :  { %v264_v29 = vsub.f32 1.0, %v263_v28 }
 0x54e   :  { %v265_v30 = vmul.f32 %v748_v23, %v264_v29 }
 0x550   :  { %v266_v31 = vadd.f32 %v748_v23, %v265_v30 }
 0x552   :  { %v270_v26 = vsel %vm269_vm14, %v748_v23, %v266_v31 }
 0x553   :  { %v275_v36 = vsel %vm272_vm15, %v274_v34, %v270_v26 }
 0x554   :  { %v281_v39 = vmul.f32 %v279_v38, %v275_v36 }
 0x599   :  { %v284_v35 = vpop.permute.xlu2 %283 }
 0x59a   :  { %v286_v37 = vmul.f32 %v284_v35, %v275_v36 }
 0x59c   :  { %288 = vrot.lane.b32.xlu0 %v286_v37, %s793_s8 }
 0x60e   :  { %v289_v40 = vpop.permute.xlu0 %288 }
 0x60f   :  { %v291_v41 = vadd.f32 %v289_v40, %v281_v39 }
 0x611   :  { %749 = vtanh.f32 %v291_v41  ;;  %v358_v1 = vrot.slane %v291_v41, 6 }
 0x617   :  { %v750_v42 = vpop.eup %749 }
 0x618   :  { %294 = vrot.lane.b32.xlu1 %v750_v42, %s792_s2 }
 0x68a   :  { %v295_v43 = vpop.permute.xlu1 %294 }
 0x68b   :  { %v889_v44 = vmul.f32 %v295_v43, %v275_v36 }
 0x68d   :  { %v308_v45 = vrot.slane %v889_v44, 4 }
 0x68f   :  { %309 = vrot.lane.b32.xlu2 %v308_v45, %s793_s8 }
 0x6e9   :  { %v310_v46 = vpop.permute.xlu2 %309 }
 0x6ea   :  { %704 = vmatmul.msk.f32.vlgmr.msrb.gmra.mxu1 %vm27_vm0, %v310_v46 }
 0x767   :  { %v330_v47 = vpop.f32.mrf.mxu1 }
 0x768   :  { %v334_v48 = vrot.slane %v330_v47, 2 }
 0x76a   :  { %v336_v49 = vadd.f32 %v334_v48, %v860_v27 }
 0x76c   :  { %751 = vtanh.f32 %v336_v49  ;;  %v705_v51 = vmul.f32 -1.442695, %v336_v49 }
 0x76e   :  { %753 = vpow2.f32 %v705_v51 }
 0x772   :  { %v752_v50 = vpop.eup %751 }
 0x773   :  { %362 = vrot.lane.b32.xlu0 %v752_v50, %s792_s2 }
 0x774   :  { %v754_v52 = vpop.eup %753 }
 0x775   :  { %v340_v53 = vadd.f32 1.0, %v754_v52 }
 0x777   :  { %755 = vrcp.f32 %v340_v53  ;;  %v352_v59 = vand.u32 2147483648, %v340_v53  ;;  %vm346_vm2 = vweird.f32 %v340_v53  ;;  %v350_v60 = vand.u32 2147483647, %v340_v53 }
 0x779   :  { %v353_v61 = vor.u32 1.1754944e-38, %v352_v59  ;;  %vm351_vm4 = vcmp.eq.f32.partialorder %v350_v60, 8.507059e+37 }
 0x77d   :  { %v756_v54 = vpop.eup %755 }
 0x77e   :  { %v342_v55 = vmul.f32 %v756_v54, %v340_v53  ;;  %vm347_vm1 = vweird.f32 %v756_v54 }
 0x77f   :  { %vm348_vm3 = vmor %vm346_vm2, %vm347_vm1 }
 0x780   :  { %v343_v56 = vsub.f32 1.0, %v342_v55 }
 0x782   :  { %v344_v57 = vmul.f32 %v756_v54, %v343_v56 }
 0x784   :  { %v345_v58 = vadd.f32 %v756_v54, %v344_v57 }
 0x786   :  { %v349_v27 = vsel %vm348_vm3, %v756_v54, %v345_v58 }
 0x787   :  { %v354_v63 = vsel %vm351_vm4, %v353_v61, %v349_v27 }
 0x788   :  { %v360_v2 = vmul.f32 %v358_v1, %v354_v63 }
 0x7e5   :  { %v363_v62 = vpop.permute.xlu0 %362 }
 0x7e6   :  { %v365_v0 = vmul.f32 %v363_v62, %v354_v63 }
 0x7e8   :  { %367 = vrot.lane.b32.xlu1 %v365_v0, %s793_s8 }
 0x85a   :  { %v368_v3 = vpop.permute.xlu1 %367 }
 0x85b   :  { %v370_v4 = vadd.f32 %v368_v3, %v360_v2 }
 0x85d   :  { %757 = vtanh.f32 %v370_v4  ;;  %v438_v33 = vrot.slane %v370_v4, 6 }
 0x863   :  { %v758_v5 = vpop.eup %757 }
 0x864   :  { %373 = vrot.lane.b32.xlu2 %v758_v5, %s792_s2 }
 0x8be   :  { %v374_v6 = vpop.permute.xlu2 %373 }
 0x8bf   :  { %v898_v7 = vmul.f32 %v374_v6, %v354_v63 }
 0x8c1   :  { %v391_v8 = vrot.slane %v898_v7, 6 }
 0x8c3   :  { %392 = vrot.lane.b32.xlu0 %v391_v8, %s793_s8 }
 0x935   :  { %v393_v9 = vpop.permute.xlu0 %392 }
 0x936   :  { %708 = vmatmul.msk.f32.vlgmr.msrb.gmra.mxu2 %vm27_vm0, %v393_v9 }
 0x9b9   :  { %v413_v10 = vpop.f32.mrf.mxu2 }
 0x9ba   :  { %v416_v11 = vadd.f32 %v413_v10, %v854_v24 }
 0x9bc   :  { %759 = vtanh.f32 %v416_v11  ;;  %v709_v14 = vmul.f32 -1.442695, %v416_v11 }
 0x9be   :  { %761 = vpow2.f32 %v709_v14 }
 0x9c2   :  { %v760_v12 = vpop.eup %759 }
 0x9c3   :  { %442 = vrot.lane.b32.xlu1 %v760_v12, %s792_s2 }
 0x9c4   :  { %v762_v15 = vpop.eup %761 }
 0x9c5   :  { %v420_v16 = vadd.f32 1.0, %v762_v15 }
 0x9c7   :  { %763 = vrcp.f32 %v420_v16  ;;  %v432_v22 = vand.u32 2147483648, %v420_v16  ;;  %vm426_vm8 = vweird.f32 %v420_v16  ;;  %v430_v23 = vand.u32 2147483647, %v420_v16 }
 0x9c9   :  { %v433_v29 = vor.u32 1.1754944e-38, %v432_v22  ;;  %vm431_vm10 = vcmp.eq.f32.partialorder %v430_v23, 8.507059e+37 }
 0x9cd   :  { %v764_v17 = vpop.eup %763 }
 0x9ce   :  { %v422_v18 = vmul.f32 %v764_v17, %v420_v16  ;;  %vm427_vm5 = vweird.f32 %v764_v17 }
 0x9cf   :  { %vm428_vm9 = vmor %vm426_vm8, %vm427_vm5 }
 0x9d0   :  { %v423_v19 = vsub.f32 1.0, %v422_v18 }
 0x9d2   :  { %v424_v20 = vmul.f32 %v764_v17, %v423_v19 }
 0x9d4   :  { %v425_v21 = vadd.f32 %v764_v17, %v424_v20 }
 0x9d6   :  { %v429_v28 = vsel %vm428_vm9, %v764_v17, %v425_v21  ;;  %vm224_vm9 = vcmask 125954  }
 0x9d7   :  { %v434_v31 = vsel %vm431_vm10, %v433_v29, %v429_v28  ;;  %vm227_vm10 = vcmask 257154  }
 0x9d8   :  { %v440_v26 = vmul.f32 %v438_v33, %v434_v31 }
 0xa35   :  { %v443_v30 = vpop.permute.xlu1 %442 }
 0xa36   :  { %v445_v32 = vmul.f32 %v443_v30, %v434_v31 }
 0xa38   :  { %447 = vrot.lane.b32.xlu2 %v445_v32, %s793_s8 }
 0xa92   :  { %v448_v34 = vpop.permute.xlu2 %447 }
 0xa93   :  { %v450_v35 = vadd.f32 %v448_v34, %v440_v26 }
 0xa95   :  { %765 = vtanh.f32 %v450_v35  ;;  %v513_v60 = vrot.slane %v450_v35, 6 }
 0xa9b   :  { %v766_v36 = vpop.eup %765 }
 0xa9c   :  { %453 = vrot.lane.b32.xlu0 %v766_v36, %s792_s2 }
 0xb0e   :  { %v454_v37 = vpop.permute.xlu0 %453 }
 0xb0f   :  { %v456_v38 = vmul.f32 %v454_v37, %v434_v31 }
 0xb11   :  { %458 = vrot.lane.b32.xlu1 %v456_v38, %s793_s8 }
 0xb83   :  { %v908_v39 = vpop.permute.xlu1 %458 }
 0xb84   :  { %712 = vmatmul.msk.f32.vlgmr.msrb.gmra.mxu3 %vm27_vm0, %v908_v39 }
 0xc07   :  { %v485_v40 = vpop.f32.mrf.mxu3 }
 0xc08   :  { %v489_v41 = vrot.slane %v485_v40, 6 }
 0xc0a   :  { %v491_v42 = vadd.f32 %v489_v41, %v856_v25 }
 0xc0c   :  { %767 = vtanh.f32 %v491_v42  ;;  %v713_v45 = vmul.f32 -1.442695, %v491_v42 }
 0xc0e   :  { %769 = vpow2.f32 %v713_v45 }
 0xc12   :  { %v768_v43 = vpop.eup %767 }
 0xc13   :  { %517 = vrot.lane.b32.xlu2 %v768_v43, %s792_s2 }
 0xc14   :  { %v770_v46 = vpop.eup %769 }
 0xc15   :  { %v495_v47 = vadd.f32 1.0, %v770_v46 }
 0xc17   :  { %771 = vrcp.f32 %v495_v47  ;;  %v507_v53 = vand.u32 2147483648, %v495_v47  ;;  %vm501_vm12 = vweird.f32 %v495_v47  ;;  %v505_v54 = vand.u32 2147483647, %v495_v47 }
 0xc19   :  { %v508_v56 = vor.u32 1.1754944e-38, %v507_v53  ;;  %vm506_vm14 = vcmp.eq.f32.partialorder %v505_v54, 8.507059e+37 }
 0xc1d   :  { %v772_v48 = vpop.eup %771 }
 0xc1e   :  { %v497_v49 = vmul.f32 %v772_v48, %v495_v47  ;;  %vm502_vm11 = vweird.f32 %v772_v48 }
 0xc1f   :  { %vm503_vm13 = vmor %vm501_vm12, %vm502_vm11  ;;  %vm303_vm11 = vcmask 128004   ;;  %vm306_vm12 = vcmask 259204  }
 0xc20   :  { %v498_v50 = vsub.f32 1.0, %v497_v49 }
 0xc22   :  { %v499_v51 = vmul.f32 %v772_v48, %v498_v50 }
 0xc24   :  { %v500_v52 = vadd.f32 %v772_v48, %v499_v51 }
 0xc26   :  { %v504_v55 = vsel %vm503_vm13, %v772_v48, %v500_v52  ;;  %vm382_vm13 = vcmask 130054  }
 0xc27   :  { %v509_v58 = vsel %vm506_vm14, %v508_v56, %v504_v55  ;;  %vm385_vm14 = vcmask 261254  }
 0xc28   :  { %v515_v27 = vmul.f32 %v513_v60, %v509_v58 }
 0xc6d   :  { %v518_v57 = vpop.permute.xlu2 %517 }
 0xc6e   :  { %v520_v59 = vmul.f32 %v518_v57, %v509_v58 }
 0xc70   :  { %522 = vrot.lane.b32.xlu0 %v520_v59, %s793_s8 }
 0xce2   :  { %v523_v61 = vpop.permute.xlu0 %522 }
 0xce3   :  { %v525_v62 = vadd.f32 %v523_v61, %v515_v27 }
 0xce5   :  { %773 = vtanh.f32 %v525_v62  ;;  %v588_v28 = vrot.slane %v525_v62, 6 }
 0xceb   :  { %v774_v63 = vpop.eup %773 }
 0xcec   :  { %528 = vrot.lane.b32.xlu1 %v774_v63, %s792_s2 }
 0xd5e   :  { %v529_v0 = vpop.permute.xlu1 %528 }
 0xd5f   :  { %v531_v1 = vmul.f32 %v529_v0, %v509_v58 }
 0xd61   :  { %v538_v2 = vrot.slane %v531_v1, 2 }
 0xd63   :  { %539 = vrot.lane.b32.xlu2 %v538_v2, %s793_s8 }
 0xdbd   :  { %v540_v3 = vpop.permute.xlu2 %539 }
 0xdbe   :  { %716 = vmatmul.msk.f32.vlgmr.msrb.gmra.mxu0 %vm27_vm0, %v540_v3 }
 0xe3b   :  { %v560_v4 = vpop.f32.mrf.mxu0 }
 0xe3c   :  { %v564_v5 = vrot.slane %v560_v4, 4 }
 0xe3e   :  { %v566_v6 = vadd.f32 %v564_v5, %v854_v24 }
 0xe40   :  { %775 = vtanh.f32 %v566_v6  ;;  %v717_v9 = vmul.f32 -1.442695, %v566_v6 }
 0xe42   :  { %777 = vpow2.f32 %v717_v9 }
 0xe46   :  { %v776_v8 = vpop.eup %775 }
 0xe47   :  { %592 = vrot.lane.b32.xlu0 %v776_v8, %s792_s2 }
 0xe48   :  { %v778_v10 = vpop.eup %777 }
 0xe49   :  { %v570_v11 = vadd.f32 1.0, %v778_v10 }
 0xe4b   :  { %779 = vrcp.f32 %v570_v11  ;;  %v582_v18 = vand.u32 2147483648, %v570_v11  ;;  %vm576_vm1 = vweird.f32 %v570_v11  ;;  %v580_v19 = vand.u32 2147483647, %v570_v11 }
 0xe4d   :  { %v583_v20 = vor.u32 1.1754944e-38, %v582_v18  ;;  %vm581_vm3 = vcmp.eq.f32.partialorder %v580_v19, 8.507059e+37 }
 0xe51   :  { %v780_v12 = vpop.eup %779 }
 0xe52   :  { %v572_v14 = vmul.f32 %v780_v12, %v570_v11  ;;  %vm577_vm15 = vweird.f32 %v780_v12 }
 0xe53   :  { %vm578_vm2 = vmor %vm576_vm1, %vm577_vm15 }
 0xe54   :  { %v573_v15 = vsub.f32 1.0, %v572_v14 }
 0xe56   :  { %v574_v16 = vmul.f32 %v780_v12, %v573_v15 }
 0xe58   :  { %v575_v17 = vadd.f32 %v780_v12, %v574_v16 }
 0xe5a   :  { %v579_v24 = vsel %vm578_vm2, %v780_v12, %v575_v17 }
 0xe5b   :  { %v584_v22 = vsel %vm581_vm3, %v583_v20, %v579_v24 }
 0xe5c   :  { %v590_v29 = vmul.f32 %v588_v28, %v584_v22 }
 0xeb9   :  { %v593_v21 = vpop.permute.xlu0 %592 }
 0xeba   :  { %v595_v23 = vmul.f32 %v593_v21, %v584_v22 }
 0xebc   :  { %597 = vrot.lane.b32.xlu1 %v595_v23, %s793_s8 }
 0xf2e   :  { %v598_v30 = vpop.permute.xlu1 %597 }
 0xf2f   :  { %v600_v31 = vadd.f32 %v598_v30, %v590_v29 }
 0xf31   :  { %781 = vtanh.f32 %v600_v31  ;;  %v663_v56 = vrot.slane %v600_v31, 6 }
 0xf37   :  { %v782_v32 = vpop.eup %781 }
 0xf38   :  { %603 = vrot.lane.b32.xlu2 %v782_v32, %s792_s2 }
 0xf92   :  { %v604_v33 = vpop.permute.xlu2 %603 }
 0xf93   :  { %v606_v26 = vmul.f32 %v604_v33, %v584_v22 }
 0xf95   :  { %v613_v34 = vrot.slane %v606_v26, 4 }
 0xf97   :  { %614 = vrot.lane.b32.xlu0 %v613_v34, %s793_s8 }
0x1009   :  { %v615_v35 = vpop.permute.xlu0 %614 }
0x100a   :  { %720 = vmatmul.msk.f32.vlgmr.msra.gmra.mxu1 %vm27_vm0, %v615_v35 }
0x1087   :  { %v635_v36 = vpop.f32.mrf.mxu1 }
0x1088   :  { %v639_v37 = vrot.slane %v635_v36, 2 }
0x108a   :  { %v641_v38 = vadd.f32 %v639_v37, %v856_v25 }
0x108c   :  { %783 = vtanh.f32 %v641_v38  ;;  %v721_v41 = vmul.f32 -1.442695, %v641_v38 }
0x108e   :  { %785 = vpow2.f32 %v721_v41 }
0x1092   :  { %v784_v40 = vpop.eup %783 }
0x1093   :  { %667 = vrot.lane.b32.xlu1 %v784_v40, %s792_s2 }
0x1094   :  { %v786_v42 = vpop.eup %785 }
0x1095   :  { %v645_v43 = vadd.f32 1.0, %v786_v42 }
0x1097   :  { %787 = vrcp.f32 %v645_v43  ;;  %v657_v25 = vand.u32 2147483648, %v645_v43  ;;  %vm651_vm4 = vweird.f32 %v645_v43  ;;  %v655_v50 = vand.u32 2147483647, %v645_v43 }
0x1099   :  { %v658_v52 = vor.u32 1.1754944e-38, %v657_v25  ;;  %vm656_vm8 = vcmp.eq.f32.partialorder %v655_v50, 8.507059e+37 }
0x109b   :  { %220 = vrot.lane.b32.xlu1 %v880_v13, %s793_s8 }
0x109d   :  { %v788_v45 = vpop.eup %787 }
0x109e   :  { %v647_v46 = vmul.f32 %v788_v45, %v645_v43  ;;  %vm652_vm0 = vweird.f32 %v788_v45 }
0x109f   :  { %vm653_vm5 = vmor %vm651_vm4, %vm652_vm0 }
0x10a0   :  { %v648_v47 = vsub.f32 1.0, %v647_v46 }
0x10a2   :  { %v649_v48 = vmul.f32 %v788_v45, %v648_v47 }
0x10a3   :  { %533 = vrot.lane.b32.xlu1 %v531_v1, %s793_s8 }
0x10a4   :  { %v650_v49 = vadd.f32 %v788_v45, %v649_v48 }
0x10a6   :  { %v654_v51 = vsel %vm653_vm5, %v788_v45, %v650_v49 }
0x10a7   :  { %v659_v53 = vsel %vm656_vm8, %v658_v52, %v654_v51 }
0x10a8   :  { %v665_v57 = vmul.f32 %v663_v56, %v659_v53 }
0x1105   :  { %v668_v13 = vpop.permute.xlu1 %667 }
0x1106   :  { %v670_v54 = vmul.f32 %v668_v13, %v659_v53 }
0x1108   :  { %672 = vrot.lane.b32.xlu2 %v670_v54, %s793_s8 }
0x110d   :  { %v221_v55 = vpop.permute.xlu1 %220 }
0x110e   :  { %698 = vst.msk [vmem:[%s991_s4] sm:$0xc] %vm224_vm9, %v221_v55 }
0x110f   :  { %699 = vst.msk [vmem:[%s991_s4 + $0xa] sm:$0xc] %vm227_vm10, %v221_v55 }
0x1110   :  { %299 = vrot.lane.b32.xlu2 %v889_v44, %s793_s8 }
0x1115   :  { %v534_v61 = vpop.permute.xlu1 %533 }
0x1118   :  { %608 = vrot.lane.b32.xlu2 %v606_v26, %s793_s8 }
0x1162   :  { %v673_v58 = vpop.permute.xlu2 %672 }
0x1163   :  { %v675_v59 = vadd.f32 %v673_v58, %v665_v57 }
0x1165   :  { %789 = vtanh.f32 %v675_v59 }
0x116a   :  { %v300_v60 = vpop.permute.xlu2 %299 }
0x116b   :  { %v790_v27 = vpop.eup %789  ;;  %702 = vst.msk [vmem:[%s991_s4] sm:$0x30] %vm303_vm11, %v300_v60 }
0x116c   :  { %703 = vst.msk [vmem:[%s991_s4 + $0x6] sm:$0x30] %vm306_vm12, %v300_v60  ;;  %678 = vrot.lane.b32.xlu0 %v790_v27, %s792_s2 }
0x116d   :  { %714 = vst.msk [vmem:[%s991_s4 + $0x8] sm:$0xc] %vm224_vm9, %v534_v61 }
0x116e   :  { %715 = vst.msk [vmem:[%s991_s4 + $0x2] sm:$0xc] %vm227_vm10, %v534_v61 }
0x1172   :  { %v609_v44 = vpop.permute.xlu2 %608 }
0x1173   :  { %718 = vst.msk [vmem:[%s991_s4 + $0x8] sm:$0x30] %vm303_vm11, %v609_v44 }
0x1174   :  { %719 = vst.msk [vmem:[%s991_s4 - $0x2] sm:$0x30] %vm306_vm12, %v609_v44  ;;  %378 = vrot.lane.b32.xlu0 %v898_v7, %s793_s8 }
0x11de   :  { %v679_v62 = vpop.permute.xlu0 %678 }
0x11df   :  { %v681_v63 = vmul.f32 %v679_v62, %v659_v53 }
0x11e1   :  { %683 = vrot.lane.b32.xlu0 %v681_v63, %s793_s8 }
0x11e6   :  { %v379_v0 = vpop.permute.xlu0 %378 }
0x11e7   :  { %706 = vst.msk [vmem:[%s991_s4] sm:$0xc0] %vm382_vm13, %v379_v0 }
0x11e8   :  { %707 = vst.msk [vmem:[%s991_s4 + $0x2] sm:$0xc0] %vm385_vm14, %v379_v0 }
0x11e9   :  { %710 = vst.msk [vmem:[%s991_s4 + $0x8] sm:$0x3] %vm145_vm6, %v908_v39 }
0x11ea   :  { %711 = vst.msk [vmem:[%s991_s4 + $0x6] sm:$0x3] %vm148_vm7, %v908_v39 }
0x1253   :  { %v684_v7 = vpop.permute.xlu0 %683 }
0x1254   :  { %722 = vst.msk [vmem:[%s991_s4 + $0x8] sm:$0xc0] %vm382_vm13, %v684_v7 }
0x1255   :  { %687 = vst.msk [vmem:[%s991_s4 - $0x6] sm:$0xc0] %vm385_vm14, %v684_v7 }

// kernel: bidaf_forward.9
= control target key start
LH: loop header
LB: loop body
LE: loop exit
PB: predicated region body
PF: predicated region fallthrough
CT: control target
= control target key end

     0   :  { %s632_s18 = smov 0   ;;  %s701_s0 = inlined_call_operand.vmem [shape: f32[2,16,32], index: 0, kind: input, shape index: {}]   ;;  %s702_s1 = inlined_call_operand.vmem [shape: f32[2,8,32], index: 1, kind: input, shape index: {}]   ;;  %s703_s2 = inlined_call_operand.vmem [shape: f32[1,32], index: 2, kind: input, shape index: {}]   ;;  %s704_s3 = inlined_call_operand.vmem [shape: f32[1,32], index: 3, kind: input, shape index: {}]   ;;  %s705_s4 = inlined_call_operand.vmem [shape: f32[1,32], index: 4, kind: input, shape index: {}]   ;;  %s706_s5 = inlined_call_operand.vmem [shape: f32[2,16,128], index: 5, kind: output, shape index: {}]  }
   0x1 LB: > { %s542_s19 = sadd.s32 4294967295, %s597_s18   ;;  %p546_p0 = scmp.ge.s32.totalorder %s597_s18, 1  ;;  %s597_s18 = sphi %s632_s18, %s15_s18  }
   0x2   : > { %p196_p1 = scmp.lt.s32.totalorder %s597_s18, 3 }
   0x4   : > { %p197_p2 = pnand %p546_p0, %p196_p1 }
   0x5   : > { %p228_p3 = scmp.lt.s32.totalorder (!%p197_p2), %s542_s19, 1  ;;  %s599_s9 = smov (!%p197_p2), 32  }
   0x6   : > { %200 = sbr.rel (%p197_p2) target bundleno = 781 (0x30d), region = 40  ;;  %s600_s10 = smov (!%p197_p2), 64  }
   0x7   : > { %s601_s11 = smov (!%p197_p2), 96  }
   0xb   : > { %s708_s19 = smov (!%p228_p3, %s542_s19), 1  ;;  %v574_v0 = vld [vmem:[%s704_s3] ss:$0 sm:$0xff]  ;;  %vm258_vm0 = vcmask 261120   ;;  %vm267_vm1 = vcmask 269312   ;;  %vm279_vm2 = vcmask 277504  }
   0xc   : > { %v575_v1 = vld [vmem:[%s703_s2] ss:$0 sm:$0xff]  ;;  %s549_s24 = sshll.u32 %s708_s19, 3  ;;  %s559_s25 = sshll.u32 %s708_s19, 4  ;;  %vm312_vm3 = vcmask 64512  }
   0xd   : > { %s236_s28 = scalar_lea.vmem %s702_s1, %s549_s24  ;;  %s232_s6 = scalar_lea.vmem %s701_s0, %s559_s25  ;;  %v576_v11 = vld [vmem:[%s705_s4] ss:$0 sm:$0xff] }
   0xe   : > { %v244_v2 = vld [vmem:[%s236_s28] sm:$0xff]  ;;  %v661_v6 = vld [vmem:[%s232_s6 + $0x8] sm:$0xff]  ;;  %s241_s14 = scalar_lea.vmem %s706_s5, %s559_s25 }
   0xf   : > { %v658_v3 = vld [vmem:[%s232_s6] sm:$0xff]  ;;  %v273_v4 = vmul.f32 %v574_v0, %v244_v2  ;;  %382 = vmatpush.msra.mxu1 %v244_v2  ;;  %562 = vmatpush.msra.mxu3 %v244_v2  ;;  %v257_v9 = vmul.f32 %v575_v1, %v661_v6  ;;  %v277_v13 = vsel %vm258_vm0, %v244_v2, 1.0  ;;  %v252_v19 = vmul.f32 %v576_v11, %v661_v6 }
  0x10   : > { %v256_v5 = vmul.f32 %v575_v1, %v658_v3  ;;  %v251_v12 = vmul.f32 %v576_v11, %v658_v3 }
  0x11   : > { %v274_v7 = vsel %vm258_vm0, %v273_v4, 0.0  ;;  %v262_v10 = vsel %vm258_vm0, %v257_v9, 0.0 }
  0x12   : > { %v259_v8 = vsel %vm258_vm0, %v256_v5, 0.0  ;;  %275 = vadd.xlane.f32.xlu0 %v274_v7 }
  0x13   : > { %260 = vadd.xlane.f32.xlu1 %v259_v8 }
  0x1a   : > { %263 = vadd.xlane.f32.xlu0 %v262_v10 }
  0x85   : > { %v276_v14 = vpop.xlane.xlu0 %275 }
  0x86   : > { %v261_v15 = vpop.xlane.xlu1 %260  ;;  %v278_v16 = vsel %vm267_vm1, %v277_v13, %v276_v14 }
  0x87   : > { %v265_v17 = vsel %vm258_vm0, %v251_v12, %v261_v15  ;;  %552 = vmatpush.xpose.msk.msra.mxu0 %vm279_vm2, %v278_v16  ;;  %561 = vmatpush.xpose.msk.msra.mxu2 %vm279_vm2, %v278_v16 }
  0x88   : > { %v268_v18 = vsel %vm267_vm1, %v265_v17, 1.0 }
  0x8a   : > { %553 = vmatmul.msk.f32.vlgmr.msra.gmra.mxu0 %vm279_vm2, %v268_v18 }
  0x8d   : > { %v264_v20 = vpop.xlane.xlu0 %263 }
  0x8e   : > { %v266_v21 = vsel %vm258_vm0, %v252_v19, %v264_v20 }
  0x8f   : > { %v269_v22 = vsel %vm267_vm1, %v266_v21, 1.0  ;;  %vm467_vm1 = vcmask 523264  }
  0x90   : > { %554 = vmatmul.msk.f32.vlgmr.msra.gmra.mxu2 %vm279_vm2, %v269_v22  ;;  %vm470_vm2 = vcmask 785408  }
 0x107   : > { %v306_v23 = vpop.f32.mrf.mxu0 }
 0x108   : > { %v313_v24 = vsel %vm312_vm3, %v306_v23, -inf }
 0x109   : > { %314 = vmax.xlane.f32.xlu2 %v313_v24 }
 0x113   : > { %v309_v25 = vpop.f32.mrf.mxu2 }
 0x114   : > { %v316_v26 = vsel %vm312_vm3, %v309_v25, -inf }
 0x115   : > { %317 = vmax.xlane.f32.xlu1 %v316_v26 }
 0x17c   : > { %v315_v27 = vpop.xlane.xlu2 %314 }
 0x17d   : > { %v319_v28 = vsub.f32 %v306_v23, %v315_v27 }
 0x17f   : > { %v321_v29 = vmul.f32 1.442695, %v319_v28 }
 0x181   : > { %577 = vpow2.f32 %v321_v29 }
 0x187   : > { %v578_v30 = vpop.eup %577 }
 0x188   : > { %v318_v31 = vpop.xlane.xlu1 %317  ;;  %v325_v32 = vsel %vm312_vm3, %v578_v30, 0.0 }
 0x189   : > { %v320_v33 = vsub.f32 %v309_v25, %v318_v31  ;;  %326 = vadd.xlane.f32.xlu0 %v325_v32  ;;  %v390_v39 = vmax.f32 %v315_v27, %v318_v31 }
 0x18b   : > { %v323_v34 = vmul.f32 1.442695, %v320_v33  ;;  %v391_v43 = vrot.slane %v390_v39, 4 }
 0x18d   : > { %579 = vpow2.f32 %v323_v34  ;;  %v392_v49 = vmax.f32 %v390_v39, %v391_v43 }
 0x18f   : > { %v393_v54 = vrot.slane %v392_v49, 2 }
 0x191   : > { %v394_v58 = vmax.f32 %v392_v49, %v393_v54 }
 0x193   : > { %v580_v35 = vpop.eup %579  ;;  %v395_v63 = vrot.slane %v394_v58, 1 }
 0x194   : > { %v328_v36 = vsel %vm312_vm3, %v580_v35, 0.0 }
 0x195   : > { %329 = vadd.xlane.f32.xlu2 %v328_v36  ;;  %v396_v4 = vmax.f32 %v394_v58, %v395_v63 }
 0x197   : > { %v397_v5 = vsub.f32 %v315_v27, %v396_v4  ;;  %v398_v7 = vsub.f32 %v318_v31, %v396_v4 }
 0x199   : > { %v399_v8 = vmul.f32 1.442695, %v397_v5  ;;  %v401_v9 = vmul.f32 1.442695, %v398_v7 }
 0x1fc   : > { %v327_v37 = vpop.xlane.xlu0 %326 }
 0x1fd   : > { %581 = vrcp.f32 %v327_v37  ;;  %v342_v42 = vand.u32 2147483648, %v327_v37  ;;  %v340_v46 = vand.u32 2147483647, %v327_v37  ;;  %vm336_vm5 = vweird.f32 %v327_v37 }
 0x1ff   : > { %v343_v48 = vor.u32 1.1754944e-38, %v342_v42  ;;  %vm341_vm7 = vcmp.eq.f32.partialorder %v340_v46, 8.507059e+37 }
 0x203   : > { %v582_v38 = vpop.eup %581 }
 0x204   : > { %v332_v40 = vmul.f32 %v582_v38, %v327_v37  ;;  %vm337_vm4 = vweird.f32 %v582_v38 }
 0x205   : > { %vm338_vm6 = vmor %vm336_vm5, %vm337_vm4 }
 0x206   : > { %v333_v41 = vsub.f32 1.0, %v332_v40 }
 0x208   : > { %v334_v44 = vmul.f32 %v582_v38, %v333_v41  ;;  %v330_v45 = vpop.xlane.xlu2 %329 }
 0x209   : > { %583 = vrcp.f32 %v330_v45  ;;  %v357_v57 = vand.u32 2147483648, %v330_v45  ;;  %v355_v60 = vand.u32 2147483647, %v330_v45  ;;  %vm351_vm9 = vweird.f32 %v330_v45 }
 0x20a   : > { %v335_v47 = vadd.f32 %v582_v38, %v334_v44  ;;  %585 = vpow2.f32 %v399_v8 }
 0x20b   : > { %v358_v62 = vor.u32 1.1754944e-38, %v357_v57  ;;  %vm356_vm11 = vcmp.eq.f32.partialorder %v355_v60, 8.507059e+37  ;;  %587 = vpow2.f32 %v401_v9 }
 0x20c   : > { %v339_v50 = vsel %vm338_vm6, %v582_v38, %v335_v47 }
 0x20d   : > { %v344_v51 = vsel %vm341_vm7, %v343_v48, %v339_v50 }
 0x20e   : > { %v345_v52 = vmul.f32 %v578_v30, %v344_v51 }
 0x20f   : > { %v584_v53 = vpop.eup %583 }
 0x210   : > { %v347_v55 = vmul.f32 %v584_v53, %v330_v45  ;;  %555 = vmatmul.msk.f32.vlgmr.msra.gmra.mxu1 %vm312_vm3, %v345_v52  ;;  %vm352_vm8 = vweird.f32 %v584_v53  ;;  %v586_v10 = vpop.eup %585 }
 0x211   : > { %vm353_vm10 = vmor %vm351_vm9, %vm352_vm8  ;;  %v588_v11 = vpop.eup %587 }
 0x212   : > { %v348_v56 = vsub.f32 1.0, %v347_v55  ;;  %v403_v12 = vadd.f32 %v588_v11, %v586_v10 }
 0x214   : > { %v349_v59 = vmul.f32 %v584_v53, %v348_v56  ;;  %v404_v13 = vrot.slane %v403_v12, 4 }
 0x216   : > { %v350_v61 = vadd.f32 %v584_v53, %v349_v59  ;;  %v405_v14 = vadd.f32 %v404_v13, %v403_v12 }
 0x218   : > { %v354_v0 = vsel %vm353_vm10, %v584_v53, %v350_v61  ;;  %v406_v15 = vrot.slane %v405_v14, 2 }
 0x219   : > { %v359_v1 = vsel %vm356_vm11, %v358_v62, %v354_v0 }
 0x21a   : > { %v360_v2 = vmul.f32 %v580_v35, %v359_v1  ;;  %v407_v16 = vadd.f32 %v406_v15, %v405_v14 }
 0x21c   : > { %556 = vmatmul.msk.f32.vlgmr.msra.gmra.mxu3 %vm312_vm3, %v360_v2  ;;  %v408_v17 = vrot.slane %v407_v16, 1 }
 0x21e   : > { %v409_v18 = vadd.f32 %v408_v17, %v407_v16 }
 0x220   : > { %589 = vrcp.f32 %v409_v18  ;;  %v421_v24 = vand.u32 2147483648, %v409_v18  ;;  %vm415_vm13 = vweird.f32 %v409_v18  ;;  %v419_v25 = vand.u32 2147483647, %v409_v18 }
 0x222   : > { %v422_v27 = vor.u32 1.1754944e-38, %v421_v24  ;;  %vm420_vm15 = vcmp.eq.f32.partialorder %v419_v25, 8.507059e+37 }
 0x226   : > { %v590_v19 = vpop.eup %589 }
 0x227   : > { %v411_v20 = vmul.f32 %v590_v19, %v409_v18  ;;  %vm416_vm12 = vweird.f32 %v590_v19 }
 0x228   : > { %vm417_vm14 = vmor %vm415_vm13, %vm416_vm12 }
 0x229   : > { %v412_v21 = vsub.f32 1.0, %v411_v20 }
 0x22b   : > { %v413_v22 = vmul.f32 %v590_v19, %v412_v21 }
 0x22d   : > { %v414_v23 = vadd.f32 %v590_v19, %v413_v22 }
 0x22f   : > { %v418_v26 = vsel %vm417_vm14, %v590_v19, %v414_v23 }
 0x230   : > { %v423_v28 = vsel %vm420_vm15, %v422_v27, %v418_v26 }
 0x231   : > { %v424_v29 = vmul.f32 %v586_v10, %v423_v28  ;;  %v425_v30 = vmul.f32 %v588_v11, %v423_v28 }
 0x233   : > { %v427_v31 = vmul.f32 %v425_v30, %v661_v6  ;;  %v426_v32 = vmul.f32 %v424_v29, %v658_v3 }
 0x235   : > { %v428_v33 = vsel %vm258_vm0, %v426_v32, 0.0  ;;  %v429_v34 = vsel %vm258_vm0, %v427_v31, 0.0 }
 0x236   : > { %v430_v35 = vadd.f32 %v429_v34, %v428_v33 }
 0x238   : > { %v431_v36 = vrot.slane %v430_v35, 4 }
 0x23a   : > { %v432_v37 = vadd.f32 %v431_v36, %v430_v35 }
 0x23c   : > { %v433_v38 = vrot.slane %v432_v37, 2 }
 0x23e   : > { %v434_v39 = vadd.f32 %v433_v38, %v432_v37 }
 0x240   : > { %v435_v40 = vrot.slane %v434_v39, 1 }
 0x242   : > { %v436_v43 = vadd.f32 %v435_v40, %v434_v39 }
 0x244   : > { %v439_v44 = vmul.f32 %v436_v43, %v658_v3  ;;  %v440_v45 = vmul.f32 %v436_v43, %v661_v6 }
 0x28d   : > { %v384_v41 = vpop.f32.mrf.mxu1 }
 0x28e   : > { %v437_v42 = vmul.f32 %v384_v41, %v658_v3  ;;  %443 = vrot.lane.b32.xlu1 %v384_v41, %s599_s9 }
 0x290   : > { %451 = vrot.lane.b32.xlu0 %v437_v42, %s600_s10 }
 0x296   : > { %459 = vrot.lane.b32.xlu1 %v439_v44, %s601_s11 }
 0x298   : > { %461 = vrot.lane.b32.xlu0 %v440_v45, %s601_s11 }
 0x29f   : > { %v387_v46 = vpop.f32.mrf.mxu3 }
 0x2a0   : > { %445 = vrot.lane.b32.xlu2 %v387_v46, %s599_s9  ;;  %v438_v47 = vmul.f32 %v387_v46, %v661_v6 }
 0x2a8   : > { %453 = vrot.lane.b32.xlu2 %v438_v47, %s600_s10 }
 0x2fa   : > { %v446_v48 = vpop.permute.xlu2 %445 }
 0x2fb   : > { %v466_v55 = vsel %vm258_vm0, %v661_v6, %v446_v48 }
 0x300   : > { %v444_v49 = vpop.permute.xlu1 %443 }
 0x301   : > { %v465_v51 = vsel %vm258_vm0, %v658_v3, %v444_v49 }
 0x302   : > { %v452_v50 = vpop.permute.xlu0 %451  ;;  %v454_v52 = vpop.permute.xlu2 %453 }
 0x303   : > { %v468_v53 = vsel %vm467_vm1, %v465_v51, %v452_v50  ;;  %v469_v57 = vsel %vm467_vm1, %v466_v55, %v454_v52 }
 0x308   : > { %v460_v54 = vpop.permute.xlu1 %459 }
 0x309   : > { %v471_v56 = vsel %vm470_vm2, %v468_v53, %v460_v54 }
 0x30a   : > { %473 = vst [vmem:[%s241_s14] sm:$0xff] %v471_v56  ;;  %v462_v58 = vpop.permute.xlu0 %461 }
 0x30b   : > { %v472_v59 = vsel %vm470_vm2, %v469_v57, %v462_v58 }
 0x30c   : > { %474 = vst [vmem:[%s241_s14 + $0x8] sm:$0xff] %v472_v59 }
 0x30d PF: > { %s15_s18 = sadd.s32 1, %s597_s18  }
 0x30e   : > { %p12_p4 = scmp.ge.s32.totalorder %s15_s18, 4  }
 0x310   :  { %14 = sbr.rel (!%p12_p4) target bundleno = 1 (0x1), region = 73 }

// kernel: bidaf_forward.8
= control target key start
LH: loop header
LB: loop body
LE: loop exit
PB: predicated region body
PF: predicated region fallthrough
CT: control target
= control target key end

     0   :  { %vm29_vm0 = vcmask 261120   ;;  %v1513_v9 = vmov 0.0   ;;  %v75_v14 = vlaneseq  ;;  %vm159_vm6 = vcmask 123904   ;;  %s1972_s1 = inlined_call_operand.vmem [shape: f32[32,128], index: 1, kind: input, shape index: {}]   ;;  %s1973_s3 = inlined_call_operand.vmem [shape: f32[32,128], index: 3, kind: input, shape index: {}]   ;;  %s1974_s0 = inlined_call_operand.vmem [shape: f32[32,32], index: 0, kind: input, shape index: {}]   ;;  %s1975_s2 = inlined_call_operand.vmem [shape: f32[1,128], index: 2, kind: input, shape index: {}]   ;;  %s1976_s4 = inlined_call_operand.vmem [shape: f32[16,2,32], index: 4, kind: output, shape index: {}]  }
   0x1   :  { %v24_v0 = vld [vmem:[%s1972_s1 + $0x18] sm:$0xff]  ;;  %v23_v1 = vld [vmem:[%s1972_s1 + $0x10] sm:$0xff]  ;;  %v22_v2 = vld [vmem:[%s1972_s1 + $0x8] sm:$0xff]  ;;  %vm162_vm7 = vcmask 255104  }
   0x2   :  { %54 = vmatpush.msra.mxu0 %v24_v0  ;;  %v1553_v3 = vld [vmem:[%s1973_s3 + $0x18] sm:$0xff]  ;;  %v1559_v4 = vld [vmem:[%s1973_s3 + $0x10] sm:$0xff]  ;;  %v21_v5 = vld [vmem:[%s1972_s1] sm:$0xff]  ;;  %v76_v17 = vand.u32 127, %v75_v14 }
   0x3   :  { %109 = vmatpush.msra.mxu1 %v1553_v3  ;;  %v1567_v6 = vld [vmem:[%s1973_s3 + $0x8] sm:$0xff]  ;;  %181 = vmatpush.msra.mxu2 %v1553_v3  ;;  %v17_v7 = vld [vmem:[%s1974_s0] sm:$0xff]  ;;  %v19_v11 = vld [vmem:[%s1974_s0 + $0x10] sm:$0xff] }
   0x4   :  { %55 = vmatpush.msra.mxu0 %v23_v1  ;;  %260 = vmatpush.msra.mxu3 %v1553_v3  ;;  %v1578_v8 = vld [vmem:[%s1973_s3] sm:$0xff]  ;;  %v18_v10 = vld [vmem:[%s1974_s0 + $0x8] sm:$0xff]  ;;  %v20_v12 = vld [vmem:[%s1974_s0 + $0x18] sm:$0xff]  ;;  %v81_v19 = vand.u32 31, %v76_v17  ;;  %s1514_s0 = smov 64  }
   0x5   :  { %110 = vmatpush.msra.mxu1 %v1559_v4  ;;  %182 = vmatpush.msra.mxu2 %v1559_v4  ;;  %v1384_v15 = vld [vmem:[%s1975_s2] ss:$0 sm:$0xff]  ;;  %s1515_s2 = smov 32  }
   0x6   :  { %56 = vmatpush.msra.mxu0 %v22_v2  ;;  %261 = vmatpush.msra.mxu3 %v1559_v4  ;;  %vm1624_vm1 = vcmp.lt.s32.totalorder %v81_v19, 16 }
   0x7   :  { %111 = vmatpush.msra.mxu1 %v1567_v6  ;;  %183 = vmatpush.msra.mxu2 %v1567_v6 }
   0x8   :  { %57 = vmatpush.msra.mxu0 %v21_v5  ;;  %262 = vmatpush.msra.mxu3 %v1567_v6 }
   0x9   :  { %1316 = vmatmul.msk.f32.vlgmr.msra.gmra.mxu0 %vm29_vm0, %v17_v7  ;;  %112 = vmatpush.msra.mxu1 %v1578_v8 }
   0xa   :  { %113 = vmatmul.f32.vlgmr.msra.gmra.mxu1 %v1513_v9  ;;  %184 = vmatpush.msra.mxu2 %v1578_v8 }
   0xb   :  { %263 = vmatpush.msra.mxu3 %v1578_v8  ;;  %339 = vmatpush.msrb.mxu1 %v1553_v3 }
   0xc   :  { %422 = vmatpush.msrb.mxu2 %v1553_v3  ;;  %1032 = vmatpush.msrb.mxu0 %v1553_v3 }
   0xd   :  { %496 = vmatpush.msrb.mxu3 %v1553_v3  ;;  %340 = vmatpush.msrb.mxu1 %v1559_v4 }
   0xe   :  { %423 = vmatpush.msrb.mxu2 %v1559_v4  ;;  %1033 = vmatpush.msrb.mxu0 %v1559_v4 }
   0xf   :  { %497 = vmatpush.msrb.mxu3 %v1559_v4  ;;  %341 = vmatpush.msrb.mxu1 %v1567_v6 }
  0x10   :  { %424 = vmatpush.msrb.mxu2 %v1567_v6  ;;  %1034 = vmatpush.msrb.mxu0 %v1567_v6 }
  0x11   :  { %1317 = vmatmul.msk.f32.gmra.mxu0 %vm29_vm0, %v18_v10  ;;  %342 = vmatpush.msrb.mxu1 %v1578_v8 }
  0x12   :  { %498 = vmatpush.msrb.mxu3 %v1567_v6  ;;  %425 = vmatpush.msrb.mxu2 %v1578_v8 }
  0x13   :  { %573 = vmatpush.msra.mxu1 %v1553_v3  ;;  %1035 = vmatpush.msrb.mxu0 %v1578_v8 }
  0x14   :  { %499 = vmatpush.msrb.mxu3 %v1578_v8 }
  0x15   :  { %574 = vmatpush.msra.mxu1 %v1559_v4 }
  0x17   :  { %575 = vmatpush.msra.mxu1 %v1567_v6 }
  0x19   :  { %1318 = vmatmul.msk.f32.gmra.mxu0 %vm29_vm0, %v19_v11  ;;  %576 = vmatpush.msra.mxu1 %v1578_v8 }
  0x21   :  { %1319 = vmatmul.msk.f32.gmra.mxu0 %vm29_vm0, %v20_v12 }
  0x86   :  { %v59_v13 = vpop.f32.mrf.mxu0 }
  0x87   :  { %v60_v29 = vadd.f32 %v1384_v15, %v59_v13  ;;  %v114_v37 = vpop.f32.mrf.mxu1 }
  0x89   :  { %v1012_v34 = vrot.slane %v60_v29, 6  ;;  %v1087_v35 = vrot.slane %v60_v29, 2 }
  0x8e   :  { %v62_v16 = vpop.f32.mrf.mxu0 }
  0x8f   :  { %v63_v18 = vadd.f32 %v1384_v15, %v62_v16 }
  0x91   :  { %v711_v23 = vrot.slane %v63_v18, 6  ;;  %v786_v24 = vrot.slane %v63_v18, 2 }
  0x96   :  { %v65_v20 = vpop.f32.mrf.mxu0 }
  0x97   :  { %v66_v22 = vadd.f32 %v1384_v15, %v65_v20 }
  0x99   :  { %v402_v25 = vrot.slane %v66_v22, 6  ;;  %v479_v26 = vrot.slane %v66_v22, 2  ;;  %v1630_v27 = vsel %vm1624_vm1, %v66_v22, %v711_v23  ;;  %v1634_v28 = vsel %vm1624_vm1, %v66_v22, %v786_v24 }
  0x9b   :  { %v1638_v30 = vsel %vm1624_vm1, %v63_v18, %v402_v25  ;;  %v1642_v31 = vsel %vm1624_vm1, %v63_v18, %v479_v26 }
  0x9e   :  { %v68_v32 = vpop.f32.mrf.mxu0 }
  0x9f   :  { %v69_v33 = vadd.f32 %v1384_v15, %v68_v32 }
  0xa1   :  { %v91_v36 = vrot.slane %v69_v33, 6  ;;  %v164_v38 = vrot.slane %v69_v33, 2  ;;  %v1646_v39 = vsel %vm1624_vm1, %v69_v33, %v1012_v34  ;;  %v1650_v40 = vsel %vm1624_vm1, %v69_v33, %v1087_v35 }
  0xa3   :  { %v1654_v41 = vsel %vm1624_vm1, %v60_v29, %v91_v36  ;;  %v1658_v42 = vsel %vm1624_vm1, %v60_v29, %v164_v38 }
  0xa4   :  { %v117_v43 = vadd.f32 %v114_v37, %v1654_v41 }
  0xa6   :  { %1385 = vtanh.f32 %v117_v43  ;;  %v1320_v45 = vmul.f32 -1.442695, %v117_v43 }
  0xa8   :  { %1387 = vpow2.f32 %v1320_v45 }
  0xac   :  { %v1386_v44 = vpop.eup %1385 }
  0xad   :  { %140 = vrot.lane.b32.xlu0 %v1386_v44, %s1514_s0 }
  0xae   :  { %v1388_v46 = vpop.eup %1387 }
  0xaf   :  { %v121_v47 = vadd.f32 1.0, %v1388_v46 }
  0xb1   :  { %1389 = vrcp.f32 %v121_v47  ;;  %v133_v53 = vand.u32 2147483648, %v121_v47  ;;  %vm127_vm3 = vweird.f32 %v121_v47  ;;  %v131_v54 = vand.u32 2147483647, %v121_v47 }
  0xb3   :  { %v134_v56 = vor.u32 1.1754944e-38, %v133_v53  ;;  %vm132_vm5 = vcmp.eq.f32.partialorder %v131_v54, 8.507059e+37 }
  0xb7   :  { %v1390_v48 = vpop.eup %1389 }
  0xb8   :  { %v123_v49 = vmul.f32 %v1390_v48, %v121_v47  ;;  %vm128_vm2 = vweird.f32 %v1390_v48 }
  0xb9   :  { %vm129_vm4 = vmor %vm127_vm3, %vm128_vm2 }
  0xba   :  { %v124_v50 = vsub.f32 1.0, %v123_v49 }
  0xbc   :  { %v125_v51 = vmul.f32 %v1390_v48, %v124_v50 }
  0xbe   :  { %v126_v52 = vadd.f32 %v1390_v48, %v125_v51 }
  0xc0   :  { %v130_v55 = vsel %vm129_vm4, %v1390_v48, %v126_v52 }
  0xc1   :  { %v135_v58 = vsel %vm132_vm5, %v134_v56, %v130_v55 }
  0xc2   :  { %v138_v60 = vmul.f32 0.0, %v135_v58 }
 0x11f   :  { %v141_v57 = vpop.permute.xlu0 %140 }
 0x120   :  { %v143_v59 = vmul.f32 %v141_v57, %v135_v58 }
 0x122   :  { %145 = vrot.lane.b32.xlu0 %v143_v59, %s1515_s2 }
 0x194   :  { %v146_v61 = vpop.permute.xlu0 %145 }
 0x195   :  { %v148_v62 = vadd.f32 %v146_v61, %v138_v60 }
 0x197   :  { %1391 = vtanh.f32 %v148_v62  ;;  %v214_v26 = vrot.slane %v148_v62, 6 }
 0x19d   :  { %v1392_v63 = vpop.eup %1391 }
 0x19e   :  { %151 = vrot.lane.b32.xlu1 %v1392_v63, %s1514_s0 }
 0x210   :  { %v152_v0 = vpop.permute.xlu1 %151 }
 0x211   :  { %v154_v1 = vmul.f32 %v152_v0, %v135_v58 }
 0x213   :  { %156 = vrot.lane.b32.xlu1 %v154_v1, %s1515_s2 }
 0x285   :  { %v157_v2 = vpop.permute.xlu1 %156 }
 0x286   :  { %160 = vst.msk [vmem:[%s1976_s4] sm:$0x3] %vm159_vm6, %v157_v2  ;;  %1322 = vmatmul.msk.f32.vlgmr.msra.gmra.mxu2 %vm29_vm0, %v157_v2 }
 0x287   :  { %1321 = vst.msk [vmem:[%s1976_s4 + $0x1e] sm:$0x3] %vm162_vm7, %v157_v2  ;;  %650 = vmatpush.msra.mxu2 %v1553_v3 }
 0x289   :  { %651 = vmatpush.msra.mxu2 %v1559_v4 }
 0x28b   :  { %652 = vmatpush.msra.mxu2 %v1567_v6 }
 0x28d   :  { %653 = vmatpush.msra.mxu2 %v1578_v8 }
 0x309   :  { %v186_v5 = vpop.f32.mrf.mxu2 }
 0x30a   :  { %v190_v7 = vrot.slane %v186_v5, 6 }
 0x30c   :  { %v192_v9 = vadd.f32 %v190_v7, %v1658_v42 }
 0x30e   :  { %1393 = vtanh.f32 %v192_v9  ;;  %v1323_v11 = vmul.f32 -1.442695, %v192_v9 }
 0x310   :  { %1395 = vpow2.f32 %v1323_v11 }
 0x314   :  { %v1394_v10 = vpop.eup %1393 }
 0x315   :  { %218 = vrot.lane.b32.xlu2 %v1394_v10, %s1514_s0 }
 0x316   :  { %v1396_v12 = vpop.eup %1395 }
 0x317   :  { %v196_v13 = vadd.f32 1.0, %v1396_v12 }
 0x319   :  { %1397 = vrcp.f32 %v196_v13  ;;  %v208_v19 = vand.u32 2147483648, %v196_v13  ;;  %vm202_vm9 = vweird.f32 %v196_v13  ;;  %v206_v20 = vand.u32 2147483647, %v196_v13 }
 0x31b   :  { %v209_v22 = vor.u32 1.1754944e-38, %v208_v19  ;;  %vm207_vm11 = vcmp.eq.f32.partialorder %v206_v20, 8.507059e+37 }
 0x31f   :  { %v1398_v14 = vpop.eup %1397 }
 0x320   :  { %v198_v15 = vmul.f32 %v1398_v14, %v196_v13  ;;  %vm203_vm8 = vweird.f32 %v1398_v14 }
 0x321   :  { %vm204_vm10 = vmor %vm202_vm9, %vm203_vm8 }
 0x322   :  { %v199_v16 = vsub.f32 1.0, %v198_v15 }
 0x324   :  { %v200_v17 = vmul.f32 %v1398_v14, %v199_v16 }
 0x326   :  { %v201_v18 = vadd.f32 %v1398_v14, %v200_v17 }
 0x328   :  { %v205_v21 = vsel %vm204_vm10, %v1398_v14, %v201_v18 }
 0x329   :  { %v210_v24 = vsel %vm207_vm11, %v209_v22, %v205_v21 }
 0x32a   :  { %v216_v29 = vmul.f32 %v214_v26, %v210_v24 }
 0x36f   :  { %v219_v23 = vpop.permute.xlu2 %218 }
 0x370   :  { %v221_v25 = vmul.f32 %v219_v23, %v210_v24 }
 0x372   :  { %223 = vrot.lane.b32.xlu2 %v221_v25, %s1515_s2 }
 0x3cc   :  { %v224_v32 = vpop.permute.xlu2 %223 }
 0x3cd   :  { %v226_v33 = vadd.f32 %v224_v32, %v216_v29 }
 0x3cf   :  { %1399 = vtanh.f32 %v226_v33  ;;  %v293_v61 = vrot.slane %v226_v33, 6 }
 0x3d5   :  { %v1400_v34 = vpop.eup %1399 }
 0x3d6   :  { %229 = vrot.lane.b32.xlu0 %v1400_v34, %s1514_s0 }
 0x448   :  { %v230_v35 = vpop.permute.xlu0 %229 }
 0x449   :  { %v1682_v36 = vmul.f32 %v230_v35, %v210_v24 }
 0x44b   :  { %v243_v37 = vrot.slane %v1682_v36, 2 }
 0x44d   :  { %244 = vrot.lane.b32.xlu1 %v243_v37, %s1515_s2 }
 0x4bf   :  { %v245_v38 = vpop.permute.xlu1 %244 }
 0x4c0   :  { %1326 = vmatmul.msk.f32.vlgmr.msra.gmra.mxu3 %vm29_vm0, %v245_v38 }
 0x4c1   :  { %731 = vmatpush.msra.mxu3 %v1553_v3 }
 0x4c3   :  { %732 = vmatpush.msra.mxu3 %v1559_v4 }
 0x4c5   :  { %733 = vmatpush.msra.mxu3 %v1567_v6 }
 0x4c7   :  { %734 = vmatpush.msra.mxu3 %v1578_v8 }
 0x543   :  { %v265_v43 = vpop.f32.mrf.mxu3 }
 0x544   :  { %v269_v44 = vrot.slane %v265_v43, 4 }
 0x546   :  { %v271_v45 = vadd.f32 %v269_v44, %v1654_v41 }
 0x548   :  { %1401 = vtanh.f32 %v271_v45  ;;  %v1327_v47 = vmul.f32 -1.442695, %v271_v45 }
 0x54a   :  { %1403 = vpow2.f32 %v1327_v47 }
 0x54e   :  { %v1402_v46 = vpop.eup %1401 }
 0x54f   :  { %297 = vrot.lane.b32.xlu2 %v1402_v46, %s1514_s0 }
 0x550   :  { %v1404_v48 = vpop.eup %1403 }
 0x551   :  { %v275_v49 = vadd.f32 1.0, %v1404_v48 }
 0x553   :  { %1405 = vrcp.f32 %v275_v49  ;;  %v287_v55 = vand.u32 2147483648, %v275_v49  ;;  %vm281_vm13 = vweird.f32 %v275_v49  ;;  %v285_v56 = vand.u32 2147483647, %v275_v49 }
 0x555   :  { %v288_v57 = vor.u32 1.1754944e-38, %v287_v55  ;;  %vm286_vm15 = vcmp.eq.f32.partialorder %v285_v56, 8.507059e+37 }
 0x559   :  { %v1406_v50 = vpop.eup %1405 }
 0x55a   :  { %v277_v51 = vmul.f32 %v1406_v50, %v275_v49  ;;  %vm282_vm12 = vweird.f32 %v1406_v50 }
 0x55b   :  { %vm283_vm14 = vmor %vm281_vm13, %vm282_vm12 }
 0x55c   :  { %v278_v52 = vsub.f32 1.0, %v277_v51 }
 0x55e   :  { %v279_v53 = vmul.f32 %v1406_v50, %v278_v52 }
 0x560   :  { %v280_v54 = vadd.f32 %v1406_v50, %v279_v53 }
 0x562   :  { %v284_v41 = vsel %vm283_vm14, %v1406_v50, %v280_v54 }
 0x563   :  { %v289_v59 = vsel %vm286_vm15, %v288_v57, %v284_v41 }
 0x564   :  { %v295_v62 = vmul.f32 %v293_v61, %v289_v59 }
 0x5a9   :  { %v298_v58 = vpop.permute.xlu2 %297 }
 0x5aa   :  { %v300_v60 = vmul.f32 %v298_v58, %v289_v59 }
 0x5ac   :  { %302 = vrot.lane.b32.xlu0 %v300_v60, %s1515_s2 }
 0x61e   :  { %v303_v63 = vpop.permute.xlu0 %302 }
 0x61f   :  { %v305_v0 = vadd.f32 %v303_v63, %v295_v62 }
 0x621   :  { %1407 = vtanh.f32 %v305_v0  ;;  %v372_v32 = vrot.slane %v305_v0, 6 }
 0x627   :  { %v1408_v1 = vpop.eup %1407 }
 0x628   :  { %308 = vrot.lane.b32.xlu1 %v1408_v1, %s1514_s0 }
 0x69a   :  { %v309_v2 = vpop.permute.xlu1 %308 }
 0x69b   :  { %v1695_v5 = vmul.f32 %v309_v2, %v289_v59 }
 0x69d   :  { %v322_v7 = vrot.slane %v1695_v5, 4 }
 0x69f   :  { %323 = vrot.lane.b32.xlu2 %v322_v7, %s1515_s2 }
 0x6f9   :  { %v324_v9 = vpop.permute.xlu2 %323 }
 0x6fa   :  { %1330 = vmatmul.msk.f32.vlgmr.msrb.gmra.mxu1 %vm29_vm0, %v324_v9 }
 0x6fb   :  { %803 = vmatpush.msrb.mxu1 %v1553_v3 }
 0x6fd   :  { %804 = vmatpush.msrb.mxu1 %v1559_v4 }
 0x6ff   :  { %805 = vmatpush.msrb.mxu1 %v1567_v6 }
 0x701   :  { %806 = vmatpush.msrb.mxu1 %v1578_v8 }
 0x777   :  { %v344_v10 = vpop.f32.mrf.mxu1 }
 0x778   :  { %v348_v11 = vrot.slane %v344_v10, 2 }
 0x77a   :  { %v350_v12 = vadd.f32 %v348_v11, %v1658_v42 }
 0x77c   :  { %1409 = vtanh.f32 %v350_v12  ;;  %v1331_v14 = vmul.f32 -1.442695, %v350_v12 }
 0x77e   :  { %1411 = vpow2.f32 %v1331_v14 }
 0x782   :  { %v1410_v13 = vpop.eup %1409 }
 0x783   :  { %376 = vrot.lane.b32.xlu0 %v1410_v13, %s1514_s0 }
 0x784   :  { %v1412_v15 = vpop.eup %1411 }
 0x785   :  { %v354_v16 = vadd.f32 1.0, %v1412_v15 }
 0x787   :  { %1413 = vrcp.f32 %v354_v16  ;;  %v366_v22 = vand.u32 2147483648, %v354_v16  ;;  %vm360_vm2 = vweird.f32 %v354_v16  ;;  %v364_v23 = vand.u32 2147483647, %v354_v16 }
 0x789   :  { %v367_v24 = vor.u32 1.1754944e-38, %v366_v22  ;;  %vm365_vm4 = vcmp.eq.f32.partialorder %v364_v23, 8.507059e+37 }
 0x78d   :  { %v1414_v17 = vpop.eup %1413 }
 0x78e   :  { %v356_v18 = vmul.f32 %v1414_v17, %v354_v16  ;;  %vm361_vm1 = vweird.f32 %v1414_v17 }
 0x78f   :  { %vm362_vm3 = vmor %vm360_vm2, %vm361_vm1 }
 0x790   :  { %v357_v19 = vsub.f32 1.0, %v356_v18 }
 0x792   :  { %v358_v20 = vmul.f32 %v1414_v17, %v357_v19 }
 0x794   :  { %v359_v21 = vadd.f32 %v1414_v17, %v358_v20 }
 0x796   :  { %v363_v42 = vsel %vm362_vm3, %v1414_v17, %v359_v21 }
 0x797   :  { %v368_v26 = vsel %vm365_vm4, %v367_v24, %v363_v42 }
 0x798   :  { %v374_v33 = vmul.f32 %v372_v32, %v368_v26 }
 0x7f5   :  { %v377_v25 = vpop.permute.xlu0 %376 }
 0x7f6   :  { %v379_v29 = vmul.f32 %v377_v25, %v368_v26 }
 0x7f8   :  { %381 = vrot.lane.b32.xlu1 %v379_v29, %s1515_s2 }
 0x86a   :  { %v382_v34 = vpop.permute.xlu1 %381 }
 0x86b   :  { %v384_v35 = vadd.f32 %v382_v34, %v374_v33 }
 0x86d   :  { %1415 = vtanh.f32 %v384_v35  ;;  %v452_v63 = vrot.slane %v384_v35, 6 }
 0x873   :  { %v1416_v37 = vpop.eup %1415 }
 0x874   :  { %387 = vrot.lane.b32.xlu2 %v1416_v37, %s1514_s0 }
 0x8ce   :  { %v388_v38 = vpop.permute.xlu2 %387 }
 0x8cf   :  { %v1708_v43 = vmul.f32 %v388_v38, %v368_v26 }
 0x8d1   :  { %v405_v44 = vrot.slane %v1708_v43, 6 }
 0x8d3   :  { %406 = vrot.lane.b32.xlu0 %v405_v44, %s1515_s2 }
 0x945   :  { %v407_v45 = vpop.permute.xlu0 %406 }
 0x946   :  { %1334 = vmatmul.msk.f32.vlgmr.msrb.gmra.mxu2 %vm29_vm0, %v407_v45 }
 0x947   :  { %878 = vmatpush.msrb.mxu2 %v1553_v3 }
 0x949   :  { %879 = vmatpush.msrb.mxu2 %v1559_v4 }
 0x94b   :  { %880 = vmatpush.msrb.mxu2 %v1567_v6 }
 0x94d   :  { %881 = vmatpush.msrb.mxu2 %v1578_v8 }
 0x9c9   :  { %v427_v46 = vpop.f32.mrf.mxu2 }
 0x9ca   :  { %v430_v47 = vadd.f32 %v427_v46, %v1638_v30 }
 0x9cc   :  { %1417 = vtanh.f32 %v430_v47  ;;  %v1335_v49 = vmul.f32 -1.442695, %v430_v47 }
 0x9ce   :  { %1419 = vpow2.f32 %v1335_v49 }
 0x9d2   :  { %v1418_v48 = vpop.eup %1417 }
 0x9d3   :  { %456 = vrot.lane.b32.xlu1 %v1418_v48, %s1514_s0 }
 0x9d4   :  { %v1420_v50 = vpop.eup %1419 }
 0x9d5   :  { %v434_v51 = vadd.f32 1.0, %v1420_v50 }
 0x9d7   :  { %1421 = vrcp.f32 %v434_v51  ;;  %v446_v41 = vand.u32 2147483648, %v434_v51  ;;  %vm440_vm8 = vweird.f32 %v434_v51  ;;  %v444_v57 = vand.u32 2147483647, %v434_v51 }
 0x9d9   :  { %v447_v59 = vor.u32 1.1754944e-38, %v446_v41  ;;  %vm445_vm10 = vcmp.eq.f32.partialorder %v444_v57, 8.507059e+37 }
 0x9dd   :  { %v1422_v52 = vpop.eup %1421 }
 0x9de   :  { %v436_v53 = vmul.f32 %v1422_v52, %v434_v51  ;;  %vm441_vm5 = vweird.f32 %v1422_v52 }
 0x9df   :  { %vm442_vm9 = vmor %vm440_vm8, %vm441_vm5 }
 0x9e0   :  { %v437_v54 = vsub.f32 1.0, %v436_v53 }
 0x9e2   :  { %v438_v55 = vmul.f32 %v1422_v52, %v437_v54 }
 0x9e4   :  { %v439_v56 = vadd.f32 %v1422_v52, %v438_v55 }
 0x9e6   :  { %v443_v58 = vsel %vm442_vm9, %v1422_v52, %v439_v56 }
 0x9e7   :  { %v448_v61 = vsel %vm445_vm10, %v447_v59, %v443_v58 }
 0x9e8   :  { %v454_v0 = vmul.f32 %v452_v63, %v448_v61 }
 0xa45   :  { %v457_v60 = vpop.permute.xlu1 %456 }
 0xa46   :  { %v459_v62 = vmul.f32 %v457_v60, %v448_v61 }
 0xa48   :  { %461 = vrot.lane.b32.xlu2 %v459_v62, %s1515_s2 }
 0xaa2   :  { %v462_v1 = vpop.permute.xlu2 %461 }
 0xaa3   :  { %v464_v2 = vadd.f32 %v462_v1, %v454_v0 }
 0xaa5   :  { %1423 = vtanh.f32 %v464_v2  ;;  %v529_v34 = vrot.slane %v464_v2, 6 }
 0xaab   :  { %v1424_v7 = vpop.eup %1423 }
 0xaac   :  { %467 = vrot.lane.b32.xlu0 %v1424_v7, %s1514_s0 }
 0xb1e   :  { %v468_v9 = vpop.permute.xlu0 %467 }
 0xb1f   :  { %v470_v10 = vmul.f32 %v468_v9, %v448_v61 }
 0xb21   :  { %472 = vrot.lane.b32.xlu1 %v470_v10, %s1515_s2 }
 0xb93   :  { %v473_v11 = vpop.permute.xlu1 %472 }
 0xb94   :  { %1336 = vst.msk [vmem:[%s1976_s4 + $0x8] sm:$0x3] %vm159_vm6, %v473_v11  ;;  %1338 = vmatmul.msk.f32.vlgmr.msrb.gmra.mxu3 %vm29_vm0, %v473_v11 }
 0xb95   :  { %1337 = vst.msk [vmem:[%s1976_s4 + $0x16] sm:$0x3] %vm162_vm7, %v473_v11  ;;  %953 = vmatpush.msrb.mxu3 %v1553_v3 }
 0xb97   :  { %954 = vmatpush.msrb.mxu3 %v1559_v4 }
 0xb99   :  { %955 = vmatpush.msrb.mxu3 %v1567_v6 }
 0xb9b   :  { %956 = vmatpush.msrb.mxu3 %v1578_v8 }
 0xc17   :  { %v501_v12 = vpop.f32.mrf.mxu3 }
 0xc18   :  { %v505_v13 = vrot.slane %v501_v12, 6 }
 0xc1a   :  { %v507_v14 = vadd.f32 %v505_v13, %v1642_v31 }
 0xc1c   :  { %1425 = vtanh.f32 %v507_v14  ;;  %v1339_v16 = vmul.f32 -1.442695, %v507_v14 }
 0xc1e   :  { %1427 = vpow2.f32 %v1339_v16 }
 0xc22   :  { %v1426_v15 = vpop.eup %1425 }
 0xc23   :  { %533 = vrot.lane.b32.xlu2 %v1426_v15, %s1514_s0 }
 0xc24   :  { %v1428_v17 = vpop.eup %1427 }
 0xc25   :  { %v511_v18 = vadd.f32 1.0, %v1428_v17 }
 0xc27   :  { %1429 = vrcp.f32 %v511_v18  ;;  %v523_v42 = vand.u32 2147483648, %v511_v18  ;;  %vm517_vm12 = vweird.f32 %v511_v18  ;;  %v521_v24 = vand.u32 2147483647, %v511_v18 }
 0xc29   :  { %v524_v26 = vor.u32 1.1754944e-38, %v523_v42  ;;  %vm522_vm14 = vcmp.eq.f32.partialorder %v521_v24, 8.507059e+37 }
 0xc2d   :  { %v1430_v19 = vpop.eup %1429 }
 0xc2e   :  { %v513_v20 = vmul.f32 %v1430_v19, %v511_v18  ;;  %vm518_vm11 = vweird.f32 %v1430_v19 }
 0xc2f   :  { %vm519_vm13 = vmor %vm517_vm12, %vm518_vm11 }
 0xc30   :  { %v514_v21 = vsub.f32 1.0, %v513_v20 }
 0xc32   :  { %v515_v22 = vmul.f32 %v1430_v19, %v514_v21 }
 0xc34   :  { %v516_v23 = vadd.f32 %v1430_v19, %v515_v22 }
 0xc36   :  { %v520_v25 = vsel %vm519_vm13, %v1430_v19, %v516_v23 }
 0xc37   :  { %v525_v32 = vsel %vm522_vm14, %v524_v26, %v520_v25 }
 0xc38   :  { %v531_v35 = vmul.f32 %v529_v34, %v525_v32 }
 0xc7d   :  { %v534_v29 = vpop.permute.xlu2 %533 }
 0xc7e   :  { %v536_v33 = vmul.f32 %v534_v29, %v525_v32 }
 0xc80   :  { %538 = vrot.lane.b32.xlu0 %v536_v33, %s1515_s2 }
 0xcf2   :  { %v539_v37 = vpop.permute.xlu0 %538 }
 0xcf3   :  { %v541_v38 = vadd.f32 %v539_v37, %v531_v35 }
 0xcf5   :  { %1431 = vtanh.f32 %v541_v38  ;;  %v606_v2 = vrot.slane %v541_v38, 6 }
 0xcfb   :  { %v1432_v44 = vpop.eup %1431 }
 0xcfc   :  { %544 = vrot.lane.b32.xlu1 %v1432_v44, %s1514_s0 }
 0xd6e   :  { %v545_v45 = vpop.permute.xlu1 %544 }
 0xd6f   :  { %v1739_v46 = vmul.f32 %v545_v45, %v525_v32 }
 0xd71   :  { %v556_v47 = vrot.slane %v1739_v46, 2 }
 0xd73   :  { %557 = vrot.lane.b32.xlu2 %v556_v47, %s1515_s2 }
 0xdcd   :  { %v558_v48 = vpop.permute.xlu2 %557 }
 0xdce   :  { %1342 = vmatmul.msk.f32.vlgmr.msra.gmra.mxu1 %vm29_vm0, %v558_v48 }
 0xdcf   :  { %1104 = vmatpush.msra.mxu1 %v1553_v3 }
 0xdd1   :  { %1105 = vmatpush.msra.mxu1 %v1559_v4 }
 0xdd3   :  { %1106 = vmatpush.msra.mxu1 %v1567_v6 }
 0xdd5   :  { %1107 = vmatpush.msra.mxu1 %v1578_v8 }
 0xe4b   :  { %v578_v49 = vpop.f32.mrf.mxu1 }
 0xe4c   :  { %v582_v50 = vrot.slane %v578_v49, 4 }
 0xe4e   :  { %v584_v51 = vadd.f32 %v582_v50, %v1638_v30 }
 0xe50   :  { %1433 = vtanh.f32 %v584_v51  ;;  %v1343_v53 = vmul.f32 -1.442695, %v584_v51 }
 0xe52   :  { %1435 = vpow2.f32 %v1343_v53 }
 0xe56   :  { %v1434_v52 = vpop.eup %1433 }
 0xe57   :  { %610 = vrot.lane.b32.xlu0 %v1434_v52, %s1514_s0 }
 0xe58   :  { %v1436_v54 = vpop.eup %1435 }
 0xe59   :  { %v588_v55 = vadd.f32 1.0, %v1436_v54 }
 0xe5b   :  { %1437 = vrcp.f32 %v588_v55  ;;  %v600_v60 = vand.u32 2147483648, %v588_v55  ;;  %vm594_vm1 = vweird.f32 %v588_v55  ;;  %v598_v61 = vand.u32 2147483647, %v588_v55 }
 0xe5d   :  { %v601_v62 = vor.u32 1.1754944e-38, %v600_v60  ;;  %vm599_vm3 = vcmp.eq.f32.partialorder %v598_v61, 8.507059e+37 }
 0xe61   :  { %v1438_v56 = vpop.eup %1437 }
 0xe62   :  { %v590_v41 = vmul.f32 %v1438_v56, %v588_v55  ;;  %vm595_vm15 = vweird.f32 %v1438_v56 }
 0xe63   :  { %vm596_vm2 = vmor %vm594_vm1, %vm595_vm15 }
 0xe64   :  { %v591_v57 = vsub.f32 1.0, %v590_v41 }
 0xe66   :  { %v592_v58 = vmul.f32 %v1438_v56, %v591_v57 }
 0xe68   :  { %v593_v59 = vadd.f32 %v1438_v56, %v592_v58 }
 0xe6a   :  { %v597_v30 = vsel %vm596_vm2, %v1438_v56, %v593_v59 }
 0xe6b   :  { %v602_v0 = vsel %vm599_vm3, %v601_v62, %v597_v30 }
 0xe6c   :  { %v608_v7 = vmul.f32 %v606_v2, %v602_v0 }
 0xec9   :  { %v611_v63 = vpop.permute.xlu0 %610 }
 0xeca   :  { %v613_v1 = vmul.f32 %v611_v63, %v602_v0 }
 0xecc   :  { %615 = vrot.lane.b32.xlu1 %v613_v1, %s1515_s2 }
 0xf3e   :  { %v616_v9 = vpop.permute.xlu1 %615 }
 0xf3f   :  { %v618_v10 = vadd.f32 %v616_v9, %v608_v7 }
 0xf41   :  { %1439 = vtanh.f32 %v618_v10  ;;  %v683_v38 = vrot.slane %v618_v10, 6 }
 0xf47   :  { %v1440_v11 = vpop.eup %1439 }
 0xf48   :  { %621 = vrot.lane.b32.xlu2 %v1440_v11, %s1514_s0 }
 0xfa2   :  { %v622_v12 = vpop.permute.xlu2 %621 }
 0xfa3   :  { %v1752_v13 = vmul.f32 %v622_v12, %v602_v0 }
 0xfa5   :  { %v633_v14 = vrot.slane %v1752_v13, 4 }
 0xfa7   :  { %634 = vrot.lane.b32.xlu0 %v633_v14, %s1515_s2 }
0x1019   :  { %v635_v15 = vpop.permute.xlu0 %634 }
0x101a   :  { %1346 = vmatmul.msk.f32.vlgmr.msra.gmra.mxu2 %vm29_vm0, %v635_v15 }
0x101b   :  { %1179 = vmatpush.msra.mxu2 %v1553_v3 }
0x101d   :  { %1180 = vmatpush.msra.mxu2 %v1559_v4 }
0x101f   :  { %1181 = vmatpush.msra.mxu2 %v1567_v6 }
0x1021   :  { %1182 = vmatpush.msra.mxu2 %v1578_v8 }
0x109d   :  { %v655_v16 = vpop.f32.mrf.mxu2 }
0x109e   :  { %v659_v17 = vrot.slane %v655_v16, 2 }
0x10a0   :  { %v661_v18 = vadd.f32 %v659_v17, %v1642_v31 }
0x10a2   :  { %1441 = vtanh.f32 %v661_v18  ;;  %v1347_v20 = vmul.f32 -1.442695, %v661_v18 }
0x10a4   :  { %1443 = vpow2.f32 %v1347_v20 }
0x10a8   :  { %v1442_v19 = vpop.eup %1441 }
0x10a9   :  { %687 = vrot.lane.b32.xlu1 %v1442_v19, %s1514_s0 }
0x10aa   :  { %v1444_v21 = vpop.eup %1443 }
0x10ab   :  { %v665_v22 = vadd.f32 1.0, %v1444_v21 }
0x10ad   :  { %1445 = vrcp.f32 %v665_v22  ;;  %v677_v29 = vand.u32 2147483648, %v665_v22  ;;  %vm671_vm5 = vweird.f32 %v665_v22  ;;  %v675_v32 = vand.u32 2147483647, %v665_v22 }
0x10af   :  { %v678_v33 = vor.u32 1.1754944e-38, %v677_v29  ;;  %vm676_vm9 = vcmp.eq.f32.partialorder %v675_v32, 8.507059e+37 }
0x10b3   :  { %v1446_v23 = vpop.eup %1445 }
0x10b4   :  { %v667_v42 = vmul.f32 %v1446_v23, %v665_v22  ;;  %vm672_vm4 = vweird.f32 %v1446_v23 }
0x10b5   :  { %vm673_vm8 = vmor %vm671_vm5, %vm672_vm4 }
0x10b6   :  { %v668_v24 = vsub.f32 1.0, %v667_v42 }
0x10b8   :  { %v669_v25 = vmul.f32 %v1446_v23, %v668_v24 }
0x10ba   :  { %v670_v26 = vadd.f32 %v1446_v23, %v669_v25 }
0x10bc   :  { %v674_v31 = vsel %vm673_vm8, %v1446_v23, %v670_v26 }
0x10bd   :  { %v679_v35 = vsel %vm676_vm9, %v678_v33, %v674_v31 }
0x10be   :  { %v685_v44 = vmul.f32 %v683_v38, %v679_v35 }
0x111b   :  { %v688_v34 = vpop.permute.xlu1 %687 }
0x111c   :  { %v690_v37 = vmul.f32 %v688_v34, %v679_v35 }
0x111e   :  { %692 = vrot.lane.b32.xlu2 %v690_v37, %s1515_s2 }
0x1178   :  { %v693_v45 = vpop.permute.xlu2 %692 }
0x1179   :  { %v695_v47 = vadd.f32 %v693_v45, %v685_v44 }
0x117b   :  { %1447 = vtanh.f32 %v695_v47  ;;  %v761_v1 = vrot.slane %v695_v47, 6 }
0x1181   :  { %v1448_v48 = vpop.eup %1447 }
0x1182   :  { %698 = vrot.lane.b32.xlu0 %v1448_v48, %s1514_s0 }
0x11f4   :  { %v699_v49 = vpop.permute.xlu0 %698 }
0x11f5   :  { %v1765_v50 = vmul.f32 %v699_v49, %v679_v35 }
0x11f7   :  { %v714_v51 = vrot.slane %v1765_v50, 6 }
0x11f9   :  { %715 = vrot.lane.b32.xlu1 %v714_v51, %s1515_s2 }
0x126b   :  { %v716_v52 = vpop.permute.xlu1 %715 }
0x126c   :  { %1350 = vmatmul.msk.f32.vlgmr.msra.gmra.mxu3 %vm29_vm0, %v716_v52 }
0x126d   :  { %1254 = vmatpush.msra.mxu3 %v1553_v3 }
0x126f   :  { %1255 = vmatpush.msra.mxu3 %v1559_v4 }
0x1271   :  { %1256 = vmatpush.msra.mxu3 %v1567_v6 }
0x1273   :  { %1257 = vmatpush.msra.mxu3 %v1578_v8 }
0x12ef   :  { %v736_v53 = vpop.f32.mrf.mxu3 }
0x12f0   :  { %v739_v54 = vadd.f32 %v736_v53, %v1630_v27 }
0x12f2   :  { %1449 = vtanh.f32 %v739_v54  ;;  %v1351_v56 = vmul.f32 -1.442695, %v739_v54 }
0x12f4   :  { %1451 = vpow2.f32 %v1351_v56 }
0x12f8   :  { %v1450_v55 = vpop.eup %1449 }
0x12f9   :  { %765 = vrot.lane.b32.xlu2 %v1450_v55, %s1514_s0 }
0x12fa   :  { %v1452_v41 = vpop.eup %1451 }
0x12fb   :  { %v743_v57 = vadd.f32 1.0, %v1452_v41 }
0x12fd   :  { %1453 = vrcp.f32 %v743_v57  ;;  %v755_v6 = vand.u32 2147483648, %v743_v57  ;;  %vm749_vm11 = vweird.f32 %v743_v57  ;;  %v753_v8 = vand.u32 2147483647, %v743_v57 }
0x12ff   :  { %v756_v30 = vor.u32 1.1754944e-38, %v755_v6  ;;  %vm754_vm13 = vcmp.eq.f32.partialorder %v753_v8, 8.507059e+37 }
0x1303   :  { %v1454_v58 = vpop.eup %1453 }
0x1304   :  { %v745_v3 = vmul.f32 %v1454_v58, %v743_v57  ;;  %vm750_vm10 = vweird.f32 %v1454_v58 }
0x1305   :  { %vm751_vm12 = vmor %vm749_vm11, %vm750_vm10 }
0x1306   :  { %v746_v59 = vsub.f32 1.0, %v745_v3 }
0x1308   :  { %v747_v4 = vmul.f32 %v1454_v58, %v746_v59 }
0x130a   :  { %v748_v60 = vadd.f32 %v1454_v58, %v747_v4 }
0x130c   :  { %v752_v61 = vsel %vm751_vm12, %v1454_v58, %v748_v60 }
0x130d   :  { %v757_v63 = vsel %vm754_vm13, %v756_v30, %v752_v61 }
0x130e   :  { %v763_v2 = vmul.f32 %v761_v1, %v757_v63 }
0x1353   :  { %v766_v62 = vpop.permute.xlu2 %765 }
0x1354   :  { %v768_v0 = vmul.f32 %v766_v62, %v757_v63 }
0x1356   :  { %770 = vrot.lane.b32.xlu0 %v768_v0, %s1515_s2 }
0x13c8   :  { %v771_v7 = vpop.permute.xlu0 %770 }
0x13c9   :  { %v773_v9 = vadd.f32 %v771_v7, %v763_v2 }
0x13cb   :  { %1455 = vtanh.f32 %v773_v9  ;;  %v836_v37 = vrot.slane %v773_v9, 6 }
0x13d1   :  { %v1456_v10 = vpop.eup %1455 }
0x13d2   :  { %776 = vrot.lane.b32.xlu1 %v1456_v10, %s1514_s0 }
0x1444   :  { %v777_v11 = vpop.permute.xlu1 %776 }
0x1445   :  { %v779_v12 = vmul.f32 %v777_v11, %v757_v63 }
0x1447   :  { %781 = vrot.lane.b32.xlu2 %v779_v12, %s1515_s2 }
0x14a1   :  { %v1779_v14 = vpop.permute.xlu2 %781 }
0x14a2   :  { %1354 = vmatmul.msk.f32.vlgmr.msrb.gmra.mxu1 %vm29_vm0, %v1779_v14 }
0x151f   :  { %v808_v15 = vpop.f32.mrf.mxu1 }
0x1520   :  { %v812_v16 = vrot.slane %v808_v15, 6 }
0x1522   :  { %v814_v17 = vadd.f32 %v812_v16, %v1634_v28 }
0x1524   :  { %1457 = vtanh.f32 %v814_v17  ;;  %v1355_v19 = vmul.f32 -1.442695, %v814_v17 }
0x1526   :  { %1459 = vpow2.f32 %v1355_v19 }
0x152a   :  { %v1458_v18 = vpop.eup %1457 }
0x152b   :  { %840 = vrot.lane.b32.xlu0 %v1458_v18, %s1514_s0 }
0x152c   :  { %v1460_v20 = vpop.eup %1459 }
0x152d   :  { %v818_v21 = vadd.f32 1.0, %v1460_v20 }
0x152f   :  { %1461 = vrcp.f32 %v818_v21  ;;  %v830_v26 = vand.u32 2147483648, %v818_v21  ;;  %vm824_vm15 = vweird.f32 %v818_v21  ;;  %v828_v29 = vand.u32 2147483647, %v818_v21 }
0x1531   :  { %v831_v31 = vor.u32 1.1754944e-38, %v830_v26  ;;  %vm829_vm2 = vcmp.eq.f32.partialorder %v828_v29, 8.507059e+37 }
0x1535   :  { %v1462_v22 = vpop.eup %1461 }
0x1536   :  { %v820_v23 = vmul.f32 %v1462_v22, %v818_v21  ;;  %vm825_vm14 = vweird.f32 %v1462_v22 }
0x1537   :  { %vm826_vm1 = vmor %vm824_vm15, %vm825_vm14 }
0x1538   :  { %v821_v42 = vsub.f32 1.0, %v820_v23 }
0x153a   :  { %v822_v24 = vmul.f32 %v1462_v22, %v821_v42 }
0x153c   :  { %v823_v25 = vadd.f32 %v1462_v22, %v822_v24 }
0x153e   :  { %v827_v32 = vsel %vm826_vm1, %v1462_v22, %v823_v25 }
0x153f   :  { %v832_v34 = vsel %vm829_vm2, %v831_v31, %v827_v32 }
0x1540   :  { %v838_v38 = vmul.f32 %v836_v37, %v832_v34 }
0x159d   :  { %v841_v33 = vpop.permute.xlu0 %840 }
0x159e   :  { %v843_v35 = vmul.f32 %v841_v33, %v832_v34 }
0x15a0   :  { %845 = vrot.lane.b32.xlu1 %v843_v35, %s1515_s2 }
0x1612   :  { %v846_v44 = vpop.permute.xlu1 %845 }
0x1613   :  { %v848_v45 = vadd.f32 %v846_v44, %v838_v38 }
0x1615   :  { %1463 = vtanh.f32 %v848_v45  ;;  %v911_v1 = vrot.slane %v848_v45, 6 }
0x161b   :  { %v1464_v47 = vpop.eup %1463 }
0x161c   :  { %851 = vrot.lane.b32.xlu2 %v1464_v47, %s1514_s0 }
0x1676   :  { %v852_v48 = vpop.permute.xlu2 %851 }
0x1677   :  { %v1787_v49 = vmul.f32 %v852_v48, %v832_v34 }
0x1679   :  { %v861_v51 = vrot.slane %v1787_v49, 2 }
0x167b   :  { %862 = vrot.lane.b32.xlu0 %v861_v51, %s1515_s2 }
0x16ed   :  { %v863_v52 = vpop.permute.xlu0 %862 }
0x16ee   :  { %1358 = vmatmul.msk.f32.vlgmr.msrb.gmra.mxu2 %vm29_vm0, %v863_v52 }
0x1771   :  { %v883_v53 = vpop.f32.mrf.mxu2 }
0x1772   :  { %v887_v54 = vrot.slane %v883_v53, 4 }
0x1774   :  { %v889_v55 = vadd.f32 %v887_v54, %v1630_v27 }
0x1776   :  { %1465 = vtanh.f32 %v889_v55  ;;  %v1359_v41 = vmul.f32 -1.442695, %v889_v55 }
0x1778   :  { %1467 = vpow2.f32 %v1359_v41 }
0x177c   :  { %v1466_v56 = vpop.eup %1465 }
0x177d   :  { %915 = vrot.lane.b32.xlu1 %v1466_v56, %s1514_s0 }
0x177e   :  { %v1468_v57 = vpop.eup %1467 }
0x177f   :  { %v893_v58 = vadd.f32 1.0, %v1468_v57 }
0x1781   :  { %1469 = vrcp.f32 %v893_v58  ;;  %v905_v8 = vand.u32 2147483648, %v893_v58  ;;  %vm899_vm4 = vweird.f32 %v893_v58  ;;  %v903_v61 = vand.u32 2147483647, %v893_v58 }
0x1783   :  { %v906_v30 = vor.u32 1.1754944e-38, %v905_v8  ;;  %vm904_vm8 = vcmp.eq.f32.partialorder %v903_v61, 8.507059e+37 }
0x1787   :  { %v1470_v3 = vpop.eup %1469 }
0x1788   :  { %v895_v59 = vmul.f32 %v1470_v3, %v893_v58  ;;  %vm900_vm3 = vweird.f32 %v1470_v3 }
0x1789   :  { %vm901_vm5 = vmor %vm899_vm4, %vm900_vm3 }
0x178a   :  { %v896_v4 = vsub.f32 1.0, %v895_v59 }
0x178c   :  { %v897_v60 = vmul.f32 %v1470_v3, %v896_v4 }
0x178e   :  { %v898_v6 = vadd.f32 %v1470_v3, %v897_v60 }
0x1790   :  { %v902_v27 = vsel %vm901_vm5, %v1470_v3, %v898_v6 }
0x1791   :  { %v907_v63 = vsel %vm904_vm8, %v906_v30, %v902_v27 }
0x1792   :  { %v913_v2 = vmul.f32 %v911_v1, %v907_v63 }
0x17ef   :  { %v916_v62 = vpop.permute.xlu1 %915 }
0x17f0   :  { %v918_v0 = vmul.f32 %v916_v62, %v907_v63 }
0x17f2   :  { %920 = vrot.lane.b32.xlu2 %v918_v0, %s1515_s2 }
0x184c   :  { %v921_v7 = vpop.permute.xlu2 %920 }
0x184d   :  { %v923_v9 = vadd.f32 %v921_v7, %v913_v2 }
0x184f   :  { %1471 = vtanh.f32 %v923_v9  ;;  %v986_v38 = vrot.slane %v923_v9, 6 }
0x1855   :  { %v1472_v10 = vpop.eup %1471 }
0x1856   :  { %926 = vrot.lane.b32.xlu0 %v1472_v10, %s1514_s0 }
0x18c8   :  { %v927_v11 = vpop.permute.xlu0 %926 }
0x18c9   :  { %v1796_v12 = vmul.f32 %v927_v11, %v907_v63 }
0x18cb   :  { %v936_v15 = vrot.slane %v1796_v12, 4 }
0x18cd   :  { %937 = vrot.lane.b32.xlu1 %v936_v15, %s1515_s2 }
0x193f   :  { %v938_v16 = vpop.permute.xlu1 %937 }
0x1940   :  { %1362 = vmatmul.msk.f32.vlgmr.msrb.gmra.mxu3 %vm29_vm0, %v938_v16 }
0x19c3   :  { %v958_v17 = vpop.f32.mrf.mxu3 }
0x19c4   :  { %v962_v18 = vrot.slane %v958_v17, 2 }
0x19c6   :  { %v964_v19 = vadd.f32 %v962_v18, %v1634_v28 }
0x19c8   :  { %1473 = vtanh.f32 %v964_v19  ;;  %v1363_v21 = vmul.f32 -1.442695, %v964_v19 }
0x19ca   :  { %1475 = vpow2.f32 %v1363_v21 }
0x19ce   :  { %v1474_v20 = vpop.eup %1473 }
0x19cf   :  { %990 = vrot.lane.b32.xlu2 %v1474_v20, %s1514_s0 }
0x19d0   :  { %v1476_v22 = vpop.eup %1475 }
0x19d1   :  { %v968_v23 = vadd.f32 1.0, %v1476_v22 }
0x19d3   :  { %1477 = vrcp.f32 %v968_v23  ;;  %v980_v32 = vand.u32 2147483648, %v968_v23  ;;  %vm974_vm10 = vweird.f32 %v968_v23  ;;  %v978_v31 = vand.u32 2147483647, %v968_v23 }
0x19d5   :  { %v981_v33 = vor.u32 1.1754944e-38, %v980_v32  ;;  %vm979_vm12 = vcmp.eq.f32.partialorder %v978_v31, 8.507059e+37 }
0x19d9   :  { %v1478_v42 = vpop.eup %1477 }
0x19da   :  { %v970_v24 = vmul.f32 %v1478_v42, %v968_v23  ;;  %vm975_vm9 = vweird.f32 %v1478_v42 }
0x19db   :  { %vm976_vm11 = vmor %vm974_vm10, %vm975_vm9 }
0x19dc   :  { %v971_v25 = vsub.f32 1.0, %v970_v24 }
0x19de   :  { %v972_v26 = vmul.f32 %v1478_v42, %v971_v25 }
0x19e0   :  { %v973_v29 = vadd.f32 %v1478_v42, %v972_v26 }
0x19e2   :  { %v977_v28 = vsel %vm976_vm11, %v1478_v42, %v973_v29 }
0x19e3   :  { %v982_v35 = vsel %vm979_vm12, %v981_v33, %v977_v28 }
0x19e4   :  { %v988_v44 = vmul.f32 %v986_v38, %v982_v35 }
0x1a29   :  { %v991_v34 = vpop.permute.xlu2 %990 }
0x1a2a   :  { %v993_v37 = vmul.f32 %v991_v34, %v982_v35 }
0x1a2c   :  { %995 = vrot.lane.b32.xlu0 %v993_v37, %s1515_s2 }
0x1a9e   :  { %v996_v45 = vpop.permute.xlu0 %995 }
0x1a9f   :  { %v998_v47 = vadd.f32 %v996_v45, %v988_v44 }
0x1aa1   :  { %1479 = vtanh.f32 %v998_v47  ;;  %v1062_v2 = vrot.slane %v998_v47, 6 }
0x1aa7   :  { %v1480_v48 = vpop.eup %1479 }
0x1aa8   :  { %1001 = vrot.lane.b32.xlu1 %v1480_v48, %s1514_s0 }
0x1b1a   :  { %v1002_v51 = vpop.permute.xlu1 %1001 }
0x1b1b   :  { %v1805_v52 = vmul.f32 %v1002_v51, %v982_v35 }
0x1b1d   :  { %v1015_v53 = vrot.slane %v1805_v52, 6 }
0x1b1f   :  { %1016 = vrot.lane.b32.xlu2 %v1015_v53, %s1515_s2 }
0x1b79   :  { %v1017_v54 = vpop.permute.xlu2 %1016 }
0x1b7a   :  { %1366 = vmatmul.msk.f32.vlgmr.msrb.gmra.mxu0 %vm29_vm0, %v1017_v54 }
0x1bf7   :  { %v1037_v55 = vpop.f32.mrf.mxu0 }
0x1bf8   :  { %v1040_v56 = vadd.f32 %v1037_v55, %v1646_v39 }
0x1bfa   :  { %1481 = vtanh.f32 %v1040_v56  ;;  %v1367_v57 = vmul.f32 -1.442695, %v1040_v56 }
0x1bfc   :  { %1483 = vpow2.f32 %v1367_v57 }
0x1c00   :  { %v1482_v41 = vpop.eup %1481 }
0x1c01   :  { %1066 = vrot.lane.b32.xlu0 %v1482_v41, %s1514_s0 }
0x1c02   :  { %v1484_v58 = vpop.eup %1483 }
0x1c03   :  { %v1044_v3 = vadd.f32 1.0, %v1484_v58 }
0x1c05   :  { %1485 = vrcp.f32 %v1044_v3  ;;  %v1056_v61 = vand.u32 2147483648, %v1044_v3  ;;  %vm1050_vm14 = vweird.f32 %v1044_v3  ;;  %v1054_v27 = vand.u32 2147483647, %v1044_v3 }
0x1c07   :  { %v1057_v62 = vor.u32 1.1754944e-38, %v1056_v61  ;;  %vm1055_vm1 = vcmp.eq.f32.partialorder %v1054_v27, 8.507059e+37 }
0x1c0b   :  { %v1486_v59 = vpop.eup %1485 }
0x1c0c   :  { %v1046_v4 = vmul.f32 %v1486_v59, %v1044_v3  ;;  %vm1051_vm13 = vweird.f32 %v1486_v59 }
0x1c0d   :  { %vm1052_vm15 = vmor %vm1050_vm14, %vm1051_vm13 }
0x1c0e   :  { %v1047_v60 = vsub.f32 1.0, %v1046_v4 }
0x1c10   :  { %v1048_v6 = vmul.f32 %v1486_v59, %v1047_v60 }
0x1c12   :  { %v1049_v8 = vadd.f32 %v1486_v59, %v1048_v6 }
0x1c14   :  { %v1053_v30 = vsel %vm1052_vm15, %v1486_v59, %v1049_v8  ;;  %vm238_vm15 = vcmask 125954  }
0x1c15   :  { %v1058_v0 = vsel %vm1055_vm1, %v1057_v62, %v1053_v30  ;;  %vm241_vm1 = vcmask 257154  }
0x1c16   :  { %v1064_v7 = vmul.f32 %v1062_v2, %v1058_v0 }
0x1c73   :  { %v1067_v63 = vpop.permute.xlu0 %1066 }
0x1c74   :  { %v1069_v1 = vmul.f32 %v1067_v63, %v1058_v0 }
0x1c76   :  { %1071 = vrot.lane.b32.xlu1 %v1069_v1, %s1515_s2 }
0x1ce8   :  { %v1072_v9 = vpop.permute.xlu1 %1071 }
0x1ce9   :  { %v1074_v10 = vadd.f32 %v1072_v9, %v1064_v7 }
0x1ceb   :  { %1487 = vtanh.f32 %v1074_v10  ;;  %v1137_v44 = vrot.slane %v1074_v10, 6 }
0x1cf1   :  { %v1488_v11 = vpop.eup %1487 }
0x1cf2   :  { %1077 = vrot.lane.b32.xlu2 %v1488_v11, %s1514_s0 }
0x1d4c   :  { %v1078_v15 = vpop.permute.xlu2 %1077 }
0x1d4d   :  { %v1080_v16 = vmul.f32 %v1078_v15, %v1058_v0 }
0x1d4f   :  { %1082 = vrot.lane.b32.xlu0 %v1080_v16, %s1515_s2 }
0x1dc1   :  { %v1815_v17 = vpop.permute.xlu0 %1082 }
0x1dc2   :  { %1370 = vmatmul.msk.f32.vlgmr.msra.gmra.mxu1 %vm29_vm0, %v1815_v17 }
0x1e3f   :  { %v1109_v18 = vpop.f32.mrf.mxu1 }
0x1e40   :  { %v1113_v19 = vrot.slane %v1109_v18, 6 }
0x1e42   :  { %v1115_v20 = vadd.f32 %v1113_v19, %v1650_v40 }
0x1e44   :  { %1489 = vtanh.f32 %v1115_v20  ;;  %v1371_v22 = vmul.f32 -1.442695, %v1115_v20 }
0x1e46   :  { %1491 = vpow2.f32 %v1371_v22 }
0x1e4a   :  { %v1490_v21 = vpop.eup %1489 }
0x1e4b   :  { %1141 = vrot.lane.b32.xlu1 %v1490_v21, %s1514_s0 }
0x1e4c   :  { %v1492_v23 = vpop.eup %1491 }
0x1e4d   :  { %v1119_v42 = vadd.f32 1.0, %v1492_v23 }
0x1e4f   :  { %1493 = vrcp.f32 %v1119_v42  ;;  %v1131_v31 = vand.u32 2147483648, %v1119_v42  ;;  %vm1125_vm3 = vweird.f32 %v1119_v42  ;;  %v1129_v28 = vand.u32 2147483647, %v1119_v42 }
0x1e51   :  { %v1132_v34 = vor.u32 1.1754944e-38, %v1131_v31  ;;  %vm1130_vm5 = vcmp.eq.f32.partialorder %v1129_v28, 8.507059e+37 }
0x1e55   :  { %v1494_v24 = vpop.eup %1493 }
0x1e56   :  { %v1121_v25 = vmul.f32 %v1494_v24, %v1119_v42  ;;  %vm1126_vm2 = vweird.f32 %v1494_v24 }
0x1e57   :  { %vm1127_vm4 = vmor %vm1125_vm3, %vm1126_vm2  ;;  %vm317_vm2 = vcmask 128004   ;;  %vm320_vm3 = vcmask 259204  }
0x1e58   :  { %v1122_v26 = vsub.f32 1.0, %v1121_v25 }
0x1e5a   :  { %v1123_v29 = vmul.f32 %v1494_v24, %v1122_v26 }
0x1e5c   :  { %v1124_v32 = vadd.f32 %v1494_v24, %v1123_v29 }
0x1e5e   :  { %v1128_v33 = vsel %vm1127_vm4, %v1494_v24, %v1124_v32  ;;  %vm396_vm4 = vcmask 130054  }
0x1e5f   :  { %v1133_v37 = vsel %vm1130_vm5, %v1132_v34, %v1128_v33  ;;  %vm399_vm5 = vcmask 261254  }
0x1e60   :  { %v1139_v45 = vmul.f32 %v1137_v44, %v1133_v37 }
0x1ebd   :  { %v1142_v35 = vpop.permute.xlu1 %1141 }
0x1ebe   :  { %v1144_v38 = vmul.f32 %v1142_v35, %v1133_v37 }
0x1ec0   :  { %1146 = vrot.lane.b32.xlu2 %v1144_v38, %s1515_s2 }
0x1f1a   :  { %v1147_v47 = vpop.permute.xlu2 %1146 }
0x1f1b   :  { %v1149_v48 = vadd.f32 %v1147_v47, %v1139_v45 }
0x1f1d   :  { %1495 = vtanh.f32 %v1149_v48  ;;  %v1212_v9 = vrot.slane %v1149_v48, 6 }
0x1f23   :  { %v1496_v51 = vpop.eup %1495 }
0x1f24   :  { %1152 = vrot.lane.b32.xlu0 %v1496_v51, %s1514_s0 }
0x1f96   :  { %v1153_v53 = vpop.permute.xlu0 %1152 }
0x1f97   :  { %v1155_v54 = vmul.f32 %v1153_v53, %v1133_v37 }
0x1f99   :  { %v1162_v55 = vrot.slane %v1155_v54, 2 }
0x1f9b   :  { %1163 = vrot.lane.b32.xlu1 %v1162_v55, %s1515_s2 }
0x200d   :  { %v1164_v56 = vpop.permute.xlu1 %1163 }
0x200e   :  { %1374 = vmatmul.msk.f32.vlgmr.msra.gmra.mxu2 %vm29_vm0, %v1164_v56 }
0x2091   :  { %v1184_v41 = vpop.f32.mrf.mxu2 }
0x2092   :  { %v1188_v57 = vrot.slane %v1184_v41, 4 }
0x2094   :  { %v1190_v58 = vadd.f32 %v1188_v57, %v1646_v39 }
0x2096   :  { %1497 = vtanh.f32 %v1190_v58  ;;  %v1375_v59 = vmul.f32 -1.442695, %v1190_v58 }
0x2098   :  { %1499 = vpow2.f32 %v1375_v59 }
0x209c   :  { %v1498_v3 = vpop.eup %1497 }
0x209d   :  { %1216 = vrot.lane.b32.xlu2 %v1498_v3, %s1514_s0 }
0x209e   :  { %v1500_v4 = vpop.eup %1499 }
0x209f   :  { %v1194_v60 = vadd.f32 1.0, %v1500_v4 }
0x20a1   :  { %1501 = vrcp.f32 %v1194_v60  ;;  %v1206_v62 = vand.u32 2147483648, %v1194_v60  ;;  %vm1200_vm9 = vweird.f32 %v1194_v60  ;;  %v1204_v63 = vand.u32 2147483647, %v1194_v60 }
0x20a3   :  { %v1207_v0 = vor.u32 1.1754944e-38, %v1206_v62  ;;  %vm1205_vm11 = vcmp.eq.f32.partialorder %v1204_v63, 8.507059e+37 }
0x20a7   :  { %v1502_v6 = vpop.eup %1501 }
0x20a8   :  { %v1196_v8 = vmul.f32 %v1502_v6, %v1194_v60  ;;  %vm1201_vm8 = vweird.f32 %v1502_v6 }
0x20a9   :  { %vm1202_vm10 = vmor %vm1200_vm9, %vm1201_vm8 }
0x20aa   :  { %v1197_v61 = vsub.f32 1.0, %v1196_v8 }
0x20ac   :  { %v1198_v27 = vmul.f32 %v1502_v6, %v1197_v61 }
0x20ae   :  { %v1199_v30 = vadd.f32 %v1502_v6, %v1198_v27 }
0x20b0   :  { %v1203_v39 = vsel %vm1202_vm10, %v1502_v6, %v1199_v30 }
0x20b1   :  { %v1208_v2 = vsel %vm1205_vm11, %v1207_v0, %v1203_v39 }
0x20b2   :  { %v1214_v10 = vmul.f32 %v1212_v9, %v1208_v2 }
0x20f7   :  { %v1217_v1 = vpop.permute.xlu2 %1216 }
0x20f8   :  { %v1219_v7 = vmul.f32 %v1217_v1, %v1208_v2 }
0x20fa   :  { %1221 = vrot.lane.b32.xlu0 %v1219_v7, %s1515_s2 }
0x216c   :  { %v1222_v11 = vpop.permute.xlu0 %1221 }
0x216d   :  { %v1224_v15 = vadd.f32 %v1222_v11, %v1214_v10 }
0x216f   :  { %1503 = vtanh.f32 %v1224_v15 }
0x2175   :  { %v1504_v16 = vpop.eup %1503 }
0x2176   :  { %1227 = vrot.lane.b32.xlu1 %v1504_v16, %s1514_s0 }
0x21e8   :  { %v1228_v18 = vpop.permute.xlu1 %1227 }
0x21e9   :  { %v1230_v19 = vmul.f32 %v1228_v18, %v1208_v2 }
0x21eb   :  { %v1237_v20 = vrot.slane %v1230_v19, 4 }
0x21ed   :  { %1238 = vrot.lane.b32.xlu2 %v1237_v20, %s1515_s2 }
0x2247   :  { %v1239_v21 = vpop.permute.xlu2 %1238 }
0x2248   :  { %1378 = vmatmul.msk.f32.vlgmr.msra.gmra.mxu3 %vm29_vm0, %v1239_v21 }
0x22cb   :  { %v1259_v22 = vpop.f32.mrf.mxu3 }
0x22cc   :  { %v1263_v23 = vrot.slane %v1259_v22, 2 }
0x22ce   :  { %v1265_v42 = vadd.f32 %v1263_v23, %v1650_v40 }
0x22d0   :  { %1505 = vtanh.f32 %v1265_v42  ;;  %v1379_v25 = vmul.f32 -1.442695, %v1265_v42 }
0x22d2   :  { %1507 = vpow2.f32 %v1379_v25 }
0x22d6   :  { %v1506_v24 = vpop.eup %1505 }
0x22d7   :  { %1291 = vrot.lane.b32.xlu0 %v1506_v24, %s1514_s0 }
0x22d8   :  { %v1508_v26 = vpop.eup %1507 }
0x22d9   :  { %v1269_v29 = vadd.f32 1.0, %v1508_v26 }
0x22db   :  { %1509 = vrcp.f32 %v1269_v29  ;;  %vm1275_vm12 = vweird.f32 %v1269_v29  ;;  %v1279_v34 = vand.u32 2147483647, %v1269_v29 }
0x22dd   :  { %vm1280_vm14 = vcmp.eq.f32.partialorder %v1279_v34, 8.507059e+37 }
0x22df   :  { %234 = vrot.lane.b32.xlu0 %v1682_v36, %s1515_s2  ;;  %v1281_v36 = vand.u32 2147483648, %v1269_v29 }
0x22e1   :  { %v1510_v40 = vpop.eup %1509  ;;  %v1282_v35 = vor.u32 1.1754944e-38, %v1281_v36 }
0x22e2   :  { %v1271_v32 = vmul.f32 %v1510_v40, %v1269_v29  ;;  %vm1276_vm0 = vweird.f32 %v1510_v40 }
0x22e3   :  { %vm1277_vm13 = vmor %vm1275_vm12, %vm1276_vm0 }
0x22e4   :  { %v1272_v31 = vsub.f32 1.0, %v1271_v32 }
0x22e6   :  { %v1273_v28 = vmul.f32 %v1510_v40, %v1272_v31 }
0x22e7   :  { %549 = vrot.lane.b32.xlu0 %v1739_v46, %s1515_s2 }
0x22e8   :  { %v1274_v33 = vadd.f32 %v1510_v40, %v1273_v28 }
0x22ea   :  { %v1278_v46 = vsel %vm1277_vm13, %v1510_v40, %v1274_v33 }
0x22eb   :  { %v1283_v37 = vsel %vm1280_vm14, %v1282_v35, %v1278_v46 }
0x22ef   :  { %856 = vrot.lane.b32.xlu0 %v1787_v49, %s1515_s2 }
0x22f7   :  { %1157 = vrot.lane.b32.xlu0 %v1155_v54, %s1515_s2 }
0x2349   :  { %v1292_v49 = vpop.permute.xlu0 %1291 }
0x234a   :  { %v1294_v38 = vmul.f32 %v1292_v49, %v1283_v37 }
0x234c   :  { %1296 = vrot.lane.b32.xlu1 %v1294_v38, %s1515_s2 }
0x2351   :  { %v235_v44 = vpop.permute.xlu0 %234 }
0x2352   :  { %1324 = vst.msk [vmem:[%s1976_s4] sm:$0xc] %vm238_vm15, %v235_v44 }
0x2353   :  { %1325 = vst.msk [vmem:[%s1976_s4 + $0x1a] sm:$0xc] %vm241_vm1, %v235_v44 }
0x2354   :  { %313 = vrot.lane.b32.xlu1 %v1695_v5, %s1515_s2  ;;  %v1287_v5 = vrot.slane %v1224_v15, 6 }
0x2356   :  { %v1289_v47 = vmul.f32 %v1287_v5, %v1283_v37 }
0x2359   :  { %v550_v45 = vpop.permute.xlu0 %549 }
0x235a   :  { %1340 = vst.msk [vmem:[%s1976_s4 + $0x8] sm:$0xc] %vm238_vm15, %v550_v45 }
0x235b   :  { %1341 = vst.msk [vmem:[%s1976_s4 + $0x12] sm:$0xc] %vm241_vm1, %v550_v45 }
0x235c   :  { %626 = vrot.lane.b32.xlu1 %v1752_v13, %s1515_s2 }
0x2361   :  { %v857_v48 = vpop.permute.xlu0 %856 }
0x2364   :  { %931 = vrot.lane.b32.xlu1 %v1796_v12, %s1515_s2 }
0x2369   :  { %v1158_v13 = vpop.permute.xlu0 %1157 }
0x236c   :  { %1232 = vrot.lane.b32.xlu1 %v1230_v19, %s1515_s2 }
0x23be   :  { %v1297_v51 = vpop.permute.xlu1 %1296 }
0x23bf   :  { %v1299_v53 = vadd.f32 %v1297_v51, %v1289_v47 }
0x23c1   :  { %1511 = vtanh.f32 %v1299_v53 }
0x23c6   :  { %v314_v54 = vpop.permute.xlu1 %313 }
0x23c7   :  { %v1512_v55 = vpop.eup %1511  ;;  %1328 = vst.msk [vmem:[%s1976_s4] sm:$0x30] %vm317_vm2, %v314_v54 }
0x23c8   :  { %1329 = vst.msk [vmem:[%s1976_s4 + $0x16] sm:$0x30] %vm320_vm3, %v314_v54  ;;  %1302 = vrot.lane.b32.xlu2 %v1512_v55, %s1514_s0 }
0x23c9   :  { %1372 = vst.msk [vmem:[%s1976_s4 + $0x18] sm:$0xc] %vm238_vm15, %v1158_v13 }
0x23ca   :  { %1373 = vst.msk [vmem:[%s1976_s4 + $0x2] sm:$0xc] %vm241_vm1, %v1158_v13 }
0x23ce   :  { %v627_v12 = vpop.permute.xlu1 %626 }
0x23cf   :  { %1344 = vst.msk [vmem:[%s1976_s4 + $0x8] sm:$0x30] %vm317_vm2, %v627_v12 }
0x23d0   :  { %1345 = vst.msk [vmem:[%s1976_s4 + $0xe] sm:$0x30] %vm320_vm3, %v627_v12  ;;  %392 = vrot.lane.b32.xlu2 %v1708_v43, %s1515_s2 }
0x23d1   :  { %1356 = vst.msk [vmem:[%s1976_s4 + $0x10] sm:$0xc] %vm238_vm15, %v857_v48 }
0x23d2   :  { %1357 = vst.msk [vmem:[%s1976_s4 + $0xa] sm:$0xc] %vm241_vm1, %v857_v48 }
0x23d6   :  { %v932_v56 = vpop.permute.xlu1 %931 }
0x23d7   :  { %1360 = vst.msk [vmem:[%s1976_s4 + $0x10] sm:$0x30] %vm317_vm2, %v932_v56 }
0x23d8   :  { %1361 = vst.msk [vmem:[%s1976_s4 + $0x6] sm:$0x30] %vm320_vm3, %v932_v56  ;;  %703 = vrot.lane.b32.xlu2 %v1765_v50, %s1515_s2 }
0x23de   :  { %v1233_v43 = vpop.permute.xlu1 %1232 }
0x23df   :  { %1376 = vst.msk [vmem:[%s1976_s4 + $0x18] sm:$0x30] %vm317_vm2, %v1233_v43 }
0x23e0   :  { %1377 = vst.msk [vmem:[%s1976_s4 - $0x2] sm:$0x30] %vm320_vm3, %v1233_v43  ;;  %1006 = vrot.lane.b32.xlu2 %v1805_v52, %s1515_s2 }
0x2422   :  { %v1303_v41 = vpop.permute.xlu2 %1302 }
0x2423   :  { %v1305_v57 = vmul.f32 %v1303_v41, %v1283_v37 }
0x2425   :  { %1307 = vrot.lane.b32.xlu2 %v1305_v57, %s1515_s2 }
0x242a   :  { %v393_v50 = vpop.permute.xlu2 %392 }
0x242b   :  { %1332 = vst.msk [vmem:[%s1976_s4] sm:$0xc0] %vm396_vm4, %v393_v50 }
0x242c   :  { %1333 = vst.msk [vmem:[%s1976_s4 + $0x12] sm:$0xc0] %vm399_vm5, %v393_v50 }
0x242d   :  { %1368 = vst.msk [vmem:[%s1976_s4 + $0x18] sm:$0x3] %vm159_vm6, %v1815_v17 }
0x242e   :  { %1369 = vst.msk [vmem:[%s1976_s4 + $0x6] sm:$0x3] %vm162_vm7, %v1815_v17 }
0x2432   :  { %v704_v52 = vpop.permute.xlu2 %703 }
0x2433   :  { %1348 = vst.msk [vmem:[%s1976_s4 + $0x8] sm:$0xc0] %vm396_vm4, %v704_v52 }
0x2434   :  { %1349 = vst.msk [vmem:[%s1976_s4 + $0xa] sm:$0xc0] %vm399_vm5, %v704_v52 }
0x2435   :  { %1352 = vst.msk [vmem:[%s1976_s4 + $0x10] sm:$0x3] %vm159_vm6, %v1779_v14 }
0x2436   :  { %1353 = vst.msk [vmem:[%s1976_s4 + $0xe] sm:$0x3] %vm162_vm7, %v1779_v14 }
0x243a   :  { %v1007_v17 = vpop.permute.xlu2 %1006 }
0x243b   :  { %1364 = vst.msk [vmem:[%s1976_s4 + $0x10] sm:$0xc0] %vm396_vm4, %v1007_v17 }
0x243c   :  { %1365 = vst.msk [vmem:[%s1976_s4 + $0x2] sm:$0xc0] %vm399_vm5, %v1007_v17 }
0x247f   :  { %v1308_v58 = vpop.permute.xlu2 %1307 }
0x2480   :  { %1380 = vst.msk [vmem:[%s1976_s4 + $0x18] sm:$0xc0] %vm396_vm4, %v1308_v58 }
0x2481   :  { %1311 = vst.msk [vmem:[%s1976_s4 - $0x6] sm:$0xc0] %vm399_vm5, %v1308_v58 }

// kernel: bidaf_forward.10
= control target key start
LH: loop header
LB: loop body
LE: loop exit
PB: predicated region body
PF: predicated region fallthrough
CT: control target
= control target key end

     0   :  { %v1509_v21 = vmov 0.0   ;;  %v74_v26 = vlaneseq  ;;  %vm159_vm5 = vcmask 123904   ;;  %vm93_vm6 = vcmask 261120   ;;  %s2000_s1 = inlined_call_operand.vmem [shape: f32[128,128], index: 1, kind: input, shape index: {}]   ;;  %s2001_s2 = inlined_call_operand.vmem [shape: f32[1,128], index: 2, kind: input, shape index: {}]   ;;  %s2002_s3 = inlined_call_operand.vmem [shape: f32[32,128], index: 3, kind: input, shape index: {}]   ;;  %s2003_s0 = inlined_call_operand.vmem [shape: f32[32,128], index: 0, kind: input, shape index: {}]   ;;  %s2004_s4 = inlined_call_operand.vmem [shape: f32[16,2,32], index: 4, kind: output, shape index: {}]  }
   0x1   :  { %v36_v0 = vld [vmem:[%s2000_s1 + $0x78] sm:$0xff]  ;;  %v35_v1 = vld [vmem:[%s2000_s1 + $0x70] sm:$0xff]  ;;  %v34_v2 = vld [vmem:[%s2000_s1 + $0x68] sm:$0xff]  ;;  %vm162_vm7 = vcmask 255104  }
   0x2   :  { %41 = vmatpush.msra.mxu0 %v36_v0  ;;  %v33_v3 = vld [vmem:[%s2000_s1 + $0x60] sm:$0xff]  ;;  %v32_v4 = vld [vmem:[%s2000_s1 + $0x58] sm:$0xff]  ;;  %v31_v5 = vld [vmem:[%s2000_s1 + $0x50] sm:$0xff]  ;;  %v75_v29 = vand.u32 127, %v74_v26 }
   0x3   :  { %v30_v6 = vld [vmem:[%s2000_s1 + $0x48] sm:$0xff]  ;;  %v29_v7 = vld [vmem:[%s2000_s1 + $0x40] sm:$0xff]  ;;  %v28_v8 = vld [vmem:[%s2000_s1 + $0x38] sm:$0xff] }
   0x4   :  { %42 = vmatpush.msra.mxu0 %v35_v1  ;;  %v27_v9 = vld [vmem:[%s2000_s1 + $0x30] sm:$0xff]  ;;  %v1570_v10 = vld [vmem:[%s2002_s3 + $0x18] sm:$0xff]  ;;  %v26_v11 = vld [vmem:[%s2000_s1 + $0x28] sm:$0xff]  ;;  %v80_v31 = vand.u32 31, %v75_v29 }
   0x5   :  { %109 = vmatpush.msra.mxu1 %v1570_v10  ;;  %181 = vmatpush.msra.mxu2 %v1570_v10  ;;  %v25_v12 = vld [vmem:[%s2000_s1 + $0x20] sm:$0xff]  ;;  %v24_v13 = vld [vmem:[%s2000_s1 + $0x18] sm:$0xff]  ;;  %v1587_v14 = vld [vmem:[%s2002_s3 + $0x10] sm:$0xff] }
   0x6   :  { %43 = vmatpush.msra.mxu0 %v34_v2  ;;  %260 = vmatpush.msra.mxu3 %v1570_v10  ;;  %v23_v15 = vld [vmem:[%s2000_s1 + $0x10] sm:$0xff]  ;;  %v1596_v16 = vld [vmem:[%s2002_s3 + $0x8] sm:$0xff]  ;;  %v1602_v17 = vld [vmem:[%s2002_s3] sm:$0xff]  ;;  %vm1648_vm0 = vcmp.lt.s32.totalorder %v80_v31, 16 }
   0x7   :  { %110 = vmatpush.msra.mxu1 %v1587_v14  ;;  %182 = vmatpush.msra.mxu2 %v1587_v14  ;;  %v22_v18 = vld [vmem:[%s2000_s1 + $0x8] sm:$0xff]  ;;  %v21_v19 = vld [vmem:[%s2000_s1] sm:$0xff]  ;;  %v19_v23 = vld [vmem:[%s2003_s0 + $0x10] sm:$0xff] }
   0x8   :  { %44 = vmatpush.msra.mxu0 %v33_v3  ;;  %261 = vmatpush.msra.mxu3 %v1587_v14  ;;  %v17_v20 = vld [vmem:[%s2003_s0] sm:$0xff]  ;;  %v18_v22 = vld [vmem:[%s2003_s0 + $0x8] sm:$0xff]  ;;  %v20_v24 = vld [vmem:[%s2003_s0 + $0x18] sm:$0xff]  ;;  %s1510_s0 = smov 64  }
   0x9   :  { %111 = vmatpush.msra.mxu1 %v1596_v16  ;;  %183 = vmatpush.msra.mxu2 %v1596_v16  ;;  %v1380_v27 = vld [vmem:[%s2001_s2] ss:$0 sm:$0xff]  ;;  %s1511_s2 = smov 32  }
   0xa   :  { %45 = vmatpush.msra.mxu0 %v32_v4  ;;  %262 = vmatpush.msra.mxu3 %v1596_v16 }
   0xb   :  { %112 = vmatpush.msra.mxu1 %v1602_v17  ;;  %184 = vmatpush.msra.mxu2 %v1602_v17 }
   0xc   :  { %46 = vmatpush.msra.mxu0 %v31_v5  ;;  %113 = vmatmul.f32.vlgmr.msra.gmra.mxu1 %v1509_v21 }
   0xd   :  { %263 = vmatpush.msra.mxu3 %v1602_v17  ;;  %339 = vmatpush.msrb.mxu1 %v1570_v10 }
   0xe   :  { %47 = vmatpush.msra.mxu0 %v30_v6  ;;  %422 = vmatpush.msrb.mxu2 %v1570_v10 }
   0xf   :  { %340 = vmatpush.msrb.mxu1 %v1587_v14  ;;  %496 = vmatpush.msrb.mxu3 %v1570_v10 }
  0x10   :  { %48 = vmatpush.msra.mxu0 %v29_v7  ;;  %423 = vmatpush.msrb.mxu2 %v1587_v14 }
  0x11   :  { %341 = vmatpush.msrb.mxu1 %v1596_v16  ;;  %497 = vmatpush.msrb.mxu3 %v1587_v14 }
  0x12   :  { %49 = vmatpush.msra.mxu0 %v28_v8  ;;  %424 = vmatpush.msrb.mxu2 %v1596_v16 }
  0x13   :  { %342 = vmatpush.msrb.mxu1 %v1602_v17  ;;  %498 = vmatpush.msrb.mxu3 %v1596_v16 }
  0x14   :  { %50 = vmatpush.msra.mxu0 %v27_v9  ;;  %425 = vmatpush.msrb.mxu2 %v1602_v17 }
  0x15   :  { %573 = vmatpush.msra.mxu1 %v1570_v10  ;;  %499 = vmatpush.msrb.mxu3 %v1602_v17 }
  0x16   :  { %51 = vmatpush.msra.mxu0 %v26_v11 }
  0x17   :  { %574 = vmatpush.msra.mxu1 %v1587_v14 }
  0x18   :  { %52 = vmatpush.msra.mxu0 %v25_v12 }
  0x19   :  { %575 = vmatpush.msra.mxu1 %v1596_v16 }
  0x1a   :  { %53 = vmatpush.msra.mxu0 %v24_v13 }
  0x1b   :  { %576 = vmatpush.msra.mxu1 %v1602_v17 }
  0x1c   :  { %54 = vmatpush.msra.mxu0 %v23_v15 }
  0x1e   :  { %55 = vmatpush.msra.mxu0 %v22_v18 }
  0x20   :  { %56 = vmatpush.msra.mxu0 %v21_v19 }
  0x21   :  { %57 = vmatmul.f32.vlgmr.msra.gmra.mxu0 %v17_v20 }
  0x29   :  { %60 = vmatmul.f32.gmra.mxu0 %v18_v22 }
  0x31   :  { %63 = vmatmul.f32.gmra.mxu0 %v19_v23 }
  0x39   :  { %66 = vmatmul.f32.gmra.mxu0 %v20_v24 }
  0x89   :  { %v114_v49 = vpop.f32.mrf.mxu1 }
  0x9e   :  { %v58_v25 = vpop.f32.mrf.mxu0 }
  0x9f   :  { %v59_v41 = vadd.f32 %v1380_v27, %v58_v25 }
  0xa1   :  { %v1012_v46 = vrot.slane %v59_v41, 6  ;;  %v1087_v47 = vrot.slane %v59_v41, 2 }
  0xa6   :  { %v61_v28 = vpop.f32.mrf.mxu0 }
  0xa7   :  { %v62_v30 = vadd.f32 %v1380_v27, %v61_v28 }
  0xa9   :  { %v711_v35 = vrot.slane %v62_v30, 6  ;;  %v786_v36 = vrot.slane %v62_v30, 2 }
  0xae   :  { %v64_v32 = vpop.f32.mrf.mxu0 }
  0xaf   :  { %v65_v34 = vadd.f32 %v1380_v27, %v64_v32 }
  0xb1   :  { %v402_v37 = vrot.slane %v65_v34, 6  ;;  %v479_v38 = vrot.slane %v65_v34, 2  ;;  %v1654_v39 = vsel %vm1648_vm0, %v65_v34, %v711_v35  ;;  %v1658_v40 = vsel %vm1648_vm0, %v65_v34, %v786_v36 }
  0xb3   :  { %v1662_v42 = vsel %vm1648_vm0, %v62_v30, %v402_v37  ;;  %v1666_v43 = vsel %vm1648_vm0, %v62_v30, %v479_v38 }
  0xb6   :  { %v67_v44 = vpop.f32.mrf.mxu0 }
  0xb7   :  { %v68_v45 = vadd.f32 %v1380_v27, %v67_v44 }
  0xb9   :  { %v90_v48 = vrot.slane %v68_v45, 6  ;;  %v164_v50 = vrot.slane %v68_v45, 2  ;;  %v1670_v51 = vsel %vm1648_vm0, %v68_v45, %v1012_v46  ;;  %v1674_v52 = vsel %vm1648_vm0, %v68_v45, %v1087_v47 }
  0xbb   :  { %v1678_v53 = vsel %vm1648_vm0, %v59_v41, %v90_v48  ;;  %v1682_v54 = vsel %vm1648_vm0, %v59_v41, %v164_v50 }
  0xbc   :  { %v117_v55 = vadd.f32 %v114_v49, %v1678_v53 }
  0xbe   :  { %1381 = vtanh.f32 %v117_v55  ;;  %v1316_v57 = vmul.f32 -1.442695, %v117_v55 }
  0xc0   :  { %1383 = vpow2.f32 %v1316_v57 }
  0xc4   :  { %v1382_v56 = vpop.eup %1381 }
  0xc5   :  { %140 = vrot.lane.b32.xlu0 %v1382_v56, %s1510_s0 }
  0xc6   :  { %v1384_v58 = vpop.eup %1383 }
  0xc7   :  { %v121_v59 = vadd.f32 1.0, %v1384_v58 }
  0xc9   :  { %1385 = vrcp.f32 %v121_v59  ;;  %v133_v1 = vand.u32 2147483648, %v121_v59  ;;  %vm127_vm2 = vweird.f32 %v121_v59  ;;  %v131_v2 = vand.u32 2147483647, %v121_v59 }
  0xcb   :  { %v134_v4 = vor.u32 1.1754944e-38, %v133_v1  ;;  %vm132_vm4 = vcmp.eq.f32.partialorder %v131_v2, 8.507059e+37 }
  0xcf   :  { %v1386_v60 = vpop.eup %1385 }
  0xd0   :  { %v123_v61 = vmul.f32 %v1386_v60, %v121_v59  ;;  %vm128_vm1 = vweird.f32 %v1386_v60 }
  0xd1   :  { %vm129_vm3 = vmor %vm127_vm2, %vm128_vm1 }
  0xd2   :  { %v124_v62 = vsub.f32 1.0, %v123_v61 }
  0xd4   :  { %v125_v63 = vmul.f32 %v1386_v60, %v124_v62 }
  0xd6   :  { %v126_v0 = vadd.f32 %v1386_v60, %v125_v63 }
  0xd8   :  { %v130_v3 = vsel %vm129_vm3, %v1386_v60, %v126_v0 }
  0xd9   :  { %v135_v6 = vsel %vm132_vm4, %v134_v4, %v130_v3 }
  0xda   :  { %v138_v8 = vmul.f32 0.0, %v135_v6 }
 0x137   :  { %v141_v5 = vpop.permute.xlu0 %140 }
 0x138   :  { %v143_v7 = vmul.f32 %v141_v5, %v135_v6 }
 0x13a   :  { %145 = vrot.lane.b32.xlu0 %v143_v7, %s1511_s2 }
 0x1ac   :  { %v146_v9 = vpop.permute.xlu0 %145 }
 0x1ad   :  { %v148_v11 = vadd.f32 %v146_v9, %v138_v8 }
 0x1af   :  { %1387 = vtanh.f32 %v148_v11  ;;  %v214_v38 = vrot.slane %v148_v11, 6 }
 0x1b5   :  { %v1388_v12 = vpop.eup %1387 }
 0x1b6   :  { %151 = vrot.lane.b32.xlu1 %v1388_v12, %s1510_s0 }
 0x228   :  { %v152_v13 = vpop.permute.xlu1 %151 }
 0x229   :  { %v154_v15 = vmul.f32 %v152_v13, %v135_v6 }
 0x22b   :  { %156 = vrot.lane.b32.xlu1 %v154_v15, %s1511_s2 }
 0x29d   :  { %v157_v18 = vpop.permute.xlu1 %156 }
 0x29e   :  { %160 = vst.msk [vmem:[%s2004_s4] sm:$0x3] %vm159_vm5, %v157_v18  ;;  %1318 = vmatmul.msk.f32.vlgmr.msra.gmra.mxu2 %vm93_vm6, %v157_v18 }
 0x29f   :  { %1317 = vst.msk [vmem:[%s2004_s4 + $0x1e] sm:$0x3] %vm162_vm7, %v157_v18  ;;  %650 = vmatpush.msra.mxu2 %v1570_v10 }
 0x2a1   :  { %651 = vmatpush.msra.mxu2 %v1587_v14 }
 0x2a3   :  { %652 = vmatpush.msra.mxu2 %v1596_v16 }
 0x2a5   :  { %653 = vmatpush.msra.mxu2 %v1602_v17 }
 0x321   :  { %v186_v19 = vpop.f32.mrf.mxu2 }
 0x322   :  { %v190_v20 = vrot.slane %v186_v19, 6 }
 0x324   :  { %v192_v21 = vadd.f32 %v190_v20, %v1682_v54 }
 0x326   :  { %1389 = vtanh.f32 %v192_v21  ;;  %v1319_v23 = vmul.f32 -1.442695, %v192_v21 }
 0x328   :  { %1391 = vpow2.f32 %v1319_v23 }
 0x32c   :  { %v1390_v22 = vpop.eup %1389 }
 0x32d   :  { %218 = vrot.lane.b32.xlu2 %v1390_v22, %s1510_s0 }
 0x32e   :  { %v1392_v24 = vpop.eup %1391 }
 0x32f   :  { %v196_v25 = vadd.f32 1.0, %v1392_v24 }
 0x331   :  { %1393 = vrcp.f32 %v196_v25  ;;  %v208_v31 = vand.u32 2147483648, %v196_v25  ;;  %vm202_vm9 = vweird.f32 %v196_v25  ;;  %v206_v32 = vand.u32 2147483647, %v196_v25 }
 0x333   :  { %v209_v34 = vor.u32 1.1754944e-38, %v208_v31  ;;  %vm207_vm11 = vcmp.eq.f32.partialorder %v206_v32, 8.507059e+37 }
 0x337   :  { %v1394_v26 = vpop.eup %1393 }
 0x338   :  { %v198_v27 = vmul.f32 %v1394_v26, %v196_v25  ;;  %vm203_vm8 = vweird.f32 %v1394_v26 }
 0x339   :  { %vm204_vm10 = vmor %vm202_vm9, %vm203_vm8 }
 0x33a   :  { %v199_v28 = vsub.f32 1.0, %v198_v27 }
 0x33c   :  { %v200_v29 = vmul.f32 %v1394_v26, %v199_v28 }
 0x33e   :  { %v201_v30 = vadd.f32 %v1394_v26, %v200_v29 }
 0x340   :  { %v205_v33 = vsel %vm204_vm10, %v1394_v26, %v201_v30 }
 0x341   :  { %v210_v36 = vsel %vm207_vm11, %v209_v34, %v205_v33 }
 0x342   :  { %v216_v41 = vmul.f32 %v214_v38, %v210_v36 }
 0x387   :  { %v219_v35 = vpop.permute.xlu2 %218 }
 0x388   :  { %v221_v37 = vmul.f32 %v219_v35, %v210_v36 }
 0x38a   :  { %223 = vrot.lane.b32.xlu2 %v221_v37, %s1511_s2 }
 0x3e4   :  { %v224_v44 = vpop.permute.xlu2 %223 }
 0x3e5   :  { %v226_v45 = vadd.f32 %v224_v44, %v216_v41 }
 0x3e7   :  { %1395 = vtanh.f32 %v226_v45  ;;  %v293_v9 = vrot.slane %v226_v45, 6 }
 0x3ed   :  { %v1396_v46 = vpop.eup %1395 }
 0x3ee   :  { %229 = vrot.lane.b32.xlu0 %v1396_v46, %s1510_s0 }
 0x460   :  { %v230_v47 = vpop.permute.xlu0 %229 }
 0x461   :  { %v1706_v48 = vmul.f32 %v230_v47, %v210_v36 }
 0x463   :  { %v243_v49 = vrot.slane %v1706_v48, 2 }
 0x465   :  { %244 = vrot.lane.b32.xlu1 %v243_v49, %s1511_s2 }
 0x4d7   :  { %v245_v50 = vpop.permute.xlu1 %244 }
 0x4d8   :  { %1322 = vmatmul.msk.f32.vlgmr.msra.gmra.mxu3 %vm93_vm6, %v245_v50 }
 0x4d9   :  { %731 = vmatpush.msra.mxu3 %v1570_v10 }
 0x4db   :  { %732 = vmatpush.msra.mxu3 %v1587_v14 }
 0x4dd   :  { %733 = vmatpush.msra.mxu3 %v1596_v16 }
 0x4df   :  { %734 = vmatpush.msra.mxu3 %v1602_v17 }
 0x55b   :  { %v265_v55 = vpop.f32.mrf.mxu3 }
 0x55c   :  { %v269_v56 = vrot.slane %v265_v55, 4 }
 0x55e   :  { %v271_v57 = vadd.f32 %v269_v56, %v1678_v53 }
 0x560   :  { %1397 = vtanh.f32 %v271_v57  ;;  %v1323_v59 = vmul.f32 -1.442695, %v271_v57 }
 0x562   :  { %1399 = vpow2.f32 %v1323_v59 }
 0x566   :  { %v1398_v58 = vpop.eup %1397 }
 0x567   :  { %297 = vrot.lane.b32.xlu2 %v1398_v58, %s1510_s0 }
 0x568   :  { %v1400_v60 = vpop.eup %1399 }
 0x569   :  { %v275_v61 = vadd.f32 1.0, %v1400_v60 }
 0x56b   :  { %1401 = vrcp.f32 %v275_v61  ;;  %v287_v3 = vand.u32 2147483648, %v275_v61  ;;  %vm281_vm13 = vweird.f32 %v275_v61  ;;  %v285_v4 = vand.u32 2147483647, %v275_v61 }
 0x56d   :  { %v288_v5 = vor.u32 1.1754944e-38, %v287_v3  ;;  %vm286_vm15 = vcmp.eq.f32.partialorder %v285_v4, 8.507059e+37 }
 0x571   :  { %v1402_v62 = vpop.eup %1401 }
 0x572   :  { %v277_v63 = vmul.f32 %v1402_v62, %v275_v61  ;;  %vm282_vm12 = vweird.f32 %v1402_v62 }
 0x573   :  { %vm283_vm14 = vmor %vm281_vm13, %vm282_vm12 }
 0x574   :  { %v278_v0 = vsub.f32 1.0, %v277_v63 }
 0x576   :  { %v279_v1 = vmul.f32 %v1402_v62, %v278_v0 }
 0x578   :  { %v280_v2 = vadd.f32 %v1402_v62, %v279_v1 }
 0x57a   :  { %v284_v53 = vsel %vm283_vm14, %v1402_v62, %v280_v2 }
 0x57b   :  { %v289_v7 = vsel %vm286_vm15, %v288_v5, %v284_v53 }
 0x57c   :  { %v295_v11 = vmul.f32 %v293_v9, %v289_v7 }
 0x5c1   :  { %v298_v6 = vpop.permute.xlu2 %297 }
 0x5c2   :  { %v300_v8 = vmul.f32 %v298_v6, %v289_v7 }
 0x5c4   :  { %302 = vrot.lane.b32.xlu0 %v300_v8, %s1511_s2 }
 0x636   :  { %v303_v12 = vpop.permute.xlu0 %302 }
 0x637   :  { %v305_v13 = vadd.f32 %v303_v12, %v295_v11 }
 0x639   :  { %1403 = vtanh.f32 %v305_v13  ;;  %v372_v44 = vrot.slane %v305_v13, 6 }
 0x63f   :  { %v1404_v15 = vpop.eup %1403 }
 0x640   :  { %308 = vrot.lane.b32.xlu1 %v1404_v15, %s1510_s0 }
 0x6b2   :  { %v309_v18 = vpop.permute.xlu1 %308 }
 0x6b3   :  { %v1719_v19 = vmul.f32 %v309_v18, %v289_v7 }
 0x6b5   :  { %v322_v20 = vrot.slane %v1719_v19, 4 }
 0x6b7   :  { %323 = vrot.lane.b32.xlu2 %v322_v20, %s1511_s2 }
 0x711   :  { %v324_v21 = vpop.permute.xlu2 %323 }
 0x712   :  { %1326 = vmatmul.msk.f32.vlgmr.msrb.gmra.mxu1 %vm93_vm6, %v324_v21 }
 0x713   :  { %803 = vmatpush.msrb.mxu1 %v1570_v10 }
 0x715   :  { %804 = vmatpush.msrb.mxu1 %v1587_v14 }
 0x717   :  { %805 = vmatpush.msrb.mxu1 %v1596_v16 }
 0x719   :  { %806 = vmatpush.msrb.mxu1 %v1602_v17 }
 0x78f   :  { %v344_v22 = vpop.f32.mrf.mxu1 }
 0x790   :  { %v348_v23 = vrot.slane %v344_v22, 2 }
 0x792   :  { %v350_v24 = vadd.f32 %v348_v23, %v1682_v54 }
 0x794   :  { %1405 = vtanh.f32 %v350_v24  ;;  %v1327_v26 = vmul.f32 -1.442695, %v350_v24 }
 0x796   :  { %1407 = vpow2.f32 %v1327_v26 }
 0x79a   :  { %v1406_v25 = vpop.eup %1405 }
 0x79b   :  { %376 = vrot.lane.b32.xlu0 %v1406_v25, %s1510_s0 }
 0x79c   :  { %v1408_v27 = vpop.eup %1407 }
 0x79d   :  { %v354_v28 = vadd.f32 1.0, %v1408_v27 }
 0x79f   :  { %1409 = vrcp.f32 %v354_v28  ;;  %v366_v34 = vand.u32 2147483648, %v354_v28  ;;  %vm360_vm1 = vweird.f32 %v354_v28  ;;  %v364_v35 = vand.u32 2147483647, %v354_v28 }
 0x7a1   :  { %v367_v36 = vor.u32 1.1754944e-38, %v366_v34  ;;  %vm365_vm3 = vcmp.eq.f32.partialorder %v364_v35, 8.507059e+37 }
 0x7a5   :  { %v1410_v29 = vpop.eup %1409 }
 0x7a6   :  { %v356_v30 = vmul.f32 %v1410_v29, %v354_v28  ;;  %vm361_vm0 = vweird.f32 %v1410_v29 }
 0x7a7   :  { %vm362_vm2 = vmor %vm360_vm1, %vm361_vm0 }
 0x7a8   :  { %v357_v31 = vsub.f32 1.0, %v356_v30 }
 0x7aa   :  { %v358_v32 = vmul.f32 %v1410_v29, %v357_v31 }
 0x7ac   :  { %v359_v33 = vadd.f32 %v1410_v29, %v358_v32 }
 0x7ae   :  { %v363_v54 = vsel %vm362_vm2, %v1410_v29, %v359_v33 }
 0x7af   :  { %v368_v38 = vsel %vm365_vm3, %v367_v36, %v363_v54 }
 0x7b0   :  { %v374_v45 = vmul.f32 %v372_v44, %v368_v38 }
 0x80d   :  { %v377_v37 = vpop.permute.xlu0 %376 }
 0x80e   :  { %v379_v41 = vmul.f32 %v377_v37, %v368_v38 }
 0x810   :  { %381 = vrot.lane.b32.xlu1 %v379_v41, %s1511_s2 }
 0x882   :  { %v382_v46 = vpop.permute.xlu1 %381 }
 0x883   :  { %v384_v47 = vadd.f32 %v382_v46, %v374_v45 }
 0x885   :  { %1411 = vtanh.f32 %v384_v47  ;;  %v452_v12 = vrot.slane %v384_v47, 6 }
 0x88b   :  { %v1412_v49 = vpop.eup %1411 }
 0x88c   :  { %387 = vrot.lane.b32.xlu2 %v1412_v49, %s1510_s0 }
 0x8e6   :  { %v388_v50 = vpop.permute.xlu2 %387 }
 0x8e7   :  { %v1732_v55 = vmul.f32 %v388_v50, %v368_v38 }
 0x8e9   :  { %v405_v56 = vrot.slane %v1732_v55, 6 }
 0x8eb   :  { %406 = vrot.lane.b32.xlu0 %v405_v56, %s1511_s2 }
 0x95d   :  { %v407_v57 = vpop.permute.xlu0 %406 }
 0x95e   :  { %1330 = vmatmul.msk.f32.vlgmr.msrb.gmra.mxu2 %vm93_vm6, %v407_v57 }
 0x95f   :  { %878 = vmatpush.msrb.mxu2 %v1570_v10 }
 0x961   :  { %879 = vmatpush.msrb.mxu2 %v1587_v14 }
 0x963   :  { %880 = vmatpush.msrb.mxu2 %v1596_v16 }
 0x965   :  { %881 = vmatpush.msrb.mxu2 %v1602_v17 }
 0x9e1   :  { %v427_v58 = vpop.f32.mrf.mxu2 }
 0x9e2   :  { %v430_v59 = vadd.f32 %v427_v58, %v1662_v42 }
 0x9e4   :  { %1413 = vtanh.f32 %v430_v59  ;;  %v1331_v61 = vmul.f32 -1.442695, %v430_v59 }
 0x9e6   :  { %1415 = vpow2.f32 %v1331_v61 }
 0x9ea   :  { %v1414_v60 = vpop.eup %1413 }
 0x9eb   :  { %456 = vrot.lane.b32.xlu1 %v1414_v60, %s1510_s0 }
 0x9ec   :  { %v1416_v62 = vpop.eup %1415 }
 0x9ed   :  { %v434_v63 = vadd.f32 1.0, %v1416_v62 }
 0x9ef   :  { %1417 = vrcp.f32 %v434_v63  ;;  %v446_v53 = vand.u32 2147483648, %v434_v63  ;;  %vm440_vm8 = vweird.f32 %v434_v63  ;;  %v444_v5 = vand.u32 2147483647, %v434_v63 }
 0x9f1   :  { %v447_v7 = vor.u32 1.1754944e-38, %v446_v53  ;;  %vm445_vm10 = vcmp.eq.f32.partialorder %v444_v5, 8.507059e+37 }
 0x9f5   :  { %v1418_v0 = vpop.eup %1417 }
 0x9f6   :  { %v436_v1 = vmul.f32 %v1418_v0, %v434_v63  ;;  %vm441_vm4 = vweird.f32 %v1418_v0 }
 0x9f7   :  { %vm442_vm9 = vmor %vm440_vm8, %vm441_vm4 }
 0x9f8   :  { %v437_v2 = vsub.f32 1.0, %v436_v1 }
 0x9fa   :  { %v438_v3 = vmul.f32 %v1418_v0, %v437_v2 }
 0x9fc   :  { %v439_v4 = vadd.f32 %v1418_v0, %v438_v3 }
 0x9fe   :  { %v443_v6 = vsel %vm442_vm9, %v1418_v0, %v439_v4 }
 0x9ff   :  { %v448_v9 = vsel %vm445_vm10, %v447_v7, %v443_v6 }
 0xa00   :  { %v454_v13 = vmul.f32 %v452_v12, %v448_v9 }
 0xa5d   :  { %v457_v8 = vpop.permute.xlu1 %456 }
 0xa5e   :  { %v459_v11 = vmul.f32 %v457_v8, %v448_v9 }
 0xa60   :  { %461 = vrot.lane.b32.xlu2 %v459_v11, %s1511_s2 }
 0xaba   :  { %v462_v15 = vpop.permute.xlu2 %461 }
 0xabb   :  { %v464_v18 = vadd.f32 %v462_v15, %v454_v13 }
 0xabd   :  { %1419 = vtanh.f32 %v464_v18  ;;  %v529_v46 = vrot.slane %v464_v18, 6 }
 0xac3   :  { %v1420_v20 = vpop.eup %1419 }
 0xac4   :  { %467 = vrot.lane.b32.xlu0 %v1420_v20, %s1510_s0 }
 0xb36   :  { %v468_v21 = vpop.permute.xlu0 %467 }
 0xb37   :  { %v470_v22 = vmul.f32 %v468_v21, %v448_v9 }
 0xb39   :  { %472 = vrot.lane.b32.xlu1 %v470_v22, %s1511_s2 }
 0xbab   :  { %v473_v23 = vpop.permute.xlu1 %472 }
 0xbac   :  { %1332 = vst.msk [vmem:[%s2004_s4 + $0x8] sm:$0x3] %vm159_vm5, %v473_v23  ;;  %1334 = vmatmul.msk.f32.vlgmr.msrb.gmra.mxu3 %vm93_vm6, %v473_v23 }
 0xbad   :  { %1333 = vst.msk [vmem:[%s2004_s4 + $0x16] sm:$0x3] %vm162_vm7, %v473_v23  ;;  %953 = vmatpush.msrb.mxu3 %v1570_v10 }
 0xbaf   :  { %954 = vmatpush.msrb.mxu3 %v1587_v14 }
 0xbb1   :  { %955 = vmatpush.msrb.mxu3 %v1596_v16 }
 0xbb3   :  { %956 = vmatpush.msrb.mxu3 %v1602_v17 }
 0xc2f   :  { %v501_v24 = vpop.f32.mrf.mxu3 }
 0xc30   :  { %v505_v25 = vrot.slane %v501_v24, 6 }
 0xc32   :  { %v507_v26 = vadd.f32 %v505_v25, %v1666_v43 }
 0xc34   :  { %1421 = vtanh.f32 %v507_v26  ;;  %v1335_v28 = vmul.f32 -1.442695, %v507_v26 }
 0xc36   :  { %1423 = vpow2.f32 %v1335_v28 }
 0xc3a   :  { %v1422_v27 = vpop.eup %1421 }
 0xc3b   :  { %533 = vrot.lane.b32.xlu2 %v1422_v27, %s1510_s0 }
 0xc3c   :  { %v1424_v29 = vpop.eup %1423 }
 0xc3d   :  { %v511_v30 = vadd.f32 1.0, %v1424_v29 }
 0xc3f   :  { %1425 = vrcp.f32 %v511_v30  ;;  %v523_v54 = vand.u32 2147483648, %v511_v30  ;;  %vm517_vm12 = vweird.f32 %v511_v30  ;;  %v521_v36 = vand.u32 2147483647, %v511_v30 }
 0xc41   :  { %v524_v38 = vor.u32 1.1754944e-38, %v523_v54  ;;  %vm522_vm14 = vcmp.eq.f32.partialorder %v521_v36, 8.507059e+37 }
 0xc45   :  { %v1426_v31 = vpop.eup %1425 }
 0xc46   :  { %v513_v32 = vmul.f32 %v1426_v31, %v511_v30  ;;  %vm518_vm11 = vweird.f32 %v1426_v31 }
 0xc47   :  { %vm519_vm13 = vmor %vm517_vm12, %vm518_vm11 }
 0xc48   :  { %v514_v33 = vsub.f32 1.0, %v513_v32 }
 0xc4a   :  { %v515_v34 = vmul.f32 %v1426_v31, %v514_v33 }
 0xc4c   :  { %v516_v35 = vadd.f32 %v1426_v31, %v515_v34 }
 0xc4e   :  { %v520_v37 = vsel %vm519_vm13, %v1426_v31, %v516_v35 }
 0xc4f   :  { %v525_v44 = vsel %vm522_vm14, %v524_v38, %v520_v37 }
 0xc50   :  { %v531_v47 = vmul.f32 %v529_v46, %v525_v44 }
 0xc95   :  { %v534_v41 = vpop.permute.xlu2 %533 }
 0xc96   :  { %v536_v45 = vmul.f32 %v534_v41, %v525_v44 }
 0xc98   :  { %538 = vrot.lane.b32.xlu0 %v536_v45, %s1511_s2 }
 0xd0a   :  { %v539_v49 = vpop.permute.xlu0 %538 }
 0xd0b   :  { %v541_v50 = vadd.f32 %v539_v49, %v531_v47 }
 0xd0d   :  { %1427 = vtanh.f32 %v541_v50  ;;  %v606_v18 = vrot.slane %v541_v50, 6 }
 0xd13   :  { %v1428_v56 = vpop.eup %1427 }
 0xd14   :  { %544 = vrot.lane.b32.xlu1 %v1428_v56, %s1510_s0 }
 0xd86   :  { %v545_v57 = vpop.permute.xlu1 %544 }
 0xd87   :  { %v1763_v58 = vmul.f32 %v545_v57, %v525_v44 }
 0xd89   :  { %v556_v59 = vrot.slane %v1763_v58, 2 }
 0xd8b   :  { %557 = vrot.lane.b32.xlu2 %v556_v59, %s1511_s2 }
 0xde5   :  { %v558_v60 = vpop.permute.xlu2 %557 }
 0xde6   :  { %1338 = vmatmul.msk.f32.vlgmr.msra.gmra.mxu1 %vm93_vm6, %v558_v60 }
 0xde7   :  { %1032 = vmatpush.msra.mxu1 %v1570_v10 }
 0xde9   :  { %1033 = vmatpush.msra.mxu1 %v1587_v14 }
 0xdeb   :  { %1034 = vmatpush.msra.mxu1 %v1596_v16 }
 0xded   :  { %1035 = vmatpush.msra.mxu1 %v1602_v17 }
 0xe63   :  { %v578_v61 = vpop.f32.mrf.mxu1 }
 0xe64   :  { %v582_v62 = vrot.slane %v578_v61, 4 }
 0xe66   :  { %v584_v63 = vadd.f32 %v582_v62, %v1662_v42 }
 0xe68   :  { %1429 = vtanh.f32 %v584_v63  ;;  %v1339_v1 = vmul.f32 -1.442695, %v584_v63 }
 0xe6a   :  { %1431 = vpow2.f32 %v1339_v1 }
 0xe6e   :  { %v1430_v0 = vpop.eup %1429 }
 0xe6f   :  { %610 = vrot.lane.b32.xlu0 %v1430_v0, %s1510_s0 }
 0xe70   :  { %v1432_v2 = vpop.eup %1431 }
 0xe71   :  { %v588_v3 = vadd.f32 1.0, %v1432_v2 }
 0xe73   :  { %1433 = vrcp.f32 %v588_v3  ;;  %v600_v8 = vand.u32 2147483648, %v588_v3  ;;  %vm594_vm0 = vweird.f32 %v588_v3  ;;  %v598_v9 = vand.u32 2147483647, %v588_v3 }
 0xe75   :  { %v601_v11 = vor.u32 1.1754944e-38, %v600_v8  ;;  %vm599_vm2 = vcmp.eq.f32.partialorder %v598_v9, 8.507059e+37 }
 0xe79   :  { %v1434_v4 = vpop.eup %1433 }
 0xe7a   :  { %v590_v53 = vmul.f32 %v1434_v4, %v588_v3  ;;  %vm595_vm15 = vweird.f32 %v1434_v4 }
 0xe7b   :  { %vm596_vm1 = vmor %vm594_vm0, %vm595_vm15 }
 0xe7c   :  { %v591_v5 = vsub.f32 1.0, %v590_v53 }
 0xe7e   :  { %v592_v6 = vmul.f32 %v1434_v4, %v591_v5 }
 0xe80   :  { %v593_v7 = vadd.f32 %v1434_v4, %v592_v6 }
 0xe82   :  { %v597_v42 = vsel %vm596_vm1, %v1434_v4, %v593_v7 }
 0xe83   :  { %v602_v13 = vsel %vm599_vm2, %v601_v11, %v597_v42 }
 0xe84   :  { %v608_v20 = vmul.f32 %v606_v18, %v602_v13 }
 0xee1   :  { %v611_v12 = vpop.permute.xlu0 %610 }
 0xee2   :  { %v613_v15 = vmul.f32 %v611_v12, %v602_v13 }
 0xee4   :  { %615 = vrot.lane.b32.xlu1 %v613_v15, %s1511_s2 }
 0xf56   :  { %v616_v21 = vpop.permute.xlu1 %615 }
 0xf57   :  { %v618_v22 = vadd.f32 %v616_v21, %v608_v20 }
 0xf59   :  { %1435 = vtanh.f32 %v618_v22  ;;  %v683_v50 = vrot.slane %v618_v22, 6 }
 0xf5f   :  { %v1436_v23 = vpop.eup %1435 }
 0xf60   :  { %621 = vrot.lane.b32.xlu2 %v1436_v23, %s1510_s0 }
 0xfba   :  { %v622_v24 = vpop.permute.xlu2 %621 }
 0xfbb   :  { %v1776_v25 = vmul.f32 %v622_v24, %v602_v13 }
 0xfbd   :  { %v633_v26 = vrot.slane %v1776_v25, 4 }
 0xfbf   :  { %634 = vrot.lane.b32.xlu0 %v633_v26, %s1511_s2 }
0x1031   :  { %v635_v27 = vpop.permute.xlu0 %634 }
0x1032   :  { %1342 = vmatmul.msk.f32.vlgmr.msra.gmra.mxu2 %vm93_vm6, %v635_v27 }
0x1033   :  { %1104 = vmatpush.msra.mxu2 %v1570_v10 }
0x1035   :  { %1105 = vmatpush.msra.mxu2 %v1587_v14 }
0x1037   :  { %1106 = vmatpush.msra.mxu2 %v1596_v16 }
0x1039   :  { %1107 = vmatpush.msra.mxu2 %v1602_v17 }
0x10b5   :  { %v655_v28 = vpop.f32.mrf.mxu2 }
0x10b6   :  { %v659_v29 = vrot.slane %v655_v28, 2 }
0x10b8   :  { %v661_v30 = vadd.f32 %v659_v29, %v1666_v43 }
0x10ba   :  { %1437 = vtanh.f32 %v661_v30  ;;  %v1343_v32 = vmul.f32 -1.442695, %v661_v30 }
0x10bc   :  { %1439 = vpow2.f32 %v1343_v32 }
0x10c0   :  { %v1438_v31 = vpop.eup %1437 }
0x10c1   :  { %687 = vrot.lane.b32.xlu1 %v1438_v31, %s1510_s0 }
0x10c2   :  { %v1440_v33 = vpop.eup %1439 }
0x10c3   :  { %v665_v34 = vadd.f32 1.0, %v1440_v33 }
0x10c5   :  { %1441 = vrcp.f32 %v665_v34  ;;  %v677_v41 = vand.u32 2147483648, %v665_v34  ;;  %vm671_vm4 = vweird.f32 %v665_v34  ;;  %v675_v44 = vand.u32 2147483647, %v665_v34 }
0x10c7   :  { %v678_v45 = vor.u32 1.1754944e-38, %v677_v41  ;;  %vm676_vm9 = vcmp.eq.f32.partialorder %v675_v44, 8.507059e+37 }
0x10cb   :  { %v1442_v35 = vpop.eup %1441 }
0x10cc   :  { %v667_v54 = vmul.f32 %v1442_v35, %v665_v34  ;;  %vm672_vm3 = vweird.f32 %v1442_v35 }
0x10cd   :  { %vm673_vm8 = vmor %vm671_vm4, %vm672_vm3 }
0x10ce   :  { %v668_v36 = vsub.f32 1.0, %v667_v54 }
0x10d0   :  { %v669_v37 = vmul.f32 %v1442_v35, %v668_v36 }
0x10d2   :  { %v670_v38 = vadd.f32 %v1442_v35, %v669_v37 }
0x10d4   :  { %v674_v43 = vsel %vm673_vm8, %v1442_v35, %v670_v38 }
0x10d5   :  { %v679_v47 = vsel %vm676_vm9, %v678_v45, %v674_v43 }
0x10d6   :  { %v685_v56 = vmul.f32 %v683_v50, %v679_v47 }
0x1133   :  { %v688_v46 = vpop.permute.xlu1 %687 }
0x1134   :  { %v690_v49 = vmul.f32 %v688_v46, %v679_v47 }
0x1136   :  { %692 = vrot.lane.b32.xlu2 %v690_v49, %s1511_s2 }
0x1190   :  { %v693_v57 = vpop.permute.xlu2 %692 }
0x1191   :  { %v695_v59 = vadd.f32 %v693_v57, %v685_v56 }
0x1193   :  { %1443 = vtanh.f32 %v695_v59  ;;  %v761_v22 = vrot.slane %v695_v59, 6 }
0x1199   :  { %v1444_v60 = vpop.eup %1443 }
0x119a   :  { %698 = vrot.lane.b32.xlu0 %v1444_v60, %s1510_s0 }
0x120c   :  { %v699_v61 = vpop.permute.xlu0 %698 }
0x120d   :  { %v1789_v62 = vmul.f32 %v699_v61, %v679_v47 }
0x120f   :  { %v714_v63 = vrot.slane %v1789_v62, 6 }
0x1211   :  { %715 = vrot.lane.b32.xlu1 %v714_v63, %s1511_s2 }
0x1283   :  { %v716_v0 = vpop.permute.xlu1 %715 }
0x1284   :  { %1346 = vmatmul.msk.f32.vlgmr.msra.gmra.mxu3 %vm93_vm6, %v716_v0 }
0x1285   :  { %1179 = vmatpush.msra.mxu3 %v1570_v10 }
0x1287   :  { %1180 = vmatpush.msra.mxu3 %v1587_v14 }
0x1289   :  { %1181 = vmatpush.msra.mxu3 %v1596_v16 }
0x128b   :  { %1182 = vmatpush.msra.mxu3 %v1602_v17 }
0x1307   :  { %v736_v1 = vpop.f32.mrf.mxu3 }
0x1308   :  { %v739_v2 = vadd.f32 %v736_v1, %v1654_v39 }
0x130a   :  { %1445 = vtanh.f32 %v739_v2  ;;  %v1347_v4 = vmul.f32 -1.442695, %v739_v2 }
0x130c   :  { %1447 = vpow2.f32 %v1347_v4 }
0x1310   :  { %v1446_v3 = vpop.eup %1445 }
0x1311   :  { %765 = vrot.lane.b32.xlu2 %v1446_v3, %s1510_s0 }
0x1312   :  { %v1448_v53 = vpop.eup %1447 }
0x1313   :  { %v743_v5 = vadd.f32 1.0, %v1448_v53 }
0x1315   :  { %1449 = vrcp.f32 %v743_v5  ;;  %v755_v11 = vand.u32 2147483648, %v743_v5  ;;  %vm749_vm11 = vweird.f32 %v743_v5  ;;  %v753_v12 = vand.u32 2147483647, %v743_v5 }
0x1317   :  { %v756_v15 = vor.u32 1.1754944e-38, %v755_v11  ;;  %vm754_vm13 = vcmp.eq.f32.partialorder %v753_v12, 8.507059e+37 }
0x131b   :  { %v1450_v6 = vpop.eup %1449 }
0x131c   :  { %v745_v7 = vmul.f32 %v1450_v6, %v743_v5  ;;  %vm750_vm10 = vweird.f32 %v1450_v6 }
0x131d   :  { %vm751_vm12 = vmor %vm749_vm11, %vm750_vm10 }
0x131e   :  { %v746_v8 = vsub.f32 1.0, %v745_v7 }
0x1320   :  { %v747_v9 = vmul.f32 %v1450_v6, %v746_v8 }
0x1322   :  { %v748_v42 = vadd.f32 %v1450_v6, %v747_v9 }
0x1324   :  { %v752_v13 = vsel %vm751_vm12, %v1450_v6, %v748_v42 }
0x1325   :  { %v757_v20 = vsel %vm754_vm13, %v756_v15, %v752_v13 }
0x1326   :  { %v763_v23 = vmul.f32 %v761_v22, %v757_v20 }
0x136b   :  { %v766_v18 = vpop.permute.xlu2 %765 }
0x136c   :  { %v768_v21 = vmul.f32 %v766_v18, %v757_v20 }
0x136e   :  { %770 = vrot.lane.b32.xlu0 %v768_v21, %s1511_s2 }
0x13e0   :  { %v771_v24 = vpop.permute.xlu0 %770 }
0x13e1   :  { %v773_v26 = vadd.f32 %v771_v24, %v763_v23 }
0x13e3   :  { %1451 = vtanh.f32 %v773_v26  ;;  %v836_v49 = vrot.slane %v773_v26, 6 }
0x13e9   :  { %v1452_v27 = vpop.eup %1451 }
0x13ea   :  { %776 = vrot.lane.b32.xlu1 %v1452_v27, %s1510_s0 }
0x145c   :  { %v777_v28 = vpop.permute.xlu1 %776 }
0x145d   :  { %v779_v29 = vmul.f32 %v777_v28, %v757_v20 }
0x145f   :  { %781 = vrot.lane.b32.xlu2 %v779_v29, %s1511_s2 }
0x14b9   :  { %v1803_v30 = vpop.permute.xlu2 %781 }
0x14ba   :  { %1350 = vmatmul.msk.f32.vlgmr.msrb.gmra.mxu1 %vm93_vm6, %v1803_v30 }
0x14bb   :  { %1254 = vmatpush.msrb.mxu1 %v1570_v10 }
0x14bd   :  { %1255 = vmatpush.msrb.mxu1 %v1587_v14 }
0x14bf   :  { %1256 = vmatpush.msrb.mxu1 %v1596_v16 }
0x14c1   :  { %1257 = vmatpush.msrb.mxu1 %v1602_v17 }
0x1537   :  { %v808_v31 = vpop.f32.mrf.mxu1 }
0x1538   :  { %v812_v32 = vrot.slane %v808_v31, 6 }
0x153a   :  { %v814_v33 = vadd.f32 %v812_v32, %v1658_v40 }
0x153c   :  { %1453 = vtanh.f32 %v814_v33  ;;  %v1351_v35 = vmul.f32 -1.442695, %v814_v33 }
0x153e   :  { %1455 = vpow2.f32 %v1351_v35 }
0x1542   :  { %v1454_v34 = vpop.eup %1453 }
0x1543   :  { %840 = vrot.lane.b32.xlu0 %v1454_v34, %s1510_s0 }
0x1544   :  { %v1456_v54 = vpop.eup %1455 }
0x1545   :  { %v818_v36 = vadd.f32 1.0, %v1456_v54 }
0x1547   :  { %1457 = vrcp.f32 %v818_v36  ;;  %v830_v17 = vand.u32 2147483648, %v818_v36  ;;  %vm824_vm15 = vweird.f32 %v818_v36  ;;  %v828_v41 = vand.u32 2147483647, %v818_v36 }
0x1549   :  { %v831_v43 = vor.u32 1.1754944e-38, %v830_v17  ;;  %vm829_vm1 = vcmp.eq.f32.partialorder %v828_v41, 8.507059e+37 }
0x154d   :  { %v1458_v10 = vpop.eup %1457 }
0x154e   :  { %v820_v37 = vmul.f32 %v1458_v10, %v818_v36  ;;  %vm825_vm14 = vweird.f32 %v1458_v10 }
0x154f   :  { %vm826_vm0 = vmor %vm824_vm15, %vm825_vm14 }
0x1550   :  { %v821_v14 = vsub.f32 1.0, %v820_v37 }
0x1552   :  { %v822_v38 = vmul.f32 %v1458_v10, %v821_v14 }
0x1554   :  { %v823_v16 = vadd.f32 %v1458_v10, %v822_v38 }
0x1556   :  { %v827_v44 = vsel %vm826_vm0, %v1458_v10, %v823_v16 }
0x1557   :  { %v832_v46 = vsel %vm829_vm1, %v831_v43, %v827_v44 }
0x1558   :  { %v838_v50 = vmul.f32 %v836_v49, %v832_v46 }
0x15b5   :  { %v841_v45 = vpop.permute.xlu0 %840 }
0x15b6   :  { %v843_v47 = vmul.f32 %v841_v45, %v832_v46 }
0x15b8   :  { %845 = vrot.lane.b32.xlu1 %v843_v47, %s1511_s2 }
0x162a   :  { %v846_v56 = vpop.permute.xlu1 %845 }
0x162b   :  { %v848_v57 = vadd.f32 %v846_v56, %v838_v50 }
0x162d   :  { %1459 = vtanh.f32 %v848_v57  ;;  %v911_v22 = vrot.slane %v848_v57, 6 }
0x1633   :  { %v1460_v59 = vpop.eup %1459 }
0x1634   :  { %851 = vrot.lane.b32.xlu2 %v1460_v59, %s1510_s0 }
0x168e   :  { %v852_v60 = vpop.permute.xlu2 %851 }
0x168f   :  { %v1815_v61 = vmul.f32 %v852_v60, %v832_v46 }
0x1691   :  { %v861_v63 = vrot.slane %v1815_v61, 2 }
0x1693   :  { %862 = vrot.lane.b32.xlu0 %v861_v63, %s1511_s2 }
0x1705   :  { %v863_v0 = vpop.permute.xlu0 %862 }
0x1706   :  { %1354 = vmatmul.msk.f32.vlgmr.msrb.gmra.mxu2 %vm93_vm6, %v863_v0 }
0x1789   :  { %v883_v1 = vpop.f32.mrf.mxu2 }
0x178a   :  { %v887_v2 = vrot.slane %v883_v1, 4 }
0x178c   :  { %v889_v3 = vadd.f32 %v887_v2, %v1654_v39 }
0x178e   :  { %1461 = vtanh.f32 %v889_v3  ;;  %v1355_v53 = vmul.f32 -1.442695, %v889_v3 }
0x1790   :  { %1463 = vpow2.f32 %v1355_v53 }
0x1794   :  { %v1462_v4 = vpop.eup %1461 }
0x1795   :  { %915 = vrot.lane.b32.xlu1 %v1462_v4, %s1510_s0 }
0x1796   :  { %v1464_v5 = vpop.eup %1463 }
0x1797   :  { %v893_v6 = vadd.f32 1.0, %v1464_v5 }
0x1799   :  { %1465 = vrcp.f32 %v893_v6  ;;  %v905_v12 = vand.u32 2147483648, %v893_v6  ;;  %vm899_vm3 = vweird.f32 %v893_v6  ;;  %v903_v13 = vand.u32 2147483647, %v893_v6 }
0x179b   :  { %v906_v15 = vor.u32 1.1754944e-38, %v905_v12  ;;  %vm904_vm8 = vcmp.eq.f32.partialorder %v903_v13, 8.507059e+37 }
0x179f   :  { %v1466_v7 = vpop.eup %1465 }
0x17a0   :  { %v895_v8 = vmul.f32 %v1466_v7, %v893_v6  ;;  %vm900_vm2 = vweird.f32 %v1466_v7 }
0x17a1   :  { %vm901_vm4 = vmor %vm899_vm3, %vm900_vm2 }
0x17a2   :  { %v896_v9 = vsub.f32 1.0, %v895_v8 }
0x17a4   :  { %v897_v42 = vmul.f32 %v1466_v7, %v896_v9 }
0x17a6   :  { %v898_v11 = vadd.f32 %v1466_v7, %v897_v42 }
0x17a8   :  { %v902_v39 = vsel %vm901_vm4, %v1466_v7, %v898_v11 }
0x17a9   :  { %v907_v20 = vsel %vm904_vm8, %v906_v15, %v902_v39 }
0x17aa   :  { %v913_v23 = vmul.f32 %v911_v22, %v907_v20 }
0x1807   :  { %v916_v18 = vpop.permute.xlu1 %915 }
0x1808   :  { %v918_v21 = vmul.f32 %v916_v18, %v907_v20 }
0x180a   :  { %920 = vrot.lane.b32.xlu2 %v918_v21, %s1511_s2 }
0x1864   :  { %v921_v24 = vpop.permute.xlu2 %920 }
0x1865   :  { %v923_v26 = vadd.f32 %v921_v24, %v913_v23 }
0x1867   :  { %1467 = vtanh.f32 %v923_v26  ;;  %v986_v50 = vrot.slane %v923_v26, 6 }
0x186d   :  { %v1468_v27 = vpop.eup %1467 }
0x186e   :  { %926 = vrot.lane.b32.xlu0 %v1468_v27, %s1510_s0 }
0x18e0   :  { %v927_v28 = vpop.permute.xlu0 %926 }
0x18e1   :  { %v1824_v29 = vmul.f32 %v927_v28, %v907_v20 }
0x18e3   :  { %v936_v31 = vrot.slane %v1824_v29, 4 }
0x18e5   :  { %937 = vrot.lane.b32.xlu1 %v936_v31, %s1511_s2 }
0x1957   :  { %v938_v32 = vpop.permute.xlu1 %937 }
0x1958   :  { %1358 = vmatmul.msk.f32.vlgmr.msrb.gmra.mxu3 %vm93_vm6, %v938_v32 }
0x19db   :  { %v958_v33 = vpop.f32.mrf.mxu3 }
0x19dc   :  { %v962_v34 = vrot.slane %v958_v33, 2 }
0x19de   :  { %v964_v35 = vadd.f32 %v962_v34, %v1658_v40 }
0x19e0   :  { %1469 = vtanh.f32 %v964_v35  ;;  %v1359_v36 = vmul.f32 -1.442695, %v964_v35 }
0x19e2   :  { %1471 = vpow2.f32 %v1359_v36 }
0x19e6   :  { %v1470_v54 = vpop.eup %1469 }
0x19e7   :  { %990 = vrot.lane.b32.xlu2 %v1470_v54, %s1510_s0 }
0x19e8   :  { %v1472_v10 = vpop.eup %1471 }
0x19e9   :  { %v968_v37 = vadd.f32 1.0, %v1472_v10 }
0x19eb   :  { %1473 = vrcp.f32 %v968_v37  ;;  %v980_v44 = vand.u32 2147483648, %v968_v37  ;;  %vm974_vm10 = vweird.f32 %v968_v37  ;;  %v978_v43 = vand.u32 2147483647, %v968_v37 }
0x19ed   :  { %v981_v45 = vor.u32 1.1754944e-38, %v980_v44  ;;  %vm979_vm12 = vcmp.eq.f32.partialorder %v978_v43, 8.507059e+37 }
0x19f1   :  { %v1474_v14 = vpop.eup %1473 }
0x19f2   :  { %v970_v38 = vmul.f32 %v1474_v14, %v968_v37  ;;  %vm975_vm9 = vweird.f32 %v1474_v14 }
0x19f3   :  { %vm976_vm11 = vmor %vm974_vm10, %vm975_vm9 }
0x19f4   :  { %v971_v16 = vsub.f32 1.0, %v970_v38 }
0x19f6   :  { %v972_v17 = vmul.f32 %v1474_v14, %v971_v16 }
0x19f8   :  { %v973_v41 = vadd.f32 %v1474_v14, %v972_v17 }
0x19fa   :  { %v977_v40 = vsel %vm976_vm11, %v1474_v14, %v973_v41 }
0x19fb   :  { %v982_v47 = vsel %vm979_vm12, %v981_v45, %v977_v40 }
0x19fc   :  { %v988_v56 = vmul.f32 %v986_v50, %v982_v47 }
0x1a41   :  { %v991_v46 = vpop.permute.xlu2 %990 }
0x1a42   :  { %v993_v49 = vmul.f32 %v991_v46, %v982_v47 }
0x1a44   :  { %995 = vrot.lane.b32.xlu0 %v993_v49, %s1511_s2 }
0x1ab6   :  { %v996_v57 = vpop.permute.xlu0 %995 }
0x1ab7   :  { %v998_v59 = vadd.f32 %v996_v57, %v988_v56 }
0x1ab9   :  { %1475 = vtanh.f32 %v998_v59  ;;  %v1062_v23 = vrot.slane %v998_v59, 6 }
0x1abf   :  { %v1476_v60 = vpop.eup %1475 }
0x1ac0   :  { %1001 = vrot.lane.b32.xlu1 %v1476_v60, %s1510_s0 }
0x1b32   :  { %v1002_v63 = vpop.permute.xlu1 %1001 }
0x1b33   :  { %v1833_v0 = vmul.f32 %v1002_v63, %v982_v47 }
0x1b35   :  { %v1015_v1 = vrot.slane %v1833_v0, 6 }
0x1b37   :  { %1016 = vrot.lane.b32.xlu2 %v1015_v1, %s1511_s2 }
0x1b91   :  { %v1017_v2 = vpop.permute.xlu2 %1016 }
0x1b92   :  { %1362 = vmatmul.msk.f32.vlgmr.msra.gmra.mxu1 %vm93_vm6, %v1017_v2 }
0x1c0f   :  { %v1037_v3 = vpop.f32.mrf.mxu1 }
0x1c10   :  { %v1040_v4 = vadd.f32 %v1037_v3, %v1670_v51 }
0x1c12   :  { %1477 = vtanh.f32 %v1040_v4  ;;  %v1363_v5 = vmul.f32 -1.442695, %v1040_v4 }
0x1c14   :  { %1479 = vpow2.f32 %v1363_v5 }
0x1c18   :  { %v1478_v53 = vpop.eup %1477 }
0x1c19   :  { %1066 = vrot.lane.b32.xlu0 %v1478_v53, %s1510_s0 }
0x1c1a   :  { %v1480_v6 = vpop.eup %1479 }
0x1c1b   :  { %v1044_v7 = vadd.f32 1.0, %v1480_v6 }
0x1c1d   :  { %1481 = vrcp.f32 %v1044_v7  ;;  %v1056_v13 = vand.u32 2147483648, %v1044_v7  ;;  %vm1050_vm14 = vweird.f32 %v1044_v7  ;;  %v1054_v39 = vand.u32 2147483647, %v1044_v7 }
0x1c1f   :  { %v1057_v18 = vor.u32 1.1754944e-38, %v1056_v13  ;;  %vm1055_vm0 = vcmp.eq.f32.partialorder %v1054_v39, 8.507059e+37 }
0x1c23   :  { %v1482_v8 = vpop.eup %1481 }
0x1c24   :  { %v1046_v9 = vmul.f32 %v1482_v8, %v1044_v7  ;;  %vm1051_vm13 = vweird.f32 %v1482_v8 }
0x1c25   :  { %vm1052_vm15 = vmor %vm1050_vm14, %vm1051_vm13 }
0x1c26   :  { %v1047_v42 = vsub.f32 1.0, %v1046_v9 }
0x1c28   :  { %v1048_v11 = vmul.f32 %v1482_v8, %v1047_v42 }
0x1c2a   :  { %v1049_v12 = vadd.f32 %v1482_v8, %v1048_v11 }
0x1c2c   :  { %v1053_v15 = vsel %vm1052_vm15, %v1482_v8, %v1049_v12  ;;  %vm238_vm15 = vcmask 125954  }
0x1c2d   :  { %v1058_v21 = vsel %vm1055_vm0, %v1057_v18, %v1053_v15  ;;  %vm241_vm0 = vcmask 257154  }
0x1c2e   :  { %v1064_v24 = vmul.f32 %v1062_v23, %v1058_v21 }
0x1c8b   :  { %v1067_v20 = vpop.permute.xlu0 %1066 }
0x1c8c   :  { %v1069_v22 = vmul.f32 %v1067_v20, %v1058_v21 }
0x1c8e   :  { %1071 = vrot.lane.b32.xlu1 %v1069_v22, %s1511_s2 }
0x1d00   :  { %v1072_v26 = vpop.permute.xlu1 %1071 }
0x1d01   :  { %v1074_v27 = vadd.f32 %v1072_v26, %v1064_v24 }
0x1d03   :  { %1483 = vtanh.f32 %v1074_v27  ;;  %v1137_v56 = vrot.slane %v1074_v27, 6 }
0x1d09   :  { %v1484_v28 = vpop.eup %1483 }
0x1d0a   :  { %1077 = vrot.lane.b32.xlu2 %v1484_v28, %s1510_s0 }
0x1d64   :  { %v1078_v31 = vpop.permute.xlu2 %1077 }
0x1d65   :  { %v1080_v32 = vmul.f32 %v1078_v31, %v1058_v21 }
0x1d67   :  { %1082 = vrot.lane.b32.xlu0 %v1080_v32, %s1511_s2 }
0x1dd9   :  { %v1843_v33 = vpop.permute.xlu0 %1082 }
0x1dda   :  { %1366 = vmatmul.msk.f32.vlgmr.msra.gmra.mxu2 %vm93_vm6, %v1843_v33 }
0x1e5d   :  { %v1109_v34 = vpop.f32.mrf.mxu2 }
0x1e5e   :  { %v1113_v35 = vrot.slane %v1109_v34, 6 }
0x1e60   :  { %v1115_v54 = vadd.f32 %v1113_v35, %v1674_v52 }
0x1e62   :  { %1485 = vtanh.f32 %v1115_v54  ;;  %v1367_v10 = vmul.f32 -1.442695, %v1115_v54 }
0x1e64   :  { %1487 = vpow2.f32 %v1367_v10 }
0x1e68   :  { %v1486_v36 = vpop.eup %1485 }
0x1e69   :  { %1141 = vrot.lane.b32.xlu1 %v1486_v36, %s1510_s0 }
0x1e6a   :  { %v1488_v37 = vpop.eup %1487 }
0x1e6b   :  { %v1119_v14 = vadd.f32 1.0, %v1488_v37 }
0x1e6d   :  { %1489 = vrcp.f32 %v1119_v14  ;;  %v1131_v43 = vand.u32 2147483648, %v1119_v14  ;;  %vm1125_vm2 = vweird.f32 %v1119_v14  ;;  %v1129_v40 = vand.u32 2147483647, %v1119_v14 }
0x1e6f   :  { %v1132_v46 = vor.u32 1.1754944e-38, %v1131_v43  ;;  %vm1130_vm4 = vcmp.eq.f32.partialorder %v1129_v40, 8.507059e+37 }
0x1e73   :  { %v1490_v38 = vpop.eup %1489 }
0x1e74   :  { %v1121_v16 = vmul.f32 %v1490_v38, %v1119_v14  ;;  %vm1126_vm1 = vweird.f32 %v1490_v38 }
0x1e75   :  { %vm1127_vm3 = vmor %vm1125_vm2, %vm1126_vm1  ;;  %vm317_vm1 = vcmask 128004   ;;  %vm320_vm2 = vcmask 259204  }
0x1e76   :  { %v1122_v17 = vsub.f32 1.0, %v1121_v16 }
0x1e78   :  { %v1123_v41 = vmul.f32 %v1490_v38, %v1122_v17 }
0x1e7a   :  { %v1124_v44 = vadd.f32 %v1490_v38, %v1123_v41 }
0x1e7c   :  { %v1128_v45 = vsel %vm1127_vm3, %v1490_v38, %v1124_v44  ;;  %vm396_vm3 = vcmask 130054  }
0x1e7d   :  { %v1133_v49 = vsel %vm1130_vm4, %v1132_v46, %v1128_v45  ;;  %vm399_vm4 = vcmask 261254  }
0x1e7e   :  { %v1139_v57 = vmul.f32 %v1137_v56, %v1133_v49 }
0x1edb   :  { %v1142_v47 = vpop.permute.xlu1 %1141 }
0x1edc   :  { %v1144_v50 = vmul.f32 %v1142_v47, %v1133_v49 }
0x1ede   :  { %1146 = vrot.lane.b32.xlu2 %v1144_v50, %s1511_s2 }
0x1f38   :  { %v1147_v59 = vpop.permute.xlu2 %1146 }
0x1f39   :  { %v1149_v60 = vadd.f32 %v1147_v59, %v1139_v57 }
0x1f3b   :  { %1491 = vtanh.f32 %v1149_v60  ;;  %v1212_v26 = vrot.slane %v1149_v60, 6 }
0x1f41   :  { %v1492_v63 = vpop.eup %1491 }
0x1f42   :  { %1152 = vrot.lane.b32.xlu0 %v1492_v63, %s1510_s0 }
0x1fb4   :  { %v1153_v1 = vpop.permute.xlu0 %1152 }
0x1fb5   :  { %v1155_v2 = vmul.f32 %v1153_v1, %v1133_v49 }
0x1fb7   :  { %v1162_v3 = vrot.slane %v1155_v2, 2 }
0x1fb9   :  { %1163 = vrot.lane.b32.xlu1 %v1162_v3, %s1511_s2 }
0x202b   :  { %v1164_v4 = vpop.permute.xlu1 %1163 }
0x202c   :  { %1370 = vmatmul.msk.f32.vlgmr.msra.gmra.mxu3 %vm93_vm6, %v1164_v4 }
0x20af   :  { %v1184_v53 = vpop.f32.mrf.mxu3 }
0x20b0   :  { %v1188_v5 = vrot.slane %v1184_v53, 4 }
0x20b2   :  { %v1190_v6 = vadd.f32 %v1188_v5, %v1670_v51 }
0x20b4   :  { %1493 = vtanh.f32 %v1190_v6  ;;  %v1371_v8 = vmul.f32 -1.442695, %v1190_v6 }
0x20b6   :  { %1495 = vpow2.f32 %v1371_v8 }
0x20ba   :  { %v1494_v7 = vpop.eup %1493 }
0x20bb   :  { %1216 = vrot.lane.b32.xlu2 %v1494_v7, %s1510_s0 }
0x20bc   :  { %v1496_v9 = vpop.eup %1495 }
0x20bd   :  { %v1194_v42 = vadd.f32 1.0, %v1496_v9 }
0x20bf   :  { %1497 = vrcp.f32 %v1194_v42  ;;  %v1206_v18 = vand.u32 2147483648, %v1194_v42  ;;  %vm1200_vm9 = vweird.f32 %v1194_v42  ;;  %v1204_v20 = vand.u32 2147483647, %v1194_v42 }
0x20c1   :  { %v1207_v21 = vor.u32 1.1754944e-38, %v1206_v18  ;;  %vm1205_vm11 = vcmp.eq.f32.partialorder %v1204_v20, 8.507059e+37 }
0x20c5   :  { %v1498_v11 = vpop.eup %1497 }
0x20c6   :  { %v1196_v12 = vmul.f32 %v1498_v11, %v1194_v42  ;;  %vm1201_vm8 = vweird.f32 %v1498_v11 }
0x20c7   :  { %vm1202_vm10 = vmor %vm1200_vm9, %vm1201_vm8 }
0x20c8   :  { %v1197_v13 = vsub.f32 1.0, %v1196_v12 }
0x20ca   :  { %v1198_v39 = vmul.f32 %v1498_v11, %v1197_v13 }
0x20cc   :  { %v1199_v15 = vadd.f32 %v1498_v11, %v1198_v39 }
0x20ce   :  { %v1203_v51 = vsel %vm1202_vm10, %v1498_v11, %v1199_v15 }
0x20cf   :  { %v1208_v23 = vsel %vm1205_vm11, %v1207_v21, %v1203_v51 }
0x20d0   :  { %v1214_v27 = vmul.f32 %v1212_v26, %v1208_v23 }
0x2115   :  { %v1217_v22 = vpop.permute.xlu2 %1216 }
0x2116   :  { %v1219_v24 = vmul.f32 %v1217_v22, %v1208_v23 }
0x2118   :  { %1221 = vrot.lane.b32.xlu0 %v1219_v24, %s1511_s2 }
0x218a   :  { %v1222_v28 = vpop.permute.xlu0 %1221 }
0x218b   :  { %v1224_v31 = vadd.f32 %v1222_v28, %v1214_v27 }
0x218d   :  { %1499 = vtanh.f32 %v1224_v31 }
0x2193   :  { %v1500_v32 = vpop.eup %1499 }
0x2194   :  { %1227 = vrot.lane.b32.xlu1 %v1500_v32, %s1510_s0 }
0x2206   :  { %v1228_v34 = vpop.permute.xlu1 %1227 }
0x2207   :  { %v1230_v35 = vmul.f32 %v1228_v34, %v1208_v23 }
0x2209   :  { %v1237_v54 = vrot.slane %v1230_v35, 4 }
0x220b   :  { %1238 = vrot.lane.b32.xlu2 %v1237_v54, %s1511_s2 }
0x2265   :  { %v1239_v36 = vpop.permute.xlu2 %1238 }
0x2266   :  { %1374 = vmatmul.msk.f32.vlgmr.msrb.gmra.mxu1 %vm93_vm6, %v1239_v36 }
0x22e3   :  { %v1259_v10 = vpop.f32.mrf.mxu1 }
0x22e4   :  { %v1263_v37 = vrot.slane %v1259_v10, 2 }
0x22e6   :  { %v1265_v14 = vadd.f32 %v1263_v37, %v1674_v52 }
0x22e8   :  { %1501 = vtanh.f32 %v1265_v14  ;;  %v1375_v16 = vmul.f32 -1.442695, %v1265_v14 }
0x22ea   :  { %1503 = vpow2.f32 %v1375_v16 }
0x22ee   :  { %v1502_v38 = vpop.eup %1501 }
0x22ef   :  { %1291 = vrot.lane.b32.xlu0 %v1502_v38, %s1510_s0 }
0x22f0   :  { %v1504_v17 = vpop.eup %1503 }
0x22f1   :  { %v1269_v41 = vadd.f32 1.0, %v1504_v17 }
0x22f3   :  { %1505 = vrcp.f32 %v1269_v41  ;;  %vm1275_vm12 = vweird.f32 %v1269_v41  ;;  %v1279_v46 = vand.u32 2147483647, %v1269_v41 }
0x22f5   :  { %vm1280_vm14 = vcmp.eq.f32.partialorder %v1279_v46, 8.507059e+37 }
0x22f7   :  { %234 = vrot.lane.b32.xlu0 %v1706_v48, %s1511_s2  ;;  %v1281_v48 = vand.u32 2147483648, %v1269_v41 }
0x22f9   :  { %v1506_v52 = vpop.eup %1505  ;;  %v1282_v47 = vor.u32 1.1754944e-38, %v1281_v48 }
0x22fa   :  { %v1271_v44 = vmul.f32 %v1506_v52, %v1269_v41  ;;  %vm1276_vm6 = vweird.f32 %v1506_v52 }
0x22fb   :  { %vm1277_vm13 = vmor %vm1275_vm12, %vm1276_vm6 }
0x22fc   :  { %v1272_v43 = vsub.f32 1.0, %v1271_v44 }
0x22fe   :  { %v1273_v40 = vmul.f32 %v1506_v52, %v1272_v43 }
0x22ff   :  { %549 = vrot.lane.b32.xlu0 %v1763_v58, %s1511_s2 }
0x2300   :  { %v1274_v45 = vadd.f32 %v1506_v52, %v1273_v40 }
0x2302   :  { %v1278_v58 = vsel %vm1277_vm13, %v1506_v52, %v1274_v45 }
0x2303   :  { %v1283_v49 = vsel %vm1280_vm14, %v1282_v47, %v1278_v58 }
0x2307   :  { %856 = vrot.lane.b32.xlu0 %v1815_v61, %s1511_s2 }
0x230f   :  { %1157 = vrot.lane.b32.xlu0 %v1155_v2, %s1511_s2 }
0x2361   :  { %v1292_v61 = vpop.permute.xlu0 %1291 }
0x2362   :  { %v1294_v50 = vmul.f32 %v1292_v61, %v1283_v49 }
0x2364   :  { %1296 = vrot.lane.b32.xlu1 %v1294_v50, %s1511_s2 }
0x2369   :  { %v235_v56 = vpop.permute.xlu0 %234 }
0x236a   :  { %1320 = vst.msk [vmem:[%s2004_s4] sm:$0xc] %vm238_vm15, %v235_v56 }
0x236b   :  { %1321 = vst.msk [vmem:[%s2004_s4 + $0x1a] sm:$0xc] %vm241_vm0, %v235_v56 }
0x236c   :  { %313 = vrot.lane.b32.xlu1 %v1719_v19, %s1511_s2  ;;  %v1287_v19 = vrot.slane %v1224_v31, 6 }
0x236e   :  { %v1289_v59 = vmul.f32 %v1287_v19, %v1283_v49 }
0x2371   :  { %v550_v57 = vpop.permute.xlu0 %549 }
0x2372   :  { %1336 = vst.msk [vmem:[%s2004_s4 + $0x8] sm:$0xc] %vm238_vm15, %v550_v57 }
0x2373   :  { %1337 = vst.msk [vmem:[%s2004_s4 + $0x12] sm:$0xc] %vm241_vm0, %v550_v57 }
0x2374   :  { %626 = vrot.lane.b32.xlu1 %v1776_v25, %s1511_s2 }
0x2379   :  { %v857_v60 = vpop.permute.xlu0 %856 }
0x237c   :  { %931 = vrot.lane.b32.xlu1 %v1824_v29, %s1511_s2 }
0x2381   :  { %v1158_v25 = vpop.permute.xlu0 %1157 }
0x2384   :  { %1232 = vrot.lane.b32.xlu1 %v1230_v35, %s1511_s2 }
0x23d6   :  { %v1297_v63 = vpop.permute.xlu1 %1296 }
0x23d7   :  { %v1299_v1 = vadd.f32 %v1297_v63, %v1289_v59 }
0x23d9   :  { %1507 = vtanh.f32 %v1299_v1 }
0x23de   :  { %v314_v2 = vpop.permute.xlu1 %313 }
0x23df   :  { %v1508_v3 = vpop.eup %1507  ;;  %1324 = vst.msk [vmem:[%s2004_s4] sm:$0x30] %vm317_vm1, %v314_v2 }
0x23e0   :  { %1325 = vst.msk [vmem:[%s2004_s4 + $0x16] sm:$0x30] %vm320_vm2, %v314_v2  ;;  %1302 = vrot.lane.b32.xlu2 %v1508_v3, %s1510_s0 }
0x23e1   :  { %1368 = vst.msk [vmem:[%s2004_s4 + $0x18] sm:$0xc] %vm238_vm15, %v1158_v25 }
0x23e2   :  { %1369 = vst.msk [vmem:[%s2004_s4 + $0x2] sm:$0xc] %vm241_vm0, %v1158_v25 }
0x23e6   :  { %v627_v29 = vpop.permute.xlu1 %626 }
0x23e7   :  { %1340 = vst.msk [vmem:[%s2004_s4 + $0x8] sm:$0x30] %vm317_vm1, %v627_v29 }
0x23e8   :  { %1341 = vst.msk [vmem:[%s2004_s4 + $0xe] sm:$0x30] %vm320_vm2, %v627_v29  ;;  %392 = vrot.lane.b32.xlu2 %v1732_v55, %s1511_s2 }
0x23e9   :  { %1352 = vst.msk [vmem:[%s2004_s4 + $0x10] sm:$0xc] %vm238_vm15, %v857_v60 }
0x23ea   :  { %1353 = vst.msk [vmem:[%s2004_s4 + $0xa] sm:$0xc] %vm241_vm0, %v857_v60 }
0x23ee   :  { %v932_v4 = vpop.permute.xlu1 %931 }
0x23ef   :  { %1356 = vst.msk [vmem:[%s2004_s4 + $0x10] sm:$0x30] %vm317_vm1, %v932_v4 }
0x23f0   :  { %1357 = vst.msk [vmem:[%s2004_s4 + $0x6] sm:$0x30] %vm320_vm2, %v932_v4  ;;  %703 = vrot.lane.b32.xlu2 %v1789_v62, %s1511_s2 }
0x23f6   :  { %v1233_v55 = vpop.permute.xlu1 %1232 }
0x23f7   :  { %1372 = vst.msk [vmem:[%s2004_s4 + $0x18] sm:$0x30] %vm317_vm1, %v1233_v55 }
0x23f8   :  { %1373 = vst.msk [vmem:[%s2004_s4 - $0x2] sm:$0x30] %vm320_vm2, %v1233_v55  ;;  %1006 = vrot.lane.b32.xlu2 %v1833_v0, %s1511_s2 }
0x243a   :  { %v1303_v53 = vpop.permute.xlu2 %1302 }
0x243b   :  { %v1305_v5 = vmul.f32 %v1303_v53, %v1283_v49 }
0x243d   :  { %1307 = vrot.lane.b32.xlu2 %v1305_v5, %s1511_s2 }
0x2442   :  { %v393_v62 = vpop.permute.xlu2 %392 }
0x2443   :  { %1328 = vst.msk [vmem:[%s2004_s4] sm:$0xc0] %vm396_vm3, %v393_v62 }
0x2444   :  { %1329 = vst.msk [vmem:[%s2004_s4 + $0x12] sm:$0xc0] %vm399_vm4, %v393_v62 }
0x2445   :  { %1364 = vst.msk [vmem:[%s2004_s4 + $0x18] sm:$0x3] %vm159_vm5, %v1843_v33 }
0x2446   :  { %1365 = vst.msk [vmem:[%s2004_s4 + $0x6] sm:$0x3] %vm162_vm7, %v1843_v33 }
0x244a   :  { %v704_v0 = vpop.permute.xlu2 %703 }
0x244b   :  { %1344 = vst.msk [vmem:[%s2004_s4 + $0x8] sm:$0xc0] %vm396_vm3, %v704_v0 }
0x244c   :  { %1345 = vst.msk [vmem:[%s2004_s4 + $0xa] sm:$0xc0] %vm399_vm4, %v704_v0 }
0x244d   :  { %1348 = vst.msk [vmem:[%s2004_s4 + $0x10] sm:$0x3] %vm159_vm5, %v1803_v30 }
0x244e   :  { %1349 = vst.msk [vmem:[%s2004_s4 + $0xe] sm:$0x3] %vm162_vm7, %v1803_v30 }
0x2452   :  { %v1007_v33 = vpop.permute.xlu2 %1006 }
0x2453   :  { %1360 = vst.msk [vmem:[%s2004_s4 + $0x10] sm:$0xc0] %vm396_vm3, %v1007_v33 }
0x2454   :  { %1361 = vst.msk [vmem:[%s2004_s4 + $0x2] sm:$0xc0] %vm399_vm4, %v1007_v33 }
0x2497   :  { %v1308_v6 = vpop.permute.xlu2 %1307 }
0x2498   :  { %1376 = vst.msk [vmem:[%s2004_s4 + $0x18] sm:$0xc0] %vm396_vm3, %v1308_v6 }
0x2499   :  { %1311 = vst.msk [vmem:[%s2004_s4 - $0x6] sm:$0xc0] %vm399_vm4, %v1308_v6 }

// kernel: bidaf_forward.13
= control target key start
LH: loop header
LB: loop body
LE: loop exit
PB: predicated region body
PF: predicated region fallthrough
CT: control target
= control target key end

     0   :  { %s570_s21 = smov 0   ;;  %s610_s0 = inlined_call_operand.vmem [shape: f32[2,16,128], index: 0, kind: input, shape index: {}]   ;;  %s611_s1 = inlined_call_operand.vmem [shape: f32[2,16,32], index: 1, kind: input, shape index: {}]   ;;  %s612_s2 = inlined_call_operand.vmem [shape: f32[2,16,32], index: 2, kind: input, shape index: {}]   ;;  %s613_s3 = inlined_call_operand.vmem [shape: s32[2,1,16], index: 3, kind: input, shape index: {}]   ;;  %s614_s4 = inlined_call_operand.vmem [shape: f32[2,128], index: 4, kind: input, shape index: {}]   ;;  %s615_s5 = inlined_call_operand.vmem [shape: f32[2,64], index: 5, kind: input, shape index: {}]   ;;  %s616_s6 = inlined_call_operand.vmem [shape: f32[2,2,16], index: 6, kind: output, shape index: {}]  }
   0x1 LB: > { %s491_s22 = sadd.s32 4294967295, %s531_s21   ;;  %p495_p0 = scmp.ge.s32.totalorder %s531_s21, 1  ;;  %s531_s21 = sphi %s570_s21, %s16_s21  }
   0x2   : > { %p240_p1 = scmp.lt.s32.totalorder %s531_s21, 3 }
   0x4   : > { %p241_p2 = pnand %p495_p0, %p240_p1 }
   0x5   : > { %p282_p3 = scmp.lt.s32.totalorder (!%p241_p2), %s491_s22, 1  ;;  %s533_s27 = smov (!%p241_p2), 32  }
   0x6   : > { %244 = sbr.rel (%p241_p2) target bundleno = 536 (0x218), region = 44 }
   0xb   : > { %s618_s22 = smov (!%p282_p3, %s491_s22), 1  ;;  %v311_v4 = vld [vmem:[%s614_s4] sm:$0x3]  ;;  %vm321_vm0 = vcmask 261120   ;;  %vm324_vm1 = vcmask 523264   ;;  %v534_v13 = vmov 0  }
   0xc   : > { %s508_s23 = sshll.u32 %s618_s22, 4  ;;  %v312_v11 = vld [vmem:[%s615_s5] sm:$0x3]  ;;  %s299_s16 = scalar_lea.vmem %s613_s3, %s618_s22  ;;  %vm379_vm4 = vcmask 123904  }
   0xd   : > { %s296_s26 = scalar_lea.vmem %s612_s2, %s508_s23  ;;  %s286_s30 = scalar_lea.vmem %s610_s0, %s508_s23  ;;  %v310_v12 = vld [vmem:[%s299_s16] sm:$0x1] }
   0xe   : > { %v309_v0 = vld [vmem:[%s296_s26 + $0x8] sm:$0xff]  ;;  %v308_v1 = vld [vmem:[%s296_s26] sm:$0xff]  ;;  %s291_s11 = scalar_lea.vmem %s611_s1, %s508_s23  ;;  %vm374_vm2 = vcmp.eq.s32.totalorder %v310_v12, 0  ;;  %s502_s17 = sshll.u32 %s618_s22, 1 }
   0xf   : > { %317 = vrot.lane.b32.xlu0 %v309_v0, %s533_s27  ;;  %v305_v2 = vld [vmem:[%s286_s30 + $0x8] sm:$0xff]  ;;  %v304_v3 = vld [vmem:[%s286_s30] sm:$0xff]  ;;  %v375_v14 = vsel %vm374_vm2, 1, %v534_v13  ;;  %s303_s20 = scalar_lea.vmem %s616_s6, %s502_s17 }
  0x10   : > { %368 = vmatpush.xpose.msra.mxu1 %v305_v2  ;;  %v307_v5 = vld [vmem:[%s291_s11 + $0x8] sm:$0xff]  ;;  %v306_v8 = vld [vmem:[%s291_s11] sm:$0xff]  ;;  %v376_v15 = vperm.slane %v375_v14, 0 }
  0x12   : > { %vm377_vm3 = vcmp.eq.s32.totalorder %v376_v15, 1 }
  0x14   : > { %369 = vmatpush.xpose.msra.mxu1 %v304_v3 }
  0x17   : > { %315 = vrot.lane.b32.xlu0 %v308_v1, %s533_s27  ;;  %370 = vmatmul.f32.vlgmr.msra.gmra.mxu1 %v311_v4 }
  0x81   : > { %v318_v6 = vpop.permute.xlu0 %317 }
  0x82   : > { %v323_v7 = vsel %vm321_vm0, %v307_v5, %v318_v6 }
  0x83   : > { %503 = vmatpush.xpose.msk.msra.mxu0 %vm324_vm1, %v323_v7 }
  0x89   : > { %v316_v9 = vpop.permute.xlu0 %315 }
  0x8a   : > { %v322_v10 = vsel %vm321_vm0, %v306_v8, %v316_v9 }
  0x8b   : > { %504 = vmatpush.xpose.msk.msra.mxu0 %vm324_vm1, %v322_v10 }
  0x8e   : > { %505 = vmatmul.msk.f32.vlgmr.msra.gmra.mxu0 %vm324_vm1, %v312_v11 }
  0x94   : > { %v371_v16 = vpop.f32.mrf.mxu1 }
 0x10b   : > { %v351_v17 = vpop.f32.mrf.mxu0 }
 0x10c   : > { %v372_v18 = vadd.f32 %v371_v16, %v351_v17 }
 0x10e   : > { %v378_v19 = vsel %vm377_vm3, -1e+30, %v372_v18 }
 0x10f   : > { %v380_v20 = vsel %vm379_vm4, %v378_v19, -inf }
 0x110   : > { %381 = vmax.xlane.f32.xlu1 %v380_v20 }
 0x183   : > { %v382_v21 = vpop.xlane.xlu1 %381 }
 0x184   : > { %v383_v22 = vsub.f32 %v378_v19, %v382_v21 }
 0x186   : > { %v384_v23 = vmul.f32 1.442695, %v383_v22 }
 0x188   : > { %521 = vpow2.f32 %v384_v23 }
 0x18e   : > { %v522_v24 = vpop.eup %521 }
 0x18f   : > { %v386_v25 = vsel %vm379_vm4, %v522_v24, 0.0 }
 0x190   : > { %387 = vadd.xlane.f32.xlu1 %v386_v25 }
 0x203   : > { %v388_v26 = vpop.xlane.xlu1 %387 }
 0x204   : > { %523 = vrcp.f32 %v388_v26  ;;  %v400_v30 = vand.u32 2147483648, %v388_v26  ;;  %v398_v32 = vand.u32 2147483647, %v388_v26  ;;  %vm394_vm6 = vweird.f32 %v388_v26 }
 0x206   : > { %v401_v34 = vor.u32 1.1754944e-38, %v400_v30  ;;  %vm399_vm8 = vcmp.eq.f32.partialorder %v398_v32, 8.507059e+37 }
 0x20a   : > { %v524_v27 = vpop.eup %523 }
 0x20b   : > { %v390_v28 = vmul.f32 %v524_v27, %v388_v26  ;;  %vm395_vm5 = vweird.f32 %v524_v27 }
 0x20c   : > { %vm396_vm7 = vmor %vm394_vm6, %vm395_vm5 }
 0x20d   : > { %v391_v29 = vsub.f32 1.0, %v390_v28 }
 0x20f   : > { %v392_v31 = vmul.f32 %v524_v27, %v391_v29 }
 0x211   : > { %v393_v33 = vadd.f32 %v524_v27, %v392_v31 }
 0x213   : > { %v397_v35 = vsel %vm396_vm7, %v524_v27, %v393_v33 }
 0x214   : > { %v402_v36 = vsel %vm399_vm8, %v401_v34, %v397_v35 }
 0x215   : > { %v403_v37 = vmul.f32 %v522_v24, %v402_v36 }
 0x217   : > { %404 = vst.msk [vmem:[%s303_s20] sm:$0x3] %vm379_vm4, %v403_v37 }
 0x218 PF: > { %s16_s21 = sadd.s32 1, %s531_s21  }
 0x219   : > { %p13_p4 = scmp.ge.s32.totalorder %s16_s21, 4  }
 0x21b   :  { %15 = sbr.rel (!%p13_p4) target bundleno = 1 (0x1), region = 83 }

</bundles_post_ra>
